<compile_context>
chip_gen: v7x
topology: tpu7x:2x2x1
jax: 0.10.0
libtpu: 0.0.40
codegen_flags: <defaults>
</compile_context>

<pallas_src>
import math
import functools

import jax
import jax.numpy as jnp
from jax.experimental import pallas as pl
from jax.experimental.pallas import tpu as pltpu

# Set to jnp.bfloat16 to feed the MXU bf16 operands (f32 accumulation is kept
# via preferred_element_type) for ~2x matmul throughput on v6e/v7x.  Default
# f32 preserves parity with the PyTorch (f32) reference.
MATMUL_INPUT_DTYPE = jnp.float32

ROW_BLOCK = 512                  # row tile: near-roofline, fits VMEM on v5e/v6e/v7x
ATTN_HEAD_BLOCK = 64             # (batch*head) slices per attention grid step
VMEM_LIMIT_BYTES = 32 * 1024 * 1024


def _cparams():
    return pltpu.CompilerParams(dimension_semantics=("parallel",),
                                vmem_limit_bytes=VMEM_LIMIT_BYTES)


def _row_tile(m):
    return m if m <= ROW_BLOCK else ROW_BLOCK


def _divisor_tile(n, target):
    """Largest divisor of n that is <= target (trace-time Python)."""
    t = min(n, target)
    while n % t:
        t -= 1
    return t


# -----------------------------------------------------------------------------
# In-kernel math helpers (only ops with guaranteed Mosaic lowerings).
# -----------------------------------------------------------------------------
def _sigmoid(x):
    # numerically stable logistic via tanh
    return 0.5 * (jnp.tanh(0.5 * x) + 1.0)


def _erf(x):
    # Abramowitz & Stegun 7.1.26, |error| <= 1.5e-7 -> f32-exact erf without
    # relying on a lax.erf Mosaic lowering.
    ax = jnp.abs(x)
    t = 1.0 / (1.0 + 0.3275911 * ax)
    poly = t * (0.254829592 + t * (-0.284496736 + t * (1.421413741
             + t * (-1.453152027 + t * 1.061405429))))
    y = 1.0 - poly * jnp.exp(-ax * ax)
    return jnp.where(x < 0.0, -y, y)


def _gelu_exact(x):
    return 0.5 * x * (1.0 + _erf(x * (1.0 / math.sqrt(2.0))))


def _apply_act(y, act):
    if act == "relu":
        return jnp.maximum(y, 0.0)
    if act == "gelu":
        return _gelu_exact(y)
    if act == "silu":
        return y * _sigmoid(y)
    return y


def _mm(a, b):
    dt = MATMUL_INPUT_DTYPE
    return jnp.dot(a.astype(dt), b.astype(dt), preferred_element_type=jnp.float32)


# -----------------------------------------------------------------------------
# Pallas kernels
# -----------------------------------------------------------------------------
def _dense_kernel(x_ref, w_ref, b_ref, o_ref, *, act):
    y = _mm(x_ref[...], w_ref[...]) + b_ref[...]
    o_ref[...] = _apply_act(y, act).astype(o_ref.dtype)


def dense(x2d, w_t, b, act="none"):
    """y = act(x2d @ w_t + b); w_t is (Kin, N), b is (1, N). Row-tiled."""
    M, Kin = x2d.shape
    N = w_t.shape[1]
    tm = _row_tile(M)
    row = lambda i: (i, 0)
    full = lambda i: (0, 0)
    return pl.pallas_call(
        functools.partial(_dense_kernel, act=act),
        out_shape=jax.ShapeDtypeStruct((M, N), jnp.float32),
        grid=(pl.cdiv(M, tm),),
        in_specs=[pl.BlockSpec((tm, Kin), row),
                  pl.BlockSpec((Kin, N), full),
                  pl.BlockSpec((1, N), full)],
        out_specs=pl.BlockSpec((tm, N), row),
        compiler_params=_cparams(),
    )(x2d, w_t, b)


def _mlp_kernel(x_ref, w1_ref, b1_ref, w2_ref, b2_ref, o_ref, *, act):
    # fused: (x @ w1 + b1) -> act -> (@ w2 + b2); keeps the hidden slab in VMEM
    h = _apply_act(_mm(x_ref[...], w1_ref[...]) + b1_ref[...], act)
    o_ref[...] = (_mm(h, w2_ref[...]) + b2_ref[...]).astype(o_ref.dtype)


def mlp(x2d, w1_t, b1, w2_t, b2, act):
    M, Kin = x2d.shape
    H = w1_t.shape[1]
    N = w2_t.shape[1]
    tm = _row_tile(M)
    row = lambda i: (i, 0)
    full = lambda i: (0, 0)
    return pl.pallas_call(
        functools.partial(_mlp_kernel, act=act),
        out_shape=jax.ShapeDtypeStruct((M, N), jnp.float32),
        grid=(pl.cdiv(M, tm),),
        in_specs=[pl.BlockSpec((tm, Kin), row),
                  pl.BlockSpec((Kin, H), full),
                  pl.BlockSpec((1, H), full),
                  pl.BlockSpec((H, N), full),
                  pl.BlockSpec((1, N), full)],
        out_specs=pl.BlockSpec((tm, N), row),
        compiler_params=_cparams(),
    )(x2d, w1_t, b1, w2_t, b2)


def _attn_kernel(q_ref, k_ref, v_ref, o_ref, *, scale):
    dt = MATMUL_INPUT_DTYPE
    q = q_ref[...].astype(dt)
    k = k_ref[...].astype(dt)
    v = v_ref[...].astype(dt)
    # batched scores, no explicit transpose (contraction on the last dims)
    s = jnp.einsum("gsd,gtd->gst", q, k,
                   preferred_element_type=jnp.float32) * scale
    m = jnp.max(s, axis=-1, keepdims=True)
    p = jnp.exp(s - m)
    denom = jnp.sum(p, axis=-1, keepdims=True)
    p = p * pl.reciprocal(denom, approx=True)          # divide -> EUP slot
    o = jnp.einsum("gst,gtd->gsd", p.astype(dt), v,
                   preferred_element_type=jnp.float32)
    o_ref[...] = o.astype(o_ref.dtype)


def attention(q, k, v):
    """q, k, v: (BH, S, Dh) -> (BH, S, Dh); softmax attention per batch*head,
    batched over blocks of heads instead of one tiny head per grid step."""
    BH, S, Dh = q.shape
    g = _divisor_tile(BH, ATTN_HEAD_BLOCK)
    spec = pl.BlockSpec((g, S, Dh), lambda i: (i, 0, 0))
    return pl.pallas_call(
        functools.partial(_attn_kernel, scale=1.0 / math.sqrt(Dh)),
        out_shape=jax.ShapeDtypeStruct((BH, S, Dh), jnp.float32),
        grid=(BH // g,),
        in_specs=[spec, spec, spec],
        out_specs=spec,
        compiler_params=_cparams(),
    )(q, k, v)


def _add_ln_kernel(x_ref, r_ref, g_ref, b_ref, o_ref, *, eps):
    y = x_ref[...] + r_ref[...]
    mu = jnp.mean(y, axis=-1, keepdims=True)
    var = jnp.mean(y * y, axis=-1, keepdims=True) - mu * mu     # one-pass variance
    o_ref[...] = ((y - mu) * jax.lax.rsqrt(var + eps)) * g_ref[...] + b_ref[...]


def add_layernorm(x2d, r2d, gamma, beta, eps=1e-5):
    """LayerNorm(x + r) over the last dim (torch post-norm residual)."""
    M, C = x2d.shape
    tm = _row_tile(M)
    row = lambda i: (i, 0)
    full = lambda i: (0, 0)
    return pl.pallas_call(
        functools.partial(_add_ln_kernel, eps=eps),
        out_shape=jax.ShapeDtypeStruct((M, C), jnp.float32),
        grid=(pl.cdiv(M, tm),),
        in_specs=[pl.BlockSpec((tm, C), row),
                  pl.BlockSpec((tm, C), row),
                  pl.BlockSpec((1, C), full),
                  pl.BlockSpec((1, C), full)],
        out_specs=pl.BlockSpec((tm, C), row),
        compiler_params=_cparams(),
    )(x2d, r2d, gamma, beta)


def _tail_kernel(y_ref, c_ref, x_ref, s_ref,
                 wm_ref, bm_ref, wc_ref, bc_ref, wo_ref, bo_ref,
                 ox_ref, os_ref, *, C):
    # mid projection + cond projection + gate + output projection + residual
    # add + skip accumulation, all on one row tile (128-lane-dense matmuls).
    mid = _mm(y_ref[...], wm_ref[...]) + bm_ref[...]            # (tm, 2C)
    cnd = _mm(c_ref[...], wc_ref[...]) + bc_ref[...]            # (tm, 2C)
    s = mid + cnd
    z = _sigmoid(s[:, :C]) * jnp.tanh(s[:, C:])                 # (tm, C)
    proj = _mm(z, wo_ref[...]) + bo_ref[...]                    # (tm, 2C)
    inv_sqrt2 = 1.0 / math.sqrt(2.0)
    ox_ref[...] = ((x_ref[...] + proj[:, :C]) * inv_sqrt2).astype(ox_ref.dtype)
    os_ref[...] = (s_ref[...] + proj[:, C:]).astype(os_ref.dtype)


def residual_tail(y_rows, cond_rows, x_rows, skip_rows, p):
    M, C = y_rows.shape
    side = cond_rows.shape[1]
    tm = _row_tile(M)
    row = lambda i: (i, 0)
    full = lambda i: (0, 0)
    return pl.pallas_call(
        functools.partial(_tail_kernel, C=C),
        out_shape=(jax.ShapeDtypeStruct((M, C), jnp.float32),
                   jax.ShapeDtypeStruct((M, C), jnp.float32)),
        grid=(pl.cdiv(M, tm),),
        in_specs=[pl.BlockSpec((tm, C), row),
                  pl.BlockSpec((tm, side), row),
                  pl.BlockSpec((tm, C), row),
                  pl.BlockSpec((tm, C), row),
                  pl.BlockSpec((C, 2 * C), full),
                  pl.BlockSpec((1, 2 * C), full),
                  pl.BlockSpec((side, 2 * C), full),
                  pl.BlockSpec((1, 2 * C), full),
                  pl.BlockSpec((C, 2 * C), full),
                  pl.BlockSpec((1, 2 * C), full)],
        out_specs=(pl.BlockSpec((tm, C), row),
                   pl.BlockSpec((tm, C), row)),
        compiler_params=_cparams(),
    )(y_rows, cond_rows, x_rows, skip_rows,
      p["mid_wT"], p["mid_b"], p["cond_wT"], p["cond_b"],
      p["outp_wT"], p["outp_b"])


# -----------------------------------------------------------------------------
# Glue: transformer encoder layer, residual block, top-level forward
# -----------------------------------------------------------------------------
def transformer_layer(x, p, nheads):
    """PyTorch TransformerEncoderLayer (post-norm, exact GELU, eval). x: (N, S, C)."""
    N, S, C = x.shape
    H = nheads
    Dh = C // H
    xf = x.reshape(N * S, C)

    qkv = dense(xf, p["in_wT"], p["in_b"])                       # (N*S, 3C)
    q, k, v = qkv[:, :C], qkv[:, C:2 * C], qkv[:, 2 * C:]

    # TODO(synk): head split/merge stays as XLA transposes; a fully fused
    # QKV+attention+out-proj kernel (in-kernel head reshape) is left out.
    def split_heads(t):
        return t.reshape(N, S, H, Dh).transpose(0, 2, 1, 3).reshape(N * H, S, Dh)

    oh = attention(split_heads(q), split_heads(k), split_heads(v))
    o = oh.reshape(N, H, S, Dh).transpose(0, 2, 1, 3).reshape(N * S, C)
    attn_out = dense(o, p["out_wT"], p["out_b"])

    h = add_layernorm(xf, attn_out, p["ln1_g"], p["ln1_b"])      # norm1(x + attn)
    ff = mlp(h, p["lin1_wT"], p["lin1_b"], p["lin2_wT"], p["lin2_b"], act="gelu")
    out = add_layernorm(h, ff, p["ln2_g"], p["ln2_b"])           # norm2(h + ff)
    return out.reshape(N, S, C)


def residual_block(x_cl, cond_rows, demb, skip_rows, p, nheads):
    """x_cl: (B, K, L, C) channel-last; cond_rows/skip_rows: (B*K*L, *)."""
    B, K, L, C = x_cl.shape
    M = B * K * L

    # diffusion projection: (B, demb) x (demb, C) — tiny, plain JAX.
    d = demb @ p["diff_wT"] + p["diff_b"]                        # (B, C)
    y = x_cl + d[:, None, None, :]

    if L != 1:   # time transformer: sequences over L (pure reshape, no transpose)
        y = transformer_layer(y.reshape(B * K, L, C), p["time"], nheads)
        y = y.reshape(B, K, L, C)
    if K != 1:   # feature transformer: sequences over K
        yf = y.transpose(0, 2, 1, 3).reshape(B * L, K, C)
        yf = transformer_layer(yf, p["feat"], nheads)
        y = yf.reshape(B, L, K, C).transpose(0, 2, 1, 3)

    new_x_rows, new_skip_rows = residual_tail(
        y.reshape(M, C), cond_rows, x_cl.reshape(M, C), skip_rows, p)
    return new_x_rows.reshape(B, K, L, C), new_skip_rows


def diffusion_embedding(params, diffusion_step):
    # table gather + two (B, demb) projections: plain JAX (too small for kernels)
    x = params["emb_table"][diffusion_step]
    x = jax.nn.silu(x @ params["proj1_wT"] + params["proj1_b"])
    x = jax.nn.silu(x @ params["proj2_wT"] + params["proj2_b"])
    return x


def diff_csdi_forward(params, x, cond_info, diffusion_step, cfg):
    B, inputdim, K, L = x.shape
    C = cfg["channels"]
    M = B * K * L

    # one-time NCHW -> channel-last relayout (cond is reused by every block)
    x_rows = x.transpose(0, 2, 3, 1).reshape(M, inputdim).astype(jnp.float32)
    cond_rows = cond_info.transpose(0, 2, 3, 1).reshape(M, -1).astype(jnp.float32)

    h = dense(x_rows, params["inp_wT"], params["inp_b"], act="relu")     # (M, C)
    h = h.reshape(B, K, L, C)

    demb = diffusion_embedding(params, diffusion_step)                   # (B, demb)

    skip_rows = jnp.zeros((M, C), jnp.float32)
    for lp in params["layers"]:
        h, skip_rows = residual_block(h, cond_rows, demb, skip_rows, lp,
                                      cfg["nheads"])

    s = skip_rows * (1.0 / math.sqrt(len(params["layers"])))
    out = mlp(s, params["out1_wT"], params["out1_b"],
              params["out2_wT"], params["out2_b"], act="relu")           # (M, 1)
    return out.reshape(B, K, L)


# -----------------------------------------------------------------------------
# Deterministic synthetic parameter initialization (weights stored transposed)
# -----------------------------------------------------------------------------
def _linear(key, out_dim, in_dim):
    kw, kb = jax.random.split(key)
    w = jax.random.normal(kw, (out_dim, in_dim), jnp.float32) / math.sqrt(in_dim)
    b = jax.random.normal(kb, (out_dim,), jnp.float32) * 0.01
    return w.T, b.reshape(1, out_dim)        # pre-transposed / pre-reshaped


def init_trans_params(key, C, dff=64):
    ks = jax.random.split(key, 4)
    in_wT, in_b = _linear(ks[0], 3 * C, C)
    out_wT, out_b = _linear(ks[1], C, C)
    lin1_wT, lin1_b = _linear(ks[2], dff, C)
    lin2_wT, lin2_b = _linear(ks[3], C, dff)
    return dict(in_wT=in_wT, in_b=in_b, out_wT=out_wT, out_b=out_b,
                lin1_wT=lin1_wT, lin1_b=lin1_b, lin2_wT=lin2_wT, lin2_b=lin2_b,
                ln1_g=jnp.ones((1, C), jnp.float32),
                ln1_b=jnp.zeros((1, C), jnp.float32),
                ln2_g=jnp.ones((1, C), jnp.float32),
                ln2_b=jnp.zeros((1, C), jnp.float32))


def init_resblock_params(key, side_dim, C, demb):
    ks = jax.random.split(key, 6)
    diff_wT, diff_b = _linear(ks[0], C, demb)
    cond_wT, cond_b = _linear(ks[1], 2 * C, side_dim)
    mid_wT, mid_b = _linear(ks[2], 2 * C, C)
    outp_wT, outp_b = _linear(ks[3], 2 * C, C)
    return dict(diff_wT=diff_wT, diff_b=diff_b, cond_wT=cond_wT, cond_b=cond_b,
                mid_wT=mid_wT, mid_b=mid_b, outp_wT=outp_wT, outp_b=outp_b,
                time=init_trans_params(ks[4], C),
                feat=init_trans_params(ks[5], C))


def init_params(key, cfg, inputdim=2):
    C = cfg["channels"]
    demb = cfg["diffusion_embedding_dim"]
    ks = jax.random.split(key, 6 + cfg["layers"])

    # sinusoidal diffusion-step embedding table (matches _build_embedding)
    dim = demb // 2
    steps = jnp.arange(cfg["num_steps"], dtype=jnp.float32)[:, None]
    freqs = (10.0 ** (jnp.arange(dim, dtype=jnp.float32) / (dim - 1) * 4.0))[None, :]
    table = steps * freqs
    emb_table = jnp.concatenate([jnp.sin(table), jnp.cos(table)], axis=1)

    proj1_wT, proj1_b = _linear(ks[0], demb, demb)
    proj2_wT, proj2_b = _linear(ks[1], demb, demb)
    inp_wT, inp_b = _linear(ks[2], C, inputdim)
    out1_wT, out1_b = _linear(ks[3], C, C)
    # NOTE: torch zero-inits output_projection2.weight; small random values are
    # used here so the full synthetic graph influences the output.
    out2_wT = jax.random.normal(ks[4], (C, 1), jnp.float32) * 0.01
    out2_b = jax.random.normal(ks[5], (1, 1), jnp.float32) * 0.01

    return dict(
        emb_table=emb_table,
        proj1_wT=proj1_wT, proj1_b=proj1_b,
        proj2_wT=proj2_wT, proj2_b=proj2_b,
        inp_wT=inp_wT, inp_b=inp_b,
        out1_wT=out1_wT, out1_b=out1_b,
        out2_wT=out2_wT, out2_b=out2_b,
        layers=[init_resblock_params(k, cfg["side_dim"], C, demb)
                for k in ks[6:]],
    )


# -----------------------------------------------------------------------------
# Main
# -----------------------------------------------------------------------------
CFG = dict(channels=64, num_steps=50, diffusion_embedding_dim=128,
           side_dim=8, nheads=8, layers=2)


@jax.jit
def run(params, x, cond_info, diffusion_step):
    return diff_csdi_forward(params, x, cond_info, diffusion_step, CFG)


if __name__ == "__main__":
    key = jax.random.PRNGKey(0)
    kp, kx, kc, kd = jax.random.split(key, 4)

    B, inputdim, K, L = 2, 2, 4, 8
    params = init_params(kp, CFG, inputdim=inputdim)

    x = jax.random.normal(kx, (B, inputdim, K, L), jnp.float32)
    cond_info = jax.random.normal(kc, (B, CFG["side_dim"], K, L), jnp.float32)
    diffusion_step = jax.random.randint(kd, (B,), 0, CFG["num_steps"], jnp.int32)

    out = run(params, x, cond_info, diffusion_step)
    out = jax.block_until_ready(out)
    assert out.shape == (B, K, L)
    assert bool(jnp.all(jnp.isfinite(out)))
    print("KERNEL_OK")
</pallas_src>

<mosaic_0001>
module attributes {stable_mosaic.version = 11 : i64} {
  func.func @_dense_kernel(%arg0: i32, %arg1: memref<64x2xf32, #tpu.memory_space<vmem>>, %arg2: memref<2x64xf32, #tpu.memory_space<vmem>>, %arg3: memref<1x64xf32, #tpu.memory_space<vmem>>, %arg4: memref<64x64xf32, #tpu.memory_space<vmem>>) attributes {dimension_semantics = [#tpu.dimension_semantics<parallel>], iteration_bounds = array<i64: 1>, scalar_prefetch = 0 : i64, scratch_operands = 0 : i64, tpu.core_type = #tpu.core_type<tc>, window_params = [{transform_indices = @transform_0, window_bounds = array<i64: 64, 2>}, {pipeline_mode = #tpu.pipeline_mode<synchronous>, transform_indices = @transform_1, window_bounds = array<i64: 2, 64>}, {pipeline_mode = #tpu.pipeline_mode<synchronous>, transform_indices = @transform_2, window_bounds = array<i64: 1, 64>}, {transform_indices = @transform_3, window_bounds = array<i64: 64, 64>}]} {
    %c0 = arith.constant 0 : index
    %c0_0 = arith.constant 0 : index
    %0 = vector.load %arg1[%c0, %c0_0] : memref<64x2xf32, #tpu.memory_space<vmem>>, vector<64x2xf32>
    %c0_1 = arith.constant 0 : index
    %c0_2 = arith.constant 0 : index
    %1 = vector.load %arg2[%c0_1, %c0_2] : memref<2x64xf32, #tpu.memory_space<vmem>>, vector<2x64xf32>
    %cst = arith.constant dense<0.000000e+00> : vector<64x64xf32>
    %2 = tpu.matmul %0, %1, %cst {dimension_numbers = #tpu.dot_dimension_numbers<[1], [0], [0], [1], [0, 0, 1, 1], [], []>} : vector<64x2xf32>, vector<2x64xf32>, vector<64x64xf32> -> vector<64x64xf32>
    %c0_3 = arith.constant 0 : index
    %c0_4 = arith.constant 0 : index
    %3 = vector.load %arg3[%c0_3, %c0_4] : memref<1x64xf32, #tpu.memory_space<vmem>>, vector<1x64xf32>
    %4 = vector.broadcast %3 : vector<1x64xf32> to vector<64x64xf32>
    %5 = arith.addf %2, %4 : vector<64x64xf32>
    %cst_5 = arith.constant 0.000000e+00 : f32
    %6 = vector.broadcast %cst_5 : f32 to vector<64x64xf32>
    %7 = arith.maximumf %5, %6 : vector<64x64xf32>
    %c0_6 = arith.constant 0 : index
    %c0_7 = arith.constant 0 : index
    %8 = vector.load %arg4[%c0_6, %c0_7] : memref<64x64xf32, #tpu.memory_space<vmem>>, vector<64x64xf32>
    tpu.vector_store %arg4[%c0_6, %c0_7], %7 {strides = array<i32>} : memref<64x64xf32, #tpu.memory_space<vmem>>, vector<64x64xf32>,
    return
  }
  func.func @transform_0(%arg0: i32) -> (i32, i32) {
    %c0_i32 = arith.constant 0 : i32
    %c0_i32_0 = arith.constant 0 : i32
    return %arg0, %c0_i32 : i32, i32
  }
  func.func @transform_1(%arg0: i32) -> (i32, i32) {
    %c0_i32 = arith.constant 0 : i32
    %c0_i32_0 = arith.constant 0 : i32
    %c0_i32_1 = arith.constant 0 : i32
    return %c0_i32, %c0_i32_0 : i32, i32
  }
  func.func @transform_2(%arg0: i32) -> (i32, i32) {
    %c0_i32 = arith.constant 0 : i32
    %c0_i32_0 = arith.constant 0 : i32
    %c0_i32_1 = arith.constant 0 : i32
    return %c0_i32, %c0_i32_0 : i32, i32
  }
  func.func @transform_3(%arg0: i32) -> (i32, i32) {
    %c0_i32 = arith.constant 0 : i32
    %c0_i32_0 = arith.constant 0 : i32
    return %arg0, %c0_i32 : i32, i32
  }
}

module attributes {stable_mosaic.version = 11 : i64} {
  func.func @_dense_kernel(%arg0: i32, %arg1: memref<64x64xf32, #tpu.memory_space<vmem>>, %arg2: memref<64x192xf32, #tpu.memory_space<vmem>>, %arg3: memref<1x192xf32, #tpu.memory_space<vmem>>, %arg4: memref<64x192xf32, #tpu.memory_space<vmem>>) attributes {dimension_semantics = [#tpu.dimension_semantics<parallel>], iteration_bounds = array<i64: 1>, scalar_prefetch = 0 : i64, scratch_operands = 0 : i64, tpu.core_type = #tpu.core_type<tc>, window_params = [{transform_indices = @transform_0, window_bounds = array<i64: 64, 64>}, {pipeline_mode = #tpu.pipeline_mode<synchronous>, transform_indices = @transform_1, window_bounds = array<i64: 64, 192>}, {pipeline_mode = #tpu.pipeline_mode<synchronous>, transform_indices = @transform_2, window_bounds = array<i64: 1, 192>}, {transform_indices = @transform_3, window_bounds = array<i64: 64, 192>}]} {
    %c0 = arith.constant 0 : index
    %c0_0 = arith.constant 0 : index
    %0 = vector.load %arg1[%c0, %c0_0] : memref<64x64xf32, #tpu.memory_space<vmem>>, vector<64x64xf32>
    %c0_1 = arith.constant 0 : index
    %c0_2 = arith.constant 0 : index
    %1 = vector.load %arg2[%c0_1, %c0_2] : memref<64x192xf32, #tpu.memory_space<vmem>>, vector<64x192xf32>
    %cst = arith.constant dense<0.000000e+00> : vector<64x192xf32>
    %2 = tpu.matmul %0, %1, %cst {dimension_numbers = #tpu.dot_dimension_numbers<[1], [0], [0], [1], [0, 0, 1, 1], [], []>} : vector<64x64xf32>, vector<64x192xf32>, vector<64x192xf32> -> vector<64x192xf32>
    %c0_3 = arith.constant 0 : index
    %c0_4 = arith.constant 0 : index
    %3 = vector.load %arg3[%c0_3, %c0_4] : memref<1x192xf32, #tpu.memory_space<vmem>>, vector<1x192xf32>
    %4 = vector.broadcast %3 : vector<1x192xf32> to vector<64x192xf32>
    %5 = arith.addf %2, %4 : vector<64x192xf32>
    %c0_5 = arith.constant 0 : index
    %c0_6 = arith.constant 0 : index
    %6 = vector.load %arg4[%c0_5, %c0_6] : memref<64x192xf32, #tpu.memory_space<vmem>>, vector<64x192xf32>
    tpu.vector_store %arg4[%c0_5, %c0_6], %5 {strides = array<i32>} : memref<64x192xf32, #tpu.memory_space<vmem>>, vector<64x192xf32>,
    return
  }
  func.func @transform_0(%arg0: i32) -> (i32, i32) {
    %c0_i32 = arith.constant 0 : i32
    %c0_i32_0 = arith.constant 0 : i32
    return %arg0, %c0_i32 : i32, i32
  }
  func.func @transform_1(%arg0: i32) -> (i32, i32) {
    %c0_i32 = arith.constant 0 : i32
    %c0_i32_0 = arith.constant 0 : i32
    %c0_i32_1 = arith.constant 0 : i32
    return %c0_i32, %c0_i32_0 : i32, i32
  }
  func.func @transform_2(%arg0: i32) -> (i32, i32) {
    %c0_i32 = arith.constant 0 : i32
    %c0_i32_0 = arith.constant 0 : i32
    %c0_i32_1 = arith.constant 0 : i32
    return %c0_i32, %c0_i32_0 : i32, i32
  }
  func.func @transform_3(%arg0: i32) -> (i32, i32) {
    %c0_i32 = arith.constant 0 : i32
    %c0_i32_0 = arith.constant 0 : i32
    return %arg0, %c0_i32 : i32, i32
  }
}

module attributes {stable_mosaic.version = 11 : i64} {
  func.func @_attn_kernel(%arg0: i32, %arg1: memref<64x8x8xf32, #tpu.memory_space<vmem>>, %arg2: memref<64x8x8xf32, #tpu.memory_space<vmem>>, %arg3: memref<64x8x8xf32, #tpu.memory_space<vmem>>, %arg4: memref<64x8x8xf32, #tpu.memory_space<vmem>>) attributes {dimension_semantics = [#tpu.dimension_semantics<parallel>], iteration_bounds = array<i64: 1>, scalar_prefetch = 0 : i64, scratch_operands = 0 : i64, tpu.core_type = #tpu.core_type<tc>, window_params = [{transform_indices = @transform_0, window_bounds = array<i64: 64, 8, 8>}, {transform_indices = @transform_1, window_bounds = array<i64: 64, 8, 8>}, {transform_indices = @transform_2, window_bounds = array<i64: 64, 8, 8>}, {transform_indices = @transform_3, window_bounds = array<i64: 64, 8, 8>}]} {
    %c0 = arith.constant 0 : index
    %c0_0 = arith.constant 0 : index
    %c0_1 = arith.constant 0 : index
    %0 = vector.load %arg1[%c0, %c0_0, %c0_1] : memref<64x8x8xf32, #tpu.memory_space<vmem>>, vector<64x8x8xf32>
    %c0_2 = arith.constant 0 : index
    %c0_3 = arith.constant 0 : index
    %c0_4 = arith.constant 0 : index
    %1 = vector.load %arg2[%c0_2, %c0_3, %c0_4] : memref<64x8x8xf32, #tpu.memory_space<vmem>>, vector<64x8x8xf32>
    %c0_5 = arith.constant 0 : index
    %c0_6 = arith.constant 0 : index
    %c0_7 = arith.constant 0 : index
    %2 = vector.load %arg3[%c0_5, %c0_6, %c0_7] : memref<64x8x8xf32, #tpu.memory_space<vmem>>, vector<64x8x8xf32>
    "tpu.trace_start"() <{level = 10 : i32, message = "gsd,gtd->gst"}> : () -> ()
    %cst = arith.constant dense<0.000000e+00> : vector<64x8x8xf32>
    %3 = tpu.matmul %0, %1, %cst {dimension_numbers = #tpu.dot_dimension_numbers<[2], [2], [1], [1], [0, 0, 0, 1, 1, 1], [0], [0]>} : vector<64x8x8xf32>, vector<64x8x8xf32>, vector<64x8x8xf32> -> vector<64x8x8xf32>
    "tpu.trace_stop"() : () -> ()
    %cst_8 = arith.constant 0.353553385 : f32
    %4 = vector.broadcast %cst_8 : f32 to vector<64x8x8xf32>
    %5 = arith.mulf %3, %4 : vector<64x8x8xf32>
    %cst_9 = arith.constant dense<0xFF800000> : vector<64x8xf32>
    %6 = vector.multi_reduction <maximumf>, %5, %cst_9 [2] : vector<64x8x8xf32> to vector<64x8xf32>
    %7 = vector.shape_cast %6 : vector<64x8xf32> to vector<64x8x1xf32>
    %8 = vector.broadcast %7 : vector<64x8x1xf32> to vector<64x8x8xf32>
    %9 = arith.subf %5, %8 : vector<64x8x8xf32>
    %10 = math.exp %9 : vector<64x8x8xf32>
    %cst_10 = arith.constant dense<0.000000e+00> : vector<64x8xf32>
    %11 = vector.multi_reduction <add>, %10, %cst_10 [2] : vector<64x8x8xf32> to vector<64x8xf32>
    %12 = vector.shape_cast %11 : vector<64x8xf32> to vector<64x8x1xf32>
    %13 = tpu.reciprocal %12 {approx = true} : vector<64x8x1xf32> -> vector<64x8x1xf32>
    %14 = vector.broadcast %13 : vector<64x8x1xf32> to vector<64x8x8xf32>
    %15 = arith.mulf %10, %14 : vector<64x8x8xf32>
    "tpu.trace_start"() <{level = 10 : i32, message = "gst,gtd->gsd"}> : () -> ()
    %cst_11 = arith.constant dense<0.000000e+00> : vector<64x8x8xf32>
    %16 = tpu.matmul %15, %2, %cst_11 {dimension_numbers = #tpu.dot_dimension_numbers<[2], [1], [1], [2], [0, 0, 0, 1, 1, 2], [0], [0]>} : vector<64x8x8xf32>, vector<64x8x8xf32>, vector<64x8x8xf32> -> vector<64x8x8xf32>
    "tpu.trace_stop"() : () -> ()
    %c0_12 = arith.constant 0 : index
    %c0_13 = arith.constant 0 : index
    %c0_14 = arith.constant 0 : index
    %17 = vector.load %arg4[%c0_12, %c0_13, %c0_14] : memref<64x8x8xf32, #tpu.memory_space<vmem>>, vector<64x8x8xf32>
    tpu.vector_store %arg4[%c0_12, %c0_13, %c0_14], %16 {strides = array<i32>} : memref<64x8x8xf32, #tpu.memory_space<vmem>>, vector<64x8x8xf32>,
    return
  }
  func.func @transform_0(%arg0: i32) -> (i32, i32, i32) {
    %c0_i32 = arith.constant 0 : i32
    %c0_i32_0 = arith.constant 0 : i32
    %c0_i32_1 = arith.constant 0 : i32
    return %arg0, %c0_i32, %c0_i32_0 : i32, i32, i32
  }
  func.func @transform_1(%arg0: i32) -> (i32, i32, i32) {
    %c0_i32 = arith.constant 0 : i32
    %c0_i32_0 = arith.constant 0 : i32
    %c0_i32_1 = arith.constant 0 : i32
    return %arg0, %c0_i32, %c0_i32_0 : i32, i32, i32
  }
  func.func @transform_2(%arg0: i32) -> (i32, i32, i32) {
    %c0_i32 = arith.constant 0 : i32
    %c0_i32_0 = arith.constant 0 : i32
    %c0_i32_1 = arith.constant 0 : i32
    return %arg0, %c0_i32, %c0_i32_0 : i32, i32, i32
  }
  func.func @transform_3(%arg0: i32) -> (i32, i32, i32) {
    %c0_i32 = arith.constant 0 : i32
    %c0_i32_0 = arith.constant 0 : i32
    %c0_i32_1 = arith.constant 0 : i32
    return %arg0, %c0_i32, %c0_i32_0 : i32, i32, i32
  }
}

module attributes {stable_mosaic.version = 11 : i64} {
  func.func @_add_ln_kernel(%arg0: i32, %arg1: memref<64x64xf32, #tpu.memory_space<vmem>>, %arg2: memref<64x64xf32, #tpu.memory_space<vmem>>, %arg3: memref<1x64xf32, #tpu.memory_space<vmem>>, %arg4: memref<1x64xf32, #tpu.memory_space<vmem>>, %arg5: memref<64x64xf32, #tpu.memory_space<vmem>>) attributes {dimension_semantics = [#tpu.dimension_semantics<parallel>], iteration_bounds = array<i64: 1>, scalar_prefetch = 0 : i64, scratch_operands = 0 : i64, tpu.core_type = #tpu.core_type<tc>, window_params = [{transform_indices = @transform_0, window_bounds = array<i64: 64, 64>}, {transform_indices = @transform_1, window_bounds = array<i64: 64, 64>}, {pipeline_mode = #tpu.pipeline_mode<synchronous>, transform_indices = @transform_2, window_bounds = array<i64: 1, 64>}, {pipeline_mode = #tpu.pipeline_mode<synchronous>, transform_indices = @transform_3, window_bounds = array<i64: 1, 64>}, {transform_indices = @transform_4, window_bounds = array<i64: 64, 64>}]} {
    %c0 = arith.constant 0 : index
    %c0_0 = arith.constant 0 : index
    %0 = vector.load %arg1[%c0, %c0_0] : memref<64x64xf32, #tpu.memory_space<vmem>>, vector<64x64xf32>
    %c0_1 = arith.constant 0 : index
    %c0_2 = arith.constant 0 : index
    %1 = vector.load %arg2[%c0_1, %c0_2] : memref<64x64xf32, #tpu.memory_space<vmem>>, vector<64x64xf32>
    %2 = arith.addf %0, %1 : vector<64x64xf32>
    %cst = arith.constant dense<0.000000e+00> : vector<64xf32>
    %3 = vector.multi_reduction <add>, %2, %cst [1] : vector<64x64xf32> to vector<64xf32>
    %4 = vector.shape_cast %3 : vector<64xf32> to vector<64x1xf32>
    %cst_3 = arith.constant 6.400000e+01 : f32
    %5 = vector.broadcast %cst_3 : f32 to vector<64x1xf32>
    %6 = arith.divf %4, %5 : vector<64x1xf32>
    %7 = arith.mulf %2, %2 : vector<64x64xf32>
    %cst_4 = arith.constant dense<0.000000e+00> : vector<64xf32>
    %8 = vector.multi_reduction <add>, %7, %cst_4 [1] : vector<64x64xf32> to vector<64xf32>
    %9 = vector.shape_cast %8 : vector<64xf32> to vector<64x1xf32>
    %cst_5 = arith.constant 6.400000e+01 : f32
    %10 = vector.broadcast %cst_5 : f32 to vector<64x1xf32>
    %11 = arith.divf %9, %10 : vector<64x1xf32>
    %12 = arith.mulf %6, %6 : vector<64x1xf32>
    %13 = arith.subf %11, %12 : vector<64x1xf32>
    %14 = vector.broadcast %6 : vector<64x1xf32> to vector<64x64xf32>
    %15 = arith.subf %2, %14 : vector<64x64xf32>
    %cst_6 = arith.constant 9.99999974E-6 : f32
    %16 = vector.broadcast %cst_6 : f32 to vector<64x1xf32>
    %17 = arith.addf %13, %16 : vector<64x1xf32>
    %18 = math.rsqrt %17 : vector<64x1xf32>
    %19 = vector.broadcast %18 : vector<64x1xf32> to vector<64x64xf32>
    %20 = arith.mulf %15, %19 : vector<64x64xf32>
    %c0_7 = arith.constant 0 : index
    %c0_8 = arith.constant 0 : index
    %21 = vector.load %arg3[%c0_7, %c0_8] : memref<1x64xf32, #tpu.memory_space<vmem>>, vector<1x64xf32>
    %22 = vector.broadcast %21 : vector<1x64xf32> to vector<64x64xf32>
    %23 = arith.mulf %20, %22 : vector<64x64xf32>
    %c0_9 = arith.constant 0 : index
    %c0_10 = arith.constant 0 : index
    %24 = vector.load %arg4[%c0_9, %c0_10] : memref<1x64xf32, #tpu.memory_space<vmem>>, vector<1x64xf32>
    %25 = vector.broadcast %24 : vector<1x64xf32> to vector<64x64xf32>
    %26 = arith.addf %23, %25 : vector<64x64xf32>
    %c0_11 = arith.constant 0 : index
    %c0_12 = arith.constant 0 : index
    %27 = vector.load %arg5[%c0_11, %c0_12] : memref<64x64xf32, #tpu.memory_space<vmem>>, vector<64x64xf32>
    tpu.vector_store %arg5[%c0_11, %c0_12], %26 {strides = array<i32>} : memref<64x64xf32, #tpu.memory_space<vmem>>, vector<64x64xf32>,
    return
  }
  func.func @transform_0(%arg0: i32) -> (i32, i32) {
    %c0_i32 = arith.constant 0 : i32
    %c0_i32_0 = arith.constant 0 : i32
    return %arg0, %c0_i32 : i32, i32
  }
  func.func @transform_1(%arg0: i32) -> (i32, i32) {
    %c0_i32 = arith.constant 0 : i32
    %c0_i32_0 = arith.constant 0 : i32
    return %arg0, %c0_i32 : i32, i32
  }
  func.func @transform_2(%arg0: i32) -> (i32, i32) {
    %c0_i32 = arith.constant 0 : i32
    %c0_i32_0 = arith.constant 0 : i32
    %c0_i32_1 = arith.constant 0 : i32
    return %c0_i32, %c0_i32_0 : i32, i32
  }
  func.func @transform_3(%arg0: i32) -> (i32, i32) {
    %c0_i32 = arith.constant 0 : i32
    %c0_i32_0 = arith.constant 0 : i32
    %c0_i32_1 = arith.constant 0 : i32
    return %c0_i32, %c0_i32_0 : i32, i32
  }
  func.func @transform_4(%arg0: i32) -> (i32, i32) {
    %c0_i32 = arith.constant 0 : i32
    %c0_i32_0 = arith.constant 0 : i32
    return %arg0, %c0_i32 : i32, i32
  }
}

module attributes {stable_mosaic.version = 11 : i64} {
  func.func @_dense_kernel(%arg0: i32, %arg1: memref<64x64xf32, #tpu.memory_space<vmem>>, %arg2: memref<64x64xf32, #tpu.memory_space<vmem>>, %arg3: memref<1x64xf32, #tpu.memory_space<vmem>>, %arg4: memref<64x64xf32, #tpu.memory_space<vmem>>) attributes {dimension_semantics = [#tpu.dimension_semantics<parallel>], iteration_bounds = array<i64: 1>, scalar_prefetch = 0 : i64, scratch_operands = 0 : i64, tpu.core_type = #tpu.core_type<tc>, window_params = [{transform_indices = @transform_0, window_bounds = array<i64: 64, 64>}, {pipeline_mode = #tpu.pipeline_mode<synchronous>, transform_indices = @transform_1, window_bounds = array<i64: 64, 64>}, {pipeline_mode = #tpu.pipeline_mode<synchronous>, transform_indices = @transform_2, window_bounds = array<i64: 1, 64>}, {transform_indices = @transform_3, window_bounds = array<i64: 64, 64>}]} {
    %c0 = arith.constant 0 : index
    %c0_0 = arith.constant 0 : index
    %0 = vector.load %arg1[%c0, %c0_0] : memref<64x64xf32, #tpu.memory_space<vmem>>, vector<64x64xf32>
    %c0_1 = arith.constant 0 : index
    %c0_2 = arith.constant 0 : index
    %1 = vector.load %arg2[%c0_1, %c0_2] : memref<64x64xf32, #tpu.memory_space<vmem>>, vector<64x64xf32>
    %cst = arith.constant dense<0.000000e+00> : vector<64x64xf32>
    %2 = tpu.matmul %0, %1, %cst {dimension_numbers = #tpu.dot_dimension_numbers<[1], [0], [0], [1], [0, 0, 1, 1], [], []>} : vector<64x64xf32>, vector<64x64xf32>, vector<64x64xf32> -> vector<64x64xf32>
    %c0_3 = arith.constant 0 : index
    %c0_4 = arith.constant 0 : index
    %3 = vector.load %arg3[%c0_3, %c0_4] : memref<1x64xf32, #tpu.memory_space<vmem>>, vector<1x64xf32>
    %4 = vector.broadcast %3 : vector<1x64xf32> to vector<64x64xf32>
    %5 = arith.addf %2, %4 : vector<64x64xf32>
    %c0_5 = arith.constant 0 : index
    %c0_6 = arith.constant 0 : index
    %6 = vector.load %arg4[%c0_5, %c0_6] : memref<64x64xf32, #tpu.memory_space<vmem>>, vector<64x64xf32>
    tpu.vector_store %arg4[%c0_5, %c0_6], %5 {strides = array<i32>} : memref<64x64xf32, #tpu.memory_space<vmem>>, vector<64x64xf32>,
    return
  }
  func.func @transform_0(%arg0: i32) -> (i32, i32) {
    %c0_i32 = arith.constant 0 : i32
    %c0_i32_0 = arith.constant 0 : i32
    return %arg0, %c0_i32 : i32, i32
  }
  func.func @transform_1(%arg0: i32) -> (i32, i32) {
    %c0_i32 = arith.constant 0 : i32
    %c0_i32_0 = arith.constant 0 : i32
    %c0_i32_1 = arith.constant 0 : i32
    return %c0_i32, %c0_i32_0 : i32, i32
  }
  func.func @transform_2(%arg0: i32) -> (i32, i32) {
    %c0_i32 = arith.constant 0 : i32
    %c0_i32_0 = arith.constant 0 : i32
    %c0_i32_1 = arith.constant 0 : i32
    return %c0_i32, %c0_i32_0 : i32, i32
  }
  func.func @transform_3(%arg0: i32) -> (i32, i32) {
    %c0_i32 = arith.constant 0 : i32
    %c0_i32_0 = arith.constant 0 : i32
    return %arg0, %c0_i32 : i32, i32
  }
}

module attributes {stable_mosaic.version = 11 : i64} {
  func.func @_mlp_kernel(%arg0: i32, %arg1: memref<64x64xf32, #tpu.memory_space<vmem>>, %arg2: memref<64x64xf32, #tpu.memory_space<vmem>>, %arg3: memref<1x64xf32, #tpu.memory_space<vmem>>, %arg4: memref<64x64xf32, #tpu.memory_space<vmem>>, %arg5: memref<1x64xf32, #tpu.memory_space<vmem>>, %arg6: memref<64x64xf32, #tpu.memory_space<vmem>>) attributes {dimension_semantics = [#tpu.dimension_semantics<parallel>], iteration_bounds = array<i64: 1>, scalar_prefetch = 0 : i64, scratch_operands = 0 : i64, tpu.core_type = #tpu.core_type<tc>, window_params = [{transform_indices = @transform_0, window_bounds = array<i64: 64, 64>}, {pipeline_mode = #tpu.pipeline_mode<synchronous>, transform_indices = @transform_1, window_bounds = array<i64: 64, 64>}, {pipeline_mode = #tpu.pipeline_mode<synchronous>, transform_indices = @transform_2, window_bounds = array<i64: 1, 64>}, {pipeline_mode = #tpu.pipeline_mode<synchronous>, transform_indices = @transform_3, window_bounds = array<i64: 64, 64>}, {pipeline_mode = #tpu.pipeline_mode<synchronous>, transform_indices = @transform_4, window_bounds = array<i64: 1, 64>}, {transform_indices = @transform_5, window_bounds = array<i64: 64, 64>}]} {
    %c0 = arith.constant 0 : index
    %c0_0 = arith.constant 0 : index
    %0 = vector.load %arg1[%c0, %c0_0] : memref<64x64xf32, #tpu.memory_space<vmem>>, vector<64x64xf32>
    %c0_1 = arith.constant 0 : index
    %c0_2 = arith.constant 0 : index
    %1 = vector.load %arg2[%c0_1, %c0_2] : memref<64x64xf32, #tpu.memory_space<vmem>>, vector<64x64xf32>
    %cst = arith.constant dense<0.000000e+00> : vector<64x64xf32>
    %2 = tpu.matmul %0, %1, %cst {dimension_numbers = #tpu.dot_dimension_numbers<[1], [0], [0], [1], [0, 0, 1, 1], [], []>} : vector<64x64xf32>, vector<64x64xf32>, vector<64x64xf32> -> vector<64x64xf32>
    %c0_3 = arith.constant 0 : index
    %c0_4 = arith.constant 0 : index
    %3 = vector.load %arg3[%c0_3, %c0_4] : memref<1x64xf32, #tpu.memory_space<vmem>>, vector<1x64xf32>
    %4 = vector.broadcast %3 : vector<1x64xf32> to vector<64x64xf32>
    %5 = arith.addf %2, %4 : vector<64x64xf32>
    %cst_5 = arith.constant 5.000000e-01 : f32
    %6 = vector.broadcast %cst_5 : f32 to vector<64x64xf32>
    %7 = arith.mulf %6, %5 : vector<64x64xf32>
    %cst_6 = arith.constant 0.707106769 : f32
    %8 = vector.broadcast %cst_6 : f32 to vector<64x64xf32>
    %9 = arith.mulf %5, %8 : vector<64x64xf32>
    %10 = math.absf %9 : vector<64x64xf32>
    %cst_7 = arith.constant 0.327591091 : f32
    %11 = vector.broadcast %cst_7 : f32 to vector<64x64xf32>
    %12 = arith.mulf %11, %10 : vector<64x64xf32>
    %cst_8 = arith.constant 1.000000e+00 : f32
    %13 = vector.broadcast %cst_8 : f32 to vector<64x64xf32>
    %14 = arith.addf %13, %12 : vector<64x64xf32>
    %cst_9 = arith.constant 1.000000e+00 : f32
    %15 = vector.broadcast %cst_9 : f32 to vector<64x64xf32>
    %16 = arith.divf %15, %14 : vector<64x64xf32>
    %cst_10 = arith.constant 1.06140542 : f32
    %17 = vector.broadcast %cst_10 : f32 to vector<64x64xf32>
    %18 = arith.mulf %16, %17 : vector<64x64xf32>
    %cst_11 = arith.constant -1.45315206 : f32
    %19 = vector.broadcast %cst_11 : f32 to vector<64x64xf32>
    %20 = arith.addf %19, %18 : vector<64x64xf32>
    %21 = arith.mulf %16, %20 : vector<64x64xf32>
    %cst_12 = arith.constant 1.42141378 : f32
    %22 = vector.broadcast %cst_12 : f32 to vector<64x64xf32>
    %23 = arith.addf %22, %21 : vector<64x64xf32>
    %24 = arith.mulf %16, %23 : vector<64x64xf32>
    %cst_13 = arith.constant -0.284496725 : f32
    %25 = vector.broadcast %cst_13 : f32 to vector<64x64xf32>
    %26 = arith.addf %25, %24 : vector<64x64xf32>
    %27 = arith.mulf %16, %26 : vector<64x64xf32>
    %cst_14 = arith.constant 0.254829586 : f32
    %28 = vector.broadcast %cst_14 : f32 to vector<64x64xf32>
    %29 = arith.addf %28, %27 : vector<64x64xf32>
    %30 = arith.mulf %16, %29 : vector<64x64xf32>
    %cst_15 = arith.constant 0.000000e+00 : f32
    %31 = vector.broadcast %cst_15 : f32 to vector<64x64xf32>
    %32 = arith.subf %31, %10 : vector<64x64xf32>
    %33 = arith.mulf %32, %10 : vector<64x64xf32>
    %34 = math.exp %33 : vector<64x64xf32>
    %35 = arith.mulf %30, %34 : vector<64x64xf32>
    %cst_16 = arith.constant 1.000000e+00 : f32
    %36 = vector.broadcast %cst_16 : f32 to vector<64x64xf32>
    %37 = arith.subf %36, %35 : vector<64x64xf32>
    %cst_17 = arith.constant 0.000000e+00 : f32
    %38 = vector.broadcast %cst_17 : f32 to vector<64x64xf32>
    %39 = arith.cmpf olt, %9, %38 : vector<64x64xf32>
    %cst_18 = arith.constant 0.000000e+00 : f32
    %40 = vector.broadcast %cst_18 : f32 to vector<64x64xf32>
    %41 = arith.subf %40, %37 : vector<64x64xf32>
    %42 = arith.select %39, %41, %37 : vector<64x64xi1>, vector<64x64xf32>
    %cst_19 = arith.constant 1.000000e+00 : f32
    %43 = vector.broadcast %cst_19 : f32 to vector<64x64xf32>
    %44 = arith.addf %43, %42 : vector<64x64xf32>
    %45 = arith.mulf %7, %44 : vector<64x64xf32>
    %c0_20 = arith.constant 0 : index
    %c0_21 = arith.constant 0 : index
    %46 = vector.load %arg4[%c0_20, %c0_21] : memref<64x64xf32, #tpu.memory_space<vmem>>, vector<64x64xf32>
    %cst_22 = arith.constant dense<0.000000e+00> : vector<64x64xf32>
    %47 = tpu.matmul %45, %46, %cst_22 {dimension_numbers = #tpu.dot_dimension_numbers<[1], [0], [0], [1], [0, 0, 1, 1], [], []>} : vector<64x64xf32>, vector<64x64xf32>, vector<64x64xf32> -> vector<64x64xf32>
    %c0_23 = arith.constant 0 : index
    %c0_24 = arith.constant 0 : index
    %48 = vector.load %arg5[%c0_23, %c0_24] : memref<1x64xf32, #tpu.memory_space<vmem>>, vector<1x64xf32>
    %49 = vector.broadcast %48 : vector<1x64xf32> to vector<64x64xf32>
    %50 = arith.addf %47, %49 : vector<64x64xf32>
    %c0_25 = arith.constant 0 : index
    %c0_26 = arith.constant 0 : index
    %51 = vector.load %arg6[%c0_25, %c0_26] : memref<64x64xf32, #tpu.memory_space<vmem>>, vector<64x64xf32>
    tpu.vector_store %arg6[%c0_25, %c0_26], %50 {strides = array<i32>} : memref<64x64xf32, #tpu.memory_space<vmem>>, vector<64x64xf32>,
    return
  }
  func.func @transform_0(%arg0: i32) -> (i32, i32) {
    %c0_i32 = arith.constant 0 : i32
    %c0_i32_0 = arith.constant 0 : i32
    return %arg0, %c0_i32 : i32, i32
  }
  func.func @transform_1(%arg0: i32) -> (i32, i32) {
    %c0_i32 = arith.constant 0 : i32
    %c0_i32_0 = arith.constant 0 : i32
    %c0_i32_1 = arith.constant 0 : i32
    return %c0_i32, %c0_i32_0 : i32, i32
  }
  func.func @transform_2(%arg0: i32) -> (i32, i32) {
    %c0_i32 = arith.constant 0 : i32
    %c0_i32_0 = arith.constant 0 : i32
    %c0_i32_1 = arith.constant 0 : i32
    return %c0_i32, %c0_i32_0 : i32, i32
  }
  func.func @transform_3(%arg0: i32) -> (i32, i32) {
    %c0_i32 = arith.constant 0 : i32
    %c0_i32_0 = arith.constant 0 : i32
    %c0_i32_1 = arith.constant 0 : i32
    return %c0_i32, %c0_i32_0 : i32, i32
  }
  func.func @transform_4(%arg0: i32) -> (i32, i32) {
    %c0_i32 = arith.constant 0 : i32
    %c0_i32_0 = arith.constant 0 : i32
    %c0_i32_1 = arith.constant 0 : i32
    return %c0_i32, %c0_i32_0 : i32, i32
  }
  func.func @transform_5(%arg0: i32) -> (i32, i32) {
    %c0_i32 = arith.constant 0 : i32
    %c0_i32_0 = arith.constant 0 : i32
    return %arg0, %c0_i32 : i32, i32
  }
}

module attributes {stable_mosaic.version = 11 : i64} {
  func.func @_attn_kernel(%arg0: i32, %arg1: memref<64x4x8xf32, #tpu.memory_space<vmem>>, %arg2: memref<64x4x8xf32, #tpu.memory_space<vmem>>, %arg3: memref<64x4x8xf32, #tpu.memory_space<vmem>>, %arg4: memref<64x4x8xf32, #tpu.memory_space<vmem>>) attributes {dimension_semantics = [#tpu.dimension_semantics<parallel>], iteration_bounds = array<i64: 2>, scalar_prefetch = 0 : i64, scratch_operands = 0 : i64, tpu.core_type = #tpu.core_type<tc>, window_params = [{transform_indices = @transform_0, window_bounds = array<i64: 64, 4, 8>}, {transform_indices = @transform_1, window_bounds = array<i64: 64, 4, 8>}, {transform_indices = @transform_2, window_bounds = array<i64: 64, 4, 8>}, {transform_indices = @transform_3, window_bounds = array<i64: 64, 4, 8>}]} {
    %c0 = arith.constant 0 : index
    %c0_0 = arith.constant 0 : index
    %c0_1 = arith.constant 0 : index
    %0 = vector.load %arg1[%c0, %c0_0, %c0_1] : memref<64x4x8xf32, #tpu.memory_space<vmem>>, vector<64x4x8xf32>
    %c0_2 = arith.constant 0 : index
    %c0_3 = arith.constant 0 : index
    %c0_4 = arith.constant 0 : index
    %1 = vector.load %arg2[%c0_2, %c0_3, %c0_4] : memref<64x4x8xf32, #tpu.memory_space<vmem>>, vector<64x4x8xf32>
    %c0_5 = arith.constant 0 : index
    %c0_6 = arith.constant 0 : index
    %c0_7 = arith.constant 0 : index
    %2 = vector.load %arg3[%c0_5, %c0_6, %c0_7] : memref<64x4x8xf32, #tpu.memory_space<vmem>>, vector<64x4x8xf32>
    "tpu.trace_start"() <{level = 10 : i32, message = "gsd,gtd->gst"}> : () -> ()
    %cst = arith.constant dense<0.000000e+00> : vector<64x4x4xf32>
    %3 = tpu.matmul %0, %1, %cst {dimension_numbers = #tpu.dot_dimension_numbers<[2], [2], [1], [1], [0, 0, 0, 1, 1, 1], [0], [0]>} : vector<64x4x8xf32>, vector<64x4x8xf32>, vector<64x4x4xf32> -> vector<64x4x4xf32>
    "tpu.trace_stop"() : () -> ()
    %cst_8 = arith.constant 0.353553385 : f32
    %4 = vector.broadcast %cst_8 : f32 to vector<64x4x4xf32>
    %5 = arith.mulf %3, %4 : vector<64x4x4xf32>
    %cst_9 = arith.constant dense<0xFF800000> : vector<64x4xf32>
    %6 = vector.multi_reduction <maximumf>, %5, %cst_9 [2] : vector<64x4x4xf32> to vector<64x4xf32>
    %7 = vector.shape_cast %6 : vector<64x4xf32> to vector<64x4x1xf32>
    %8 = vector.broadcast %7 : vector<64x4x1xf32> to vector<64x4x4xf32>
    %9 = arith.subf %5, %8 : vector<64x4x4xf32>
    %10 = math.exp %9 : vector<64x4x4xf32>
    %cst_10 = arith.constant dense<0.000000e+00> : vector<64x4xf32>
    %11 = vector.multi_reduction <add>, %10, %cst_10 [2] : vector<64x4x4xf32> to vector<64x4xf32>
    %12 = vector.shape_cast %11 : vector<64x4xf32> to vector<64x4x1xf32>
    %13 = tpu.reciprocal %12 {approx = true} : vector<64x4x1xf32> -> vector<64x4x1xf32>
    %14 = vector.broadcast %13 : vector<64x4x1xf32> to vector<64x4x4xf32>
    %15 = arith.mulf %10, %14 : vector<64x4x4xf32>
    "tpu.trace_start"() <{level = 10 : i32, message = "gst,gtd->gsd"}> : () -> ()
    %cst_11 = arith.constant dense<0.000000e+00> : vector<64x4x8xf32>
    %16 = tpu.matmul %15, %2, %cst_11 {dimension_numbers = #tpu.dot_dimension_numbers<[2], [1], [1], [2], [0, 0, 0, 1, 1, 2], [0], [0]>} : vector<64x4x4xf32>, vector<64x4x8xf32>, vector<64x4x8xf32> -> vector<64x4x8xf32>
    "tpu.trace_stop"() : () -> ()
    %c0_12 = arith.constant 0 : index
    %c0_13 = arith.constant 0 : index
    %c0_14 = arith.constant 0 : index
    %17 = vector.load %arg4[%c0_12, %c0_13, %c0_14] : memref<64x4x8xf32, #tpu.memory_space<vmem>>, vector<64x4x8xf32>
    tpu.vector_store %arg4[%c0_12, %c0_13, %c0_14], %16 {strides = array<i32>} : memref<64x4x8xf32, #tpu.memory_space<vmem>>, vector<64x4x8xf32>,
    return
  }
  func.func @transform_0(%arg0: i32) -> (i32, i32, i32) {
    %c0_i32 = arith.constant 0 : i32
    %c0_i32_0 = arith.constant 0 : i32
    %c0_i32_1 = arith.constant 0 : i32
    return %arg0, %c0_i32, %c0_i32_0 : i32, i32, i32
  }
  func.func @transform_1(%arg0: i32) -> (i32, i32, i32) {
    %c0_i32 = arith.constant 0 : i32
    %c0_i32_0 = arith.constant 0 : i32
    %c0_i32_1 = arith.constant 0 : i32
    return %arg0, %c0_i32, %c0_i32_0 : i32, i32, i32
  }
  func.func @transform_2(%arg0: i32) -> (i32, i32, i32) {
    %c0_i32 = arith.constant 0 : i32
    %c0_i32_0 = arith.constant 0 : i32
    %c0_i32_1 = arith.constant 0 : i32
    return %arg0, %c0_i32, %c0_i32_0 : i32, i32, i32
  }
  func.func @transform_3(%arg0: i32) -> (i32, i32, i32) {
    %c0_i32 = arith.constant 0 : i32
    %c0_i32_0 = arith.constant 0 : i32
    %c0_i32_1 = arith.constant 0 : i32
    return %arg0, %c0_i32, %c0_i32_0 : i32, i32, i32
  }
}

module attributes {stable_mosaic.version = 11 : i64} {
  func.func @_tail_kernel(%arg0: i32, %arg1: memref<64x64xf32, #tpu.memory_space<vmem>>, %arg2: memref<64x8xf32, #tpu.memory_space<vmem>>, %arg3: memref<64x64xf32, #tpu.memory_space<vmem>>, %arg4: memref<64x64xf32, #tpu.memory_space<vmem>>, %arg5: memref<64x128xf32, #tpu.memory_space<vmem>>, %arg6: memref<1x128xf32, #tpu.memory_space<vmem>>, %arg7: memref<8x128xf32, #tpu.memory_space<vmem>>, %arg8: memref<1x128xf32, #tpu.memory_space<vmem>>, %arg9: memref<64x128xf32, #tpu.memory_space<vmem>>, %arg10: memref<1x128xf32, #tpu.memory_space<vmem>>, %arg11: memref<64x64xf32, #tpu.memory_space<vmem>>, %arg12: memref<64x64xf32, #tpu.memory_space<vmem>>) attributes {dimension_semantics = [#tpu.dimension_semantics<parallel>], iteration_bounds = array<i64: 1>, scalar_prefetch = 0 : i64, scratch_operands = 0 : i64, tpu.core_type = #tpu.core_type<tc>, window_params = [{transform_indices = @transform_0, window_bounds = array<i64: 64, 64>}, {transform_indices = @transform_1, window_bounds = array<i64: 64, 8>}, {transform_indices = @transform_2, window_bounds = array<i64: 64, 64>}, {transform_indices = @transform_3, window_bounds = array<i64: 64, 64>}, {pipeline_mode = #tpu.pipeline_mode<synchronous>, transform_indices = @transform_4, window_bounds = array<i64: 64, 128>}, {pipeline_mode = #tpu.pipeline_mode<synchronous>, transform_indices = @transform_5, window_bounds = array<i64: 1, 128>}, {pipeline_mode = #tpu.pipeline_mode<synchronous>, transform_indices = @transform_6, window_bounds = array<i64: 8, 128>}, {pipeline_mode = #tpu.pipeline_mode<synchronous>, transform_indices = @transform_7, window_bounds = array<i64: 1, 128>}, {pipeline_mode = #tpu.pipeline_mode<synchronous>, transform_indices = @transform_8, window_bounds = array<i64: 64, 128>}, {pipeline_mode = #tpu.pipeline_mode<synchronous>, transform_indices = @transform_9, window_bounds = array<i64: 1, 128>}, {transform_indices = @transform_10, window_bounds = array<i64: 64, 64>}, {transform_indices = @transform_11, window_bounds = array<i64: 64, 64>}]} {
    %c0 = arith.constant 0 : index
    %c0_0 = arith.constant 0 : index
    %0 = vector.load %arg1[%c0, %c0_0] : memref<64x64xf32, #tpu.memory_space<vmem>>, vector<64x64xf32>
    %c0_1 = arith.constant 0 : index
    %c0_2 = arith.constant 0 : index
    %1 = vector.load %arg5[%c0_1, %c0_2] : memref<64x128xf32, #tpu.memory_space<vmem>>, vector<64x128xf32>
    %cst = arith.constant dense<0.000000e+00> : vector<64x128xf32>
    %2 = tpu.matmul %0, %1, %cst {dimension_numbers = #tpu.dot_dimension_numbers<[1], [0], [0], [1], [0, 0, 1, 1], [], []>} : vector<64x64xf32>, vector<64x128xf32>, vector<64x128xf32> -> vector<64x128xf32>
    %c0_3 = arith.constant 0 : index
    %c0_4 = arith.constant 0 : index
    %3 = vector.load %arg6[%c0_3, %c0_4] : memref<1x128xf32, #tpu.memory_space<vmem>>, vector<1x128xf32>
    %4 = vector.broadcast %3 : vector<1x128xf32> to vector<64x128xf32>
    %5 = arith.addf %2, %4 : vector<64x128xf32>
    %c0_5 = arith.constant 0 : index
    %c0_6 = arith.constant 0 : index
    %6 = vector.load %arg2[%c0_5, %c0_6] : memref<64x8xf32, #tpu.memory_space<vmem>>, vector<64x8xf32>
    %c0_7 = arith.constant 0 : index
    %c0_8 = arith.constant 0 : index
    %7 = vector.load %arg7[%c0_7, %c0_8] : memref<8x128xf32, #tpu.memory_space<vmem>>, vector<8x128xf32>
    %cst_9 = arith.constant dense<0.000000e+00> : vector<64x128xf32>
    %8 = tpu.matmul %6, %7, %cst_9 {dimension_numbers = #tpu.dot_dimension_numbers<[1], [0], [0], [1], [0, 0, 1, 1], [], []>} : vector<64x8xf32>, vector<8x128xf32>, vector<64x128xf32> -> vector<64x128xf32>
    %c0_10 = arith.constant 0 : index
    %c0_11 = arith.constant 0 : index
    %9 = vector.load %arg8[%c0_10, %c0_11] : memref<1x128xf32, #tpu.memory_space<vmem>>, vector<1x128xf32>
    %10 = vector.broadcast %9 : vector<1x128xf32> to vector<64x128xf32>
    %11 = arith.addf %8, %10 : vector<64x128xf32>
    %12 = arith.addf %5, %11 : vector<64x128xf32>
    %13 = vector.extract_strided_slice %12 {offsets = [0, 0], sizes = [64, 64], strides = [1, 1]} : vector<64x128xf32> to vector<64x64xf32>
    %cst_12 = arith.constant 5.000000e-01 : f32
    %14 = vector.broadcast %cst_12 : f32 to vector<64x64xf32>
    %15 = arith.mulf %14, %13 : vector<64x64xf32>
    %16 = math.tanh %15 : vector<64x64xf32>
    %cst_13 = arith.constant 1.000000e+00 : f32
    %17 = vector.broadcast %cst_13 : f32 to vector<64x64xf32>
    %18 = arith.addf %16, %17 : vector<64x64xf32>
    %cst_14 = arith.constant 5.000000e-01 : f32
    %19 = vector.broadcast %cst_14 : f32 to vector<64x64xf32>
    %20 = arith.mulf %19, %18 : vector<64x64xf32>
    %21 = vector.extract_strided_slice %12 {offsets = [0, 64], sizes = [64, 64], strides = [1, 1]} : vector<64x128xf32> to vector<64x64xf32>
    %22 = math.tanh %21 : vector<64x64xf32>
    %23 = arith.mulf %20, %22 : vector<64x64xf32>
    %c0_15 = arith.constant 0 : index
    %c0_16 = arith.constant 0 : index
    %24 = vector.load %arg9[%c0_15, %c0_16] : memref<64x128xf32, #tpu.memory_space<vmem>>, vector<64x128xf32>
    %cst_17 = arith.constant dense<0.000000e+00> : vector<64x128xf32>
    %25 = tpu.matmul %23, %24, %cst_17 {dimension_numbers = #tpu.dot_dimension_numbers<[1], [0], [0], [1], [0, 0, 1, 1], [], []>} : vector<64x64xf32>, vector<64x128xf32>, vector<64x128xf32> -> vector<64x128xf32>
    %c0_18 = arith.constant 0 : index
    %c0_19 = arith.constant 0 : index
    %26 = vector.load %arg10[%c0_18, %c0_19] : memref<1x128xf32, #tpu.memory_space<vmem>>, vector<1x128xf32>
    %27 = vector.broadcast %26 : vector<1x128xf32> to vector<64x128xf32>
    %28 = arith.addf %25, %27 : vector<64x128xf32>
    %c0_20 = arith.constant 0 : index
    %c0_21 = arith.constant 0 : index
    %29 = vector.load %arg3[%c0_20, %c0_21] : memref<64x64xf32, #tpu.memory_space<vmem>>, vector<64x64xf32>
    %30 = vector.extract_strided_slice %28 {offsets = [0, 0], sizes = [64, 64], strides = [1, 1]} : vector<64x128xf32> to vector<64x64xf32>
    %31 = arith.addf %29, %30 : vector<64x64xf32>
    %cst_22 = arith.constant 0.707106769 : f32
    %32 = vector.broadcast %cst_22 : f32 to vector<64x64xf32>
    %33 = arith.mulf %31, %32 : vector<64x64xf32>
    %c0_23 = arith.constant 0 : index
    %c0_24 = arith.constant 0 : index
    %34 = vector.load %arg11[%c0_23, %c0_24] : memref<64x64xf32, #tpu.memory_space<vmem>>, vector<64x64xf32>
    tpu.vector_store %arg11[%c0_23, %c0_24], %33 {strides = array<i32>} : memref<64x64xf32, #tpu.memory_space<vmem>>, vector<64x64xf32>,
    %c0_25 = arith.constant 0 : index
    %c0_26 = arith.constant 0 : index
    %35 = vector.load %arg4[%c0_25, %c0_26] : memref<64x64xf32, #tpu.memory_space<vmem>>, vector<64x64xf32>
    %36 = vector.extract_strided_slice %28 {offsets = [0, 64], sizes = [64, 64], strides = [1, 1]} : vector<64x128xf32> to vector<64x64xf32>
    %37 = arith.addf %35, %36 : vector<64x64xf32>
    %c0_27 = arith.constant 0 : index
    %c0_28 = arith.constant 0 : index
    %38 = vector.load %arg12[%c0_27, %c0_28] : memref<64x64xf32, #tpu.memory_space<vmem>>, vector<64x64xf32>
    tpu.vector_store %arg12[%c0_27, %c0_28], %37 {strides = array<i32>} : memref<64x64xf32, #tpu.memory_space<vmem>>, vector<64x64xf32>,
    return
  }
  func.func @transform_0(%arg0: i32) -> (i32, i32) {
    %c0_i32 = arith.constant 0 : i32
    %c0_i32_0 = arith.constant 0 : i32
    return %arg0, %c0_i32 : i32, i32
  }
  func.func @transform_1(%arg0: i32) -> (i32, i32) {
    %c0_i32 = arith.constant 0 : i32
    %c0_i32_0 = arith.constant 0 : i32
    return %arg0, %c0_i32 : i32, i32
  }
  func.func @transform_2(%arg0: i32) -> (i32, i32) {
    %c0_i32 = arith.constant 0 : i32
    %c0_i32_0 = arith.constant 0 : i32
    return %arg0, %c0_i32 : i32, i32
  }
  func.func @transform_3(%arg0: i32) -> (i32, i32) {
    %c0_i32 = arith.constant 0 : i32
    %c0_i32_0 = arith.constant 0 : i32
    return %arg0, %c0_i32 : i32, i32
  }
  func.func @transform_4(%arg0: i32) -> (i32, i32) {
    %c0_i32 = arith.constant 0 : i32
    %c0_i32_0 = arith.constant 0 : i32
    %c0_i32_1 = arith.constant 0 : i32
    return %c0_i32, %c0_i32_0 : i32, i32
  }
  func.func @transform_5(%arg0: i32) -> (i32, i32) {
    %c0_i32 = arith.constant 0 : i32
    %c0_i32_0 = arith.constant 0 : i32
    %c0_i32_1 = arith.constant 0 : i32
    return %c0_i32, %c0_i32_0 : i32, i32
  }
  func.func @transform_6(%arg0: i32) -> (i32, i32) {
    %c0_i32 = arith.constant 0 : i32
    %c0_i32_0 = arith.constant 0 : i32
    %c0_i32_1 = arith.constant 0 : i32
    return %c0_i32, %c0_i32_0 : i32, i32
  }
  func.func @transform_7(%arg0: i32) -> (i32, i32) {
    %c0_i32 = arith.constant 0 : i32
    %c0_i32_0 = arith.constant 0 : i32
    %c0_i32_1 = arith.constant 0 : i32
    return %c0_i32, %c0_i32_0 : i32, i32
  }
  func.func @transform_8(%arg0: i32) -> (i32, i32) {
    %c0_i32 = arith.constant 0 : i32
    %c0_i32_0 = arith.constant 0 : i32
    %c0_i32_1 = arith.constant 0 : i32
    return %c0_i32, %c0_i32_0 : i32, i32
  }
  func.func @transform_9(%arg0: i32) -> (i32, i32) {
    %c0_i32 = arith.constant 0 : i32
    %c0_i32_0 = arith.constant 0 : i32
    %c0_i32_1 = arith.constant 0 : i32
    return %c0_i32, %c0_i32_0 : i32, i32
  }
  func.func @transform_10(%arg0: i32) -> (i32, i32) {
    %c0_i32 = arith.constant 0 : i32
    %c0_i32_0 = arith.constant 0 : i32
    return %arg0, %c0_i32 : i32, i32
  }
  func.func @transform_11(%arg0: i32) -> (i32, i32) {
    %c0_i32 = arith.constant 0 : i32
    %c0_i32_0 = arith.constant 0 : i32
    return %arg0, %c0_i32 : i32, i32
  }
}

module attributes {stable_mosaic.version = 11 : i64} {
  func.func @_tail_kernel(%arg0: i32, %arg1: memref<64x64xf32, #tpu.memory_space<vmem>>, %arg2: memref<64x8xf32, #tpu.memory_space<vmem>>, %arg3: memref<64x64xf32, #tpu.memory_space<vmem>>, %arg4: memref<64x64xf32, #tpu.memory_space<vmem>>, %arg5: memref<64x128xf32, #tpu.memory_space<vmem>>, %arg6: memref<1x128xf32, #tpu.memory_space<vmem>>, %arg7: memref<8x128xf32, #tpu.memory_space<vmem>>, %arg8: memref<1x128xf32, #tpu.memory_space<vmem>>, %arg9: memref<64x128xf32, #tpu.memory_space<vmem>>, %arg10: memref<1x128xf32, #tpu.memory_space<vmem>>, %arg11: memref<64x64xf32, #tpu.memory_space<vmem>>, %arg12: memref<64x64xf32, #tpu.memory_space<vmem>>) attributes {dimension_semantics = [#tpu.dimension_semantics<parallel>], iteration_bounds = array<i64: 1>, scalar_prefetch = 0 : i64, scratch_operands = 0 : i64, tpu.core_type = #tpu.core_type<tc>, window_params = [{transform_indices = @transform_0, window_bounds = array<i64: 64, 64>}, {transform_indices = @transform_1, window_bounds = array<i64: 64, 8>}, {transform_indices = @transform_2, window_bounds = array<i64: 64, 64>}, {transform_indices = @transform_3, window_bounds = array<i64: 64, 64>}, {pipeline_mode = #tpu.pipeline_mode<synchronous>, transform_indices = @transform_4, window_bounds = array<i64: 64, 128>}, {pipeline_mode = #tpu.pipeline_mode<synchronous>, transform_indices = @transform_5, window_bounds = array<i64: 1, 128>}, {pipeline_mode = #tpu.pipeline_mode<synchronous>, transform_indices = @transform_6, window_bounds = array<i64: 8, 128>}, {pipeline_mode = #tpu.pipeline_mode<synchronous>, transform_indices = @transform_7, window_bounds = array<i64: 1, 128>}, {pipeline_mode = #tpu.pipeline_mode<synchronous>, transform_indices = @transform_8, window_bounds = array<i64: 64, 128>}, {pipeline_mode = #tpu.pipeline_mode<synchronous>, transform_indices = @transform_9, window_bounds = array<i64: 1, 128>}, {transform_indices = @transform_10, window_bounds = array<i64: 64, 64>}, {transform_indices = @transform_11, window_bounds = array<i64: 64, 64>}]} {
    %c0 = arith.constant 0 : index
    %c0_0 = arith.constant 0 : index
    %0 = vector.load %arg1[%c0, %c0_0] : memref<64x64xf32, #tpu.memory_space<vmem>>, vector<64x64xf32>
    %c0_1 = arith.constant 0 : index
    %c0_2 = arith.constant 0 : index
    %1 = vector.load %arg5[%c0_1, %c0_2] : memref<64x128xf32, #tpu.memory_space<vmem>>, vector<64x128xf32>
    %cst = arith.constant dense<0.000000e+00> : vector<64x128xf32>
    %2 = tpu.matmul %0, %1, %cst {dimension_numbers = #tpu.dot_dimension_numbers<[1], [0], [0], [1], [0, 0, 1, 1], [], []>} : vector<64x64xf32>, vector<64x128xf32>, vector<64x128xf32> -> vector<64x128xf32>
    %c0_3 = arith.constant 0 : index
    %c0_4 = arith.constant 0 : index
    %3 = vector.load %arg6[%c0_3, %c0_4] : memref<1x128xf32, #tpu.memory_space<vmem>>, vector<1x128xf32>
    %4 = vector.broadcast %3 : vector<1x128xf32> to vector<64x128xf32>
    %5 = arith.addf %2, %4 : vector<64x128xf32>
    %c0_5 = arith.constant 0 : index
    %c0_6 = arith.constant 0 : index
    %6 = vector.load %arg2[%c0_5, %c0_6] : memref<64x8xf32, #tpu.memory_space<vmem>>, vector<64x8xf32>
    %c0_7 = arith.constant 0 : index
    %c0_8 = arith.constant 0 : index
    %7 = vector.load %arg7[%c0_7, %c0_8] : memref<8x128xf32, #tpu.memory_space<vmem>>, vector<8x128xf32>
    %cst_9 = arith.constant dense<0.000000e+00> : vector<64x128xf32>
    %8 = tpu.matmul %6, %7, %cst_9 {dimension_numbers = #tpu.dot_dimension_numbers<[1], [0], [0], [1], [0, 0, 1, 1], [], []>} : vector<64x8xf32>, vector<8x128xf32>, vector<64x128xf32> -> vector<64x128xf32>
    %c0_10 = arith.constant 0 : index
    %c0_11 = arith.constant 0 : index
    %9 = vector.load %arg8[%c0_10, %c0_11] : memref<1x128xf32, #tpu.memory_space<vmem>>, vector<1x128xf32>
    %10 = vector.broadcast %9 : vector<1x128xf32> to vector<64x128xf32>
    %11 = arith.addf %8, %10 : vector<64x128xf32>
    %12 = arith.addf %5, %11 : vector<64x128xf32>
    %13 = vector.extract_strided_slice %12 {offsets = [0, 0], sizes = [64, 64], strides = [1, 1]} : vector<64x128xf32> to vector<64x64xf32>
    %cst_12 = arith.constant 5.000000e-01 : f32
    %14 = vector.broadcast %cst_12 : f32 to vector<64x64xf32>
    %15 = arith.mulf %14, %13 : vector<64x64xf32>
    %16 = math.tanh %15 : vector<64x64xf32>
    %cst_13 = arith.constant 1.000000e+00 : f32
    %17 = vector.broadcast %cst_13 : f32 to vector<64x64xf32>
    %18 = arith.addf %16, %17 : vector<64x64xf32>
    %cst_14 = arith.constant 5.000000e-01 : f32
    %19 = vector.broadcast %cst_14 : f32 to vector<64x64xf32>
    %20 = arith.mulf %19, %18 : vector<64x64xf32>
    %21 = vector.extract_strided_slice %12 {offsets = [0, 64], sizes = [64, 64], strides = [1, 1]} : vector<64x128xf32> to vector<64x64xf32>
    %22 = math.tanh %21 : vector<64x64xf32>
    %23 = arith.mulf %20, %22 : vector<64x64xf32>
    %c0_15 = arith.constant 0 : index
    %c0_16 = arith.constant 0 : index
    %24 = vector.load %arg9[%c0_15, %c0_16] : memref<64x128xf32, #tpu.memory_space<vmem>>, vector<64x128xf32>
    %cst_17 = arith.constant dense<0.000000e+00> : vector<64x128xf32>
    %25 = tpu.matmul %23, %24, %cst_17 {dimension_numbers = #tpu.dot_dimension_numbers<[1], [0], [0], [1], [0, 0, 1, 1], [], []>} : vector<64x64xf32>, vector<64x128xf32>, vector<64x128xf32> -> vector<64x128xf32>
    %c0_18 = arith.constant 0 : index
    %c0_19 = arith.constant 0 : index
    %26 = vector.load %arg10[%c0_18, %c0_19] : memref<1x128xf32, #tpu.memory_space<vmem>>, vector<1x128xf32>
    %27 = vector.broadcast %26 : vector<1x128xf32> to vector<64x128xf32>
    %28 = arith.addf %25, %27 : vector<64x128xf32>
    %c0_20 = arith.constant 0 : index
    %c0_21 = arith.constant 0 : index
    %29 = vector.load %arg3[%c0_20, %c0_21] : memref<64x64xf32, #tpu.memory_space<vmem>>, vector<64x64xf32>
    %30 = vector.extract_strided_slice %28 {offsets = [0, 0], sizes = [64, 64], strides = [1, 1]} : vector<64x128xf32> to vector<64x64xf32>
    %31 = arith.addf %29, %30 : vector<64x64xf32>
    %cst_22 = arith.constant 0.707106769 : f32
    %32 = vector.broadcast %cst_22 : f32 to vector<64x64xf32>
    %33 = arith.mulf %31, %32 : vector<64x64xf32>
    %c0_23 = arith.constant 0 : index
    %c0_24 = arith.constant 0 : index
    %34 = vector.load %arg11[%c0_23, %c0_24] : memref<64x64xf32, #tpu.memory_space<vmem>>, vector<64x64xf32>
    tpu.vector_store %arg11[%c0_23, %c0_24], %33 {strides = array<i32>} : memref<64x64xf32, #tpu.memory_space<vmem>>, vector<64x64xf32>,
    %c0_25 = arith.constant 0 : index
    %c0_26 = arith.constant 0 : index
    %35 = vector.load %arg4[%c0_25, %c0_26] : memref<64x64xf32, #tpu.memory_space<vmem>>, vector<64x64xf32>
    %36 = vector.extract_strided_slice %28 {offsets = [0, 64], sizes = [64, 64], strides = [1, 1]} : vector<64x128xf32> to vector<64x64xf32>
    %37 = arith.addf %35, %36 : vector<64x64xf32>
    %c0_27 = arith.constant 0 : index
    %c0_28 = arith.constant 0 : index
    %38 = vector.load %arg12[%c0_27, %c0_28] : memref<64x64xf32, #tpu.memory_space<vmem>>, vector<64x64xf32>
    tpu.vector_store %arg12[%c0_27, %c0_28], %37 {strides = array<i32>} : memref<64x64xf32, #tpu.memory_space<vmem>>, vector<64x64xf32>,
    return
  }
  func.func @transform_0(%arg0: i32) -> (i32, i32) {
    %c0_i32 = arith.constant 0 : i32
    %c0_i32_0 = arith.constant 0 : i32
    return %arg0, %c0_i32 : i32, i32
  }
  func.func @transform_1(%arg0: i32) -> (i32, i32) {
    %c0_i32 = arith.constant 0 : i32
    %c0_i32_0 = arith.constant 0 : i32
    return %arg0, %c0_i32 : i32, i32
  }
  func.func @transform_2(%arg0: i32) -> (i32, i32) {
    %c0_i32 = arith.constant 0 : i32
    %c0_i32_0 = arith.constant 0 : i32
    return %arg0, %c0_i32 : i32, i32
  }
  func.func @transform_3(%arg0: i32) -> (i32, i32) {
    %c0_i32 = arith.constant 0 : i32
    %c0_i32_0 = arith.constant 0 : i32
    return %arg0, %c0_i32 : i32, i32
  }
  func.func @transform_4(%arg0: i32) -> (i32, i32) {
    %c0_i32 = arith.constant 0 : i32
    %c0_i32_0 = arith.constant 0 : i32
    %c0_i32_1 = arith.constant 0 : i32
    return %c0_i32, %c0_i32_0 : i32, i32
  }
  func.func @transform_5(%arg0: i32) -> (i32, i32) {
    %c0_i32 = arith.constant 0 : i32
    %c0_i32_0 = arith.constant 0 : i32
    %c0_i32_1 = arith.constant 0 : i32
    return %c0_i32, %c0_i32_0 : i32, i32
  }
  func.func @transform_6(%arg0: i32) -> (i32, i32) {
    %c0_i32 = arith.constant 0 : i32
    %c0_i32_0 = arith.constant 0 : i32
    %c0_i32_1 = arith.constant 0 : i32
    return %c0_i32, %c0_i32_0 : i32, i32
  }
  func.func @transform_7(%arg0: i32) -> (i32, i32) {
    %c0_i32 = arith.constant 0 : i32
    %c0_i32_0 = arith.constant 0 : i32
    %c0_i32_1 = arith.constant 0 : i32
    return %c0_i32, %c0_i32_0 : i32, i32
  }
  func.func @transform_8(%arg0: i32) -> (i32, i32) {
    %c0_i32 = arith.constant 0 : i32
    %c0_i32_0 = arith.constant 0 : i32
    %c0_i32_1 = arith.constant 0 : i32
    return %c0_i32, %c0_i32_0 : i32, i32
  }
  func.func @transform_9(%arg0: i32) -> (i32, i32) {
    %c0_i32 = arith.constant 0 : i32
    %c0_i32_0 = arith.constant 0 : i32
    %c0_i32_1 = arith.constant 0 : i32
    return %c0_i32, %c0_i32_0 : i32, i32
  }
  func.func @transform_10(%arg0: i32) -> (i32, i32) {
    %c0_i32 = arith.constant 0 : i32
    %c0_i32_0 = arith.constant 0 : i32
    return %arg0, %c0_i32 : i32, i32
  }
  func.func @transform_11(%arg0: i32) -> (i32, i32) {
    %c0_i32 = arith.constant 0 : i32
    %c0_i32_0 = arith.constant 0 : i32
    return %arg0, %c0_i32 : i32, i32
  }
}

module attributes {stable_mosaic.version = 11 : i64} {
  func.func @_mlp_kernel(%arg0: i32, %arg1: memref<64x64xf32, #tpu.memory_space<vmem>>, %arg2: memref<64x64xf32, #tpu.memory_space<vmem>>, %arg3: memref<1x64xf32, #tpu.memory_space<vmem>>, %arg4: memref<64x1xf32, #tpu.memory_space<vmem>>, %arg5: memref<1x1xf32, #tpu.memory_space<vmem>>, %arg6: memref<64x1xf32, #tpu.memory_space<vmem>>) attributes {dimension_semantics = [#tpu.dimension_semantics<parallel>], iteration_bounds = array<i64: 1>, scalar_prefetch = 0 : i64, scratch_operands = 0 : i64, tpu.core_type = #tpu.core_type<tc>, window_params = [{transform_indices = @transform_0, window_bounds = array<i64: 64, 64>}, {pipeline_mode = #tpu.pipeline_mode<synchronous>, transform_indices = @transform_1, window_bounds = array<i64: 64, 64>}, {pipeline_mode = #tpu.pipeline_mode<synchronous>, transform_indices = @transform_2, window_bounds = array<i64: 1, 64>}, {pipeline_mode = #tpu.pipeline_mode<synchronous>, transform_indices = @transform_3, window_bounds = array<i64: 64, 1>}, {pipeline_mode = #tpu.pipeline_mode<synchronous>, transform_indices = @transform_4, window_bounds = array<i64: 1, 1>}, {transform_indices = @transform_5, window_bounds = array<i64: 64, 1>}]} {
    %c0 = arith.constant 0 : index
    %c0_0 = arith.constant 0 : index
    %0 = vector.load %arg1[%c0, %c0_0] : memref<64x64xf32, #tpu.memory_space<vmem>>, vector<64x64xf32>
    %c0_1 = arith.constant 0 : index
    %c0_2 = arith.constant 0 : index
    %1 = vector.load %arg2[%c0_1, %c0_2] : memref<64x64xf32, #tpu.memory_space<vmem>>, vector<64x64xf32>
    %cst = arith.constant dense<0.000000e+00> : vector<64x64xf32>
    %2 = tpu.matmul %0, %1, %cst {dimension_numbers = #tpu.dot_dimension_numbers<[1], [0], [0], [1], [0, 0, 1, 1], [], []>} : vector<64x64xf32>, vector<64x64xf32>, vector<64x64xf32> -> vector<64x64xf32>
    %c0_3 = arith.constant 0 : index
    %c0_4 = arith.constant 0 : index
    %3 = vector.load %arg3[%c0_3, %c0_4] : memref<1x64xf32, #tpu.memory_space<vmem>>, vector<1x64xf32>
    %4 = vector.broadcast %3 : vector<1x64xf32> to vector<64x64xf32>
    %5 = arith.addf %2, %4 : vector<64x64xf32>
    %cst_5 = arith.constant 0.000000e+00 : f32
    %6 = vector.broadcast %cst_5 : f32 to vector<64x64xf32>
    %7 = arith.maximumf %5, %6 : vector<64x64xf32>
    %c0_6 = arith.constant 0 : index
    %c0_7 = arith.constant 0 : index
    %8 = vector.load %arg4[%c0_6, %c0_7] : memref<64x1xf32, #tpu.memory_space<vmem>>, vector<64x1xf32>
    %cst_8 = arith.constant dense<0.000000e+00> : vector<64x1xf32>
    %9 = tpu.matmul %7, %8, %cst_8 {dimension_numbers = #tpu.dot_dimension_numbers<[1], [0], [0], [1], [0, 0, 1, 1], [], []>} : vector<64x64xf32>, vector<64x1xf32>, vector<64x1xf32> -> vector<64x1xf32>
    %c0_9 = arith.constant 0 : index
    %c0_10 = arith.constant 0 : index
    %10 = vector.load %arg5[%c0_9, %c0_10] : memref<1x1xf32, #tpu.memory_space<vmem>>, vector<1x1xf32>
    %11 = vector.broadcast %10 : vector<1x1xf32> to vector<64x1xf32>
    %12 = arith.addf %9, %11 : vector<64x1xf32>
    %c0_11 = arith.constant 0 : index
    %c0_12 = arith.constant 0 : index
    %13 = vector.load %arg6[%c0_11, %c0_12] : memref<64x1xf32, #tpu.memory_space<vmem>>, vector<64x1xf32>
    tpu.vector_store %arg6[%c0_11, %c0_12], %12 {strides = array<i32>} : memref<64x1xf32, #tpu.memory_space<vmem>>, vector<64x1xf32>,
    return
  }
  func.func @transform_0(%arg0: i32) -> (i32, i32) {
    %c0_i32 = arith.constant 0 : i32
    %c0_i32_0 = arith.constant 0 : i32
    return %arg0, %c0_i32 : i32, i32
  }
  func.func @transform_1(%arg0: i32) -> (i32, i32) {
    %c0_i32 = arith.constant 0 : i32
    %c0_i32_0 = arith.constant 0 : i32
    %c0_i32_1 = arith.constant 0 : i32
    return %c0_i32, %c0_i32_0 : i32, i32
  }
  func.func @transform_2(%arg0: i32) -> (i32, i32) {
    %c0_i32 = arith.constant 0 : i32
    %c0_i32_0 = arith.constant 0 : i32
    %c0_i32_1 = arith.constant 0 : i32
    return %c0_i32, %c0_i32_0 : i32, i32
  }
  func.func @transform_3(%arg0: i32) -> (i32, i32) {
    %c0_i32 = arith.constant 0 : i32
    %c0_i32_0 = arith.constant 0 : i32
    %c0_i32_1 = arith.constant 0 : i32
    return %c0_i32, %c0_i32_0 : i32, i32
  }
  func.func @transform_4(%arg0: i32) -> (i32, i32) {
    %c0_i32 = arith.constant 0 : i32
    %c0_i32_0 = arith.constant 0 : i32
    %c0_i32_1 = arith.constant 0 : i32
    return %c0_i32, %c0_i32_0 : i32, i32
  }
  func.func @transform_5(%arg0: i32) -> (i32, i32) {
    %c0_i32 = arith.constant 0 : i32
    %c0_i32_0 = arith.constant 0 : i32
    return %arg0, %c0_i32 : i32, i32
  }
}

</mosaic_0001>

<bundles_post_ra>
// kernel: run.28
= control target key start
LH: loop header
LB: loop body
LE: loop exit
PB: predicated region body
PF: predicated region fallthrough
CT: control target
= control target key end

     0   :  { %vm55_vm0 = vcmask 1041408   ;;  %vm30_vm1 = vcmask 15360   ;;  %vm172_vm2 = vcmask 523264   ;;  %s310_s1 = inlined_call_operand.vmem [shape: f32[2,64], index: 1, kind: input, shape index: {}]   ;;  %s311_s0 = inlined_call_operand.vmem [shape: f32[64,2], index: 0, kind: input, shape index: {}]   ;;  %s312_s2 = inlined_call_operand.vmem [shape: f32[1,64], index: 2, kind: input, shape index: {}]   ;;  %s313_s3 = inlined_call_operand.vmem [shape: f32[64,64], index: 3, kind: output, shape index: {}]  }
   0x1   :  { %v22_v0 = vld [vmem:[%s310_s1] sm:$0x3]  ;;  %v15_v3 = vld [vmem:[%s311_s0 + $0x8] sm:$0xff]  ;;  %v16_v5 = vld [vmem:[%s311_s0 + $0x10] sm:$0xff] }
   0x2   :  { %v14_v1 = vld [vmem:[%s311_s0] sm:$0xff]  ;;  %204 = vmatprep.subr.msk.mxu0 %vm55_vm0, %v22_v0  ;;  %218 = vmatprep.subr.msk.mxu1 %vm55_vm0, %v22_v0  ;;  %v19_v4 = vld [vmem:[%s311_s0 + $0x28] sm:$0xff]  ;;  %v20_v6 = vld [vmem:[%s311_s0 + $0x30] sm:$0xff] }
   0x3   :  { %v18_v2 = vld [vmem:[%s311_s0 + $0x20] sm:$0xff]  ;;  %205 = vmatpush3.msk.msra.mxu0 %vm55_vm0, %v22_v0  ;;  %219 = vmatpush3.msk.msra.mxu1 %vm55_vm0, %v22_v0  ;;  %v17_v7 = vld [vmem:[%s311_s0 + $0x18] sm:$0xff] }
   0x4   :  { %206 = vmatprep.mubr.msk.f32.mxu0 %vm30_vm1, %v14_v1  ;;  %212 = vmatprep.mubr.msk.f32.mxu1 %vm30_vm1, %v18_v2  ;;  %v21_v8 = vld [vmem:[%s311_s0 + $0x38] sm:$0xff]  ;;  %v185_v9 = vld [vmem:[%s312_s2] ss:$0 sm:$0xff] }
   0x5   :  { %207 = vmatmul.mubr.msk.f32.vlgmr.msra.gmra.mrb[0].mxu0 %vm30_vm1, %v15_v3  ;;  %213 = vmatmul.mubr.msk.f32.vlgmr.msra.gmra.mrb[0].mxu1 %vm30_vm1, %v19_v4 }
   0x6   :  { %209 = vmatprep.mubr.msk.f32.mxu0 %vm30_vm1, %v16_v5  ;;  %215 = vmatprep.mubr.msk.f32.mxu1 %vm30_vm1, %v20_v6 }
   0x9   :  { %210 = vmatmul.mubr.msk.f32.gmra.mrb[2].mxu0 %vm30_vm1, %v17_v7  ;;  %216 = vmatmul.mubr.msk.f32.gmra.mrb[2].mxu1 %vm30_vm1, %v21_v8 }
  0xd8   :  { %v208_v10 = vpop.f32.mrb[0].mxu0  ;;  %v214_v11 = vpop.f32.mrb[0].mxu1 }
  0xd9   :  { %v131_v12 = vadd.f32 %v208_v10, %v185_v9  ;;  %v151_v13 = vadd.f32 %v214_v11, %v185_v9  ;;  %v125_v14 = vpop.f32.mrb[1].mxu0  ;;  %v145_v15 = vpop.f32.mrb[1].mxu1 }
  0xda   :  { %v126_v16 = vadd.f32 %v185_v9, %v125_v14  ;;  %v146_v17 = vadd.f32 %v185_v9, %v145_v15 }
  0xdb   :  { %v165_v18 = vmax.f32 %v131_v12, 0.0  ;;  %v169_v19 = vmax.f32 %v151_v13, 0.0 }
  0xdc   :  { %v164_v20 = vmax.f32 %v126_v16, 0.0  ;;  %v168_v21 = vmax.f32 %v146_v17, 0.0  ;;  %v211_v22 = vpop.f32.mrb[2].mxu0  ;;  %v217_v23 = vpop.f32.mrb[2].mxu1 }
  0xdd   :  { %174 = vst.msk [vmem:[%s313_s3 + $0x8] sm:$0xff] %vm172_vm2, %v165_v18  ;;  %178 = vst.msk [vmem:[%s313_s3 + $0x28] sm:$0xff] %vm172_vm2, %v169_v19  ;;  %v141_v24 = vadd.f32 %v211_v22, %v185_v9  ;;  %v161_v25 = vadd.f32 %v217_v23, %v185_v9  ;;  %v135_v26 = vpop.f32.mrb[3].mxu0  ;;  %v155_v27 = vpop.f32.mrb[3].mxu1 }
  0xde   :  { %173 = vst.msk [vmem:[%s313_s3] sm:$0xff] %vm172_vm2, %v164_v20  ;;  %177 = vst.msk [vmem:[%s313_s3 + $0x20] sm:$0xff] %vm172_vm2, %v168_v21  ;;  %v136_v28 = vadd.f32 %v185_v9, %v135_v26  ;;  %v156_v29 = vadd.f32 %v185_v9, %v155_v27 }
  0xdf   :  { %v167_v30 = vmax.f32 %v141_v24, 0.0  ;;  %v171_v31 = vmax.f32 %v161_v25, 0.0 }
  0xe0   :  { %v166_v32 = vmax.f32 %v136_v28, 0.0  ;;  %v170_v33 = vmax.f32 %v156_v29, 0.0 }
  0xe1   :  { %176 = vst.msk [vmem:[%s313_s3 + $0x18] sm:$0xff] %vm172_vm2, %v167_v30  ;;  %180 = vst.msk [vmem:[%s313_s3 + $0x38] sm:$0xff] %vm172_vm2, %v171_v31 }
  0xe2   :  { %175 = vst.msk [vmem:[%s313_s3 + $0x10] sm:$0xff] %vm172_vm2, %v166_v32  ;;  %179 = vst.msk [vmem:[%s313_s3 + $0x30] sm:$0xff] %vm172_vm2, %v170_v33 }

// kernel: run.29
= control target key start
LH: loop header
LB: loop body
LE: loop exit
PB: predicated region body
PF: predicated region fallthrough
CT: control target
= control target key end

     0   :  { %v241_v3 = vmov 0.0   ;;  %vm50_vm0 = vcmask 523264   ;;  %v40_v33 = vlaneseq  ;;  %s401_s1 = inlined_call_operand.vmem [shape: f32[64,192], index: 1, kind: input, shape index: {}]   ;;  %s402_s0 = inlined_call_operand.vmem [shape: f32[64,64], index: 0, kind: input, shape index: {}]   ;;  %s403_s2 = inlined_call_operand.vmem [shape: f32[1,192], index: 2, kind: input, shape index: {}]   ;;  %s404_s3 = inlined_call_operand.vmem [shape: f32[64,192], index: 3, kind: output, shape index: {}]  }
   0x1   :  { %v23_v0 = vld [vmem:[%s401_s1 + $0x8] sm:$0xff]  ;;  %v25_v1 = vld [vmem:[%s401_s1 + $0x18] sm:$0xff]  ;;  %v22_v2 = vld [vmem:[%s401_s1] sm:$0xff]  ;;  %139 = vmatprep.mubr.f32.mxu0 %v241_v3  ;;  %163 = vmatprep.mubr.f32.mxu1 %v241_v3 }
   0x2   :  { %v216_v4 = vpack.c.bf16 %v25_v1, %v23_v0  ;;  %v24_v5 = vld [vmem:[%s401_s1 + $0x10] sm:$0xff]  ;;  %v27_v6 = vld [vmem:[%s401_s1 + $0x28] sm:$0xff]  ;;  %v29_v7 = vld [vmem:[%s401_s1 + $0x38] sm:$0xff]  ;;  %v41_v34 = vshrl.u32 %v40_v33, 7 }
   0x3   :  { %v218_v8 = vpack.c.bf16 %v24_v5, %v22_v2  ;;  %v220_v9 = vpack.c.bf16 %v29_v7, %v27_v6  ;;  %v26_v10 = vld [vmem:[%s401_s1 + $0x20] sm:$0xff]  ;;  %v28_v11 = vld [vmem:[%s401_s1 + $0x30] sm:$0xff]  ;;  %v31_v12 = vld [vmem:[%s401_s1 + $0x48] sm:$0xff] }
   0x4   :  { %217 = vmatprep.subr.bf16.mxu0 %v216_v4  ;;  %232 = vmatprep.subr.bf16.mxu1 %v216_v4  ;;  %v33_v13 = vld [vmem:[%s401_s1 + $0x58] sm:$0xff]  ;;  %v222_v14 = vpack.c.bf16 %v28_v11, %v26_v10  ;;  %v30_v16 = vld [vmem:[%s401_s1 + $0x40] sm:$0xff]  ;;  %v32_v17 = vld [vmem:[%s401_s1 + $0x50] sm:$0xff]  ;;  %v42_v35 = vsub.s32 0, %v41_v34  ;;  %v46_v37 = vsub.s32 1, %v41_v34 }
   0x5   :  { %219 = vmatpush1.bf16.msra.mxu0 %v218_v8  ;;  %236 = vmatpush1.bf16.msra.mxu1 %v218_v8  ;;  %v224_v15 = vpack.c.bf16 %v33_v13, %v31_v12  ;;  %v35_v18 = vld [vmem:[%s401_s1 + $0x68] sm:$0xff]  ;;  %v37_v19 = vld [vmem:[%s401_s1 + $0x78] sm:$0xff]  ;;  %v226_v20 = vpack.c.bf16 %v32_v17, %v30_v16  ;;  %v34_v22 = vld [vmem:[%s401_s1 + $0x60] sm:$0xff] }
   0x6   :  { %221 = vmatprep.subr.bf16.mxu0 %v220_v9  ;;  %233 = vmatprep.subr.bf16.mxu1 %v220_v9  ;;  %v228_v21 = vpack.c.bf16 %v37_v19, %v35_v18  ;;  %v36_v23 = vld [vmem:[%s401_s1 + $0x70] sm:$0xff]  ;;  %v14_v25 = vld [vmem:[%s402_s0] sm:$0xff]  ;;  %v15_v27 = vld [vmem:[%s402_s0 + $0x8] sm:$0xff] }
   0x7   :  { %v230_v24 = vpack.c.bf16 %v36_v23, %v34_v22  ;;  %v18_v26 = vld [vmem:[%s402_s0 + $0x20] sm:$0xff]  ;;  %v19_v28 = vld [vmem:[%s402_s0 + $0x28] sm:$0xff]  ;;  %v16_v29 = vld [vmem:[%s402_s0 + $0x10] sm:$0xff] }
   0x8   :  { %v20_v30 = vld [vmem:[%s402_s0 + $0x30] sm:$0xff]  ;;  %v17_v31 = vld [vmem:[%s402_s0 + $0x18] sm:$0xff]  ;;  %v38_v36 = vld [vmem:[%s403_s2] sm:$0x3] }
   0x9   :  { %223 = vmatpush1.bf16.msra.mxu0 %v222_v14  ;;  %237 = vmatpush1.bf16.msra.mxu1 %v222_v14  ;;  %v21_v32 = vld [vmem:[%s402_s0 + $0x38] sm:$0xff]  ;;  %v43_v38 = vrot.slane %v38_v36, %v42_v35  ;;  %v47_v39 = vrot.slane %v38_v36, %v46_v37 }
   0xa   :  { %225 = vmatprep.subr.bf16.mxu0 %v224_v15  ;;  %234 = vmatprep.subr.bf16.mxu1 %v224_v15 }
   0xd   :  { %227 = vmatpush1.bf16.msra.mxu0 %v226_v20  ;;  %238 = vmatpush1.bf16.msra.mxu1 %v226_v20 }
   0xe   :  { %229 = vmatprep.subr.bf16.mxu0 %v228_v21  ;;  %235 = vmatprep.subr.bf16.mxu1 %v228_v21 }
  0x11   :  { %231 = vmatpush1.bf16.msra.mxu0 %v230_v24  ;;  %239 = vmatpush1.bf16.msra.mxu1 %v230_v24 }
  0x14   :  { %208 = vmatmul.mubr.msk.f32.vlgmr.msra.gmra.mrb[0].mxu0 %vm50_vm0, %v14_v25  ;;  %212 = vmatmul.mubr.msk.f32.vlgmr.msra.gmra.mrb[0].mxu1 %vm50_vm0, %v18_v26 }
  0x15   :  { %145 = vmatprep.mubr.f32.mxu0 %v241_v3  ;;  %169 = vmatprep.mubr.f32.mxu1 %v241_v3 }
  0x18   :  { %209 = vmatmul.mubr.msk.f32.gmra.mrb[2].mxu0 %vm50_vm0, %v15_v27  ;;  %213 = vmatmul.mubr.msk.f32.gmra.mrb[2].mxu1 %vm50_vm0, %v19_v28 }
  0x19   :  { %151 = vmatprep.mubr.f32.mxu0 %v241_v3  ;;  %175 = vmatprep.mubr.f32.mxu1 %v241_v3 }
  0x1c   :  { %210 = vmatmul.mubr.msk.f32.gmra.mrb[4].mxu0 %vm50_vm0, %v16_v29  ;;  %214 = vmatmul.mubr.msk.f32.gmra.mrb[4].mxu1 %vm50_vm0, %v20_v30 }
  0x1d   :  { %157 = vmatprep.mubr.f32.mxu0 %v241_v3  ;;  %181 = vmatprep.mubr.f32.mxu1 %v241_v3 }
  0x20   :  { %211 = vmatmul.mubr.msk.f32.gmra.mrb[6].mxu0 %vm50_vm0, %v17_v31  ;;  %215 = vmatmul.mubr.msk.f32.gmra.mrb[6].mxu1 %vm50_vm0, %v21_v32 }
  0xe7   :  { %v141_v40 = vpop.f32.mrb[0].mxu0  ;;  %v165_v41 = vpop.f32.mrb[0].mxu1 }
  0xe8   :  { %v142_v42 = vadd.f32 %v141_v40, %v43_v38  ;;  %v166_v43 = vadd.f32 %v165_v41, %v43_v38  ;;  %v143_v44 = vpop.f32.mrb[1].mxu0  ;;  %v167_v45 = vpop.f32.mrb[1].mxu1 }
  0xe9   :  { %v144_v46 = vadd.f32 %v143_v44, %v47_v39  ;;  %v168_v47 = vadd.f32 %v167_v45, %v47_v39 }
  0xea   :  { %188 = vst [vmem:[%s404_s3] sm:$0xff] %v142_v42  ;;  %196 = vst [vmem:[%s404_s3 + $0x40] sm:$0xff] %v166_v43 }
  0xeb   :  { %189 = vst.msk [vmem:[%s404_s3 + $0x8] sm:$0xff] %vm50_vm0, %v144_v46  ;;  %197 = vst.msk [vmem:[%s404_s3 + $0x48] sm:$0xff] %vm50_vm0, %v168_v47  ;;  %v147_v48 = vpop.f32.mrb[2].mxu0  ;;  %v171_v49 = vpop.f32.mrb[2].mxu1 }
  0xec   :  { %v148_v50 = vadd.f32 %v147_v48, %v43_v38  ;;  %v172_v51 = vadd.f32 %v171_v49, %v43_v38  ;;  %v149_v52 = vpop.f32.mrb[3].mxu0  ;;  %v173_v53 = vpop.f32.mrb[3].mxu1 }
  0xed   :  { %v150_v54 = vadd.f32 %v149_v52, %v47_v39  ;;  %v174_v55 = vadd.f32 %v173_v53, %v47_v39 }
  0xee   :  { %190 = vst [vmem:[%s404_s3 + $0x10] sm:$0xff] %v148_v50  ;;  %198 = vst [vmem:[%s404_s3 + $0x50] sm:$0xff] %v172_v51 }
  0xef   :  { %191 = vst.msk [vmem:[%s404_s3 + $0x18] sm:$0xff] %vm50_vm0, %v150_v54  ;;  %199 = vst.msk [vmem:[%s404_s3 + $0x58] sm:$0xff] %vm50_vm0, %v174_v55  ;;  %v153_v56 = vpop.f32.mrb[4].mxu0  ;;  %v177_v57 = vpop.f32.mrb[4].mxu1 }
  0xf0   :  { %v154_v58 = vadd.f32 %v153_v56, %v43_v38  ;;  %v178_v59 = vadd.f32 %v177_v57, %v43_v38  ;;  %v155_v60 = vpop.f32.mrb[5].mxu0  ;;  %v179_v61 = vpop.f32.mrb[5].mxu1 }
  0xf1   :  { %v156_v62 = vadd.f32 %v155_v60, %v47_v39  ;;  %v180_v63 = vadd.f32 %v179_v61, %v47_v39 }
  0xf2   :  { %192 = vst [vmem:[%s404_s3 + $0x20] sm:$0xff] %v154_v58  ;;  %200 = vst [vmem:[%s404_s3 + $0x60] sm:$0xff] %v178_v59 }
  0xf3   :  { %193 = vst.msk [vmem:[%s404_s3 + $0x28] sm:$0xff] %vm50_vm0, %v156_v62  ;;  %201 = vst.msk [vmem:[%s404_s3 + $0x68] sm:$0xff] %vm50_vm0, %v180_v63  ;;  %v159_v0 = vpop.f32.mrb[6].mxu0  ;;  %v183_v1 = vpop.f32.mrb[6].mxu1 }
  0xf4   :  { %v160_v2 = vadd.f32 %v159_v0, %v43_v38  ;;  %v184_v3 = vadd.f32 %v183_v1, %v43_v38  ;;  %v161_v4 = vpop.f32.mrb[7].mxu0  ;;  %v185_v5 = vpop.f32.mrb[7].mxu1 }
  0xf5   :  { %v162_v6 = vadd.f32 %v161_v4, %v47_v39  ;;  %v186_v7 = vadd.f32 %v185_v5, %v47_v39 }
  0xf6   :  { %194 = vst [vmem:[%s404_s3 + $0x30] sm:$0xff] %v160_v2  ;;  %202 = vst [vmem:[%s404_s3 + $0x70] sm:$0xff] %v184_v3 }
  0xf7   :  { %195 = vst.msk [vmem:[%s404_s3 + $0x38] sm:$0xff] %vm50_vm0, %v162_v6  ;;  %203 = vst.msk [vmem:[%s404_s3 + $0x78] sm:$0xff] %vm50_vm0, %v186_v7 }

// kernel: run.31
= control target key start
LH: loop header
LB: loop body
LE: loop exit
PB: predicated region body
PF: predicated region fallthrough
CT: control target
= control target key end

     0   :  { %vm37_vm0 = vcmask 523264   ;;  %s367_s1 = inlined_call_operand.vmem [shape: f32[64,64], index: 1, kind: input, shape index: {}]   ;;  %s368_s0 = inlined_call_operand.vmem [shape: f32[64,64], index: 0, kind: input, shape index: {}]   ;;  %s369_s2 = inlined_call_operand.vmem [shape: f32[1,64], index: 2, kind: input, shape index: {}]   ;;  %s370_s3 = inlined_call_operand.vmem [shape: f32[64,64], index: 3, kind: output, shape index: {}]  }
   0x1   :  { %v22_v0 = vld [vmem:[%s367_s1] sm:$0xff]  ;;  %v23_v1 = vld [vmem:[%s367_s1 + $0x8] sm:$0xff]  ;;  %v24_v2 = vld [vmem:[%s367_s1 + $0x10] sm:$0xff] }
   0x2   :  { %v232_v3 = vpack.c.bf16 %v23_v1, %v22_v0  ;;  %v25_v4 = vld [vmem:[%s367_s1 + $0x18] sm:$0xff]  ;;  %v26_v6 = vld [vmem:[%s367_s1 + $0x20] sm:$0xff]  ;;  %v27_v7 = vld [vmem:[%s367_s1 + $0x28] sm:$0xff] }
   0x3   :  { %v236_v5 = vpack.c.bf16 %v25_v4, %v24_v2  ;;  %v14_v8 = vld [vmem:[%s368_s0] sm:$0xff]  ;;  %v240_v10 = vpack.c.bf16 %v27_v7, %v26_v6  ;;  %v28_v11 = vld [vmem:[%s367_s1 + $0x30] sm:$0xff]  ;;  %v29_v12 = vld [vmem:[%s367_s1 + $0x38] sm:$0xff] }
   0x4   :  { %233 = vmatprep.subr.bf16.mxu0 %v232_v3  ;;  %248 = vmatprep.subr.bf16.mxu1 %v232_v3  ;;  %v18_v9 = vld [vmem:[%s368_s0 + $0x20] sm:$0xff]  ;;  %v244_v13 = vpack.c.bf16 %v29_v12, %v28_v11  ;;  %v15_v14 = vld [vmem:[%s368_s0 + $0x8] sm:$0xff]  ;;  %v16_v16 = vld [vmem:[%s368_s0 + $0x10] sm:$0xff] }
   0x5   :  { %235 = vmatpush3.bf16.msra.mxu0 %v232_v3  ;;  %252 = vmatpush3.bf16.msra.mxu1 %v232_v3  ;;  %v19_v15 = vld [vmem:[%s368_s0 + $0x28] sm:$0xff]  ;;  %v20_v17 = vld [vmem:[%s368_s0 + $0x30] sm:$0xff]  ;;  %v17_v18 = vld [vmem:[%s368_s0 + $0x18] sm:$0xff] }
   0x6   :  { %237 = vmatprep.subr.bf16.mxu0 %v236_v5  ;;  %249 = vmatprep.subr.bf16.mxu1 %v236_v5  ;;  %v21_v19 = vld [vmem:[%s368_s0 + $0x38] sm:$0xff]  ;;  %v179_v20 = vld [vmem:[%s369_s2] ss:$0 sm:$0xff] }
   0x7   :  { %220 = vmatprep.mubr.msk.f32.mxu0 %vm37_vm0, %v14_v8  ;;  %226 = vmatprep.mubr.msk.f32.mxu1 %vm37_vm0, %v18_v9 }
   0x9   :  { %239 = vmatpush3.bf16.msra.mxu0 %v236_v5  ;;  %253 = vmatpush3.bf16.msra.mxu1 %v236_v5 }
   0xa   :  { %241 = vmatprep.subr.bf16.mxu0 %v240_v10  ;;  %250 = vmatprep.subr.bf16.mxu1 %v240_v10 }
   0xd   :  { %243 = vmatpush3.bf16.msra.mxu0 %v240_v10  ;;  %254 = vmatpush3.bf16.msra.mxu1 %v240_v10 }
   0xe   :  { %245 = vmatprep.subr.bf16.mxu0 %v244_v13  ;;  %251 = vmatprep.subr.bf16.mxu1 %v244_v13 }
  0x11   :  { %247 = vmatpush3.bf16.msra.mxu0 %v244_v13  ;;  %255 = vmatpush3.bf16.msra.mxu1 %v244_v13 }
  0x14   :  { %221 = vmatmul.mubr.msk.f32.vlgmr.msra.gmra.mrb[0].mxu0 %vm37_vm0, %v15_v14  ;;  %227 = vmatmul.mubr.msk.f32.vlgmr.msra.gmra.mrb[0].mxu1 %vm37_vm0, %v19_v15 }
  0x15   :  { %223 = vmatprep.mubr.msk.f32.mxu0 %vm37_vm0, %v16_v16  ;;  %229 = vmatprep.mubr.msk.f32.mxu1 %vm37_vm0, %v20_v17 }
  0x18   :  { %224 = vmatmul.mubr.msk.f32.gmra.mrb[2].mxu0 %vm37_vm0, %v17_v18  ;;  %230 = vmatmul.mubr.msk.f32.gmra.mrb[2].mxu1 %vm37_vm0, %v21_v19 }
  0xe7   :  { %v222_v21 = vpop.f32.mrb[0].mxu0  ;;  %v228_v22 = vpop.f32.mrb[0].mxu1 }
  0xe8   :  { %v134_v23 = vadd.f32 %v222_v21, %v179_v20  ;;  %v154_v24 = vadd.f32 %v228_v22, %v179_v20  ;;  %v128_v25 = vpop.f32.mrb[1].mxu0  ;;  %v148_v26 = vpop.f32.mrb[1].mxu1 }
  0xe9   :  { %v129_v27 = vadd.f32 %v179_v20, %v128_v25  ;;  %v149_v28 = vadd.f32 %v179_v20, %v148_v26 }
  0xea   :  { %168 = vst.msk [vmem:[%s370_s3 + $0x8] sm:$0xff] %vm37_vm0, %v134_v23  ;;  %172 = vst.msk [vmem:[%s370_s3 + $0x28] sm:$0xff] %vm37_vm0, %v154_v24 }
  0xeb   :  { %167 = vst.msk [vmem:[%s370_s3] sm:$0xff] %vm37_vm0, %v129_v27  ;;  %171 = vst.msk [vmem:[%s370_s3 + $0x20] sm:$0xff] %vm37_vm0, %v149_v28  ;;  %v225_v29 = vpop.f32.mrb[2].mxu0  ;;  %v231_v30 = vpop.f32.mrb[2].mxu1 }
  0xec   :  { %v144_v31 = vadd.f32 %v225_v29, %v179_v20  ;;  %v164_v32 = vadd.f32 %v231_v30, %v179_v20  ;;  %v138_v33 = vpop.f32.mrb[3].mxu0  ;;  %v158_v34 = vpop.f32.mrb[3].mxu1 }
  0xed   :  { %v139_v35 = vadd.f32 %v179_v20, %v138_v33  ;;  %v159_v36 = vadd.f32 %v179_v20, %v158_v34 }
  0xee   :  { %170 = vst.msk [vmem:[%s370_s3 + $0x18] sm:$0xff] %vm37_vm0, %v144_v31  ;;  %174 = vst.msk [vmem:[%s370_s3 + $0x38] sm:$0xff] %vm37_vm0, %v164_v32 }
  0xef   :  { %169 = vst.msk [vmem:[%s370_s3 + $0x10] sm:$0xff] %vm37_vm0, %v139_v35  ;;  %173 = vst.msk [vmem:[%s370_s3 + $0x30] sm:$0xff] %vm37_vm0, %v159_v36 }

// kernel: run.32
= control target key start
LH: loop header
LB: loop body
LE: loop exit
PB: predicated region body
PF: predicated region fallthrough
CT: control target
= control target key end

     0   :  { %vm41_vm0 = vcmask 523264   ;;  %s433_s0 = inlined_call_operand.vmem [shape: f32[64,64], index: 0, kind: input, shape index: {}]   ;;  %s434_s1 = inlined_call_operand.vmem [shape: f32[64,64], index: 1, kind: input, shape index: {}]   ;;  %s435_s2 = inlined_call_operand.vmem [shape: f32[1,64], index: 2, kind: input, shape index: {}]   ;;  %s436_s3 = inlined_call_operand.vmem [shape: f32[1,64], index: 3, kind: input, shape index: {}]   ;;  %s437_s4 = inlined_call_operand.vmem [shape: f32[64,64], index: 4, kind: output, shape index: {}]  }
   0x1   :  { %v19_v0 = vld [vmem:[%s433_s0 + $0x10] sm:$0xff]  ;;  %v17_v2 = vld [vmem:[%s433_s0] sm:$0xff]  ;;  %v20_v5 = vld [vmem:[%s433_s0 + $0x18] sm:$0xff] }
   0x2   :  { %v27_v1 = vld [vmem:[%s434_s1 + $0x10] sm:$0xff]  ;;  %v25_v4 = vld [vmem:[%s434_s1] sm:$0xff]  ;;  %v28_v6 = vld [vmem:[%s434_s1 + $0x18] sm:$0xff] }
   0x3   :  { %v257_v3 = vadd.f32 %v27_v1, %v19_v0  ;;  %v268_v7 = vadd.f32 %v25_v4, %v17_v2  ;;  %v270_v8 = vadd.f32 %v28_v6, %v20_v5  ;;  %v18_v9 = vld [vmem:[%s433_s0 + $0x8] sm:$0xff]  ;;  %v21_v15 = vld [vmem:[%s433_s0 + $0x20] sm:$0xff]  ;;  %v24_v22 = vld [vmem:[%s433_s0 + $0x38] sm:$0xff] }
   0x4   :  { %v26_v10 = vld [vmem:[%s434_s1 + $0x8] sm:$0xff]  ;;  %v29_v16 = vld [vmem:[%s434_s1 + $0x20] sm:$0xff]  ;;  %v32_v23 = vld [vmem:[%s434_s1 + $0x38] sm:$0xff] }
   0x5   :  { %v22_v11 = vld [vmem:[%s433_s0 + $0x28] sm:$0xff]  ;;  %v48_v12 = vsel %vm41_vm0, %v257_v3, 0.0  ;;  %v283_v13 = vadd.f32 %v26_v10, %v18_v9  ;;  %v42_v17 = vsel %vm41_vm0, %v268_v7, 0.0  ;;  %v51_v18 = vsel %vm41_vm0, %v270_v8, 0.0  ;;  %v23_v24 = vld [vmem:[%s433_s0 + $0x30] sm:$0xff] }
   0x6   :  { %v30_v14 = vld [vmem:[%s434_s1 + $0x28] sm:$0xff]  ;;  %49 = vadd.xlane.f32.xlu1 %v48_v12  ;;  %43 = vadd.xlane.f32.xlu0 %v42_v17  ;;  %v302_v21 = vadd.f32 %v29_v16, %v21_v15  ;;  %v31_v25 = vld [vmem:[%s434_s1 + $0x30] sm:$0xff]  ;;  %v318_v27 = vadd.f32 %v32_v23, %v24_v22  ;;  %v75_v33 = vmul.f32 %v268_v7, %v268_v7 }
   0x7   :  { %v298_v19 = vadd.f32 %v30_v14, %v22_v11  ;;  %v45_v20 = vsel %vm41_vm0, %v283_v13, 0.0  ;;  %v322_v29 = vadd.f32 %v31_v25, %v23_v24  ;;  %v76_v31 = vmul.f32 %v283_v13, %v283_v13 }
   0x8   :  { %v54_v28 = vsel %vm41_vm0, %v302_v21, 0.0  ;;  %v63_v30 = vsel %vm41_vm0, %v318_v27, 0.0  ;;  %v78_v35 = vmul.f32 %v270_v8, %v270_v8  ;;  %v83_v36 = vsel %vm41_vm0, %v75_v33, 0.0 }
   0x9   :  { %v57_v26 = vsel %vm41_vm0, %v298_v19, 0.0  ;;  %v60_v32 = vsel %vm41_vm0, %v322_v29, 0.0  ;;  %v86_v34 = vsel %vm41_vm0, %v76_v31, 0.0  ;;  %v77_v37 = vmul.f32 %v257_v3, %v257_v3 }
   0xa   :  { %52 = vadd.xlane.f32.xlu1 %v51_v18  ;;  %46 = vadd.xlane.f32.xlu0 %v45_v20  ;;  %v92_v38 = vsel %vm41_vm0, %v78_v35, 0.0  ;;  %v80_v39 = vmul.f32 %v298_v19, %v298_v19  ;;  %v79_v41 = vmul.f32 %v302_v21, %v302_v21  ;;  %v82_v43 = vmul.f32 %v318_v27, %v318_v27 }
   0xb   :  { %v89_v40 = vsel %vm41_vm0, %v77_v37, 0.0  ;;  %v81_v45 = vmul.f32 %v322_v29, %v322_v29 }
   0xc   :  { %v98_v42 = vsel %vm41_vm0, %v80_v39, 0.0  ;;  %v95_v44 = vsel %vm41_vm0, %v79_v41, 0.0  ;;  %v104_v46 = vsel %vm41_vm0, %v82_v43, 0.0 }
   0xd   :  { %v101_v47 = vsel %vm41_vm0, %v81_v45, 0.0 }
   0xe   :  { %58 = vadd.xlane.f32.xlu1 %v57_v26  ;;  %55 = vadd.xlane.f32.xlu0 %v54_v28 }
  0x12   :  { %64 = vadd.xlane.f32.xlu1 %v63_v30  ;;  %61 = vadd.xlane.f32.xlu0 %v60_v32 }
  0x16   :  { %87 = vadd.xlane.f32.xlu1 %v86_v34  ;;  %84 = vadd.xlane.f32.xlu0 %v83_v36 }
  0x1a   :  { %93 = vadd.xlane.f32.xlu1 %v92_v38  ;;  %90 = vadd.xlane.f32.xlu0 %v89_v40 }
  0x1e   :  { %99 = vadd.xlane.f32.xlu1 %v98_v42  ;;  %96 = vadd.xlane.f32.xlu0 %v95_v44 }
  0x22   :  { %105 = vadd.xlane.f32.xlu1 %v104_v46  ;;  %102 = vadd.xlane.f32.xlu0 %v101_v47 }
  0x93   :  { %v50_v48 = vpop.xlane.xlu1 %49  ;;  %v44_v49 = vpop.xlane.xlu0 %43 }
  0x94   :  { %v352_v57 = vmul.f32 0.015625, %v44_v49  ;;  %v356_v63 = vmul.f32 0.015625, %v50_v48  ;;  %v205_v49 = vld [vmem:[%s435_s2] ss:$0 sm:$0xff] }
  0x96   :  { %v115_v0 = vmul.f32 %v352_v57, %v352_v57  ;;  %v117_v14 = vmul.f32 %v356_v63, %v356_v63  ;;  %v131_v48 = vsub.f32 %v268_v7, %v352_v57  ;;  %v133_v57 = vsub.f32 %v257_v3, %v356_v63 }
  0x97   :  { %v53_v50 = vpop.xlane.xlu1 %52  ;;  %v47_v51 = vpop.xlane.xlu0 %46 }
  0x98   :  { %v68_v55 = vmul.f32 0.015625, %v47_v51  ;;  %v354_v59 = vmul.f32 0.015625, %v53_v50 }
  0x9a   :  { %v116_v60 = vmul.f32 %v68_v55, %v68_v55  ;;  %v118_v6 = vmul.f32 %v354_v59, %v354_v59  ;;  %v132_v45 = vsub.f32 %v283_v13, %v68_v55  ;;  %v134_v13 = vsub.f32 %v270_v8, %v354_v59 }
  0x9b   :  { %v59_v52 = vpop.xlane.xlu1 %58  ;;  %v56_v53 = vpop.xlane.xlu0 %55 }
  0x9c   :  { %v362_v9 = vmul.f32 0.015625, %v59_v52  ;;  %v366_v15 = vmul.f32 0.015625, %v56_v53 }
  0x9e   :  { %v120_v23 = vmul.f32 %v362_v9, %v362_v9  ;;  %v119_v30 = vmul.f32 %v366_v15, %v366_v15 }
  0x9f   :  { %v65_v54 = vpop.xlane.xlu1 %64  ;;  %v62_v56 = vpop.xlane.xlu0 %61 }
  0xa0   :  { %v370_v24 = vmul.f32 0.015625, %v65_v54  ;;  %v374_v31 = vmul.f32 0.015625, %v62_v56  ;;  %v206_v54 = vld [vmem:[%s436_s3] ss:$0 sm:$0xff] }
  0xa2   :  { %v122_v37 = vmul.f32 %v370_v24, %v370_v24  ;;  %v121_v41 = vmul.f32 %v374_v31, %v374_v31 }
  0xa3   :  { %v88_v58 = vpop.xlane.xlu1 %87  ;;  %v85_v62 = vpop.xlane.xlu0 %84 }
  0xa4   :  { %v108_v61 = vmul.f32 0.015625, %v88_v58  ;;  %v107_v1 = vmul.f32 0.015625, %v85_v62 }
  0xa6   :  { %v124_v2 = vsub.f32 %v108_v61, %v116_v60  ;;  %v123_v4 = vsub.f32 %v107_v1, %v115_v0 }
  0xa7   :  { %v94_v5 = vpop.xlane.xlu1 %93  ;;  %v91_v12 = vpop.xlane.xlu0 %90 }
  0xa8   :  { %v140_v10 = vadd.f32 1e-05, %v124_v2  ;;  %v110_v11 = vmul.f32 0.015625, %v94_v5  ;;  %v139_v16 = vadd.f32 1e-05, %v123_v4  ;;  %v109_v17 = vmul.f32 0.015625, %v91_v12 }
  0xa9   :  { %v136_v2 = vsub.f32 %v298_v19, %v362_v9  ;;  %v135_v4 = vsub.f32 %v302_v21, %v366_v15  ;;  %v137_v12 = vsub.f32 %v322_v29, %v374_v31 }
  0xaa   :  { %207 = vrsqrt.f32 %v140_v10  ;;  %v126_v18 = vsub.f32 %v110_v11, %v118_v6  ;;  %v125_v20 = vsub.f32 %v109_v17, %v117_v14  ;;  %v138_v10 = vsub.f32 %v318_v27, %v370_v24 }
  0xab   :  { %209 = vrsqrt.f32 %v139_v16  ;;  %v100_v22 = vpop.xlane.xlu1 %99  ;;  %v97_v28 = vpop.xlane.xlu0 %96 }
  0xac   :  { %v142_v25 = vadd.f32 1e-05, %v126_v18  ;;  %v112_v26 = vmul.f32 0.015625, %v100_v22  ;;  %v141_v32 = vadd.f32 1e-05, %v125_v20  ;;  %v111_v33 = vmul.f32 0.015625, %v97_v28 }
  0xae   :  { %211 = vrsqrt.f32 %v142_v25  ;;  %v128_v34 = vsub.f32 %v112_v26, %v120_v23  ;;  %v127_v35 = vsub.f32 %v111_v33, %v119_v30 }
  0xaf   :  { %213 = vrsqrt.f32 %v141_v32  ;;  %v106_v36 = vpop.xlane.xlu1 %105  ;;  %v103_v40 = vpop.xlane.xlu0 %102 }
  0xb0   :  { %v144_v38 = vadd.f32 1e-05, %v128_v34  ;;  %v114_v39 = vmul.f32 0.015625, %v106_v36  ;;  %v143_v42 = vadd.f32 1e-05, %v127_v35  ;;  %v113_v43 = vmul.f32 0.015625, %v103_v40 }
  0xb2   :  { %215 = vrsqrt.f32 %v144_v38  ;;  %v130_v44 = vsub.f32 %v114_v39, %v122_v37  ;;  %v129_v46 = vsub.f32 %v113_v43, %v121_v41 }
  0xb3   :  { %217 = vrsqrt.f32 %v143_v42 }
  0xb4   :  { %v208_v47 = vpop.eup %207  ;;  %v146_v50 = vadd.f32 1e-05, %v130_v44  ;;  %v145_v53 = vadd.f32 1e-05, %v129_v46 }
  0xb5   :  { %v210_v51 = vpop.eup %209  ;;  %v156_v52 = vmul.f32 %v208_v47, %v132_v45 }
  0xb6   :  { %v155_v56 = vmul.f32 %v210_v51, %v131_v48  ;;  %219 = vrsqrt.f32 %v146_v50 }
  0xb7   :  { %v171_v55 = vmul.f32 %v205_v49, %v156_v52  ;;  %221 = vrsqrt.f32 %v145_v53 }
  0xb8   :  { %v212_v7 = vpop.eup %211  ;;  %v170_v58 = vmul.f32 %v205_v49, %v155_v56 }
  0xb9   :  { %v214_v60 = vpop.eup %213  ;;  %v186_v61 = vadd.f32 %v206_v54, %v171_v55  ;;  %v158_v62 = vmul.f32 %v212_v7, %v134_v13 }
  0xba   :  { %v185_v0 = vadd.f32 %v206_v54, %v170_v58  ;;  %v157_v1 = vmul.f32 %v214_v60, %v133_v57 }
  0xbb   :  { %194 = vst.msk [vmem:[%s437_s4 + $0x8] sm:$0xff] %vm41_vm0, %v186_v61  ;;  %v173_v8 = vmul.f32 %v205_v49, %v158_v62 }
  0xbc   :  { %v216_v59 = vpop.eup %215  ;;  %193 = vst.msk [vmem:[%s437_s4] sm:$0xff] %vm41_vm0, %v185_v0  ;;  %v172_v3 = vmul.f32 %v205_v49, %v157_v1 }
  0xbd   :  { %v218_v63 = vpop.eup %217  ;;  %v188_v5 = vadd.f32 %v206_v54, %v173_v8  ;;  %v160_v6 = vmul.f32 %v216_v59, %v136_v2 }
  0xbe   :  { %v187_v19 = vadd.f32 %v206_v54, %v172_v3  ;;  %v159_v9 = vmul.f32 %v218_v63, %v135_v4 }
  0xbf   :  { %196 = vst.msk [vmem:[%s437_s4 + $0x18] sm:$0xff] %vm41_vm0, %v188_v5  ;;  %v175_v21 = vmul.f32 %v205_v49, %v160_v6 }
  0xc0   :  { %v220_v11 = vpop.eup %219  ;;  %195 = vst.msk [vmem:[%s437_s4 + $0x10] sm:$0xff] %vm41_vm0, %v187_v19  ;;  %v174_v14 = vmul.f32 %v205_v49, %v159_v9 }
  0xc1   :  { %v222_v15 = vpop.eup %221  ;;  %v190_v16 = vadd.f32 %v206_v54, %v175_v21  ;;  %v162_v17 = vmul.f32 %v220_v11, %v138_v10 }
  0xc2   :  { %v189_v27 = vadd.f32 %v206_v54, %v174_v14  ;;  %v161_v18 = vmul.f32 %v222_v15, %v137_v12 }
  0xc3   :  { %198 = vst.msk [vmem:[%s437_s4 + $0x28] sm:$0xff] %vm41_vm0, %v190_v16  ;;  %v177_v20 = vmul.f32 %v205_v49, %v162_v17 }
  0xc4   :  { %197 = vst.msk [vmem:[%s437_s4 + $0x20] sm:$0xff] %vm41_vm0, %v189_v27  ;;  %v176_v29 = vmul.f32 %v205_v49, %v161_v18 }
  0xc5   :  { %v192_v22 = vadd.f32 %v206_v54, %v177_v20 }
  0xc6   :  { %v191_v23 = vadd.f32 %v206_v54, %v176_v29 }
  0xc7   :  { %200 = vst.msk [vmem:[%s437_s4 + $0x38] sm:$0xff] %vm41_vm0, %v192_v22 }
  0xc8   :  { %199 = vst.msk [vmem:[%s437_s4 + $0x30] sm:$0xff] %vm41_vm0, %v191_v23 }

// kernel: run.33
= control target key start
LH: loop header
LB: loop body
LE: loop exit
PB: predicated region body
PF: predicated region fallthrough
CT: control target
= control target key end

     0   :  { %vm43_vm0 = vcmask 523264   ;;  %s998_s1 = inlined_call_operand.vmem [shape: f32[64,64], index: 1, kind: input, shape index: {}]   ;;  %s999_s0 = inlined_call_operand.vmem [shape: f32[64,64], index: 0, kind: input, shape index: {}]   ;;  %s1000_s3 = inlined_call_operand.vmem [shape: f32[64,64], index: 3, kind: input, shape index: {}]   ;;  %s1001_s2 = inlined_call_operand.vmem [shape: f32[1,64], index: 2, kind: input, shape index: {}]   ;;  %s1002_s4 = inlined_call_operand.vmem [shape: f32[1,64], index: 4, kind: input, shape index: {}]   ;;  %s1003_s5 = inlined_call_operand.vmem [shape: f32[64,64], index: 5, kind: output, shape index: {}]  }
   0x1   :  { %v28_v0 = vld [vmem:[%s998_s1] sm:$0xff]  ;;  %v29_v1 = vld [vmem:[%s998_s1 + $0x8] sm:$0xff]  ;;  %v30_v2 = vld [vmem:[%s998_s1 + $0x10] sm:$0xff] }
   0x2   :  { %v651_v3 = vpack.c.bf16 %v29_v1, %v28_v0  ;;  %v31_v4 = vld [vmem:[%s998_s1 + $0x18] sm:$0xff]  ;;  %v32_v6 = vld [vmem:[%s998_s1 + $0x20] sm:$0xff]  ;;  %v33_v7 = vld [vmem:[%s998_s1 + $0x28] sm:$0xff] }
   0x3   :  { %v655_v5 = vpack.c.bf16 %v31_v4, %v30_v2  ;;  %v20_v8 = vld [vmem:[%s999_s0] sm:$0xff]  ;;  %v659_v9 = vpack.c.bf16 %v33_v7, %v32_v6  ;;  %v34_v10 = vld [vmem:[%s998_s1 + $0x30] sm:$0xff]  ;;  %v35_v11 = vld [vmem:[%s998_s1 + $0x38] sm:$0xff] }
   0x4   :  { %652 = vmatprep.subr.bf16.mxu0 %v651_v3  ;;  %611 = vmatprep.mubr.msk.f32.mxu0 %vm43_vm0, %v20_v8  ;;  %v663_v12 = vpack.c.bf16 %v35_v11, %v34_v10  ;;  %v21_v13 = vld [vmem:[%s999_s0 + $0x8] sm:$0xff]  ;;  %v22_v14 = vld [vmem:[%s999_s0 + $0x10] sm:$0xff]  ;;  %v23_v15 = vld [vmem:[%s999_s0 + $0x18] sm:$0xff] }
   0x5   :  { %654 = vmatpush3.bf16.msra.mxu0 %v651_v3  ;;  %v24_v16 = vld [vmem:[%s999_s0 + $0x20] sm:$0xff]  ;;  %v25_v17 = vld [vmem:[%s999_s0 + $0x28] sm:$0xff]  ;;  %v26_v18 = vld [vmem:[%s999_s0 + $0x30] sm:$0xff] }
   0x6   :  { %656 = vmatprep.subr.bf16.mxu0 %v655_v5  ;;  %v27_v19 = vld [vmem:[%s999_s0 + $0x38] sm:$0xff]  ;;  %v389_v20 = vld [vmem:[%s1000_s3] sm:$0xff]  ;;  %v390_v21 = vld [vmem:[%s1000_s3 + $0x8] sm:$0xff] }
   0x7   :  { %v667_v22 = vpack.c.bf16 %v390_v21, %v389_v20  ;;  %v391_v23 = vld [vmem:[%s1000_s3 + $0x10] sm:$0xff]  ;;  %v392_v24 = vld [vmem:[%s1000_s3 + $0x18] sm:$0xff]  ;;  %v393_v26 = vld [vmem:[%s1000_s3 + $0x20] sm:$0xff] }
   0x8   :  { %v671_v25 = vpack.c.bf16 %v392_v24, %v391_v23  ;;  %v394_v27 = vld [vmem:[%s1000_s3 + $0x28] sm:$0xff]  ;;  %v395_v29 = vld [vmem:[%s1000_s3 + $0x30] sm:$0xff]  ;;  %v396_v30 = vld [vmem:[%s1000_s3 + $0x38] sm:$0xff] }
   0x9   :  { %658 = vmatpush3.bf16.msra.mxu0 %v655_v5  ;;  %668 = vmatprep.subr.bf16.mxu1 %v667_v22  ;;  %v675_v28 = vpack.c.bf16 %v394_v27, %v393_v26  ;;  %v679_v31 = vpack.c.bf16 %v396_v30, %v395_v29  ;;  %v545_v32 = vld [vmem:[%s1001_s2] ss:$0 sm:$0xff] }
   0xa   :  { %660 = vmatprep.subr.bf16.mxu0 %v659_v9  ;;  %670 = vmatpush3.bf16.msra.mxu1 %v667_v22 }
   0xb   :  { %672 = vmatprep.subr.bf16.mxu1 %v671_v25 }
   0xd   :  { %662 = vmatpush3.bf16.msra.mxu0 %v659_v9 }
   0xe   :  { %664 = vmatprep.subr.bf16.mxu0 %v663_v12  ;;  %674 = vmatpush3.bf16.msra.mxu1 %v671_v25 }
   0xf   :  { %676 = vmatprep.subr.bf16.mxu1 %v675_v28 }
  0x11   :  { %666 = vmatpush3.bf16.msra.mxu0 %v663_v12 }
  0x12   :  { %678 = vmatpush3.bf16.msra.mxu1 %v675_v28 }
  0x13   :  { %680 = vmatprep.subr.bf16.mxu1 %v679_v31 }
  0x14   :  { %612 = vmatmul.mubr.msk.f32.vlgmr.msra.gmra.mrb[0].mxu0 %vm43_vm0, %v21_v13 }
  0x15   :  { %614 = vmatprep.mubr.msk.f32.mxu0 %vm43_vm0, %v22_v14 }
  0x16   :  { %682 = vmatpush3.bf16.msra.mxu1 %v679_v31 }
  0x18   :  { %615 = vmatmul.mubr.msk.f32.gmra.mrb[2].mxu0 %vm43_vm0, %v23_v15 }
  0x19   :  { %617 = vmatprep.mubr.msk.f32.mxu0 %vm43_vm0, %v24_v16 }
  0x1c   :  { %618 = vmatmul.mubr.msk.f32.gmra.mrb[4].mxu0 %vm43_vm0, %v25_v17 }
  0x1d   :  { %620 = vmatprep.mubr.msk.f32.mxu0 %vm43_vm0, %v26_v18 }
  0x20   :  { %621 = vmatmul.mubr.msk.f32.gmra.mrb[6].mxu0 %vm43_vm0, %v27_v19 }
  0xe7   :  { %v613_v33 = vpop.f32.mrb[0].mxu0 }
  0xe8   :  { %v828_v34 = vadd.f32 %v613_v33, %v545_v32  ;;  %v134_v35 = vpop.f32.mrb[1].mxu0 }
  0xe9   :  { %v830_v36 = vadd.f32 %v545_v32, %v134_v35 }
  0xea   :  { %v833_v37 = vmul.f32 0.70710677, %v828_v34 }
  0xeb   :  { %v836_v38 = vmul.f32 0.70710677, %v830_v36  ;;  %v616_v39 = vpop.f32.mrb[2].mxu0 }
  0xec   :  { %v190_v40 = vand.u32 2147483647, %v833_v37  ;;  %v839_v41 = vadd.f32 %v616_v39, %v545_v32  ;;  %v144_v42 = vpop.f32.mrb[3].mxu0  ;;  %vm350_vm1 = vcmp.lt.f32.partialorder %v833_v37, 0.0 }
  0xed   :  { %v189_v43 = vand.u32 2147483647, %v836_v38  ;;  %v842_v44 = vadd.f32 %v545_v32, %v144_v42  ;;  %vm349_vm2 = vcmp.lt.f32.partialorder %v836_v38, 0.0 }
  0xee   :  { %v198_v45 = vmul.f32 0.3275911, %v190_v40  ;;  %v845_v46 = vmul.f32 0.70710677, %v839_v41  ;;  %v302_v63 = vsub.f32 0.0, %v190_v40 }
  0xef   :  { %v197_v47 = vmul.f32 0.3275911, %v189_v43  ;;  %v848_v48 = vmul.f32 0.70710677, %v842_v44  ;;  %v619_v51 = vpop.f32.mrb[4].mxu0  ;;  %v301_v2 = vsub.f32 0.0, %v189_v43 }
  0xf0   :  { %v206_v49 = vadd.f32 1.0, %v198_v45  ;;  %v192_v50 = vand.u32 2147483647, %v845_v46  ;;  %v154_v54 = vpop.f32.mrb[5].mxu0  ;;  %v852_v59 = vadd.f32 %v619_v51, %v545_v32  ;;  %v310_v8 = vmul.f32 %v302_v63, %v190_v40 }
  0xf1   :  { %v205_v52 = vadd.f32 1.0, %v197_v47  ;;  %v191_v53 = vand.u32 2147483647, %v848_v48  ;;  %v854_v62 = vadd.f32 %v545_v32, %v154_v54  ;;  %v309_v15 = vmul.f32 %v301_v2, %v189_v43 }
  0xf2   :  { %683 = vrcp.f32 %v206_v49  ;;  %v200_v55 = vmul.f32 0.3275911, %v192_v50  ;;  %v857_v0 = vmul.f32 0.70710677, %v852_v59  ;;  %v304_v3 = vsub.f32 0.0, %v192_v50 }
  0xf3   :  { %v199_v56 = vmul.f32 0.3275911, %v191_v53  ;;  %v622_v57 = vpop.f32.mrb[6].mxu0  ;;  %685 = vrcp.f32 %v205_v52  ;;  %v860_v1 = vmul.f32 0.70710677, %v854_v62  ;;  %v303_v9 = vsub.f32 0.0, %v191_v53 }
  0xf4   :  { %v208_v58 = vadd.f32 1.0, %v200_v55  ;;  %v164_v60 = vpop.f32.mrb[7].mxu0  ;;  %v194_v4 = vand.u32 2147483647, %v857_v0  ;;  %v863_v5 = vadd.f32 %v622_v57, %v545_v32  ;;  %v312_v16 = vmul.f32 %v304_v3, %v192_v50 }
  0xf5   :  { %v207_v61 = vadd.f32 1.0, %v199_v56  ;;  %v193_v6 = vand.u32 2147483647, %v860_v1  ;;  %v866_v7 = vadd.f32 %v545_v32, %v164_v60  ;;  %v319_v23 = vmul.f32 1.442695, %v310_v8 }
  0xf6   :  { %687 = vrcp.f32 %v208_v58  ;;  %v202_v10 = vmul.f32 0.3275911, %v194_v4  ;;  %v869_v11 = vmul.f32 0.70710677, %v863_v5  ;;  %v306_v20 = vsub.f32 0.0, %v194_v4 }
  0xf7   :  { %689 = vrcp.f32 %v207_v61  ;;  %v201_v12 = vmul.f32 0.3275911, %v193_v6  ;;  %v872_v13 = vmul.f32 0.70710677, %v866_v7  ;;  %v311_v24 = vmul.f32 %v303_v9, %v191_v53 }
  0xf8   :  { %v210_v17 = vadd.f32 1.0, %v202_v10  ;;  %v196_v18 = vand.u32 2147483647, %v869_v11  ;;  %v305_v28 = vsub.f32 0.0, %v193_v6  ;;  %v317_v31 = vmul.f32 1.442695, %v309_v15 }
  0xf9   :  { %v209_v21 = vadd.f32 1.0, %v201_v12  ;;  %v195_v22 = vand.u32 2147483647, %v872_v13  ;;  %v323_v32 = vmul.f32 1.442695, %v312_v16  ;;  %v314_v42 = vmul.f32 %v306_v20, %v194_v4 }
  0xfa   :  { %691 = vrcp.f32 %v210_v17  ;;  %v204_v25 = vmul.f32 0.3275911, %v196_v18  ;;  %v321_v47 = vmul.f32 1.442695, %v311_v24  ;;  %v308_v49 = vsub.f32 0.0, %v196_v18 }
  0xfb   :  { %693 = vrcp.f32 %v209_v21  ;;  %v203_v29 = vmul.f32 0.3275911, %v195_v22  ;;  %v313_v52 = vmul.f32 %v305_v28, %v193_v6  ;;  %v307_v54 = vsub.f32 0.0, %v195_v22 }
  0xfc   :  { %v874_v14 = vpop.eup %683  ;;  %v212_v33 = vadd.f32 1.0, %v204_v25  ;;  %v891_v57 = vmul.f32 0.5, %v830_v36  ;;  %v327_v60 = vmul.f32 1.442695, %v314_v42  ;;  %v316_v63 = vmul.f32 %v308_v49, %v196_v18 }
  0xfd   :  { %v230_v19 = vmul.f32 1.0614054, %v874_v14  ;;  %v879_v26 = vpop.eup %685  ;;  %v211_v43 = vadd.f32 1.0, %v203_v29  ;;  %v325_v6 = vmul.f32 1.442695, %v313_v52  ;;  %v315_v10 = vmul.f32 %v307_v54, %v195_v22 }
  0xfe   :  { %695 = vrcp.f32 %v212_v33  ;;  %v229_v55 = vmul.f32 1.0614054, %v879_v26  ;;  %v331_v20 = vmul.f32 1.442695, %v316_v63  ;;  %vm351_vm3 = vcmp.lt.f32.partialorder %v848_v48, 0.0 }
  0xff   :  { %v238_v27 = vadd.f32 -1.4531521, %v230_v19  ;;  %697 = vrcp.f32 %v211_v43  ;;  %v329_v29 = vmul.f32 1.442695, %v315_v10  ;;  %vm352_vm4 = vcmp.lt.f32.partialorder %v845_v46, 0.0 }
 0x100   :  { %v881_v30 = vpop.eup %687  ;;  %699 = vpow2.f32 %v319_v23  ;;  %v237_v2 = vadd.f32 -1.4531521, %v229_v55  ;;  %vm354_vm5 = vcmp.lt.f32.partialorder %v857_v0, 0.0  ;;  %vm353_vm6 = vcmp.lt.f32.partialorder %v860_v1, 0.0 }
 0x101   :  { %v883_v35 = vpop.eup %689  ;;  %v246_v39 = vmul.f32 %v874_v14, %v238_v27  ;;  %v232_v40 = vmul.f32 1.0614054, %v881_v30  ;;  %701 = vpow2.f32 %v317_v31  ;;  %v177_v0 = vmul.f32 0.5, %v854_v62 }
 0x102   :  { %v231_v45 = vmul.f32 1.0614054, %v883_v35  ;;  %703 = vpow2.f32 %v323_v32  ;;  %v245_v36 = vmul.f32 %v879_v26, %v237_v2  ;;  %vm356_vm7 = vcmp.lt.f32.partialorder %v869_v11, 0.0 }
 0x103   :  { %v254_v50 = vadd.f32 1.4214138, %v246_v39  ;;  %v240_v51 = vadd.f32 -1.4531521, %v232_v40  ;;  %705 = vpow2.f32 %v321_v47  ;;  %vm355_vm8 = vcmp.lt.f32.partialorder %v872_v13, 0.0 }
 0x104   :  { %v239_v53 = vadd.f32 -1.4531521, %v231_v45  ;;  %v895_v8 = vpop.eup %691  ;;  %707 = vpow2.f32 %v327_v60  ;;  %v253_v21 = vadd.f32 1.4214138, %v245_v36  ;;  %v179_v62 = vmul.f32 0.5, %v866_v7 }
 0x105   :  { %v262_v56 = vmul.f32 %v874_v14, %v254_v50  ;;  %v248_v58 = vmul.f32 %v881_v30, %v240_v51  ;;  %v898_v12 = vpop.eup %693  ;;  %v234_v17 = vmul.f32 1.0614054, %v895_v8  ;;  %709 = vpow2.f32 %v325_v6 }
 0x106   :  { %v247_v61 = vmul.f32 %v883_v35, %v239_v53  ;;  %v233_v19 = vmul.f32 1.0614054, %v898_v12  ;;  %v261_v31 = vmul.f32 %v879_v26, %v253_v21  ;;  %711 = vpow2.f32 %v331_v20 }
 0x107   :  { %v270_v3 = vadd.f32 -0.28449672, %v262_v56  ;;  %v256_v4 = vadd.f32 1.4214138, %v248_v58  ;;  %v242_v22 = vadd.f32 -1.4531521, %v234_v17  ;;  %713 = vpow2.f32 %v329_v29 }
 0x108   :  { %v255_v9 = vadd.f32 1.4214138, %v247_v61  ;;  %v905_v25 = vpop.eup %695  ;;  %v241_v28 = vadd.f32 -1.4531521, %v233_v19  ;;  %v269_v50 = vadd.f32 -0.28449672, %v261_v31 }
 0x109   :  { %v278_v15 = vmul.f32 %v874_v14, %v270_v3  ;;  %v264_v16 = vmul.f32 %v881_v30, %v256_v4  ;;  %v908_v32 = vpop.eup %697  ;;  %v250_v40 = vmul.f32 %v895_v8, %v242_v22  ;;  %v236_v42 = vmul.f32 1.0614054, %v905_v25 }
 0x10a   :  { %v263_v18 = vmul.f32 %v883_v35, %v255_v9  ;;  %v700_v43 = vpop.eup %699  ;;  %v249_v47 = vmul.f32 %v898_v12, %v241_v28  ;;  %v235_v49 = vmul.f32 1.0614054, %v908_v32  ;;  %v277_v60 = vmul.f32 %v879_v26, %v269_v50 }
 0x10b   :  { %v286_v23 = vadd.f32 0.2548296, %v278_v15  ;;  %v272_v24 = vadd.f32 -0.28449672, %v264_v16  ;;  %v258_v53 = vadd.f32 1.4214138, %v250_v40  ;;  %v702_v55 = vpop.eup %701 }
 0x10c   :  { %v271_v27 = vadd.f32 -0.28449672, %v263_v18  ;;  %v244_v54 = vadd.f32 -1.4531521, %v236_v42  ;;  %v257_v56 = vadd.f32 1.4214138, %v249_v47  ;;  %v704_v61 = vpop.eup %703 }
 0x10d   :  { %v294_v33 = vmul.f32 %v874_v14, %v286_v23  ;;  %v280_v39 = vmul.f32 %v881_v30, %v272_v24  ;;  %v243_v58 = vadd.f32 -1.4531521, %v235_v49  ;;  %v266_v3 = vmul.f32 %v895_v8, %v258_v53  ;;  %v706_v6 = vpop.eup %705 }
 0x10e   :  { %v279_v45 = vmul.f32 %v883_v35, %v271_v27  ;;  %v252_v4 = vmul.f32 %v905_v25, %v244_v54  ;;  %v265_v10 = vmul.f32 %v898_v12, %v257_v56  ;;  %v285_v15 = vadd.f32 0.2548296, %v277_v60  ;;  %v708_v16 = vpop.eup %707 }
 0x10f   :  { %v334_v51 = vmul.f32 %v700_v43, %v294_v33  ;;  %v288_v52 = vadd.f32 0.2548296, %v280_v39  ;;  %v251_v36 = vmul.f32 %v908_v32, %v243_v58  ;;  %v274_v18 = vadd.f32 -0.28449672, %v266_v3  ;;  %v710_v22 = vpop.eup %709 }
 0x110   :  { %v287_v14 = vadd.f32 0.2548296, %v279_v45  ;;  %v260_v19 = vadd.f32 1.4214138, %v252_v4  ;;  %v273_v23 = vadd.f32 -0.28449672, %v265_v10  ;;  %v293_v24 = vmul.f32 %v879_v26, %v285_v15 }
 0x111   :  { %v342_v63 = vsub.f32 1.0, %v334_v51  ;;  %v296_v2 = vmul.f32 %v881_v30, %v288_v52  ;;  %v259_v30 = vadd.f32 1.4214138, %v251_v36  ;;  %v282_v28 = vmul.f32 %v895_v8, %v274_v18 }
 0x112   :  { %v295_v9 = vmul.f32 %v883_v35, %v287_v14  ;;  %v268_v35 = vmul.f32 %v905_v25, %v260_v19  ;;  %v281_v39 = vmul.f32 %v898_v12, %v273_v23  ;;  %v333_v43 = vmul.f32 %v702_v55, %v293_v24 }
 0x113   :  { %v336_v17 = vmul.f32 %v704_v61, %v296_v2  ;;  %v358_v27 = vsub.f32 0.0, %v342_v63  ;;  %v267_v40 = vmul.f32 %v908_v32, %v259_v30  ;;  %v290_v20 = vadd.f32 0.2548296, %v282_v28 }
 0x114   :  { %v335_v21 = vmul.f32 %v706_v6, %v295_v9  ;;  %v276_v42 = vadd.f32 -0.28449672, %v268_v35  ;;  %v289_v45 = vadd.f32 0.2548296, %v281_v39  ;;  %v341_v51 = vsub.f32 1.0, %v333_v43 }
 0x115   :  { %v344_v31 = vsub.f32 1.0, %v336_v17  ;;  %v275_v47 = vadd.f32 -0.28449672, %v267_v40  ;;  %v366_v49 = vsel %vm350_vm1, %v358_v27, %v342_v63  ;;  %v298_v29 = vmul.f32 %v895_v8, %v290_v20  ;;  %v712_v8 = vpop.eup %711 }
 0x116   :  { %v343_v33 = vsub.f32 1.0, %v335_v21  ;;  %v284_v50 = vmul.f32 %v905_v25, %v276_v42  ;;  %v297_v54 = vmul.f32 %v898_v12, %v289_v45  ;;  %v175_v55 = vmul.f32 0.5, %v842_v44  ;;  %v714_v10 = vpop.eup %713 }
 0x117   :  { %v360_v52 = vsub.f32 0.0, %v344_v31  ;;  %v283_v14 = vmul.f32 %v908_v32, %v275_v47  ;;  %v338_v48 = vmul.f32 %v708_v16, %v298_v29  ;;  %v357_v58 = vsub.f32 0.0, %v341_v51 }
 0x118   :  { %v359_v26 = vsub.f32 0.0, %v343_v33  ;;  %v292_v56 = vadd.f32 0.2548296, %v284_v50  ;;  %v337_v60 = vmul.f32 %v710_v22, %v297_v54  ;;  %v374_v63 = vadd.f32 1.0, %v366_v49 }
 0x119   :  { %v291_v61 = vadd.f32 0.2548296, %v283_v14  ;;  %v346_v2 = vsub.f32 1.0, %v338_v48  ;;  %v365_v12 = vsel %vm349_vm2, %v357_v58, %v341_v51  ;;  %v368_v4 = vsel %vm352_vm4, %v360_v52, %v344_v31 }
 0x11a   :  { %v367_v53 = vsel %vm351_vm3, %v359_v26, %v343_v33  ;;  %v300_v3 = vmul.f32 %v905_v25, %v292_v56  ;;  %v345_v6 = vsub.f32 1.0, %v337_v60  ;;  %v373_v9 = vadd.f32 1.0, %v365_v12 }
 0x11b   :  { %v375_v37 = vadd.f32 1.0, %v367_v53  ;;  %v299_v44 = vmul.f32 %v908_v32, %v291_v61  ;;  %v174_v36 = vmul.f32 0.5, %v828_v34  ;;  %v362_v46 = vsub.f32 0.0, %v346_v2 }
 0x11c   :  { %v340_v15 = vmul.f32 %v712_v8, %v300_v3  ;;  %v361_v17 = vsub.f32 0.0, %v345_v6  ;;  %v381_v25 = vmul.f32 %v373_v9, %v891_v57  ;;  %v376_v38 = vadd.f32 1.0, %v368_v4 }
 0x11d   :  { %v383_v16 = vmul.f32 %v375_v37, %v175_v55  ;;  %v339_v18 = vmul.f32 %v714_v10, %v299_v44  ;;  %v382_v19 = vmul.f32 %v374_v63, %v174_v36  ;;  %v370_v23 = vsel %vm354_vm5, %v362_v46, %v346_v2 }
 0x11e   :  { %v348_v21 = vsub.f32 1.0, %v340_v15  ;;  %v369_v32 = vsel %vm353_vm6, %v361_v17, %v345_v6  ;;  %639 = vmatprep.mubr.msk.f32.mxu1 %vm43_vm0, %v381_v25  ;;  %v176_v34 = vmul.f32 0.5, %v839_v41  ;;  %v378_v27 = vadd.f32 1.0, %v370_v23 }
 0x11f   :  { %v347_v30 = vsub.f32 1.0, %v339_v18  ;;  %v377_v24 = vadd.f32 1.0, %v369_v32  ;;  %640 = vmatmul.mubr.msk.f32.vlgmr.msra.gmra.mrb[0].mxu1 %vm43_vm0, %v382_v19  ;;  %v178_v41 = vmul.f32 0.5, %v852_v59  ;;  %v180_v20 = vmul.f32 0.5, %v863_v5  ;;  %v554_v59 = vld [vmem:[%s1002_s4] ss:$0 sm:$0xff] }
 0x120   :  { %v364_v22 = vsub.f32 0.0, %v348_v21  ;;  %642 = vmatprep.mubr.msk.f32.mxu1 %vm43_vm0, %v383_v16  ;;  %v384_v1 = vmul.f32 %v376_v38, %v176_v34 }
 0x121   :  { %v363_v57 = vsub.f32 0.0, %v347_v30  ;;  %v385_v28 = vmul.f32 %v377_v24, %v177_v0  ;;  %v386_v11 = vmul.f32 %v378_v27, %v178_v41 }
 0x122   :  { %v372_v35 = vsel %vm356_vm7, %v364_v22, %v348_v21 }
 0x123   :  { %v371_v31 = vsel %vm355_vm8, %v363_v57, %v347_v30  ;;  %643 = vmatmul.mubr.msk.f32.gmra.mrb[2].mxu1 %vm43_vm0, %v384_v1  ;;  %v380_v39 = vadd.f32 1.0, %v372_v35 }
 0x124   :  { %v379_v33 = vadd.f32 1.0, %v371_v31  ;;  %645 = vmatprep.mubr.msk.f32.mxu1 %vm43_vm0, %v385_v28 }
 0x125   :  { %v388_v13 = vmul.f32 %v380_v39, %v180_v20 }
 0x126   :  { %v387_v40 = vmul.f32 %v379_v33, %v179_v62 }
 0x127   :  { %646 = vmatmul.mubr.msk.f32.gmra.mrb[4].mxu1 %vm43_vm0, %v386_v11 }
 0x128   :  { %648 = vmatprep.mubr.msk.f32.mxu1 %vm43_vm0, %v387_v40 }
 0x12b   :  { %649 = vmatmul.mubr.msk.f32.gmra.mrb[6].mxu1 %vm43_vm0, %v388_v13 }
 0x1f2   :  { %v641_v7 = vpop.f32.mrb[0].mxu1 }
 0x1f3   :  { %v500_v42 = vadd.f32 %v641_v7, %v554_v59  ;;  %v494_v43 = vpop.f32.mrb[1].mxu1 }
 0x1f4   :  { %v495_v26 = vadd.f32 %v554_v59, %v494_v43 }
 0x1f5   :  { %534 = vst.msk [vmem:[%s1003_s5 + $0x8] sm:$0xff] %vm43_vm0, %v500_v42 }
 0x1f6   :  { %533 = vst.msk [vmem:[%s1003_s5] sm:$0xff] %vm43_vm0, %v495_v26  ;;  %v644_v5 = vpop.f32.mrb[2].mxu1 }
 0x1f7   :  { %v510_v45 = vadd.f32 %v644_v5, %v554_v59  ;;  %v504_v47 = vpop.f32.mrb[3].mxu1 }
 0x1f8   :  { %v505_v49 = vadd.f32 %v554_v59, %v504_v47 }
 0x1f9   :  { %536 = vst.msk [vmem:[%s1003_s5 + $0x18] sm:$0xff] %vm43_vm0, %v510_v45 }
 0x1fa   :  { %535 = vst.msk [vmem:[%s1003_s5 + $0x10] sm:$0xff] %vm43_vm0, %v505_v49  ;;  %v647_v29 = vpop.f32.mrb[4].mxu1 }
 0x1fb   :  { %v520_v50 = vadd.f32 %v647_v29, %v554_v59  ;;  %v514_v51 = vpop.f32.mrb[5].mxu1 }
 0x1fc   :  { %v515_v52 = vadd.f32 %v554_v59, %v514_v51 }
 0x1fd   :  { %538 = vst.msk [vmem:[%s1003_s5 + $0x28] sm:$0xff] %vm43_vm0, %v520_v50 }
 0x1fe   :  { %537 = vst.msk [vmem:[%s1003_s5 + $0x20] sm:$0xff] %vm43_vm0, %v515_v52  ;;  %v650_v53 = vpop.f32.mrb[6].mxu1 }
 0x1ff   :  { %v530_v54 = vadd.f32 %v650_v53, %v554_v59  ;;  %v524_v14 = vpop.f32.mrb[7].mxu1 }
 0x200   :  { %v525_v55 = vadd.f32 %v554_v59, %v524_v14 }
 0x201   :  { %540 = vst.msk [vmem:[%s1003_s5 + $0x38] sm:$0xff] %vm43_vm0, %v530_v54 }
 0x202   :  { %539 = vst.msk [vmem:[%s1003_s5 + $0x30] sm:$0xff] %vm43_vm0, %v525_v55 }

// kernel: run.41
= control target key start
LH: loop header
LB: loop body
LE: loop exit
PB: predicated region body
PF: predicated region fallthrough
CT: control target
= control target key end

     0   :  { %vm60_vm0 = vcmask 523264   ;;  %vm206_vm1 = vcmask 64512   ;;  %s1212_s4 = inlined_call_operand.vmem [shape: f32[64,128], index: 4, kind: input, shape index: {}]   ;;  %s1213_s0 = inlined_call_operand.vmem [shape: f32[64,64], index: 0, kind: input, shape index: {}]   ;;  %s1214_s6 = inlined_call_operand.vmem [shape: f32[8,128], index: 6, kind: input, shape index: {}]   ;;  %s1215_s1 = inlined_call_operand.vmem [shape: f32[64,8], index: 1, kind: input, shape index: {}]   ;;  %s1216_s8 = inlined_call_operand.vmem [shape: f32[64,128], index: 8, kind: input, shape index: {}]   ;;  %s1217_s5 = inlined_call_operand.vmem [shape: f32[1,128], index: 5, kind: input, shape index: {}]   ;;  %s1218_s7 = inlined_call_operand.vmem [shape: f32[1,128], index: 7, kind: input, shape index: {}]   ;;  %s1219_s9 = inlined_call_operand.vmem [shape: f32[1,128], index: 9, kind: input, shape index: {}]   ;;  %s1220_s2 = inlined_call_operand.vmem [shape: f32[64,64], index: 2, kind: input, shape index: {}]   ;;  %s1221_s10 = inlined_call_operand.vmem [shape: f32[64,64], index: 10, kind: output, shape index: {0}]   ;;  %s1222_s3 = inlined_call_operand.vmem [shape: f32[64,64], index: 3, kind: input, shape index: {}]   ;;  %s1223_s11 = inlined_call_operand.vmem [shape: f32[64,64], index: 11, kind: output, shape index: {1}]  }
   0x1   :  { %v45_v0 = vld [vmem:[%s1212_s4] sm:$0xff]  ;;  %v46_v1 = vld [vmem:[%s1212_s4 + $0x8] sm:$0xff]  ;;  %v47_v2 = vld [vmem:[%s1212_s4 + $0x10] sm:$0xff] }
   0x2   :  { %v802_v3 = vpack.c.bf16 %v46_v1, %v45_v0  ;;  %v48_v4 = vld [vmem:[%s1212_s4 + $0x18] sm:$0xff]  ;;  %v49_v6 = vld [vmem:[%s1212_s4 + $0x20] sm:$0xff]  ;;  %v50_v7 = vld [vmem:[%s1212_s4 + $0x28] sm:$0xff] }
   0x3   :  { %v806_v5 = vpack.c.bf16 %v48_v4, %v47_v2  ;;  %v37_v8 = vld [vmem:[%s1213_s0] sm:$0xff]  ;;  %v191_v11 = vld [vmem:[%s1215_s1 + $0x8] sm:$0xff]  ;;  %v810_v12 = vpack.c.bf16 %v50_v7, %v49_v6  ;;  %v192_v13 = vld [vmem:[%s1215_s1 + $0x10] sm:$0xff] }
   0x4   :  { %803 = vmatprep.subr.bf16.mxu0 %v802_v3  ;;  %748 = vmatprep.mubr.msk.f32.mxu0 %vm60_vm0, %v37_v8  ;;  %v198_v9 = vld [vmem:[%s1214_s6] sm:$0xff]  ;;  %v51_v14 = vld [vmem:[%s1212_s4 + $0x30] sm:$0xff]  ;;  %v52_v15 = vld [vmem:[%s1212_s4 + $0x38] sm:$0xff] }
   0x5   :  { %v190_v10 = vld [vmem:[%s1215_s1] sm:$0xff]  ;;  %805 = vmatpush3.bf16.msra.mxu0 %v802_v3  ;;  %760 = vmatprep.subr.mxu1 %v198_v9  ;;  %v193_v16 = vld [vmem:[%s1215_s1 + $0x18] sm:$0xff]  ;;  %v814_v17 = vpack.c.bf16 %v52_v15, %v51_v14  ;;  %v195_v19 = vld [vmem:[%s1215_s1 + $0x28] sm:$0xff] }
   0x6   :  { %807 = vmatprep.subr.bf16.mxu0 %v806_v5  ;;  %761 = vmatpush3.msra.mxu1 %v198_v9  ;;  %v194_v18 = vld [vmem:[%s1215_s1 + $0x20] sm:$0xff]  ;;  %v196_v20 = vld [vmem:[%s1215_s1 + $0x30] sm:$0xff]  ;;  %v38_v21 = vld [vmem:[%s1213_s0 + $0x8] sm:$0xff] }
   0x7   :  { %762 = vmatprep.mubr.msk.f32.mxu1 %vm206_vm1, %v190_v10  ;;  %v197_v22 = vld [vmem:[%s1215_s1 + $0x38] sm:$0xff]  ;;  %v39_v23 = vld [vmem:[%s1213_s0 + $0x10] sm:$0xff]  ;;  %v41_v25 = vld [vmem:[%s1213_s0 + $0x20] sm:$0xff] }
   0x8   :  { %763 = vmatmul.mubr.msk.f32.vlgmr.msra.gmra.mrb[0].mxu1 %vm206_vm1, %v191_v11  ;;  %v40_v24 = vld [vmem:[%s1213_s0 + $0x18] sm:$0xff]  ;;  %v42_v26 = vld [vmem:[%s1213_s0 + $0x28] sm:$0xff]  ;;  %v43_v27 = vld [vmem:[%s1213_s0 + $0x30] sm:$0xff] }
   0x9   :  { %809 = vmatpush3.bf16.msra.mxu0 %v806_v5  ;;  %765 = vmatprep.mubr.msk.f32.mxu1 %vm206_vm1, %v192_v13  ;;  %v44_v28 = vld [vmem:[%s1213_s0 + $0x38] sm:$0xff]  ;;  %v424_v29 = vld [vmem:[%s1216_s8] sm:$0xff]  ;;  %v425_v30 = vld [vmem:[%s1216_s8 + $0x8] sm:$0xff] }
   0xa   :  { %811 = vmatprep.subr.bf16.mxu0 %v810_v12  ;;  %v426_v31 = vld [vmem:[%s1216_s8 + $0x10] sm:$0xff]  ;;  %v818_v32 = vpack.c.bf16 %v425_v30, %v424_v29  ;;  %v427_v33 = vld [vmem:[%s1216_s8 + $0x18] sm:$0xff]  ;;  %v428_v35 = vld [vmem:[%s1216_s8 + $0x20] sm:$0xff] }
   0xb   :  { %v822_v34 = vpack.c.bf16 %v427_v33, %v426_v31  ;;  %v429_v36 = vld [vmem:[%s1216_s8 + $0x28] sm:$0xff]  ;;  %v664_v44 = vld [vmem:[%s1217_s5] ss:$0 sm:$0xff]  ;;  %v430_v57 = vld [vmem:[%s1216_s8 + $0x30] sm:$0xff] }
   0xc   :  { %766 = vmatmul.mubr.msk.f32.gmra.mrb[2].mxu1 %vm206_vm1, %v193_v16  ;;  %819 = vmatprep.subr.bf16.mxu1 %v818_v32  ;;  %v826_v37 = vpack.c.bf16 %v429_v36, %v428_v35  ;;  %v673_v51 = vld [vmem:[%s1218_s7] ss:$0 sm:$0xff]  ;;  %v431_v58 = vld [vmem:[%s1216_s8 + $0x38] sm:$0xff]  ;;  %s891_s7 = smov 64  }
   0xd   :  { %813 = vmatpush3.bf16.msra.mxu0 %v810_v12  ;;  %768 = vmatprep.mubr.msk.f32.mxu1 %vm206_vm1, %v194_v18  ;;  %v830_v61 = vpack.c.bf16 %v431_v58, %v430_v57 }
   0xe   :  { %815 = vmatprep.subr.bf16.mxu0 %v814_v17  ;;  %821 = vmatpush3.bf16.msra.mxu1 %v818_v32 }
   0xf   :  { %823 = vmatprep.subr.bf16.mxu1 %v822_v34 }
  0x10   :  { %769 = vmatmul.mubr.msk.f32.gmra.mrb[4].mxu1 %vm206_vm1, %v195_v19 }
  0x11   :  { %817 = vmatpush3.bf16.msra.mxu0 %v814_v17  ;;  %771 = vmatprep.mubr.msk.f32.mxu1 %vm206_vm1, %v196_v20 }
  0x12   :  { %825 = vmatpush3.bf16.msra.mxu1 %v822_v34 }
  0x13   :  { %827 = vmatprep.subr.bf16.mxu1 %v826_v37 }
  0x14   :  { %749 = vmatmul.mubr.msk.f32.vlgmr.msra.gmra.mrb[0].mxu0 %vm60_vm0, %v38_v21  ;;  %772 = vmatmul.mubr.msk.f32.gmra.mrb[6].mxu1 %vm206_vm1, %v197_v22 }
  0x15   :  { %751 = vmatprep.mubr.msk.f32.mxu0 %vm60_vm0, %v39_v23 }
  0x16   :  { %829 = vmatpush3.bf16.msra.mxu1 %v826_v37 }
  0x17   :  { %831 = vmatprep.subr.bf16.mxu1 %v830_v61 }
  0x18   :  { %752 = vmatmul.mubr.msk.f32.gmra.mrb[2].mxu0 %vm60_vm0, %v40_v24 }
  0x19   :  { %754 = vmatprep.mubr.msk.f32.mxu0 %vm60_vm0, %v41_v25 }
  0x1a   :  { %833 = vmatpush3.bf16.msra.mxu1 %v830_v61 }
  0x1c   :  { %755 = vmatmul.mubr.msk.f32.gmra.mrb[4].mxu0 %vm60_vm0, %v42_v26 }
  0x1d   :  { %757 = vmatprep.mubr.msk.f32.mxu0 %vm60_vm0, %v43_v27 }
  0x20   :  { %758 = vmatmul.mubr.msk.f32.gmra.mrb[6].mxu0 %vm60_vm0, %v44_v28 }
  0xdb   :  { %v764_v38 = vpop.f32.mrb[0].mxu1 }
  0xdc   :  { %v297_v39 = vpop.f32.mrb[1].mxu1 }
  0xdf   :  { %v767_v40 = vpop.f32.mrb[2].mxu1 }
  0xe0   :  { %v307_v41 = vpop.f32.mrb[3].mxu1 }
  0xe3   :  { %v770_v42 = vpop.f32.mrb[4].mxu1 }
  0xe4   :  { %v317_v43 = vpop.f32.mrb[5].mxu1 }
  0xe7   :  { %v750_v45 = vpop.f32.mrb[0].mxu0  ;;  %v773_v46 = vpop.f32.mrb[6].mxu1 }
  0xe8   :  { %v157_v47 = vadd.f32 %v750_v45, %v664_v44  ;;  %v151_v48 = vpop.f32.mrb[1].mxu0  ;;  %v327_v49 = vpop.f32.mrb[7].mxu1 }
  0xe9   :  { %v152_v50 = vadd.f32 %v664_v44, %v151_v48 }
  0xea   :  { %v835_v52 = vadd.f32 %v764_v38, %v157_v47 }
  0xeb   :  { %v838_v53 = vadd.f32 %v297_v39, %v152_v50  ;;  %v753_v54 = vpop.f32.mrb[2].mxu0 }
  0xec   :  { %v167_v55 = vadd.f32 %v753_v54, %v664_v44  ;;  %v161_v56 = vpop.f32.mrb[3].mxu0  ;;  %v836_v62 = vadd.f32 %v835_v52, %v673_v51 }
  0xed   :  { %v839_v59 = vadd.f32 %v838_v53, %v673_v51  ;;  %v162_v60 = vadd.f32 %v664_v44, %v161_v56 }
  0xee   :  { %v841_v63 = vadd.f32 %v673_v51, %v167_v55  ;;  %v345_v28 = vmul.f32 0.5, %v836_v62 }
  0xef   :  { %859 = vtanh.f32 %v839_v59  ;;  %v756_v0 = vpop.f32.mrb[4].mxu0  ;;  %v844_v1 = vadd.f32 %v673_v51, %v162_v60  ;;  %v344_v27 = vmul.f32 0.5, %v839_v59 }
  0xf0   :  { %v842_v2 = vadd.f32 %v841_v63, %v767_v40  ;;  %v177_v3 = vadd.f32 %v756_v0, %v664_v44  ;;  %v171_v4 = vpop.f32.mrb[5].mxu0  ;;  %861 = vtanh.f32 %v836_v62 }
  0xf1   :  { %v845_v5 = vadd.f32 %v844_v1, %v307_v41  ;;  %v172_v6 = vadd.f32 %v664_v44, %v171_v4 }
  0xf2   :  { %v847_v7 = vadd.f32 %v673_v51, %v177_v3  ;;  %v347_v30 = vmul.f32 0.5, %v842_v2 }
  0xf3   :  { %863 = vtanh.f32 %v845_v5  ;;  %v759_v8 = vpop.f32.mrb[6].mxu0  ;;  %v850_v9 = vadd.f32 %v673_v51, %v172_v6  ;;  %v346_v29 = vmul.f32 0.5, %v845_v5 }
  0xf4   :  { %v187_v10 = vadd.f32 %v759_v8, %v664_v44  ;;  %v848_v11 = vadd.f32 %v847_v7, %v770_v42  ;;  %v181_v12 = vpop.f32.mrb[7].mxu0  ;;  %865 = vtanh.f32 %v842_v2 }
  0xf5   :  { %v182_v13 = vadd.f32 %v664_v44, %v181_v12  ;;  %v851_v14 = vadd.f32 %v850_v9, %v317_v43 }
  0xf6   :  { %v853_v15 = vadd.f32 %v673_v51, %v187_v10  ;;  %v349_v32 = vmul.f32 0.5, %v848_v11 }
  0xf7   :  { %867 = vtanh.f32 %v851_v14  ;;  %v856_v16 = vadd.f32 %v673_v51, %v182_v13  ;;  %v348_v31 = vmul.f32 0.5, %v851_v14  ;;  %v569_v13 = vld [vmem:[%s1220_s2 + $0x8] sm:$0xff] }
  0xf8   :  { %v854_v17 = vadd.f32 %v853_v15, %v773_v46  ;;  %869 = vtanh.f32 %v848_v11  ;;  %v682_v11 = vld [vmem:[%s1219_s9] ss:$0 sm:$0xff] }
  0xf9   :  { %v860_v18 = vpop.eup %859  ;;  %v857_v19 = vadd.f32 %v856_v16, %v327_v49  ;;  %v568_v16 = vld [vmem:[%s1220_s2] sm:$0xff] }
  0xfa   :  { %392 = vrot.lane.b32.xlu0 %v860_v18, %s891_s7  ;;  %v862_v20 = vpop.eup %861  ;;  %v351_v35 = vmul.f32 0.5, %v854_v17 }
  0xfb   :  { %871 = vtanh.f32 %v857_v19  ;;  %v350_v33 = vmul.f32 0.5, %v857_v19 }
  0xfc   :  { %873 = vtanh.f32 %v854_v17 }
  0xfd   :  { %v864_v21 = vpop.eup %863  ;;  %875 = vtanh.f32 %v344_v27 }
  0xfe   :  { %396 = vrot.lane.b32.xlu1 %v864_v21, %s891_s7  ;;  %394 = vrot.lane.b32.xlu0 %v862_v20, %s891_s7  ;;  %v866_v22 = vpop.eup %865  ;;  %877 = vtanh.f32 %v345_v28  ;;  %v571_v21 = vld [vmem:[%s1220_s2 + $0x18] sm:$0xff] }
  0xff   :  { %879 = vtanh.f32 %v346_v29 }
 0x100   :  { %881 = vtanh.f32 %v347_v30 }
 0x101   :  { %v868_v23 = vpop.eup %867  ;;  %883 = vtanh.f32 %v348_v31  ;;  %v573_v31 = vld [vmem:[%s1220_s2 + $0x28] sm:$0xff] }
 0x102   :  { %398 = vrot.lane.b32.xlu1 %v866_v22, %s891_s7  ;;  %400 = vrot.lane.b32.xlu0 %v868_v23, %s891_s7  ;;  %v870_v24 = vpop.eup %869  ;;  %885 = vtanh.f32 %v349_v32 }
 0x103   :  { %887 = vtanh.f32 %v350_v33 }
 0x104   :  { %889 = vtanh.f32 %v351_v35  ;;  %v572_v35 = vld [vmem:[%s1220_s2 + $0x20] sm:$0xff] }
 0x105   :  { %v872_v25 = vpop.eup %871 }
 0x106   :  { %402 = vrot.lane.b32.xlu1 %v870_v24, %s891_s7  ;;  %404 = vrot.lane.b32.xlu0 %v872_v25, %s891_s7  ;;  %v874_v26 = vpop.eup %873  ;;  %v570_v25 = vld [vmem:[%s1220_s2 + $0x10] sm:$0xff] }
 0x107   :  { %v876_v34 = vpop.eup %875 }
 0x108   :  { %v878_v36 = vpop.eup %877  ;;  %v360_v37 = vadd.f32 1.0, %v876_v34 }
 0x109   :  { %v880_v38 = vpop.eup %879  ;;  %v361_v42 = vadd.f32 1.0, %v878_v36 }
 0x10a   :  { %406 = vrot.lane.b32.xlu1 %v874_v26, %s891_s7  ;;  %v882_v39 = vpop.eup %881  ;;  %v368_v40 = vmul.f32 0.5, %v360_v37  ;;  %v362_v41 = vadd.f32 1.0, %v880_v38 }
 0x10b   :  { %v884_v43 = vpop.eup %883  ;;  %v369_v48 = vmul.f32 0.5, %v361_v42  ;;  %v363_v49 = vadd.f32 1.0, %v882_v39 }
 0x10c   :  { %v886_v46 = vpop.eup %885  ;;  %v370_v47 = vmul.f32 0.5, %v362_v41  ;;  %v364_v50 = vadd.f32 1.0, %v884_v43  ;;  %v575_v41 = vld [vmem:[%s1220_s2 + $0x38] sm:$0xff] }
 0x10d   :  { %v888_v51 = vpop.eup %887  ;;  %v371_v56 = vmul.f32 0.5, %v363_v49  ;;  %v365_v58 = vadd.f32 1.0, %v886_v46 }
 0x10e   :  { %v372_v57 = vmul.f32 0.5, %v364_v50  ;;  %v366_v59 = vadd.f32 1.0, %v888_v51  ;;  %v890_v60 = vpop.eup %889 }
 0x10f   :  { %v373_v1 = vmul.f32 0.5, %v365_v58  ;;  %v367_v3 = vadd.f32 1.0, %v890_v60  ;;  %v603_v58 = vld [vmem:[%s1222_s3 + $0x18] sm:$0xff] }
 0x110   :  { %v374_v2 = vmul.f32 0.5, %v366_v59  ;;  %v602_v59 = vld [vmem:[%s1222_s3 + $0x10] sm:$0xff] }
 0x111   :  { %v375_v8 = vmul.f32 0.5, %v367_v3 }
 0x16c   :  { %v393_v44 = vpop.permute.xlu0 %392 }
 0x16d   :  { %v416_v45 = vmul.f32 %v393_v44, %v368_v40 }
 0x16f   :  { %790 = vmatprep.mubr.msk.f32.mxu1 %vm60_vm0, %v416_v45  ;;  %v574_v45 = vld [vmem:[%s1220_s2 + $0x30] sm:$0xff] }
 0x170   :  { %v397_v52 = vpop.permute.xlu1 %396  ;;  %v395_v53 = vpop.permute.xlu0 %394 }
 0x171   :  { %v418_v54 = vmul.f32 %v397_v52, %v370_v47  ;;  %v417_v55 = vmul.f32 %v395_v53, %v369_v48  ;;  %v601_v52 = vld [vmem:[%s1222_s3 + $0x8] sm:$0xff]  ;;  %v600_v53 = vld [vmem:[%s1222_s3] sm:$0xff] }
 0x173   :  { %791 = vmatmul.mubr.msk.f32.vlgmr.msra.gmra.mrb[8].mxu1 %vm60_vm0, %v417_v55 }
 0x174   :  { %v399_v61 = vpop.permute.xlu1 %398  ;;  %v401_v62 = vpop.permute.xlu0 %400  ;;  %793 = vmatprep.mubr.msk.f32.mxu1 %vm60_vm0, %v418_v54 }
 0x175   :  { %v419_v63 = vmul.f32 %v399_v61, %v371_v56  ;;  %v420_v0 = vmul.f32 %v401_v62, %v372_v57 }
 0x177   :  { %794 = vmatmul.mubr.msk.f32.gmra.mrb[10].mxu1 %vm60_vm0, %v419_v63 }
 0x178   :  { %v403_v4 = vpop.permute.xlu1 %402  ;;  %v405_v5 = vpop.permute.xlu0 %404  ;;  %796 = vmatprep.mubr.msk.f32.mxu1 %vm60_vm0, %v420_v0  ;;  %v605_v0 = vld [vmem:[%s1222_s3 + $0x28] sm:$0xff] }
 0x179   :  { %v421_v6 = vmul.f32 %v403_v4, %v373_v1  ;;  %v422_v7 = vmul.f32 %v405_v5, %v374_v2  ;;  %v604_v1 = vld [vmem:[%s1222_s3 + $0x20] sm:$0xff] }
 0x17b   :  { %797 = vmatmul.mubr.msk.f32.gmra.mrb[12].mxu1 %vm60_vm0, %v421_v6  ;;  %v607_v6 = vld [vmem:[%s1222_s3 + $0x38] sm:$0xff] }
 0x17c   :  { %v407_v9 = vpop.permute.xlu1 %406  ;;  %799 = vmatprep.mubr.msk.f32.mxu1 %vm60_vm0, %v422_v7  ;;  %v606_v7 = vld [vmem:[%s1222_s3 + $0x30] sm:$0xff] }
 0x17d   :  { %v423_v10 = vmul.f32 %v407_v9, %v375_v8 }
 0x17f   :  { %800 = vmatmul.mubr.msk.f32.gmra.mrb[14].mxu1 %vm60_vm0, %v423_v10 }
 0x246   :  { %v792_v12 = vpop.f32.mrb[8].mxu1 }
 0x247   :  { %v535_v14 = vadd.f32 %v792_v12, %v682_v11  ;;  %v529_v15 = vpop.f32.mrb[9].mxu1 }
 0x248   :  { %v530_v17 = vadd.f32 %v682_v11, %v529_v15 }
 0x249   :  { %v577_v18 = vadd.f32 %v569_v13, %v535_v14  ;;  %618 = vrot.lane.b32.xlu1 %v535_v14, %s891_s7 }
 0x24a   :  { %v576_v19 = vadd.f32 %v568_v16, %v530_v17  ;;  %v795_v20 = vpop.f32.mrb[10].mxu1  ;;  %616 = vrot.lane.b32.xlu0 %v530_v17, %s891_s7 }
 0x24b   :  { %v585_v22 = vmul.f32 0.70710677, %v577_v18  ;;  %v545_v23 = vadd.f32 %v795_v20, %v682_v11  ;;  %v539_v24 = vpop.f32.mrb[11].mxu1 }
 0x24c   :  { %v584_v26 = vmul.f32 0.70710677, %v576_v19  ;;  %v540_v27 = vadd.f32 %v682_v11, %v539_v24 }
 0x24d   :  { %593 = vst.msk [vmem:[%s1221_s10 + $0x8] sm:$0xff] %vm60_vm0, %v585_v22  ;;  %v579_v28 = vadd.f32 %v571_v21, %v545_v23  ;;  %622 = vrot.lane.b32.xlu1 %v545_v23, %s891_s7 }
 0x24e   :  { %592 = vst.msk [vmem:[%s1221_s10] sm:$0xff] %vm60_vm0, %v584_v26  ;;  %v578_v29 = vadd.f32 %v570_v25, %v540_v27  ;;  %v798_v30 = vpop.f32.mrb[12].mxu1  ;;  %620 = vrot.lane.b32.xlu0 %v540_v27, %s891_s7 }
 0x24f   :  { %v587_v32 = vmul.f32 0.70710677, %v579_v28  ;;  %v555_v33 = vadd.f32 %v798_v30, %v682_v11  ;;  %v549_v34 = vpop.f32.mrb[13].mxu1 }
 0x250   :  { %v586_v36 = vmul.f32 0.70710677, %v578_v29  ;;  %v550_v37 = vadd.f32 %v682_v11, %v549_v34 }
 0x251   :  { %595 = vst.msk [vmem:[%s1221_s10 + $0x18] sm:$0xff] %vm60_vm0, %v587_v32  ;;  %v581_v38 = vadd.f32 %v573_v31, %v555_v33  ;;  %626 = vrot.lane.b32.xlu1 %v555_v33, %s891_s7 }
 0x252   :  { %594 = vst.msk [vmem:[%s1221_s10 + $0x10] sm:$0xff] %vm60_vm0, %v586_v36  ;;  %v580_v39 = vadd.f32 %v572_v35, %v550_v37  ;;  %v801_v40 = vpop.f32.mrb[14].mxu1  ;;  %624 = vrot.lane.b32.xlu0 %v550_v37, %s891_s7 }
 0x253   :  { %v589_v42 = vmul.f32 0.70710677, %v581_v38  ;;  %v565_v43 = vadd.f32 %v801_v40, %v682_v11  ;;  %v559_v44 = vpop.f32.mrb[15].mxu1 }
 0x254   :  { %v588_v46 = vmul.f32 0.70710677, %v580_v39  ;;  %v560_v47 = vadd.f32 %v682_v11, %v559_v44 }
 0x255   :  { %597 = vst.msk [vmem:[%s1221_s10 + $0x28] sm:$0xff] %vm60_vm0, %v589_v42  ;;  %v583_v48 = vadd.f32 %v575_v41, %v565_v43  ;;  %630 = vrot.lane.b32.xlu1 %v565_v43, %s891_s7 }
 0x256   :  { %596 = vst.msk [vmem:[%s1221_s10 + $0x20] sm:$0xff] %vm60_vm0, %v588_v46  ;;  %v582_v49 = vadd.f32 %v574_v45, %v560_v47  ;;  %628 = vrot.lane.b32.xlu0 %v560_v47, %s891_s7 }
 0x257   :  { %v591_v50 = vmul.f32 0.70710677, %v583_v48 }
 0x258   :  { %v590_v51 = vmul.f32 0.70710677, %v582_v49 }
 0x259   :  { %599 = vst.msk [vmem:[%s1221_s10 + $0x38] sm:$0xff] %vm60_vm0, %v591_v50 }
 0x25a   :  { %598 = vst.msk [vmem:[%s1221_s10 + $0x30] sm:$0xff] %vm60_vm0, %v590_v51 }
 0x2bb   :  { %v619_v54 = vpop.permute.xlu1 %618 }
 0x2bc   :  { %v641_v55 = vadd.f32 %v619_v54, %v601_v52  ;;  %v617_v56 = vpop.permute.xlu0 %616 }
 0x2bd   :  { %v640_v57 = vadd.f32 %v617_v56, %v600_v53 }
 0x2be   :  { %649 = vst.msk [vmem:[%s1223_s11 + $0x8] sm:$0xff] %vm60_vm0, %v641_v55 }
 0x2bf   :  { %648 = vst.msk [vmem:[%s1223_s11] sm:$0xff] %vm60_vm0, %v640_v57  ;;  %v623_v60 = vpop.permute.xlu1 %622 }
 0x2c0   :  { %v643_v61 = vadd.f32 %v623_v60, %v603_v58  ;;  %v621_v62 = vpop.permute.xlu0 %620 }
 0x2c1   :  { %v642_v63 = vadd.f32 %v621_v62, %v602_v59 }
 0x2c2   :  { %651 = vst.msk [vmem:[%s1223_s11 + $0x18] sm:$0xff] %vm60_vm0, %v643_v61 }
 0x2c3   :  { %650 = vst.msk [vmem:[%s1223_s11 + $0x10] sm:$0xff] %vm60_vm0, %v642_v63  ;;  %v627_v2 = vpop.permute.xlu1 %626 }
 0x2c4   :  { %v645_v3 = vadd.f32 %v627_v2, %v605_v0  ;;  %v625_v4 = vpop.permute.xlu0 %624 }
 0x2c5   :  { %v644_v5 = vadd.f32 %v625_v4, %v604_v1 }
 0x2c6   :  { %653 = vst.msk [vmem:[%s1223_s11 + $0x28] sm:$0xff] %vm60_vm0, %v645_v3 }
 0x2c7   :  { %652 = vst.msk [vmem:[%s1223_s11 + $0x20] sm:$0xff] %vm60_vm0, %v644_v5  ;;  %v631_v8 = vpop.permute.xlu1 %630 }
 0x2c8   :  { %v647_v9 = vadd.f32 %v631_v8, %v607_v6  ;;  %v629_v10 = vpop.permute.xlu0 %628 }
 0x2c9   :  { %v646_v11 = vadd.f32 %v629_v10, %v606_v7 }
 0x2ca   :  { %655 = vst.msk [vmem:[%s1223_s11 + $0x38] sm:$0xff] %vm60_vm0, %v647_v9 }
 0x2cb   :  { %654 = vst.msk [vmem:[%s1223_s11 + $0x30] sm:$0xff] %vm60_vm0, %v646_v11 }

// kernel: run.54
= control target key start
LH: loop header
LB: loop body
LE: loop exit
PB: predicated region body
PF: predicated region fallthrough
CT: control target
= control target key end

     0   :  { %vm61_vm0 = vcmask 523264   ;;  %vm207_vm1 = vcmask 64512   ;;  %s1243_s0 = inlined_call_operand.vmem [shape: f32[64,64], index: 0, kind: input, shape index: {}]   ;;  %s1244_s1 = inlined_call_operand.vmem [shape: f32[64,8], index: 1, kind: input, shape index: {}]   ;;  %s1245_s2 = inlined_call_operand.vmem [shape: f32[64,64], index: 2, kind: input, shape index: {}]   ;;  %s1246_s3 = inlined_call_operand.vmem [shape: f32[64,64], index: 3, kind: input, shape index: {}]   ;;  %s1247_s4 = inlined_call_operand.vmem [shape: f32[64,128], index: 4, kind: input, shape index: {}]   ;;  %s1248_s5 = inlined_call_operand.vmem [shape: f32[1,128], index: 5, kind: input, shape index: {}]   ;;  %s1249_s6 = inlined_call_operand.vmem [shape: f32[8,128], index: 6, kind: input, shape index: {}]   ;;  %s1250_s7 = inlined_call_operand.vmem [shape: f32[1,128], index: 7, kind: input, shape index: {}]   ;;  %s1251_s8 = inlined_call_operand.vmem [shape: f32[64,128], index: 8, kind: input, shape index: {}]   ;;  %s1252_s9 = inlined_call_operand.vmem [shape: f32[1,128], index: 9, kind: input, shape index: {}]   ;;  %s1253_s10 = inlined_call_operand.hbm [shape: f32[64,64], index: 10, kind: output, shape index: {0}]   ;;  %s1254_s11 = inlined_call_operand.vmem [shape: f32[64,64], index: 11, kind: output, shape index: {1}]  }
   0x1   :  { %v46_v0 = vld [vmem:[%s1247_s4] sm:$0xff]  ;;  %v47_v1 = vld [vmem:[%s1247_s4 + $0x8] sm:$0xff]  ;;  %v48_v2 = vld [vmem:[%s1247_s4 + $0x10] sm:$0xff] }
   0x2   :  { %v815_v3 = vpack.c.bf16 %v47_v1, %v46_v0  ;;  %v49_v4 = vld [vmem:[%s1247_s4 + $0x18] sm:$0xff]  ;;  %v50_v6 = vld [vmem:[%s1247_s4 + $0x20] sm:$0xff]  ;;  %v51_v7 = vld [vmem:[%s1247_s4 + $0x28] sm:$0xff] }
   0x3   :  { %v819_v5 = vpack.c.bf16 %v49_v4, %v48_v2  ;;  %v38_v8 = vld [vmem:[%s1243_s0] sm:$0xff]  ;;  %v192_v11 = vld [vmem:[%s1244_s1 + $0x8] sm:$0xff]  ;;  %v823_v12 = vpack.c.bf16 %v51_v7, %v50_v6  ;;  %v193_v13 = vld [vmem:[%s1244_s1 + $0x10] sm:$0xff] }
   0x4   :  { %816 = vmatprep.subr.bf16.mxu0 %v815_v3  ;;  %761 = vmatprep.mubr.msk.f32.mxu0 %vm61_vm0, %v38_v8  ;;  %v199_v9 = vld [vmem:[%s1249_s6] sm:$0xff]  ;;  %v52_v14 = vld [vmem:[%s1247_s4 + $0x30] sm:$0xff]  ;;  %v53_v15 = vld [vmem:[%s1247_s4 + $0x38] sm:$0xff] }
   0x5   :  { %v191_v10 = vld [vmem:[%s1244_s1] sm:$0xff]  ;;  %818 = vmatpush3.bf16.msra.mxu0 %v815_v3  ;;  %773 = vmatprep.subr.mxu1 %v199_v9  ;;  %v194_v16 = vld [vmem:[%s1244_s1 + $0x18] sm:$0xff] }
   0x6   :  { %820 = vmatprep.subr.bf16.mxu0 %v819_v5  ;;  %774 = vmatpush3.msra.mxu1 %v199_v9 }
   0x7   :  { %775 = vmatprep.mubr.msk.f32.mxu1 %vm207_vm1, %v191_v10 }
   0x8   :  { %776 = vmatmul.mubr.msk.f32.vlgmr.msra.gmra.mrb[0].mxu1 %vm207_vm1, %v192_v11 }
   0x9   :  { %822 = vmatpush3.bf16.msra.mxu0 %v819_v5  ;;  %778 = vmatprep.mubr.msk.f32.mxu1 %vm207_vm1, %v193_v13 }
   0xa   :  { %17 = vsyncpa [#allocation3], 0  ;;  %824 = vmatprep.subr.bf16.mxu0 %v823_v12  ;;  %v827_v17 = vpack.c.bf16 %v53_v15, %v52_v14  ;;  %v195_v18 = vld [vmem:[%s1244_s1 + $0x20] sm:$0xff]  ;;  %v196_v19 = vld [vmem:[%s1244_s1 + $0x28] sm:$0xff]  ;;  %s932_s16 = smov [#allocation2]  }
   0xb   :  { %v197_v20 = vld [vmem:[%s1244_s1 + $0x30] sm:$0xff]  ;;  %v39_v21 = vld [vmem:[%s1243_s0 + $0x8] sm:$0xff]  ;;  %v198_v22 = vld [vmem:[%s1244_s1 + $0x38] sm:$0xff]  ;;  %s662_s17 = sshll.u32 %s932_s16, 4  ;;  %s663_s17 = int_to_ptr.vmem [resolvable:$true] %s662_s17 }
   0xc   :  { %779 = vmatmul.mubr.msk.f32.gmra.mrb[2].mxu1 %vm207_vm1, %v194_v16  ;;  %v40_v23 = vld [vmem:[%s1243_s0 + $0x10] sm:$0xff]  ;;  %v41_v24 = vld [vmem:[%s1243_s0 + $0x18] sm:$0xff]  ;;  %v42_v25 = vld [vmem:[%s1243_s0 + $0x20] sm:$0xff]  ;;  %p912_p1 = scmp.lt.s32.totalorder %s663_s17, %s663_s17 }
   0xd   :  { %826 = vmatpush3.bf16.msra.mxu0 %v823_v12  ;;  %781 = vmatprep.mubr.msk.f32.mxu1 %vm207_vm1, %v195_v18  ;;  %v43_v26 = vld [vmem:[%s1243_s0 + $0x28] sm:$0xff]  ;;  %v44_v27 = vld [vmem:[%s1243_s0 + $0x30] sm:$0xff]  ;;  %v45_v28 = vld [vmem:[%s1243_s0 + $0x38] sm:$0xff] }
   0xe   :  { %828 = vmatprep.subr.bf16.mxu0 %v827_v17  ;;  %v425_v29 = vld [vmem:[%s1251_s8] sm:$0xff]  ;;  %v426_v30 = vld [vmem:[%s1251_s8 + $0x8] sm:$0xff]  ;;  %v427_v31 = vld [vmem:[%s1251_s8 + $0x10] sm:$0xff] }
   0xf   :  { %v831_v32 = vpack.c.bf16 %v426_v30, %v425_v29  ;;  %v428_v33 = vld [vmem:[%s1251_s8 + $0x18] sm:$0xff]  ;;  %v429_v35 = vld [vmem:[%s1251_s8 + $0x20] sm:$0xff]  ;;  %v430_v36 = vld [vmem:[%s1251_s8 + $0x28] sm:$0xff] }
  0x10   :  { %782 = vmatmul.mubr.msk.f32.gmra.mrb[4].mxu1 %vm207_vm1, %v196_v19  ;;  %v835_v34 = vpack.c.bf16 %v428_v33, %v427_v31  ;;  %v839_v37 = vpack.c.bf16 %v430_v36, %v429_v35  ;;  %v677_v44 = vld [vmem:[%s1248_s5] ss:$0 sm:$0xff]  ;;  %v431_v57 = vld [vmem:[%s1251_s8 + $0x30] sm:$0xff]  ;;  %v432_v58 = vld [vmem:[%s1251_s8 + $0x38] sm:$0xff] }
  0x11   :  { %830 = vmatpush3.bf16.msra.mxu0 %v827_v17  ;;  %784 = vmatprep.mubr.msk.f32.mxu1 %vm207_vm1, %v197_v20  ;;  %v686_v51 = vld [vmem:[%s1250_s7] ss:$0 sm:$0xff]  ;;  %v843_v61 = vpack.c.bf16 %v432_v58, %v431_v57  ;;  %s931_s7 = smov 64  }
  0x12   :  { %832 = vmatprep.subr.bf16.mxu1 %v831_v32 }
  0x13   :  { %834 = vmatpush3.bf16.msra.mxu1 %v831_v32 }
  0x14   :  { %762 = vmatmul.mubr.msk.f32.vlgmr.msra.gmra.mrb[0].mxu0 %vm61_vm0, %v39_v21  ;;  %785 = vmatmul.mubr.msk.f32.gmra.mrb[6].mxu1 %vm207_vm1, %v198_v22 }
  0x15   :  { %764 = vmatprep.mubr.msk.f32.mxu0 %vm61_vm0, %v40_v23  ;;  %836 = vmatprep.subr.bf16.mxu1 %v835_v34 }
  0x17   :  { %838 = vmatpush3.bf16.msra.mxu1 %v835_v34 }
  0x18   :  { %765 = vmatmul.mubr.msk.f32.gmra.mrb[2].mxu0 %vm61_vm0, %v41_v24  ;;  %840 = vmatprep.subr.bf16.mxu1 %v839_v37 }
  0x19   :  { %767 = vmatprep.mubr.msk.f32.mxu0 %vm61_vm0, %v42_v25 }
  0x1b   :  { %842 = vmatpush3.bf16.msra.mxu1 %v839_v37 }
  0x1c   :  { %768 = vmatmul.mubr.msk.f32.gmra.mrb[4].mxu0 %vm61_vm0, %v43_v26  ;;  %844 = vmatprep.subr.bf16.mxu1 %v843_v61 }
  0x1d   :  { %770 = vmatprep.mubr.msk.f32.mxu0 %vm61_vm0, %v44_v27 }
  0x1f   :  { %846 = vmatpush3.bf16.msra.mxu1 %v843_v61 }
  0x20   :  { %771 = vmatmul.mubr.msk.f32.gmra.mrb[6].mxu0 %vm61_vm0, %v45_v28 }
  0xdb   :  { %v777_v38 = vpop.f32.mrb[0].mxu1 }
  0xdc   :  { %v298_v39 = vpop.f32.mrb[1].mxu1 }
  0xdf   :  { %v780_v40 = vpop.f32.mrb[2].mxu1 }
  0xe0   :  { %v308_v41 = vpop.f32.mrb[3].mxu1 }
  0xe3   :  { %v783_v42 = vpop.f32.mrb[4].mxu1 }
  0xe4   :  { %v318_v43 = vpop.f32.mrb[5].mxu1 }
  0xe7   :  { %v763_v45 = vpop.f32.mrb[0].mxu0  ;;  %v786_v46 = vpop.f32.mrb[6].mxu1 }
  0xe8   :  { %v158_v47 = vadd.f32 %v763_v45, %v677_v44  ;;  %v152_v48 = vpop.f32.mrb[1].mxu0  ;;  %v328_v49 = vpop.f32.mrb[7].mxu1 }
  0xe9   :  { %v153_v50 = vadd.f32 %v677_v44, %v152_v48 }
  0xea   :  { %v848_v52 = vadd.f32 %v777_v38, %v158_v47 }
  0xeb   :  { %v851_v53 = vadd.f32 %v298_v39, %v153_v50  ;;  %v766_v54 = vpop.f32.mrb[2].mxu0 }
  0xec   :  { %v168_v55 = vadd.f32 %v766_v54, %v677_v44  ;;  %v162_v56 = vpop.f32.mrb[3].mxu0  ;;  %v849_v62 = vadd.f32 %v848_v52, %v686_v51 }
  0xed   :  { %v852_v59 = vadd.f32 %v851_v53, %v686_v51  ;;  %v163_v60 = vadd.f32 %v677_v44, %v162_v56 }
  0xee   :  { %v854_v63 = vadd.f32 %v686_v51, %v168_v55  ;;  %v346_v28 = vmul.f32 0.5, %v849_v62 }
  0xef   :  { %875 = vtanh.f32 %v852_v59  ;;  %v769_v0 = vpop.f32.mrb[4].mxu0  ;;  %v857_v1 = vadd.f32 %v686_v51, %v163_v60  ;;  %v345_v27 = vmul.f32 0.5, %v852_v59 }
  0xf0   :  { %v855_v2 = vadd.f32 %v854_v63, %v780_v40  ;;  %v178_v3 = vadd.f32 %v769_v0, %v677_v44  ;;  %v172_v4 = vpop.f32.mrb[5].mxu0  ;;  %877 = vtanh.f32 %v849_v62 }
  0xf1   :  { %v858_v5 = vadd.f32 %v857_v1, %v308_v41  ;;  %v173_v6 = vadd.f32 %v677_v44, %v172_v4 }
  0xf2   :  { %v860_v7 = vadd.f32 %v686_v51, %v178_v3  ;;  %v348_v30 = vmul.f32 0.5, %v855_v2 }
  0xf3   :  { %879 = vtanh.f32 %v858_v5  ;;  %v772_v8 = vpop.f32.mrb[6].mxu0  ;;  %v863_v9 = vadd.f32 %v686_v51, %v173_v6  ;;  %v347_v29 = vmul.f32 0.5, %v858_v5 }
  0xf4   :  { %v188_v10 = vadd.f32 %v772_v8, %v677_v44  ;;  %v861_v11 = vadd.f32 %v860_v7, %v783_v42  ;;  %v182_v12 = vpop.f32.mrb[7].mxu0  ;;  %881 = vtanh.f32 %v855_v2 }
  0xf5   :  { %v183_v13 = vadd.f32 %v677_v44, %v182_v12  ;;  %v864_v14 = vadd.f32 %v863_v9, %v318_v43 }
  0xf6   :  { %v866_v15 = vadd.f32 %v686_v51, %v188_v10  ;;  %v350_v32 = vmul.f32 0.5, %v861_v11 }
  0xf7   :  { %883 = vtanh.f32 %v864_v14  ;;  %v869_v16 = vadd.f32 %v686_v51, %v183_v13  ;;  %v349_v31 = vmul.f32 0.5, %v864_v14  ;;  %v570_v13 = vld [vmem:[%s1245_s2 + $0x8] sm:$0xff] }
  0xf8   :  { %v867_v17 = vadd.f32 %v866_v15, %v786_v46  ;;  %885 = vtanh.f32 %v861_v11  ;;  %v695_v11 = vld [vmem:[%s1252_s9] ss:$0 sm:$0xff] }
  0xf9   :  { %v876_v18 = vpop.eup %875  ;;  %v870_v19 = vadd.f32 %v869_v16, %v328_v49  ;;  %v569_v16 = vld [vmem:[%s1245_s2] sm:$0xff] }
  0xfa   :  { %393 = vrot.lane.b32.xlu0 %v876_v18, %s931_s7  ;;  %v878_v20 = vpop.eup %877  ;;  %v352_v35 = vmul.f32 0.5, %v867_v17 }
  0xfb   :  { %887 = vtanh.f32 %v870_v19  ;;  %v351_v33 = vmul.f32 0.5, %v870_v19 }
  0xfc   :  { %889 = vtanh.f32 %v867_v17 }
  0xfd   :  { %v880_v21 = vpop.eup %879  ;;  %891 = vtanh.f32 %v345_v27 }
  0xfe   :  { %397 = vrot.lane.b32.xlu1 %v880_v21, %s931_s7  ;;  %395 = vrot.lane.b32.xlu0 %v878_v20, %s931_s7  ;;  %v882_v22 = vpop.eup %881  ;;  %893 = vtanh.f32 %v346_v28  ;;  %v572_v21 = vld [vmem:[%s1245_s2 + $0x18] sm:$0xff] }
  0xff   :  { %895 = vtanh.f32 %v347_v29 }
 0x100   :  { %897 = vtanh.f32 %v348_v30 }
 0x101   :  { %v884_v23 = vpop.eup %883  ;;  %899 = vtanh.f32 %v349_v31  ;;  %v574_v31 = vld [vmem:[%s1245_s2 + $0x28] sm:$0xff] }
 0x102   :  { %399 = vrot.lane.b32.xlu1 %v882_v22, %s931_s7  ;;  %401 = vrot.lane.b32.xlu0 %v884_v23, %s931_s7  ;;  %v886_v24 = vpop.eup %885  ;;  %901 = vtanh.f32 %v350_v32 }
 0x103   :  { %903 = vtanh.f32 %v351_v33 }
 0x104   :  { %905 = vtanh.f32 %v352_v35  ;;  %v573_v35 = vld [vmem:[%s1245_s2 + $0x20] sm:$0xff] }
 0x105   :  { %v888_v25 = vpop.eup %887 }
 0x106   :  { %403 = vrot.lane.b32.xlu1 %v886_v24, %s931_s7  ;;  %405 = vrot.lane.b32.xlu0 %v888_v25, %s931_s7  ;;  %v890_v26 = vpop.eup %889  ;;  %v571_v25 = vld [vmem:[%s1245_s2 + $0x10] sm:$0xff] }
 0x107   :  { %v892_v34 = vpop.eup %891 }
 0x108   :  { %v894_v36 = vpop.eup %893  ;;  %v361_v37 = vadd.f32 1.0, %v892_v34 }
 0x109   :  { %v896_v38 = vpop.eup %895  ;;  %v362_v42 = vadd.f32 1.0, %v894_v36 }
 0x10a   :  { %407 = vrot.lane.b32.xlu1 %v890_v26, %s931_s7  ;;  %v898_v39 = vpop.eup %897  ;;  %v369_v40 = vmul.f32 0.5, %v361_v37  ;;  %v363_v41 = vadd.f32 1.0, %v896_v38 }
 0x10b   :  { %v900_v43 = vpop.eup %899  ;;  %v370_v48 = vmul.f32 0.5, %v362_v42  ;;  %v364_v49 = vadd.f32 1.0, %v898_v39 }
 0x10c   :  { %v902_v46 = vpop.eup %901  ;;  %v371_v47 = vmul.f32 0.5, %v363_v41  ;;  %v365_v50 = vadd.f32 1.0, %v900_v43  ;;  %v576_v41 = vld [vmem:[%s1245_s2 + $0x38] sm:$0xff] }
 0x10d   :  { %v904_v51 = vpop.eup %903  ;;  %v372_v56 = vmul.f32 0.5, %v364_v49  ;;  %v366_v58 = vadd.f32 1.0, %v902_v46 }
 0x10e   :  { %v373_v57 = vmul.f32 0.5, %v365_v50  ;;  %v367_v59 = vadd.f32 1.0, %v904_v51  ;;  %v906_v60 = vpop.eup %905 }
 0x10f   :  { %v374_v1 = vmul.f32 0.5, %v366_v58  ;;  %v368_v3 = vadd.f32 1.0, %v906_v60 }
 0x110   :  { %v375_v2 = vmul.f32 0.5, %v367_v59 }
 0x111   :  { %v376_v8 = vmul.f32 0.5, %v368_v3 }
 0x16c   :  { %v394_v44 = vpop.permute.xlu0 %393 }
 0x16d   :  { %v417_v45 = vmul.f32 %v394_v44, %v369_v40 }
 0x16f   :  { %803 = vmatprep.mubr.msk.f32.mxu1 %vm61_vm0, %v417_v45  ;;  %v575_v45 = vld [vmem:[%s1245_s2 + $0x30] sm:$0xff]  ;;  %s907_s2 = scalar_lea.vmem %s663_s17, 1024 }
 0x170   :  { %v398_v52 = vpop.permute.xlu1 %397  ;;  %v396_v53 = vpop.permute.xlu0 %395  ;;  %p908_p0 = scmp.ne.s32.totalorder %s663_s17, %s907_s2  ;;  %p913_p2 = scmp.lt.s32.totalorder %s907_s2, %s907_s2 }
 0x171   :  { %v419_v54 = vmul.f32 %v398_v52, %v371_v47  ;;  %v418_v55 = vmul.f32 %v396_v53, %v370_v48 }
 0x172   :  { %p914_p3 = por %p913_p2, %p912_p1 }
 0x173   :  { %804 = vmatmul.mubr.msk.f32.vlgmr.msra.gmra.mrb[8].mxu1 %vm61_vm0, %v418_v55 }
 0x174   :  { %v400_v61 = vpop.permute.xlu1 %399  ;;  %v402_v62 = vpop.permute.xlu0 %401  ;;  %806 = vmatprep.mubr.msk.f32.mxu1 %vm61_vm0, %v419_v54  ;;  %p915_p4 = pnand %p914_p3, %p908_p0 }
 0x175   :  { %v420_v63 = vmul.f32 %v400_v61, %v372_v56  ;;  %v421_v0 = vmul.f32 %v402_v62, %v373_v57 }
 0x177   :  { %807 = vmatmul.mubr.msk.f32.gmra.mrb[10].mxu1 %vm61_vm0, %v420_v63 }
 0x178   :  { %v404_v4 = vpop.permute.xlu1 %403  ;;  %v406_v5 = vpop.permute.xlu0 %405  ;;  %809 = vmatprep.mubr.msk.f32.mxu1 %vm61_vm0, %v421_v0 }
 0x179   :  { %v422_v6 = vmul.f32 %v404_v4, %v374_v1  ;;  %v423_v7 = vmul.f32 %v406_v5, %v375_v2 }
 0x17b   :  { %810 = vmatmul.mubr.msk.f32.gmra.mrb[12].mxu1 %vm61_vm0, %v422_v6 }
 0x17c   :  { %v408_v9 = vpop.permute.xlu1 %407  ;;  %812 = vmatprep.mubr.msk.f32.mxu1 %vm61_vm0, %v423_v7 }
 0x17d   :  { %v424_v10 = vmul.f32 %v408_v9, %v376_v8 }
 0x17f   :  { %813 = vmatmul.mubr.msk.f32.gmra.mrb[14].mxu1 %vm61_vm0, %v424_v10 }
 0x246   :  { %v805_v12 = vpop.f32.mrb[8].mxu1 }
 0x247   :  { %v536_v14 = vadd.f32 %v805_v12, %v695_v11  ;;  %v530_v15 = vpop.f32.mrb[9].mxu1 }
 0x248   :  { %v531_v17 = vadd.f32 %v695_v11, %v530_v15 }
 0x249   :  { %v578_v18 = vadd.f32 %v570_v13, %v536_v14  ;;  %619 = vrot.lane.b32.xlu1 %v536_v14, %s931_s7 }
 0x24a   :  { %v577_v19 = vadd.f32 %v569_v16, %v531_v17  ;;  %v808_v20 = vpop.f32.mrb[10].mxu1  ;;  %617 = vrot.lane.b32.xlu0 %v531_v17, %s931_s7 }
 0x24b   :  { %v586_v22 = vmul.f32 0.70710677, %v578_v18  ;;  %v546_v23 = vadd.f32 %v808_v20, %v695_v11  ;;  %v540_v24 = vpop.f32.mrb[11].mxu1 }
 0x24c   :  { %v585_v26 = vmul.f32 0.70710677, %v577_v19  ;;  %v541_v27 = vadd.f32 %v695_v11, %v540_v24 }
 0x24d   :  { %594 = vst.msk [vmem:[#allocation2 + $0x8] sm:$0xff] %vm61_vm0, %v586_v22  ;;  %v580_v28 = vadd.f32 %v572_v21, %v546_v23  ;;  %623 = vrot.lane.b32.xlu1 %v546_v23, %s931_s7 }
 0x24e   :  { %593 = vst.msk [vmem:[#allocation2] sm:$0xff] %vm61_vm0, %v585_v26  ;;  %v579_v29 = vadd.f32 %v571_v25, %v541_v27  ;;  %v811_v30 = vpop.f32.mrb[12].mxu1  ;;  %621 = vrot.lane.b32.xlu0 %v541_v27, %s931_s7 }
 0x24f   :  { %v588_v32 = vmul.f32 0.70710677, %v580_v28  ;;  %v556_v33 = vadd.f32 %v811_v30, %v695_v11  ;;  %v550_v34 = vpop.f32.mrb[13].mxu1 }
 0x250   :  { %v587_v36 = vmul.f32 0.70710677, %v579_v29  ;;  %v551_v37 = vadd.f32 %v695_v11, %v550_v34 }
 0x251   :  { %596 = vst.msk [vmem:[#allocation2 + $0x18] sm:$0xff] %vm61_vm0, %v588_v32  ;;  %v582_v38 = vadd.f32 %v574_v31, %v556_v33  ;;  %627 = vrot.lane.b32.xlu1 %v556_v33, %s931_s7 }
 0x252   :  { %595 = vst.msk [vmem:[#allocation2 + $0x10] sm:$0xff] %vm61_vm0, %v587_v36  ;;  %v581_v39 = vadd.f32 %v573_v35, %v551_v37  ;;  %v814_v40 = vpop.f32.mrb[14].mxu1  ;;  %625 = vrot.lane.b32.xlu0 %v551_v37, %s931_s7 }
 0x253   :  { %v590_v42 = vmul.f32 0.70710677, %v582_v38  ;;  %v566_v43 = vadd.f32 %v814_v40, %v695_v11  ;;  %v560_v44 = vpop.f32.mrb[15].mxu1 }
 0x254   :  { %v589_v46 = vmul.f32 0.70710677, %v581_v39  ;;  %v561_v47 = vadd.f32 %v695_v11, %v560_v44 }
 0x255   :  { %598 = vst.msk [vmem:[#allocation2 + $0x28] sm:$0xff] %vm61_vm0, %v590_v42  ;;  %v584_v48 = vadd.f32 %v576_v41, %v566_v43  ;;  %631 = vrot.lane.b32.xlu1 %v566_v43, %s931_s7 }
 0x256   :  { %597 = vst.msk [vmem:[#allocation2 + $0x20] sm:$0xff] %vm61_vm0, %v589_v46  ;;  %v583_v49 = vadd.f32 %v575_v45, %v561_v47  ;;  %629 = vrot.lane.b32.xlu0 %v561_v47, %s931_s7 }
 0x257   :  { %v592_v50 = vmul.f32 0.70710677, %v584_v48 }
 0x258   :  { %v591_v51 = vmul.f32 0.70710677, %v583_v49 }
 0x259   :  { %600 = vst.msk [vmem:[#allocation2 + $0x38] sm:$0xff] %vm61_vm0, %v592_v50 }
 0x25a   :  { %599 = vst.msk [vmem:[#allocation2 + $0x30] sm:$0xff] %vm61_vm0, %v591_v51 }
 0x25b   :  { %918 = shalt.err (!%p915_p4)
}
 0x25c   :  { %s919_s20 = scalar_lea.hbm %s1253_s10, 1024 }
 0x25d   :  { %p920_p5 = scmp.ne.s32.totalorder %s1253_s10, %s919_s20  ;;  %p923_p6 = scmp.lt.u32.totalorder %s919_s20, %s1253_s10 }
 0x25f   :  { %p925_p7 = pnand %p923_p6, %p920_p5 }
 0x261   :  { %928 = shalt.err (!%p925_p7)
}
 0x262   :  { %s933_s8 = smov 128   ;;  %s934_s21 = smov 8   ;;  %v602_v52 = vld [vmem:[%s1246_s3 + $0x8] sm:$0xff]  ;;  %v601_v53 = vld [vmem:[%s1246_s3] sm:$0xff]  ;;  %v604_v58 = vld [vmem:[%s1246_s3 + $0x18] sm:$0xff] }
 0x263   :  { %668 = dma.vmem_to_hbm [thread:$0]  %s663_s17, 1024, %s1253_s10, [#allocation3], %s933_s8, %s933_s8, %s934_s21  }
 0x264   :  { %v603_v59 = vld [vmem:[%s1246_s3 + $0x10] sm:$0xff]  ;;  %v606_v0 = vld [vmem:[%s1246_s3 + $0x28] sm:$0xff]  ;;  %v605_v1 = vld [vmem:[%s1246_s3 + $0x20] sm:$0xff] }
 0x265   :  { %v608_v6 = vld [vmem:[%s1246_s3 + $0x38] sm:$0xff]  ;;  %v607_v7 = vld [vmem:[%s1246_s3 + $0x30] sm:$0xff] }
 0x2bb   :  { %v620_v54 = vpop.permute.xlu1 %619 }
 0x2bc   :  { %v642_v55 = vadd.f32 %v620_v54, %v602_v52  ;;  %v618_v56 = vpop.permute.xlu0 %617 }
 0x2bd   :  { %v641_v57 = vadd.f32 %v618_v56, %v601_v53 }
 0x2be   :  { %650 = vst.msk [vmem:[%s1254_s11 + $0x8] sm:$0xff] %vm61_vm0, %v642_v55 }
 0x2bf   :  { %649 = vst.msk [vmem:[%s1254_s11] sm:$0xff] %vm61_vm0, %v641_v57  ;;  %v624_v60 = vpop.permute.xlu1 %623 }
 0x2c0   :  { %v644_v61 = vadd.f32 %v624_v60, %v604_v58  ;;  %v622_v62 = vpop.permute.xlu0 %621 }
 0x2c1   :  { %v643_v63 = vadd.f32 %v622_v62, %v603_v59 }
 0x2c2   :  { %652 = vst.msk [vmem:[%s1254_s11 + $0x18] sm:$0xff] %vm61_vm0, %v644_v61 }
 0x2c3   :  { %651 = vst.msk [vmem:[%s1254_s11 + $0x10] sm:$0xff] %vm61_vm0, %v643_v63  ;;  %v628_v2 = vpop.permute.xlu1 %627 }
 0x2c4   :  { %v646_v3 = vadd.f32 %v628_v2, %v606_v0  ;;  %v626_v4 = vpop.permute.xlu0 %625 }
 0x2c5   :  { %v645_v5 = vadd.f32 %v626_v4, %v605_v1 }
 0x2c6   :  { %654 = vst.msk [vmem:[%s1254_s11 + $0x28] sm:$0xff] %vm61_vm0, %v646_v3 }
 0x2c7   :  { %653 = vst.msk [vmem:[%s1254_s11 + $0x20] sm:$0xff] %vm61_vm0, %v645_v5  ;;  %v632_v8 = vpop.permute.xlu1 %631 }
 0x2c8   :  { %v648_v9 = vadd.f32 %v632_v8, %v608_v6  ;;  %v630_v10 = vpop.permute.xlu0 %629 }
 0x2c9   :  { %v647_v11 = vadd.f32 %v630_v10, %v607_v7 }
 0x2ca   :  { %656 = vst.msk [vmem:[%s1254_s11 + $0x38] sm:$0xff] %vm61_vm0, %v648_v9 }
 0x2cb   :  { %655 = vst.msk [vmem:[%s1254_s11 + $0x30] sm:$0xff] %vm61_vm0, %v647_v11 }
 0x2cc   :  { %929 = dma.done.wait [#allocation3], 1024  }
 0x2cd   :  { %930 = vsyncadd [#allocation3], 4294966272 }
 0x2ce   :  { %676 = vsyncpa [#allocation3], 1 }

// kernel: run.55
= control target key start
LH: loop header
LB: loop body
LE: loop exit
PB: predicated region body
PF: predicated region fallthrough
CT: control target
= control target key end

     0   :  { %vm45_vm0 = vcmask 523264   ;;  %vm327_vm1 = vcmask 7168   ;;  %s634_s1 = inlined_call_operand.vmem [shape: f32[64,64], index: 1, kind: input, shape index: {}]   ;;  %s635_s0 = inlined_call_operand.vmem [shape: f32[64,64], index: 0, kind: input, shape index: {}]   ;;  %s636_s3 = inlined_call_operand.vmem [shape: f32[64,1], index: 3, kind: input, shape index: {}]   ;;  %s637_s4 = inlined_call_operand.<no memory space> [shape: f32[1,1], index: 4, kind: input, shape index: {}]   ;;  %s638_s2 = inlined_call_operand.vmem [shape: f32[1,64], index: 2, kind: input, shape index: {}]   ;;  %s639_s5 = inlined_call_operand.vmem [shape: f32[64,1], index: 5, kind: output, shape index: {}]  }
   0x1   :  { %v30_v0 = vld [vmem:[%s634_s1] sm:$0xff]  ;;  %v31_v1 = vld [vmem:[%s634_s1 + $0x8] sm:$0xff]  ;;  %v32_v2 = vld [vmem:[%s634_s1 + $0x10] sm:$0xff]  ;;  %v10_v32 = vstv %s637_s4 }
   0x2   :  { %v446_v3 = vpack.c.bf16 %v31_v1, %v30_v0  ;;  %v33_v4 = vld [vmem:[%s634_s1 + $0x18] sm:$0xff]  ;;  %v34_v6 = vld [vmem:[%s634_s1 + $0x20] sm:$0xff]  ;;  %v35_v7 = vld [vmem:[%s634_s1 + $0x28] sm:$0xff]  ;;  %11 = vst [vmem:[#allocation2] sm:$0x1] %v10_v32 }
   0x3   :  { %v450_v5 = vpack.c.bf16 %v33_v4, %v32_v2  ;;  %v22_v8 = vld [vmem:[%s635_s0] sm:$0xff]  ;;  %v454_v9 = vpack.c.bf16 %v35_v7, %v34_v6  ;;  %v36_v10 = vld [vmem:[%s634_s1 + $0x30] sm:$0xff]  ;;  %v184_v12 = vld [vmem:[%s636_s3 + $0x8] sm:$0xff] }
   0x4   :  { %447 = vmatprep.subr.bf16.mxu0 %v446_v3  ;;  %406 = vmatprep.mubr.msk.f32.mxu0 %vm45_vm0, %v22_v8  ;;  %v183_v11 = vld [vmem:[%s636_s3] sm:$0xff]  ;;  %v37_v13 = vld [vmem:[%s634_s1 + $0x38] sm:$0xff]  ;;  %v185_v15 = vld [vmem:[%s636_s3 + $0x10] sm:$0xff] }
   0x5   :  { %449 = vmatpush3.bf16.msra.mxu0 %v446_v3  ;;  %v462_v14 = vpack.c.bf16 %v184_v12, %v183_v11  ;;  %v186_v16 = vld [vmem:[%s636_s3 + $0x18] sm:$0xff]  ;;  %v187_v18 = vld [vmem:[%s636_s3 + $0x20] sm:$0xff]  ;;  %v188_v19 = vld [vmem:[%s636_s3 + $0x28] sm:$0xff]  ;;  %v458_v20 = vpack.c.bf16 %v37_v13, %v36_v10 }
   0x6   :  { %451 = vmatprep.subr.bf16.mxu0 %v450_v5  ;;  %v466_v17 = vpack.c.bf16 %v186_v16, %v185_v15  ;;  %v470_v21 = vpack.c.bf16 %v188_v19, %v187_v18  ;;  %v23_v22 = vld [vmem:[%s635_s0 + $0x8] sm:$0xff]  ;;  %v24_v23 = vld [vmem:[%s635_s0 + $0x10] sm:$0xff]  ;;  %v25_v24 = vld [vmem:[%s635_s0 + $0x18] sm:$0xff] }
   0x7   :  { %463 = vmatprep.subr.bf16.mxu1 %v462_v14  ;;  %v26_v25 = vld [vmem:[%s635_s0 + $0x20] sm:$0xff]  ;;  %v27_v26 = vld [vmem:[%s635_s0 + $0x28] sm:$0xff]  ;;  %v28_v27 = vld [vmem:[%s635_s0 + $0x30] sm:$0xff] }
   0x8   :  { %465 = vmatpush3.bf16.msra.mxu1 %v462_v14  ;;  %v29_v28 = vld [vmem:[%s635_s0 + $0x38] sm:$0xff]  ;;  %v189_v29 = vld [vmem:[%s636_s3 + $0x30] sm:$0xff]  ;;  %v340_v33 = vld [vmem:[%s638_s2] ss:$0 sm:$0xff] }
   0x9   :  { %453 = vmatpush3.bf16.msra.mxu0 %v450_v5  ;;  %467 = vmatprep.subr.bf16.mxu1 %v466_v17  ;;  %v190_v30 = vld [vmem:[%s636_s3 + $0x38] sm:$0xff]  ;;  %v349_v58 = vld [vmem:[#allocation2] ss:$0 sm:$0xff] }
   0xa   :  { %455 = vmatprep.subr.bf16.mxu0 %v454_v9  ;;  %v474_v31 = vpack.c.bf16 %v190_v30, %v189_v29 }
   0xc   :  { %469 = vmatpush3.bf16.msra.mxu1 %v466_v17 }
   0xd   :  { %457 = vmatpush3.bf16.msra.mxu0 %v454_v9  ;;  %471 = vmatprep.subr.bf16.mxu1 %v470_v21 }
   0xe   :  { %459 = vmatprep.subr.bf16.mxu0 %v458_v20 }
  0x10   :  { %473 = vmatpush3.bf16.msra.mxu1 %v470_v21 }
  0x11   :  { %461 = vmatpush3.bf16.msra.mxu0 %v458_v20  ;;  %475 = vmatprep.subr.bf16.mxu1 %v474_v31 }
  0x14   :  { %407 = vmatmul.mubr.msk.f32.vlgmr.msra.gmra.mrb[0].mxu0 %vm45_vm0, %v23_v22  ;;  %477 = vmatpush3.bf16.msra.mxu1 %v474_v31 }
  0x15   :  { %409 = vmatprep.mubr.msk.f32.mxu0 %vm45_vm0, %v24_v23 }
  0x18   :  { %410 = vmatmul.mubr.msk.f32.gmra.mrb[2].mxu0 %vm45_vm0, %v25_v24 }
  0x19   :  { %412 = vmatprep.mubr.msk.f32.mxu0 %vm45_vm0, %v26_v25 }
  0x1c   :  { %413 = vmatmul.mubr.msk.f32.gmra.mrb[4].mxu0 %vm45_vm0, %v27_v26 }
  0x1d   :  { %415 = vmatprep.mubr.msk.f32.mxu0 %vm45_vm0, %v28_v27 }
  0x20   :  { %416 = vmatmul.mubr.msk.f32.gmra.mrb[6].mxu0 %vm45_vm0, %v29_v28 }
  0xe7   :  { %v408_v34 = vpop.f32.mrb[0].mxu0 }
  0xe8   :  { %v142_v35 = vadd.f32 %v408_v34, %v340_v33  ;;  %v136_v36 = vpop.f32.mrb[1].mxu0 }
  0xe9   :  { %v137_v37 = vadd.f32 %v340_v33, %v136_v36 }
  0xea   :  { %v176_v40 = vmax.f32 %v142_v35, 0.0 }
  0xeb   :  { %v175_v38 = vmax.f32 %v137_v37, 0.0  ;;  %v411_v39 = vpop.f32.mrb[2].mxu0 }
  0xec   :  { %v152_v41 = vadd.f32 %v411_v39, %v340_v33  ;;  %v146_v42 = vpop.f32.mrb[3].mxu0 }
  0xed   :  { %v147_v43 = vadd.f32 %v340_v33, %v146_v42  ;;  %434 = vmatprep.mubr.msk.f32.mxu1 %vm45_vm0, %v175_v38 }
  0xee   :  { %435 = vmatmul.mubr.msk.f32.vlgmr.msra.gmra.mrb[0].mxu1 %vm45_vm0, %v176_v40  ;;  %v178_v46 = vmax.f32 %v152_v41, 0.0 }
  0xef   :  { %v177_v44 = vmax.f32 %v147_v43, 0.0  ;;  %v414_v45 = vpop.f32.mrb[4].mxu0 }
  0xf0   :  { %v162_v47 = vadd.f32 %v414_v45, %v340_v33  ;;  %v156_v48 = vpop.f32.mrb[5].mxu0 }
  0xf1   :  { %v157_v49 = vadd.f32 %v340_v33, %v156_v48  ;;  %437 = vmatprep.mubr.msk.f32.mxu1 %vm45_vm0, %v177_v44 }
  0xf2   :  { %438 = vmatmul.mubr.msk.f32.gmra.mrb[2].mxu1 %vm45_vm0, %v178_v46  ;;  %v180_v52 = vmax.f32 %v162_v47, 0.0 }
  0xf3   :  { %v179_v50 = vmax.f32 %v157_v49, 0.0  ;;  %v417_v51 = vpop.f32.mrb[6].mxu0 }
  0xf4   :  { %v172_v53 = vadd.f32 %v417_v51, %v340_v33  ;;  %v166_v54 = vpop.f32.mrb[7].mxu0 }
  0xf5   :  { %v167_v55 = vadd.f32 %v340_v33, %v166_v54  ;;  %440 = vmatprep.mubr.msk.f32.mxu1 %vm45_vm0, %v179_v50 }
  0xf6   :  { %441 = vmatmul.mubr.msk.f32.gmra.mrb[4].mxu1 %vm45_vm0, %v180_v52  ;;  %v182_v57 = vmax.f32 %v172_v53, 0.0 }
  0xf7   :  { %v181_v56 = vmax.f32 %v167_v55, 0.0 }
  0xf9   :  { %443 = vmatprep.mubr.msk.f32.mxu1 %vm45_vm0, %v181_v56 }
  0xfa   :  { %444 = vmatmul.mubr.msk.f32.gmra.mrb[6].mxu1 %vm45_vm0, %v182_v57 }
 0x1c1   :  { %v436_v59 = vpop.f32.mrb[0].mxu1 }
 0x1c2   :  { %v294_v60 = vadd.f32 %v436_v59, %v349_v58  ;;  %v288_v61 = vpop.f32.mrb[1].mxu1 }
 0x1c3   :  { %v289_v62 = vadd.f32 %v349_v58, %v288_v61 }
 0x1c4   :  { %329 = vst.msk [vmem:[%s639_s5 + $0x8] sm:$0xff] %vm327_vm1, %v294_v60 }
 0x1c5   :  { %328 = vst.msk [vmem:[%s639_s5] sm:$0xff] %vm327_vm1, %v289_v62  ;;  %v439_v63 = vpop.f32.mrb[2].mxu1 }
 0x1c6   :  { %v304_v0 = vadd.f32 %v439_v63, %v349_v58  ;;  %v298_v1 = vpop.f32.mrb[3].mxu1 }
 0x1c7   :  { %v299_v2 = vadd.f32 %v349_v58, %v298_v1 }
 0x1c8   :  { %331 = vst.msk [vmem:[%s639_s5 + $0x18] sm:$0xff] %vm327_vm1, %v304_v0 }
 0x1c9   :  { %330 = vst.msk [vmem:[%s639_s5 + $0x10] sm:$0xff] %vm327_vm1, %v299_v2  ;;  %v442_v3 = vpop.f32.mrb[4].mxu1 }
 0x1ca   :  { %v314_v4 = vadd.f32 %v442_v3, %v349_v58  ;;  %v308_v5 = vpop.f32.mrb[5].mxu1 }
 0x1cb   :  { %v309_v6 = vadd.f32 %v349_v58, %v308_v5 }
 0x1cc   :  { %333 = vst.msk [vmem:[%s639_s5 + $0x28] sm:$0xff] %vm327_vm1, %v314_v4 }
 0x1cd   :  { %332 = vst.msk [vmem:[%s639_s5 + $0x20] sm:$0xff] %vm327_vm1, %v309_v6  ;;  %v445_v7 = vpop.f32.mrb[6].mxu1 }
 0x1ce   :  { %v324_v8 = vadd.f32 %v445_v7, %v349_v58  ;;  %v318_v9 = vpop.f32.mrb[7].mxu1 }
 0x1cf   :  { %v319_v10 = vadd.f32 %v349_v58, %v318_v9 }
 0x1d0   :  { %335 = vst.msk [vmem:[%s639_s5 + $0x38] sm:$0xff] %vm327_vm1, %v324_v8 }
 0x1d1   :  { %334 = vst.msk [vmem:[%s639_s5 + $0x30] sm:$0xff] %vm327_vm1, %v319_v10 }

// kernel: run.30
= control target key start
LH: loop header
LB: loop body
LE: loop exit
PB: predicated region body
PF: predicated region fallthrough
CT: control target
= control target key end

     0   :  { %vm206_vm0 = vcmask 64512   ;;  %v13999_v0 = vmov 0.0   ;;  %vm11926_vm1 = vmmov 0   ;;  %s13995_s1 = inlined_call_operand.vmem [shape: f32[64,8,8], index: 1, kind: input, shape index: {}]   ;;  %s13996_s0 = inlined_call_operand.vmem [shape: f32[64,8,8], index: 0, kind: input, shape index: {}]   ;;  %s13997_s2 = inlined_call_operand.vmem [shape: f32[64,8,8], index: 2, kind: input, shape index: {}]   ;;  %s13998_s3 = inlined_call_operand.vmem [shape: f32[64,8,8], index: 3, kind: output, shape index: {}]  }
   0x1   :  { %11027 = vmatprep.subr.mxu0 %v13999_v0  ;;  %v78_v1 = vld [vmem:[%s13995_s1] sm:$0xff]  ;;  %11029 = vmatprep.mubr.msk.f32.mxu0 %vm11926_vm1, %v13999_v0  ;;  %v79_v2 = vld [vmem:[%s13995_s1 + $0x8] sm:$0xff]  ;;  %v80_v4 = vld [vmem:[%s13995_s1 + $0x10] sm:$0xff] }
   0x2   :  { %11028 = vmatpush3.xpose.msk.msra.mxu0 %vm206_vm0, %v78_v1  ;;  %v14_v3 = vld [vmem:[%s13996_s0] sm:$0xff]  ;;  %11032 = vmatprep.subr.mxu1 %v13999_v0  ;;  %v15_v5 = vld [vmem:[%s13996_s0 + $0x8] sm:$0xff]  ;;  %v81_v6 = vld [vmem:[%s13995_s1 + $0x18] sm:$0xff] }
   0x3   :  { %11037 = vmatprep.subr.mxu0 %v13999_v0  ;;  %11033 = vmatpush3.xpose.msk.msra.mxu1 %vm206_vm0, %v79_v2  ;;  %v16_v7 = vld [vmem:[%s13996_s0 + $0x10] sm:$0xff]  ;;  %v82_v8 = vld [vmem:[%s13995_s1 + $0x20] sm:$0xff]  ;;  %v17_v9 = vld [vmem:[%s13996_s0 + $0x18] sm:$0xff] }
   0x4   :  { %11034 = vmatprep.mubr.msk.f32.mxu1 %vm11926_vm1, %v13999_v0  ;;  %11042 = vmatprep.subr.mxu1 %v13999_v0  ;;  %v83_v10 = vld [vmem:[%s13995_s1 + $0x28] sm:$0xff]  ;;  %v18_v11 = vld [vmem:[%s13996_s0 + $0x20] sm:$0xff]  ;;  %v84_v12 = vld [vmem:[%s13995_s1 + $0x30] sm:$0xff] }
   0x5   :  { %11030 = vmatmul.mubr.msk.f32.vlgmr.msra.gmra.mrb[0].mxu0 %vm206_vm0, %v14_v3  ;;  %v19_v13 = vld [vmem:[%s13996_s0 + $0x28] sm:$0xff]  ;;  %v85_v14 = vld [vmem:[%s13995_s1 + $0x38] sm:$0xff]  ;;  %v20_v15 = vld [vmem:[%s13996_s0 + $0x30] sm:$0xff] }
   0x6   :  { %11038 = vmatpush3.xpose.msk.msra.mxu0 %vm206_vm0, %v80_v4  ;;  %11039 = vmatprep.mubr.msk.f32.mxu0 %vm11926_vm1, %v13999_v0  ;;  %v86_v16 = vld [vmem:[%s13995_s1 + $0x40] sm:$0xff]  ;;  %v21_v17 = vld [vmem:[%s13996_s0 + $0x38] sm:$0xff]  ;;  %v87_v18 = vld [vmem:[%s13995_s1 + $0x48] sm:$0xff] }
   0x7   :  { %11035 = vmatmul.mubr.msk.f32.vlgmr.msra.gmra.mrb[0].mxu1 %vm206_vm0, %v15_v5  ;;  %11047 = vmatprep.subr.mxu0 %v13999_v0  ;;  %v22_v19 = vld [vmem:[%s13996_s0 + $0x40] sm:$0xff]  ;;  %v88_v20 = vld [vmem:[%s13995_s1 + $0x50] sm:$0xff]  ;;  %v23_v21 = vld [vmem:[%s13996_s0 + $0x48] sm:$0xff] }
   0x8   :  { %11043 = vmatpush3.xpose.msk.msra.mxu1 %vm206_vm0, %v81_v6  ;;  %11044 = vmatprep.mubr.msk.f32.mxu1 %vm11926_vm1, %v13999_v0  ;;  %v89_v22 = vld [vmem:[%s13995_s1 + $0x58] sm:$0xff]  ;;  %v24_v23 = vld [vmem:[%s13996_s0 + $0x50] sm:$0xff]  ;;  %v90_v24 = vld [vmem:[%s13995_s1 + $0x60] sm:$0xff] }
   0x9   :  { %11040 = vmatmul.mubr.msk.f32.vlgmr.msra.gmra.mrb[2].mxu0 %vm206_vm0, %v16_v7  ;;  %11052 = vmatprep.subr.mxu1 %v13999_v0  ;;  %v25_v25 = vld [vmem:[%s13996_s0 + $0x58] sm:$0xff]  ;;  %v91_v26 = vld [vmem:[%s13995_s1 + $0x68] sm:$0xff]  ;;  %v26_v27 = vld [vmem:[%s13996_s0 + $0x60] sm:$0xff] }
   0xa   :  { %11048 = vmatpush3.xpose.msk.msra.mxu0 %vm206_vm0, %v82_v8  ;;  %11049 = vmatprep.mubr.msk.f32.mxu0 %vm11926_vm1, %v13999_v0  ;;  %v92_v28 = vld [vmem:[%s13995_s1 + $0x70] sm:$0xff]  ;;  %v27_v29 = vld [vmem:[%s13996_s0 + $0x68] sm:$0xff]  ;;  %v93_v30 = vld [vmem:[%s13995_s1 + $0x78] sm:$0xff] }
   0xb   :  { %11045 = vmatmul.mubr.msk.f32.vlgmr.msra.gmra.mrb[2].mxu1 %vm206_vm0, %v17_v9  ;;  %11057 = vmatprep.subr.mxu0 %v13999_v0  ;;  %v28_v31 = vld [vmem:[%s13996_s0 + $0x70] sm:$0xff]  ;;  %v94_v32 = vld [vmem:[%s13995_s1 + $0x80] sm:$0xff]  ;;  %v29_v33 = vld [vmem:[%s13996_s0 + $0x78] sm:$0xff] }
   0xc   :  { %11053 = vmatpush3.xpose.msk.msra.mxu1 %vm206_vm0, %v83_v10  ;;  %11054 = vmatprep.mubr.msk.f32.mxu1 %vm11926_vm1, %v13999_v0  ;;  %v95_v34 = vld [vmem:[%s13995_s1 + $0x88] sm:$0xff]  ;;  %v30_v35 = vld [vmem:[%s13996_s0 + $0x80] sm:$0xff]  ;;  %v96_v36 = vld [vmem:[%s13995_s1 + $0x90] sm:$0xff] }
   0xd   :  { %11050 = vmatmul.mubr.msk.f32.vlgmr.msra.gmra.mrb[4].mxu0 %vm206_vm0, %v18_v11  ;;  %11062 = vmatprep.subr.mxu1 %v13999_v0  ;;  %v31_v37 = vld [vmem:[%s13996_s0 + $0x88] sm:$0xff]  ;;  %v97_v38 = vld [vmem:[%s13995_s1 + $0x98] sm:$0xff]  ;;  %v32_v39 = vld [vmem:[%s13996_s0 + $0x90] sm:$0xff] }
   0xe   :  { %11058 = vmatpush3.xpose.msk.msra.mxu0 %vm206_vm0, %v84_v12  ;;  %11059 = vmatprep.mubr.msk.f32.mxu0 %vm11926_vm1, %v13999_v0  ;;  %v98_v40 = vld [vmem:[%s13995_s1 + $0xa0] sm:$0xff]  ;;  %v33_v41 = vld [vmem:[%s13996_s0 + $0x98] sm:$0xff]  ;;  %v99_v42 = vld [vmem:[%s13995_s1 + $0xa8] sm:$0xff] }
   0xf   :  { %11055 = vmatmul.mubr.msk.f32.vlgmr.msra.gmra.mrb[4].mxu1 %vm206_vm0, %v19_v13  ;;  %11067 = vmatprep.subr.mxu0 %v13999_v0  ;;  %v34_v43 = vld [vmem:[%s13996_s0 + $0xa0] sm:$0xff]  ;;  %v100_v44 = vld [vmem:[%s13995_s1 + $0xb0] sm:$0xff]  ;;  %v35_v45 = vld [vmem:[%s13996_s0 + $0xa8] sm:$0xff] }
  0x10   :  { %11063 = vmatpush3.xpose.msk.msra.mxu1 %vm206_vm0, %v85_v14  ;;  %11064 = vmatprep.mubr.msk.f32.mxu1 %vm11926_vm1, %v13999_v0  ;;  %v101_v46 = vld [vmem:[%s13995_s1 + $0xb8] sm:$0xff]  ;;  %v36_v47 = vld [vmem:[%s13996_s0 + $0xb0] sm:$0xff]  ;;  %v102_v48 = vld [vmem:[%s13995_s1 + $0xc0] sm:$0xff] }
  0x11   :  { %11060 = vmatmul.mubr.msk.f32.vlgmr.msra.gmra.mrb[6].mxu0 %vm206_vm0, %v20_v15  ;;  %11072 = vmatprep.subr.mxu1 %v13999_v0  ;;  %v37_v49 = vld [vmem:[%s13996_s0 + $0xb8] sm:$0xff]  ;;  %v103_v50 = vld [vmem:[%s13995_s1 + $0xc8] sm:$0xff]  ;;  %v38_v51 = vld [vmem:[%s13996_s0 + $0xc0] sm:$0xff] }
  0x12   :  { %11068 = vmatpush3.xpose.msk.msra.mxu0 %vm206_vm0, %v86_v16  ;;  %11069 = vmatprep.mubr.msk.f32.mxu0 %vm11926_vm1, %v13999_v0  ;;  %v104_v52 = vld [vmem:[%s13995_s1 + $0xd0] sm:$0xff]  ;;  %v39_v53 = vld [vmem:[%s13996_s0 + $0xc8] sm:$0xff]  ;;  %v105_v54 = vld [vmem:[%s13995_s1 + $0xd8] sm:$0xff] }
  0x13   :  { %11065 = vmatmul.mubr.msk.f32.vlgmr.msra.gmra.mrb[6].mxu1 %vm206_vm0, %v21_v17  ;;  %11077 = vmatprep.subr.mxu0 %v13999_v0  ;;  %v40_v55 = vld [vmem:[%s13996_s0 + $0xd0] sm:$0xff]  ;;  %v106_v56 = vld [vmem:[%s13995_s1 + $0xe0] sm:$0xff]  ;;  %v41_v57 = vld [vmem:[%s13996_s0 + $0xd8] sm:$0xff] }
  0x14   :  { %11073 = vmatpush3.xpose.msk.msra.mxu1 %vm206_vm0, %v87_v18  ;;  %11074 = vmatprep.mubr.msk.f32.mxu1 %vm11926_vm1, %v13999_v0  ;;  %v107_v58 = vld [vmem:[%s13995_s1 + $0xe8] sm:$0xff]  ;;  %v42_v59 = vld [vmem:[%s13996_s0 + $0xe0] sm:$0xff]  ;;  %v108_v60 = vld [vmem:[%s13995_s1 + $0xf0] sm:$0xff] }
  0x15   :  { %11070 = vmatmul.mubr.msk.f32.vlgmr.msra.gmra.mrb[8].mxu0 %vm206_vm0, %v22_v19  ;;  %11082 = vmatprep.subr.mxu1 %v13999_v0  ;;  %v43_v61 = vld [vmem:[%s13996_s0 + $0xe8] sm:$0xff]  ;;  %v109_v62 = vld [vmem:[%s13995_s1 + $0xf8] sm:$0xff]  ;;  %v44_v63 = vld [vmem:[%s13996_s0 + $0xf0] sm:$0xff] }
  0x16   :  { %11078 = vmatpush3.xpose.msk.msra.mxu0 %vm206_vm0, %v88_v20  ;;  %11079 = vmatprep.mubr.msk.f32.mxu0 %vm11926_vm1, %v13999_v0  ;;  %v110_v1 = vld [vmem:[%s13995_s1 + $0x100] sm:$0xff]  ;;  %v45_v2 = vld [vmem:[%s13996_s0 + $0xf8] sm:$0xff]  ;;  %v111_v3 = vld [vmem:[%s13995_s1 + $0x108] sm:$0xff] }
  0x17   :  { %11075 = vmatmul.mubr.msk.f32.vlgmr.msra.gmra.mrb[8].mxu1 %vm206_vm0, %v23_v21  ;;  %11087 = vmatprep.subr.mxu0 %v13999_v0  ;;  %v46_v4 = vld [vmem:[%s13996_s0 + $0x100] sm:$0xff]  ;;  %v112_v5 = vld [vmem:[%s13995_s1 + $0x110] sm:$0xff]  ;;  %v47_v6 = vld [vmem:[%s13996_s0 + $0x108] sm:$0xff] }
  0x18   :  { %11083 = vmatpush3.xpose.msk.msra.mxu1 %vm206_vm0, %v89_v22  ;;  %11084 = vmatprep.mubr.msk.f32.mxu1 %vm11926_vm1, %v13999_v0  ;;  %v113_v7 = vld [vmem:[%s13995_s1 + $0x118] sm:$0xff]  ;;  %v48_v8 = vld [vmem:[%s13996_s0 + $0x110] sm:$0xff]  ;;  %v114_v9 = vld [vmem:[%s13995_s1 + $0x120] sm:$0xff] }
  0x19   :  { %11080 = vmatmul.mubr.msk.f32.vlgmr.msra.gmra.mrb[10].mxu0 %vm206_vm0, %v24_v23  ;;  %11092 = vmatprep.subr.mxu1 %v13999_v0  ;;  %v49_v10 = vld [vmem:[%s13996_s0 + $0x118] sm:$0xff]  ;;  %v115_v11 = vld [vmem:[%s13995_s1 + $0x128] sm:$0xff]  ;;  %v50_v12 = vld [vmem:[%s13996_s0 + $0x120] sm:$0xff] }
  0x1a   :  { %11088 = vmatpush3.xpose.msk.msra.mxu0 %vm206_vm0, %v90_v24  ;;  %11089 = vmatprep.mubr.msk.f32.mxu0 %vm11926_vm1, %v13999_v0  ;;  %v116_v13 = vld [vmem:[%s13995_s1 + $0x130] sm:$0xff]  ;;  %v51_v14 = vld [vmem:[%s13996_s0 + $0x128] sm:$0xff]  ;;  %v117_v15 = vld [vmem:[%s13995_s1 + $0x138] sm:$0xff] }
  0x1b   :  { %11085 = vmatmul.mubr.msk.f32.vlgmr.msra.gmra.mrb[10].mxu1 %vm206_vm0, %v25_v25  ;;  %11097 = vmatprep.subr.mxu0 %v13999_v0  ;;  %v52_v16 = vld [vmem:[%s13996_s0 + $0x130] sm:$0xff]  ;;  %v118_v17 = vld [vmem:[%s13995_s1 + $0x140] sm:$0xff]  ;;  %v53_v18 = vld [vmem:[%s13996_s0 + $0x138] sm:$0xff] }
  0x1c   :  { %11093 = vmatpush3.xpose.msk.msra.mxu1 %vm206_vm0, %v91_v26  ;;  %11094 = vmatprep.mubr.msk.f32.mxu1 %vm11926_vm1, %v13999_v0  ;;  %v119_v19 = vld [vmem:[%s13995_s1 + $0x148] sm:$0xff]  ;;  %v54_v20 = vld [vmem:[%s13996_s0 + $0x140] sm:$0xff]  ;;  %v120_v21 = vld [vmem:[%s13995_s1 + $0x150] sm:$0xff] }
  0x1d   :  { %11090 = vmatmul.mubr.msk.f32.vlgmr.msra.gmra.mrb[12].mxu0 %vm206_vm0, %v26_v27  ;;  %11102 = vmatprep.subr.mxu1 %v13999_v0  ;;  %v55_v22 = vld [vmem:[%s13996_s0 + $0x148] sm:$0xff]  ;;  %v121_v23 = vld [vmem:[%s13995_s1 + $0x158] sm:$0xff]  ;;  %v56_v24 = vld [vmem:[%s13996_s0 + $0x150] sm:$0xff] }
  0x1e   :  { %11098 = vmatpush3.xpose.msk.msra.mxu0 %vm206_vm0, %v92_v28  ;;  %11099 = vmatprep.mubr.msk.f32.mxu0 %vm11926_vm1, %v13999_v0  ;;  %v122_v25 = vld [vmem:[%s13995_s1 + $0x160] sm:$0xff]  ;;  %v57_v26 = vld [vmem:[%s13996_s0 + $0x158] sm:$0xff]  ;;  %v123_v27 = vld [vmem:[%s13995_s1 + $0x168] sm:$0xff] }
  0x1f   :  { %11095 = vmatmul.mubr.msk.f32.vlgmr.msra.gmra.mrb[12].mxu1 %vm206_vm0, %v27_v29  ;;  %11107 = vmatprep.subr.mxu0 %v13999_v0  ;;  %v58_v28 = vld [vmem:[%s13996_s0 + $0x160] sm:$0xff]  ;;  %v124_v29 = vld [vmem:[%s13995_s1 + $0x170] sm:$0xff] }
  0x20   :  { %11103 = vmatpush3.xpose.msk.msra.mxu1 %vm206_vm0, %v93_v30  ;;  %11104 = vmatprep.mubr.msk.f32.mxu1 %vm11926_vm1, %v13999_v0  ;;  %v59_v30 = vld [vmem:[%s13996_s0 + $0x168] sm:$0xff] }
  0x21   :  { %11100 = vmatmul.mubr.msk.f32.vlgmr.msra.gmra.mrb[14].mxu0 %vm206_vm0, %v28_v31  ;;  %11112 = vmatprep.subr.mxu1 %v13999_v0  ;;  %v125_v31 = vld [vmem:[%s13995_s1 + $0x178] sm:$0xff] }
  0x22   :  { %11108 = vmatpush3.xpose.msk.msra.mxu0 %vm206_vm0, %v94_v32  ;;  %11109 = vmatprep.mubr.msk.f32.mxu0 %vm11926_vm1, %v13999_v0  ;;  %v60_v32 = vld [vmem:[%s13996_s0 + $0x170] sm:$0xff] }
  0x23   :  { %11105 = vmatmul.mubr.msk.f32.vlgmr.msra.gmra.mrb[14].mxu1 %vm206_vm0, %v29_v33  ;;  %11117 = vmatprep.subr.mxu0 %v13999_v0  ;;  %v126_v33 = vld [vmem:[%s13995_s1 + $0x180] sm:$0xff] }
  0x24   :  { %11113 = vmatpush3.xpose.msk.msra.mxu1 %vm206_vm0, %v95_v34  ;;  %11114 = vmatprep.mubr.msk.f32.mxu1 %vm11926_vm1, %v13999_v0  ;;  %v61_v34 = vld [vmem:[%s13996_s0 + $0x178] sm:$0xff] }
  0x25   :  { %11110 = vmatmul.mubr.msk.f32.vlgmr.msra.gmra.mrb[16].mxu0 %vm206_vm0, %v30_v35  ;;  %11122 = vmatprep.subr.mxu1 %v13999_v0  ;;  %v127_v35 = vld [vmem:[%s13995_s1 + $0x188] sm:$0xff] }
  0x26   :  { %11118 = vmatpush3.xpose.msk.msra.mxu0 %vm206_vm0, %v96_v36  ;;  %11119 = vmatprep.mubr.msk.f32.mxu0 %vm11926_vm1, %v13999_v0  ;;  %v62_v36 = vld [vmem:[%s13996_s0 + $0x180] sm:$0xff] }
  0x27   :  { %11115 = vmatmul.mubr.msk.f32.vlgmr.msra.gmra.mrb[16].mxu1 %vm206_vm0, %v31_v37  ;;  %11127 = vmatprep.subr.mxu0 %v13999_v0  ;;  %v128_v37 = vld [vmem:[%s13995_s1 + $0x190] sm:$0xff] }
  0x28   :  { %11123 = vmatpush3.xpose.msk.msra.mxu1 %vm206_vm0, %v97_v38  ;;  %11124 = vmatprep.mubr.msk.f32.mxu1 %vm11926_vm1, %v13999_v0  ;;  %v63_v38 = vld [vmem:[%s13996_s0 + $0x188] sm:$0xff] }
  0x29   :  { %11120 = vmatmul.mubr.msk.f32.vlgmr.msra.gmra.mrb[18].mxu0 %vm206_vm0, %v32_v39  ;;  %11132 = vmatprep.subr.mxu1 %v13999_v0  ;;  %v129_v39 = vld [vmem:[%s13995_s1 + $0x198] sm:$0xff] }
  0x2a   :  { %11128 = vmatpush3.xpose.msk.msra.mxu0 %vm206_vm0, %v98_v40  ;;  %11129 = vmatprep.mubr.msk.f32.mxu0 %vm11926_vm1, %v13999_v0  ;;  %v64_v40 = vld [vmem:[%s13996_s0 + $0x190] sm:$0xff] }
  0x2b   :  { %11125 = vmatmul.mubr.msk.f32.vlgmr.msra.gmra.mrb[18].mxu1 %vm206_vm0, %v33_v41  ;;  %11137 = vmatprep.subr.mxu0 %v13999_v0  ;;  %v130_v41 = vld [vmem:[%s13995_s1 + $0x1a0] sm:$0xff] }
  0x2c   :  { %11133 = vmatpush3.xpose.msk.msra.mxu1 %vm206_vm0, %v99_v42  ;;  %11134 = vmatprep.mubr.msk.f32.mxu1 %vm11926_vm1, %v13999_v0  ;;  %v65_v42 = vld [vmem:[%s13996_s0 + $0x198] sm:$0xff] }
  0x2d   :  { %11130 = vmatmul.mubr.msk.f32.vlgmr.msra.gmra.mrb[20].mxu0 %vm206_vm0, %v34_v43  ;;  %11142 = vmatprep.subr.mxu1 %v13999_v0  ;;  %v131_v43 = vld [vmem:[%s13995_s1 + $0x1a8] sm:$0xff] }
  0x2e   :  { %11138 = vmatpush3.xpose.msk.msra.mxu0 %vm206_vm0, %v100_v44  ;;  %11139 = vmatprep.mubr.msk.f32.mxu0 %vm11926_vm1, %v13999_v0  ;;  %v66_v44 = vld [vmem:[%s13996_s0 + $0x1a0] sm:$0xff] }
  0x2f   :  { %11135 = vmatmul.mubr.msk.f32.vlgmr.msra.gmra.mrb[20].mxu1 %vm206_vm0, %v35_v45  ;;  %11147 = vmatprep.subr.mxu0 %v13999_v0  ;;  %v132_v45 = vld [vmem:[%s13995_s1 + $0x1b0] sm:$0xff] }
  0x30   :  { %11143 = vmatpush3.xpose.msk.msra.mxu1 %vm206_vm0, %v101_v46  ;;  %11144 = vmatprep.mubr.msk.f32.mxu1 %vm11926_vm1, %v13999_v0  ;;  %v67_v46 = vld [vmem:[%s13996_s0 + $0x1a8] sm:$0xff] }
  0x31   :  { %11140 = vmatmul.mubr.msk.f32.vlgmr.msra.gmra.mrb[22].mxu0 %vm206_vm0, %v36_v47  ;;  %11152 = vmatprep.subr.mxu1 %v13999_v0  ;;  %v133_v47 = vld [vmem:[%s13995_s1 + $0x1b8] sm:$0xff] }
  0x32   :  { %11148 = vmatpush3.xpose.msk.msra.mxu0 %vm206_vm0, %v102_v48  ;;  %11149 = vmatprep.mubr.msk.f32.mxu0 %vm11926_vm1, %v13999_v0  ;;  %v68_v48 = vld [vmem:[%s13996_s0 + $0x1b0] sm:$0xff] }
  0x33   :  { %11145 = vmatmul.mubr.msk.f32.vlgmr.msra.gmra.mrb[22].mxu1 %vm206_vm0, %v37_v49  ;;  %11157 = vmatprep.subr.mxu0 %v13999_v0  ;;  %v134_v49 = vld [vmem:[%s13995_s1 + $0x1c0] sm:$0xff] }
  0x34   :  { %11153 = vmatpush3.xpose.msk.msra.mxu1 %vm206_vm0, %v103_v50  ;;  %11154 = vmatprep.mubr.msk.f32.mxu1 %vm11926_vm1, %v13999_v0  ;;  %v69_v50 = vld [vmem:[%s13996_s0 + $0x1b8] sm:$0xff] }
  0x35   :  { %11150 = vmatmul.mubr.msk.f32.vlgmr.msra.gmra.mrb[24].mxu0 %vm206_vm0, %v38_v51  ;;  %11162 = vmatprep.subr.mxu1 %v13999_v0  ;;  %v135_v51 = vld [vmem:[%s13995_s1 + $0x1c8] sm:$0xff] }
  0x36   :  { %11158 = vmatpush3.xpose.msk.msra.mxu0 %vm206_vm0, %v104_v52  ;;  %11159 = vmatprep.mubr.msk.f32.mxu0 %vm11926_vm1, %v13999_v0  ;;  %v70_v52 = vld [vmem:[%s13996_s0 + $0x1c0] sm:$0xff] }
  0x37   :  { %11155 = vmatmul.mubr.msk.f32.vlgmr.msra.gmra.mrb[24].mxu1 %vm206_vm0, %v39_v53  ;;  %11167 = vmatprep.subr.mxu0 %v13999_v0  ;;  %v136_v53 = vld [vmem:[%s13995_s1 + $0x1d0] sm:$0xff] }
  0x38   :  { %11163 = vmatpush3.xpose.msk.msra.mxu1 %vm206_vm0, %v105_v54  ;;  %11164 = vmatprep.mubr.msk.f32.mxu1 %vm11926_vm1, %v13999_v0  ;;  %v71_v54 = vld [vmem:[%s13996_s0 + $0x1c8] sm:$0xff] }
  0x39   :  { %11160 = vmatmul.mubr.msk.f32.vlgmr.msra.gmra.mrb[26].mxu0 %vm206_vm0, %v40_v55  ;;  %11172 = vmatprep.subr.mxu1 %v13999_v0  ;;  %v137_v55 = vld [vmem:[%s13995_s1 + $0x1d8] sm:$0xff] }
  0x3a   :  { %11168 = vmatpush3.xpose.msk.msra.mxu0 %vm206_vm0, %v106_v56  ;;  %11169 = vmatprep.mubr.msk.f32.mxu0 %vm11926_vm1, %v13999_v0  ;;  %v72_v56 = vld [vmem:[%s13996_s0 + $0x1d0] sm:$0xff] }
  0x3b   :  { %11165 = vmatmul.mubr.msk.f32.vlgmr.msra.gmra.mrb[26].mxu1 %vm206_vm0, %v41_v57  ;;  %11177 = vmatprep.subr.mxu0 %v13999_v0  ;;  %v138_v57 = vld [vmem:[%s13995_s1 + $0x1e0] sm:$0xff] }
  0x3c   :  { %11173 = vmatpush3.xpose.msk.msra.mxu1 %vm206_vm0, %v107_v58  ;;  %11174 = vmatprep.mubr.msk.f32.mxu1 %vm11926_vm1, %v13999_v0  ;;  %v73_v58 = vld [vmem:[%s13996_s0 + $0x1d8] sm:$0xff] }
  0x3d   :  { %11170 = vmatmul.mubr.msk.f32.vlgmr.msra.gmra.mrb[28].mxu0 %vm206_vm0, %v42_v59  ;;  %11182 = vmatprep.subr.mxu1 %v13999_v0  ;;  %v139_v59 = vld [vmem:[%s13995_s1 + $0x1e8] sm:$0xff] }
  0x3e   :  { %11178 = vmatpush3.xpose.msk.msra.mxu0 %vm206_vm0, %v108_v60  ;;  %11179 = vmatprep.mubr.msk.f32.mxu0 %vm11926_vm1, %v13999_v0  ;;  %v74_v60 = vld [vmem:[%s13996_s0 + $0x1e0] sm:$0xff] }
  0x3f   :  { %11175 = vmatmul.mubr.msk.f32.vlgmr.msra.gmra.mrb[28].mxu1 %vm206_vm0, %v43_v61  ;;  %11187 = vmatprep.subr.mxu0 %v13999_v0  ;;  %v140_v61 = vld [vmem:[%s13995_s1 + $0x1f0] sm:$0xff] }
  0x40   :  { %11183 = vmatpush3.xpose.msk.msra.mxu1 %vm206_vm0, %v109_v62  ;;  %11184 = vmatprep.mubr.msk.f32.mxu1 %vm11926_vm1, %v13999_v0  ;;  %v75_v62 = vld [vmem:[%s13996_s0 + $0x1e8] sm:$0xff] }
  0x41   :  { %11180 = vmatmul.mubr.msk.f32.vlgmr.msra.gmra.mrb[30].mxu0 %vm206_vm0, %v44_v63  ;;  %11192 = vmatprep.subr.mxu1 %v13999_v0  ;;  %v141_v63 = vld [vmem:[%s13995_s1 + $0x1f8] sm:$0xff] }
  0x42   :  { %11188 = vmatpush3.xpose.msk.msra.mxu0 %vm206_vm0, %v110_v1  ;;  %11189 = vmatprep.mubr.msk.f32.mxu0 %vm11926_vm1, %v13999_v0  ;;  %v76_v1 = vld [vmem:[%s13996_s0 + $0x1f0] sm:$0xff] }
  0x43   :  { %11185 = vmatmul.mubr.msk.f32.vlgmr.msra.gmra.mrb[30].mxu1 %vm206_vm0, %v45_v2  ;;  %11197 = vmatprep.subr.mxu0 %v13999_v0  ;;  %v77_v2 = vld [vmem:[%s13996_s0 + $0x1f8] sm:$0xff] }
  0x44   :  { %11193 = vmatpush3.xpose.msk.msra.mxu1 %vm206_vm0, %v111_v3  ;;  %11194 = vmatprep.mubr.msk.f32.mxu1 %vm11926_vm1, %v13999_v0 }
  0x45   :  { %11190 = vmatmul.mubr.msk.f32.vlgmr.msra.gmra.mrb[32].mxu0 %vm206_vm0, %v46_v4  ;;  %11202 = vmatprep.subr.mxu1 %v13999_v0 }
  0x46   :  { %11198 = vmatpush3.xpose.msk.msra.mxu0 %vm206_vm0, %v112_v5  ;;  %11199 = vmatprep.mubr.msk.f32.mxu0 %vm11926_vm1, %v13999_v0 }
  0x47   :  { %11195 = vmatmul.mubr.msk.f32.vlgmr.msra.gmra.mrb[32].mxu1 %vm206_vm0, %v47_v6  ;;  %11207 = vmatprep.subr.mxu0 %v13999_v0 }
  0x48   :  { %11203 = vmatpush3.xpose.msk.msra.mxu1 %vm206_vm0, %v113_v7  ;;  %11204 = vmatprep.mubr.msk.f32.mxu1 %vm11926_vm1, %v13999_v0 }
  0x49   :  { %11200 = vmatmul.mubr.msk.f32.vlgmr.msra.gmra.mrb[34].mxu0 %vm206_vm0, %v48_v8  ;;  %11212 = vmatprep.subr.mxu1 %v13999_v0 }
  0x4a   :  { %11208 = vmatpush3.xpose.msk.msra.mxu0 %vm206_vm0, %v114_v9  ;;  %11209 = vmatprep.mubr.msk.f32.mxu0 %vm11926_vm1, %v13999_v0 }
  0x4b   :  { %11205 = vmatmul.mubr.msk.f32.vlgmr.msra.gmra.mrb[34].mxu1 %vm206_vm0, %v49_v10  ;;  %11217 = vmatprep.subr.mxu0 %v13999_v0 }
  0x4c   :  { %11213 = vmatpush3.xpose.msk.msra.mxu1 %vm206_vm0, %v115_v11  ;;  %11214 = vmatprep.mubr.msk.f32.mxu1 %vm11926_vm1, %v13999_v0 }
  0x4d   :  { %11210 = vmatmul.mubr.msk.f32.vlgmr.msra.gmra.mrb[36].mxu0 %vm206_vm0, %v50_v12  ;;  %11222 = vmatprep.subr.mxu1 %v13999_v0 }
  0x4e   :  { %11218 = vmatpush3.xpose.msk.msra.mxu0 %vm206_vm0, %v116_v13  ;;  %11219 = vmatprep.mubr.msk.f32.mxu0 %vm11926_vm1, %v13999_v0 }
  0x4f   :  { %11215 = vmatmul.mubr.msk.f32.vlgmr.msra.gmra.mrb[36].mxu1 %vm206_vm0, %v51_v14  ;;  %11227 = vmatprep.subr.mxu0 %v13999_v0 }
  0x50   :  { %11223 = vmatpush3.xpose.msk.msra.mxu1 %vm206_vm0, %v117_v15  ;;  %11224 = vmatprep.mubr.msk.f32.mxu1 %vm11926_vm1, %v13999_v0 }
  0x51   :  { %11220 = vmatmul.mubr.msk.f32.vlgmr.msra.gmra.mrb[38].mxu0 %vm206_vm0, %v52_v16  ;;  %11232 = vmatprep.subr.mxu1 %v13999_v0 }
  0x52   :  { %11228 = vmatpush3.xpose.msk.msra.mxu0 %vm206_vm0, %v118_v17  ;;  %11229 = vmatprep.mubr.msk.f32.mxu0 %vm11926_vm1, %v13999_v0 }
  0x53   :  { %11225 = vmatmul.mubr.msk.f32.vlgmr.msra.gmra.mrb[38].mxu1 %vm206_vm0, %v53_v18  ;;  %11237 = vmatprep.subr.mxu0 %v13999_v0 }
  0x54   :  { %11233 = vmatpush3.xpose.msk.msra.mxu1 %vm206_vm0, %v119_v19  ;;  %11234 = vmatprep.mubr.msk.f32.mxu1 %vm11926_vm1, %v13999_v0 }
  0x55   :  { %11230 = vmatmul.mubr.msk.f32.vlgmr.msra.gmra.mrb[40].mxu0 %vm206_vm0, %v54_v20  ;;  %11242 = vmatprep.subr.mxu1 %v13999_v0 }
  0x56   :  { %11238 = vmatpush3.xpose.msk.msra.mxu0 %vm206_vm0, %v120_v21  ;;  %11239 = vmatprep.mubr.msk.f32.mxu0 %vm11926_vm1, %v13999_v0 }
  0x57   :  { %11235 = vmatmul.mubr.msk.f32.vlgmr.msra.gmra.mrb[40].mxu1 %vm206_vm0, %v55_v22  ;;  %11247 = vmatprep.subr.mxu0 %v13999_v0 }
  0x58   :  { %11243 = vmatpush3.xpose.msk.msra.mxu1 %vm206_vm0, %v121_v23  ;;  %11244 = vmatprep.mubr.msk.f32.mxu1 %vm11926_vm1, %v13999_v0 }
  0x59   :  { %11240 = vmatmul.mubr.msk.f32.vlgmr.msra.gmra.mrb[42].mxu0 %vm206_vm0, %v56_v24  ;;  %11252 = vmatprep.subr.mxu1 %v13999_v0 }
  0x5a   :  { %11248 = vmatpush3.xpose.msk.msra.mxu0 %vm206_vm0, %v122_v25  ;;  %11249 = vmatprep.mubr.msk.f32.mxu0 %vm11926_vm1, %v13999_v0 }
  0x5b   :  { %11245 = vmatmul.mubr.msk.f32.vlgmr.msra.gmra.mrb[42].mxu1 %vm206_vm0, %v57_v26  ;;  %11257 = vmatprep.subr.mxu0 %v13999_v0 }
  0x5c   :  { %11253 = vmatpush3.xpose.msk.msra.mxu1 %vm206_vm0, %v123_v27  ;;  %11254 = vmatprep.mubr.msk.f32.mxu1 %vm11926_vm1, %v13999_v0 }
  0x5d   :  { %11250 = vmatmul.mubr.msk.f32.vlgmr.msra.gmra.mrb[44].mxu0 %vm206_vm0, %v58_v28  ;;  %11262 = vmatprep.subr.mxu1 %v13999_v0 }
  0x5e   :  { %11258 = vmatpush3.xpose.msk.msra.mxu0 %vm206_vm0, %v124_v29  ;;  %11259 = vmatprep.mubr.msk.f32.mxu0 %vm11926_vm1, %v13999_v0 }
  0x5f   :  { %11255 = vmatmul.mubr.msk.f32.vlgmr.msra.gmra.mrb[44].mxu1 %vm206_vm0, %v59_v30  ;;  %11267 = vmatprep.subr.mxu0 %v13999_v0 }
  0x60   :  { %11263 = vmatpush3.xpose.msk.msra.mxu1 %vm206_vm0, %v125_v31  ;;  %11264 = vmatprep.mubr.msk.f32.mxu1 %vm11926_vm1, %v13999_v0 }
  0x61   :  { %11260 = vmatmul.mubr.msk.f32.vlgmr.msra.gmra.mrb[46].mxu0 %vm206_vm0, %v60_v32  ;;  %11272 = vmatprep.subr.mxu1 %v13999_v0 }
  0x62   :  { %11268 = vmatpush3.xpose.msk.msra.mxu0 %vm206_vm0, %v126_v33  ;;  %11269 = vmatprep.mubr.msk.f32.mxu0 %vm11926_vm1, %v13999_v0 }
  0x63   :  { %11265 = vmatmul.mubr.msk.f32.vlgmr.msra.gmra.mrb[46].mxu1 %vm206_vm0, %v61_v34  ;;  %11277 = vmatprep.subr.mxu0 %v13999_v0 }
  0x64   :  { %11273 = vmatpush3.xpose.msk.msra.mxu1 %vm206_vm0, %v127_v35  ;;  %11274 = vmatprep.mubr.msk.f32.mxu1 %vm11926_vm1, %v13999_v0 }
  0x65   :  { %11270 = vmatmul.mubr.msk.f32.vlgmr.msra.gmra.mrb[48].mxu0 %vm206_vm0, %v62_v36  ;;  %11282 = vmatprep.subr.mxu1 %v13999_v0 }
  0x66   :  { %11278 = vmatpush3.xpose.msk.msra.mxu0 %vm206_vm0, %v128_v37  ;;  %11279 = vmatprep.mubr.msk.f32.mxu0 %vm11926_vm1, %v13999_v0 }
  0x67   :  { %11275 = vmatmul.mubr.msk.f32.vlgmr.msra.gmra.mrb[48].mxu1 %vm206_vm0, %v63_v38  ;;  %11287 = vmatprep.subr.mxu0 %v13999_v0 }
  0x68   :  { %11283 = vmatpush3.xpose.msk.msra.mxu1 %vm206_vm0, %v129_v39  ;;  %11284 = vmatprep.mubr.msk.f32.mxu1 %vm11926_vm1, %v13999_v0 }
  0x69   :  { %11280 = vmatmul.mubr.msk.f32.vlgmr.msra.gmra.mrb[50].mxu0 %vm206_vm0, %v64_v40  ;;  %11292 = vmatprep.subr.mxu1 %v13999_v0 }
  0x6a   :  { %11288 = vmatpush3.xpose.msk.msra.mxu0 %vm206_vm0, %v130_v41  ;;  %11289 = vmatprep.mubr.msk.f32.mxu0 %vm11926_vm1, %v13999_v0 }
  0x6b   :  { %11285 = vmatmul.mubr.msk.f32.vlgmr.msra.gmra.mrb[50].mxu1 %vm206_vm0, %v65_v42  ;;  %11297 = vmatprep.subr.mxu0 %v13999_v0 }
  0x6c   :  { %11293 = vmatpush3.xpose.msk.msra.mxu1 %vm206_vm0, %v131_v43  ;;  %11294 = vmatprep.mubr.msk.f32.mxu1 %vm11926_vm1, %v13999_v0 }
  0x6d   :  { %11290 = vmatmul.mubr.msk.f32.vlgmr.msra.gmra.mrb[52].mxu0 %vm206_vm0, %v66_v44  ;;  %11302 = vmatprep.subr.mxu1 %v13999_v0 }
  0x6e   :  { %11298 = vmatpush3.xpose.msk.msra.mxu0 %vm206_vm0, %v132_v45  ;;  %11299 = vmatprep.mubr.msk.f32.mxu0 %vm11926_vm1, %v13999_v0 }
  0x6f   :  { %11295 = vmatmul.mubr.msk.f32.vlgmr.msra.gmra.mrb[52].mxu1 %vm206_vm0, %v67_v46  ;;  %11307 = vmatprep.subr.mxu0 %v13999_v0 }
  0x70   :  { %11303 = vmatpush3.xpose.msk.msra.mxu1 %vm206_vm0, %v133_v47  ;;  %11304 = vmatprep.mubr.msk.f32.mxu1 %vm11926_vm1, %v13999_v0 }
  0x71   :  { %11300 = vmatmul.mubr.msk.f32.vlgmr.msra.gmra.mrb[54].mxu0 %vm206_vm0, %v68_v48  ;;  %11312 = vmatprep.subr.mxu1 %v13999_v0 }
  0x72   :  { %11308 = vmatpush3.xpose.msk.msra.mxu0 %vm206_vm0, %v134_v49  ;;  %11309 = vmatprep.mubr.msk.f32.mxu0 %vm11926_vm1, %v13999_v0 }
  0x73   :  { %11305 = vmatmul.mubr.msk.f32.vlgmr.msra.gmra.mrb[54].mxu1 %vm206_vm0, %v69_v50  ;;  %11317 = vmatprep.subr.mxu0 %v13999_v0 }
  0x74   :  { %11313 = vmatpush3.xpose.msk.msra.mxu1 %vm206_vm0, %v135_v51  ;;  %11314 = vmatprep.mubr.msk.f32.mxu1 %vm11926_vm1, %v13999_v0 }
  0x75   :  { %11310 = vmatmul.mubr.msk.f32.vlgmr.msra.gmra.mrb[56].mxu0 %vm206_vm0, %v70_v52  ;;  %11322 = vmatprep.subr.mxu1 %v13999_v0 }
  0x76   :  { %11318 = vmatpush3.xpose.msk.msra.mxu0 %vm206_vm0, %v136_v53  ;;  %11319 = vmatprep.mubr.msk.f32.mxu0 %vm11926_vm1, %v13999_v0 }
  0x77   :  { %11315 = vmatmul.mubr.msk.f32.vlgmr.msra.gmra.mrb[56].mxu1 %vm206_vm0, %v71_v54  ;;  %11327 = vmatprep.subr.mxu0 %v13999_v0 }
  0x78   :  { %11323 = vmatpush3.xpose.msk.msra.mxu1 %vm206_vm0, %v137_v55  ;;  %11324 = vmatprep.mubr.msk.f32.mxu1 %vm11926_vm1, %v13999_v0 }
  0x79   :  { %11320 = vmatmul.mubr.msk.f32.vlgmr.msra.gmra.mrb[58].mxu0 %vm206_vm0, %v72_v56  ;;  %11332 = vmatprep.subr.mxu1 %v13999_v0 }
  0x7a   :  { %11328 = vmatpush3.xpose.msk.msra.mxu0 %vm206_vm0, %v138_v57  ;;  %11329 = vmatprep.mubr.msk.f32.mxu0 %vm11926_vm1, %v13999_v0 }
  0x7b   :  { %11325 = vmatmul.mubr.msk.f32.vlgmr.msra.gmra.mrb[58].mxu1 %vm206_vm0, %v73_v58  ;;  %11337 = vmatprep.subr.mxu0 %v13999_v0 }
  0x7c   :  { %11333 = vmatpush3.xpose.msk.msra.mxu1 %vm206_vm0, %v139_v59  ;;  %11334 = vmatprep.mubr.msk.f32.mxu1 %vm11926_vm1, %v13999_v0 }
  0x7d   :  { %11330 = vmatmul.mubr.msk.f32.vlgmr.msra.gmra.mrb[60].mxu0 %vm206_vm0, %v74_v60  ;;  %11342 = vmatprep.subr.mxu1 %v13999_v0 }
  0x7e   :  { %11338 = vmatpush3.xpose.msk.msra.mxu0 %vm206_vm0, %v140_v61  ;;  %11339 = vmatprep.mubr.msk.f32.mxu0 %vm11926_vm1, %v13999_v0 }
  0x7f   :  { %11335 = vmatmul.mubr.msk.f32.vlgmr.msra.gmra.mrb[60].mxu1 %vm206_vm0, %v75_v62  ;;  %11347 = vmatprep.subr.mxu0 %v13999_v0 }
  0x80   :  { %11343 = vmatpush3.xpose.msk.msra.mxu1 %vm206_vm0, %v141_v63  ;;  %11344 = vmatprep.mubr.msk.f32.mxu1 %vm11926_vm1, %v13999_v0 }
  0x81   :  { %11340 = vmatmul.mubr.msk.f32.vlgmr.msra.gmra.mrb[62].mxu0 %vm206_vm0, %v76_v1  ;;  %11352 = vmatprep.subr.mxu1 %v13999_v0 }
  0x82   :  { %11349 = vmatprep.mubr.msk.f32.mxu0 %vm11926_vm1, %v13999_v0 }
  0x83   :  { %11345 = vmatmul.mubr.msk.f32.vlgmr.msra.gmra.mrb[62].mxu1 %vm206_vm0, %v77_v2 }
  0x84   :  { %11354 = vmatprep.mubr.msk.f32.mxu1 %vm11926_vm1, %v13999_v0 }
  0xd8   :  { %v279_v3 = vpop.f32.mrb[0].mxu0 }
  0xd9   :  { %v12657_v4 = vmul.f32 0.35355338, %v279_v3  ;;  %v11031_v5 = vpop.f32.mrb[1].mxu0 }
  0xda   :  { %v355_v6 = vpop.f32.mrb[0].mxu1 }
  0xdb   :  { %v12659_v7 = vmul.f32 0.35355338, %v355_v6  ;;  %v5135_v8 = vsel %vm206_vm0, %v12657_v4, -inf  ;;  %v11036_v9 = vpop.f32.mrb[1].mxu1 }
  0xdc   :  { %5136 = vmax.xlane.f32.xlu0 %v5135_v8  ;;  %v431_v10 = vpop.f32.mrb[2].mxu0 }
  0xdd   :  { %v12663_v11 = vmul.f32 0.35355338, %v431_v10  ;;  %v11041_v12 = vpop.f32.mrb[3].mxu0  ;;  %v5138_v13 = vsel %vm206_vm0, %v12659_v7, -inf }
  0xde   :  { %v507_v14 = vpop.f32.mrb[2].mxu1 }
  0xdf   :  { %v12667_v15 = vmul.f32 0.35355338, %v507_v14  ;;  %v5141_v16 = vsel %vm206_vm0, %v12663_v11, -inf  ;;  %v11046_v17 = vpop.f32.mrb[3].mxu1 }
  0xe0   :  { %5139 = vmax.xlane.f32.xlu0 %v5138_v13  ;;  %5142 = vmax.xlane.f32.xlu1 %v5141_v16  ;;  %v583_v18 = vpop.f32.mrb[4].mxu0 }
  0xe1   :  { %v12671_v19 = vmul.f32 0.35355338, %v583_v18  ;;  %v11051_v20 = vpop.f32.mrb[5].mxu0  ;;  %v5144_v21 = vsel %vm206_vm0, %v12667_v15, -inf }
  0xe2   :  { %v659_v22 = vpop.f32.mrb[4].mxu1 }
  0xe3   :  { %v12675_v23 = vmul.f32 0.35355338, %v659_v22  ;;  %v5147_v24 = vsel %vm206_vm0, %v12671_v19, -inf  ;;  %v11056_v25 = vpop.f32.mrb[5].mxu1 }
  0xe4   :  { %5145 = vmax.xlane.f32.xlu1 %v5144_v21  ;;  %5148 = vmax.xlane.f32.xlu0 %v5147_v24  ;;  %v735_v26 = vpop.f32.mrb[6].mxu0 }
  0xe5   :  { %v12679_v27 = vmul.f32 0.35355338, %v735_v26  ;;  %v11061_v28 = vpop.f32.mrb[7].mxu0  ;;  %v5150_v29 = vsel %vm206_vm0, %v12675_v23, -inf }
  0xe6   :  { %v811_v30 = vpop.f32.mrb[6].mxu1 }
  0xe7   :  { %v12683_v31 = vmul.f32 0.35355338, %v811_v30  ;;  %v5153_v32 = vsel %vm206_vm0, %v12679_v27, -inf  ;;  %v11066_v33 = vpop.f32.mrb[7].mxu1 }
  0xe8   :  { %5151 = vmax.xlane.f32.xlu1 %v5150_v29  ;;  %5154 = vmax.xlane.f32.xlu0 %v5153_v32  ;;  %v887_v34 = vpop.f32.mrb[8].mxu0 }
  0xe9   :  { %v12687_v35 = vmul.f32 0.35355338, %v887_v34  ;;  %v11071_v36 = vpop.f32.mrb[9].mxu0  ;;  %v5156_v37 = vsel %vm206_vm0, %v12683_v31, -inf }
  0xea   :  { %v963_v38 = vpop.f32.mrb[8].mxu1 }
  0xeb   :  { %v12691_v39 = vmul.f32 0.35355338, %v963_v38  ;;  %v5159_v40 = vsel %vm206_vm0, %v12687_v35, -inf  ;;  %v11076_v41 = vpop.f32.mrb[9].mxu1 }
  0xec   :  { %5157 = vmax.xlane.f32.xlu1 %v5156_v37  ;;  %5160 = vmax.xlane.f32.xlu0 %v5159_v40  ;;  %v1039_v42 = vpop.f32.mrb[10].mxu0 }
  0xed   :  { %v12695_v43 = vmul.f32 0.35355338, %v1039_v42  ;;  %v11081_v44 = vpop.f32.mrb[11].mxu0  ;;  %v5162_v45 = vsel %vm206_vm0, %v12691_v39, -inf }
  0xee   :  { %v1115_v46 = vpop.f32.mrb[10].mxu1 }
  0xef   :  { %v12699_v47 = vmul.f32 0.35355338, %v1115_v46  ;;  %v5165_v48 = vsel %vm206_vm0, %v12695_v43, -inf  ;;  %v11086_v49 = vpop.f32.mrb[11].mxu1 }
  0xf0   :  { %5163 = vmax.xlane.f32.xlu1 %v5162_v45  ;;  %5166 = vmax.xlane.f32.xlu0 %v5165_v48  ;;  %v1191_v50 = vpop.f32.mrb[12].mxu0 }
  0xf1   :  { %v12703_v51 = vmul.f32 0.35355338, %v1191_v50  ;;  %v11091_v52 = vpop.f32.mrb[13].mxu0  ;;  %v5168_v53 = vsel %vm206_vm0, %v12699_v47, -inf }
  0xf2   :  { %v1267_v54 = vpop.f32.mrb[12].mxu1 }
  0xf3   :  { %v12707_v55 = vmul.f32 0.35355338, %v1267_v54  ;;  %v5171_v56 = vsel %vm206_vm0, %v12703_v51, -inf  ;;  %v11096_v57 = vpop.f32.mrb[13].mxu1 }
  0xf4   :  { %5169 = vmax.xlane.f32.xlu1 %v5168_v53  ;;  %5172 = vmax.xlane.f32.xlu0 %v5171_v56  ;;  %v1343_v58 = vpop.f32.mrb[14].mxu0 }
  0xf5   :  { %v12711_v59 = vmul.f32 0.35355338, %v1343_v58  ;;  %v11101_v60 = vpop.f32.mrb[15].mxu0  ;;  %v5174_v61 = vsel %vm206_vm0, %v12707_v55, -inf }
  0xf6   :  { %v1419_v62 = vpop.f32.mrb[14].mxu1 }
  0xf7   :  { %v12715_v63 = vmul.f32 0.35355338, %v1419_v62  ;;  %v5177_v1 = vsel %vm206_vm0, %v12711_v59, -inf  ;;  %v11106_v2 = vpop.f32.mrb[15].mxu1 }
  0xf8   :  { %5175 = vmax.xlane.f32.xlu1 %v5174_v61  ;;  %5178 = vmax.xlane.f32.xlu0 %v5177_v1  ;;  %v1495_v3 = vpop.f32.mrb[16].mxu0 }
  0xf9   :  { %v12719_v5 = vmul.f32 0.35355338, %v1495_v3  ;;  %v11111_v6 = vpop.f32.mrb[17].mxu0  ;;  %v5180_v8 = vsel %vm206_vm0, %v12715_v63, -inf }
  0xfa   :  { %v1571_v9 = vpop.f32.mrb[16].mxu1 }
  0xfb   :  { %v12723_v10 = vmul.f32 0.35355338, %v1571_v9  ;;  %v5183_v12 = vsel %vm206_vm0, %v12719_v5, -inf  ;;  %v11116_v13 = vpop.f32.mrb[17].mxu1 }
  0xfc   :  { %5181 = vmax.xlane.f32.xlu1 %v5180_v8  ;;  %5184 = vmax.xlane.f32.xlu0 %v5183_v12  ;;  %v1647_v14 = vpop.f32.mrb[18].mxu0 }
  0xfd   :  { %v12727_v16 = vmul.f32 0.35355338, %v1647_v14  ;;  %v11121_v17 = vpop.f32.mrb[19].mxu0  ;;  %v5186_v18 = vsel %vm206_vm0, %v12723_v10, -inf }
  0xfe   :  { %v1723_v20 = vpop.f32.mrb[18].mxu1 }
  0xff   :  { %v12731_v21 = vmul.f32 0.35355338, %v1723_v20  ;;  %v5189_v22 = vsel %vm206_vm0, %v12727_v16, -inf  ;;  %v11126_v24 = vpop.f32.mrb[19].mxu1 }
 0x100   :  { %5187 = vmax.xlane.f32.xlu1 %v5186_v18  ;;  %5190 = vmax.xlane.f32.xlu0 %v5189_v22  ;;  %v1799_v25 = vpop.f32.mrb[20].mxu0 }
 0x101   :  { %v12735_v26 = vmul.f32 0.35355338, %v1799_v25  ;;  %v11131_v28 = vpop.f32.mrb[21].mxu0  ;;  %v5192_v29 = vsel %vm206_vm0, %v12731_v21, -inf }
 0x102   :  { %v1875_v30 = vpop.f32.mrb[20].mxu1 }
 0x103   :  { %v12739_v32 = vmul.f32 0.35355338, %v1875_v30  ;;  %v5195_v33 = vsel %vm206_vm0, %v12735_v26, -inf  ;;  %v11136_v34 = vpop.f32.mrb[21].mxu1 }
 0x104   :  { %5193 = vmax.xlane.f32.xlu1 %v5192_v29  ;;  %5196 = vmax.xlane.f32.xlu0 %v5195_v33  ;;  %v1951_v36 = vpop.f32.mrb[22].mxu0 }
 0x105   :  { %v12743_v37 = vmul.f32 0.35355338, %v1951_v36  ;;  %v11141_v38 = vpop.f32.mrb[23].mxu0  ;;  %v5198_v40 = vsel %vm206_vm0, %v12739_v32, -inf }
 0x106   :  { %v2027_v41 = vpop.f32.mrb[22].mxu1 }
 0x107   :  { %v12747_v42 = vmul.f32 0.35355338, %v2027_v41  ;;  %v5201_v44 = vsel %vm206_vm0, %v12743_v37, -inf  ;;  %v11146_v45 = vpop.f32.mrb[23].mxu1 }
 0x108   :  { %5199 = vmax.xlane.f32.xlu1 %v5198_v40  ;;  %5202 = vmax.xlane.f32.xlu0 %v5201_v44  ;;  %v2103_v46 = vpop.f32.mrb[24].mxu0 }
 0x109   :  { %v12751_v48 = vmul.f32 0.35355338, %v2103_v46  ;;  %v11151_v49 = vpop.f32.mrb[25].mxu0  ;;  %v5204_v50 = vsel %vm206_vm0, %v12747_v42, -inf }
 0x10a   :  { %v2179_v52 = vpop.f32.mrb[24].mxu1 }
 0x10b   :  { %v12755_v53 = vmul.f32 0.35355338, %v2179_v52  ;;  %v5207_v54 = vsel %vm206_vm0, %v12751_v48, -inf  ;;  %v11156_v56 = vpop.f32.mrb[25].mxu1 }
 0x10c   :  { %5205 = vmax.xlane.f32.xlu1 %v5204_v50  ;;  %5208 = vmax.xlane.f32.xlu0 %v5207_v54  ;;  %v2255_v57 = vpop.f32.mrb[26].mxu0 }
 0x10d   :  { %v12759_v58 = vmul.f32 0.35355338, %v2255_v57  ;;  %v11161_v60 = vpop.f32.mrb[27].mxu0  ;;  %v5210_v61 = vsel %vm206_vm0, %v12755_v53, -inf }
 0x10e   :  { %v2331_v62 = vpop.f32.mrb[26].mxu1 }
 0x10f   :  { %v12763_v1 = vmul.f32 0.35355338, %v2331_v62  ;;  %v5213_v2 = vsel %vm206_vm0, %v12759_v58, -inf  ;;  %v11166_v3 = vpop.f32.mrb[27].mxu1 }
 0x110   :  { %5211 = vmax.xlane.f32.xlu1 %v5210_v61  ;;  %5214 = vmax.xlane.f32.xlu0 %v5213_v2  ;;  %v2407_v6 = vpop.f32.mrb[28].mxu0 }
 0x111   :  { %v12767_v8 = vmul.f32 0.35355338, %v2407_v6  ;;  %v11171_v9 = vpop.f32.mrb[29].mxu0  ;;  %v5216_v12 = vsel %vm206_vm0, %v12763_v1, -inf }
 0x112   :  { %v2483_v13 = vpop.f32.mrb[28].mxu1 }
 0x113   :  { %v12771_v14 = vmul.f32 0.35355338, %v2483_v13  ;;  %v5219_v17 = vsel %vm206_vm0, %v12767_v8, -inf  ;;  %v11176_v18 = vpop.f32.mrb[29].mxu1 }
 0x114   :  { %5217 = vmax.xlane.f32.xlu1 %v5216_v12  ;;  %5220 = vmax.xlane.f32.xlu0 %v5219_v17  ;;  %v2559_v20 = vpop.f32.mrb[30].mxu0 }
 0x115   :  { %v12775_v22 = vmul.f32 0.35355338, %v2559_v20  ;;  %v11181_v24 = vpop.f32.mrb[31].mxu0  ;;  %v5222_v25 = vsel %vm206_vm0, %v12771_v14, -inf }
 0x116   :  { %v2635_v28 = vpop.f32.mrb[30].mxu1 }
 0x117   :  { %v12779_v29 = vmul.f32 0.35355338, %v2635_v28  ;;  %v5225_v30 = vsel %vm206_vm0, %v12775_v22, -inf  ;;  %v11186_v33 = vpop.f32.mrb[31].mxu1 }
 0x118   :  { %5223 = vmax.xlane.f32.xlu1 %v5222_v25  ;;  %5226 = vmax.xlane.f32.xlu0 %v5225_v30  ;;  %v2711_v34 = vpop.f32.mrb[32].mxu0 }
 0x119   :  { %v12783_v36 = vmul.f32 0.35355338, %v2711_v34  ;;  %v11191_v38 = vpop.f32.mrb[33].mxu0  ;;  %v5228_v40 = vsel %vm206_vm0, %v12779_v29, -inf }
 0x11a   :  { %v2787_v41 = vpop.f32.mrb[32].mxu1 }
 0x11b   :  { %v12787_v44 = vmul.f32 0.35355338, %v2787_v41  ;;  %v5231_v45 = vsel %vm206_vm0, %v12783_v36, -inf  ;;  %v11196_v46 = vpop.f32.mrb[33].mxu1 }
 0x11c   :  { %5229 = vmax.xlane.f32.xlu1 %v5228_v40  ;;  %5232 = vmax.xlane.f32.xlu0 %v5231_v45  ;;  %v2863_v49 = vpop.f32.mrb[34].mxu0 }
 0x11d   :  { %v12791_v50 = vmul.f32 0.35355338, %v2863_v49  ;;  %v11201_v52 = vpop.f32.mrb[35].mxu0  ;;  %v5234_v54 = vsel %vm206_vm0, %v12787_v44, -inf }
 0x11e   :  { %v2939_v56 = vpop.f32.mrb[34].mxu1 }
 0x11f   :  { %v12795_v57 = vmul.f32 0.35355338, %v2939_v56  ;;  %v5237_v60 = vsel %vm206_vm0, %v12791_v50, -inf  ;;  %v11206_v61 = vpop.f32.mrb[35].mxu1 }
 0x120   :  { %5235 = vmax.xlane.f32.xlu1 %v5234_v54  ;;  %5238 = vmax.xlane.f32.xlu0 %v5237_v60  ;;  %v3015_v62 = vpop.f32.mrb[36].mxu0 }
 0x121   :  { %v12799_v2 = vmul.f32 0.35355338, %v3015_v62  ;;  %v11211_v3 = vpop.f32.mrb[37].mxu0  ;;  %v5240_v6 = vsel %vm206_vm0, %v12795_v57, -inf }
 0x122   :  { %v3091_v9 = vpop.f32.mrb[36].mxu1 }
 0x123   :  { %v12803_v12 = vmul.f32 0.35355338, %v3091_v9  ;;  %v5243_v13 = vsel %vm206_vm0, %v12799_v2, -inf  ;;  %v11216_v17 = vpop.f32.mrb[37].mxu1 }
 0x124   :  { %5241 = vmax.xlane.f32.xlu1 %v5240_v6  ;;  %5244 = vmax.xlane.f32.xlu0 %v5243_v13  ;;  %v3167_v18 = vpop.f32.mrb[38].mxu0 }
 0x125   :  { %v12807_v20 = vmul.f32 0.35355338, %v3167_v18  ;;  %v11221_v24 = vpop.f32.mrb[39].mxu0  ;;  %v5246_v25 = vsel %vm206_vm0, %v12803_v12, -inf }
 0x126   :  { %v3243_v28 = vpop.f32.mrb[38].mxu1 }
 0x127   :  { %v12811_v30 = vmul.f32 0.35355338, %v3243_v28  ;;  %v5249_v33 = vsel %vm206_vm0, %v12807_v20, -inf  ;;  %v11226_v34 = vpop.f32.mrb[39].mxu1 }
 0x128   :  { %5247 = vmax.xlane.f32.xlu1 %v5246_v25  ;;  %5250 = vmax.xlane.f32.xlu0 %v5249_v33  ;;  %v3319_v38 = vpop.f32.mrb[40].mxu0 }
 0x129   :  { %v12815_v40 = vmul.f32 0.35355338, %v3319_v38  ;;  %v11231_v41 = vpop.f32.mrb[41].mxu0  ;;  %v5252_v45 = vsel %vm206_vm0, %v12811_v30, -inf }
 0x12a   :  { %v3395_v46 = vpop.f32.mrb[40].mxu1 }
 0x12b   :  { %v12819_v49 = vmul.f32 0.35355338, %v3395_v46  ;;  %v5255_v52 = vsel %vm206_vm0, %v12815_v40, -inf  ;;  %v11236_v54 = vpop.f32.mrb[41].mxu1 }
 0x12c   :  { %5253 = vmax.xlane.f32.xlu1 %v5252_v45  ;;  %5256 = vmax.xlane.f32.xlu0 %v5255_v52  ;;  %v3471_v56 = vpop.f32.mrb[42].mxu0 }
 0x12d   :  { %v12823_v60 = vmul.f32 0.35355338, %v3471_v56  ;;  %v11241_v61 = vpop.f32.mrb[43].mxu0  ;;  %v5258_v62 = vsel %vm206_vm0, %v12819_v49, -inf }
 0x12e   :  { %v3547_v3 = vpop.f32.mrb[42].mxu1 }
 0x12f   :  { %v12827_v6 = vmul.f32 0.35355338, %v3547_v3  ;;  %v5261_v9 = vsel %vm206_vm0, %v12823_v60, -inf  ;;  %v11246_v13 = vpop.f32.mrb[43].mxu1 }
 0x130   :  { %5259 = vmax.xlane.f32.xlu1 %v5258_v62  ;;  %5262 = vmax.xlane.f32.xlu0 %v5261_v9  ;;  %v3623_v17 = vpop.f32.mrb[44].mxu0 }
 0x131   :  { %v12831_v18 = vmul.f32 0.35355338, %v3623_v17  ;;  %v11251_v24 = vpop.f32.mrb[45].mxu0  ;;  %v5264_v25 = vsel %vm206_vm0, %v12827_v6, -inf }
 0x132   :  { %v3699_v28 = vpop.f32.mrb[44].mxu1 }
 0x133   :  { %v12835_v33 = vmul.f32 0.35355338, %v3699_v28  ;;  %v5267_v34 = vsel %vm206_vm0, %v12831_v18, -inf  ;;  %v11256_v38 = vpop.f32.mrb[45].mxu1 }
 0x134   :  { %5265 = vmax.xlane.f32.xlu1 %v5264_v25  ;;  %5268 = vmax.xlane.f32.xlu0 %v5267_v34  ;;  %v3775_v41 = vpop.f32.mrb[46].mxu0 }
 0x135   :  { %v12839_v45 = vmul.f32 0.35355338, %v3775_v41  ;;  %v11261_v46 = vpop.f32.mrb[47].mxu0  ;;  %v5270_v52 = vsel %vm206_vm0, %v12835_v33, -inf }
 0x136   :  { %v3851_v54 = vpop.f32.mrb[46].mxu1 }
 0x137   :  { %v12843_v56 = vmul.f32 0.35355338, %v3851_v54  ;;  %v5273_v61 = vsel %vm206_vm0, %v12839_v45, -inf  ;;  %v11266_v62 = vpop.f32.mrb[47].mxu1 }
 0x138   :  { %5271 = vmax.xlane.f32.xlu1 %v5270_v52  ;;  %5274 = vmax.xlane.f32.xlu0 %v5273_v61  ;;  %v3927_v3 = vpop.f32.mrb[48].mxu0 }
 0x139   :  { %v12847_v9 = vmul.f32 0.35355338, %v3927_v3  ;;  %v11271_v13 = vpop.f32.mrb[49].mxu0  ;;  %v5276_v17 = vsel %vm206_vm0, %v12843_v56, -inf }
 0x13a   :  { %v4003_v24 = vpop.f32.mrb[48].mxu1 }
 0x13b   :  { %v12851_v25 = vmul.f32 0.35355338, %v4003_v24  ;;  %v5279_v28 = vsel %vm206_vm0, %v12847_v9, -inf  ;;  %v11276_v34 = vpop.f32.mrb[49].mxu1 }
 0x13c   :  { %5277 = vmax.xlane.f32.xlu1 %v5276_v17  ;;  %5280 = vmax.xlane.f32.xlu0 %v5279_v28  ;;  %v4079_v38 = vpop.f32.mrb[50].mxu0 }
 0x13d   :  { %v12855_v41 = vmul.f32 0.35355338, %v4079_v38  ;;  %v11281_v46 = vpop.f32.mrb[51].mxu0  ;;  %v5282_v52 = vsel %vm206_vm0, %v12851_v25, -inf }
 0x13e   :  { %v4155_v54 = vpop.f32.mrb[50].mxu1 }
 0x13f   :  { %14026 = vst [vmem:[#allocation2_spill] sm:$0xff] %v12855_v41  ;;  %v12859_v61 = vmul.f32 0.35355338, %v4155_v54  ;;  %v5285_v62 = vsel %vm206_vm0, %v12855_v41, -inf  ;;  %v11286_v3 = vpop.f32.mrb[51].mxu1 }
 0x140   :  { %5283 = vmax.xlane.f32.xlu1 %v5282_v52  ;;  %5286 = vmax.xlane.f32.xlu0 %v5285_v62  ;;  %v4231_v13 = vpop.f32.mrb[52].mxu0 }
 0x141   :  { %14027 = vst [vmem:[#allocation3_spill] sm:$0xff] %v12859_v61  ;;  %v12863_v24 = vmul.f32 0.35355338, %v4231_v13  ;;  %v11291_v17 = vpop.f32.mrb[53].mxu0  ;;  %v5288_v28 = vsel %vm206_vm0, %v12859_v61, -inf }
 0x142   :  { %v4307_v34 = vpop.f32.mrb[52].mxu1 }
 0x143   :  { %14028 = vst [vmem:[#allocation4_spill] sm:$0xff] %v12863_v24  ;;  %v12867_v38 = vmul.f32 0.35355338, %v4307_v34  ;;  %v5291_v46 = vsel %vm206_vm0, %v12863_v24, -inf  ;;  %v11296_v54 = vpop.f32.mrb[53].mxu1 }
 0x144   :  { %5289 = vmax.xlane.f32.xlu1 %v5288_v28  ;;  %5292 = vmax.xlane.f32.xlu0 %v5291_v46  ;;  %v4383_v0 = vpop.f32.mrb[54].mxu0 }
 0x145   :  { %14029 = vst [vmem:[#allocation5_spill] sm:$0xff] %v12867_v38  ;;  %v12871_v3 = vmul.f32 0.35355338, %v4383_v0  ;;  %v11301_v52 = vpop.f32.mrb[55].mxu0  ;;  %v5294_v62 = vsel %vm206_vm0, %v12867_v38, -inf }
 0x146   :  { %v4459_v13 = vpop.f32.mrb[54].mxu1 }
 0x147   :  { %14030 = vst [vmem:[#allocation6_spill] sm:$0xff] %v12871_v3  ;;  %v12875_v17 = vmul.f32 0.35355338, %v4459_v13  ;;  %v5297_v34 = vsel %vm206_vm0, %v12871_v3, -inf  ;;  %v11306_v61 = vpop.f32.mrb[55].mxu1 }
 0x148   :  { %5295 = vmax.xlane.f32.xlu1 %v5294_v62  ;;  %5298 = vmax.xlane.f32.xlu0 %v5297_v34  ;;  %v4535_v24 = vpop.f32.mrb[56].mxu0 }
 0x149   :  { %14031 = vst [vmem:[#allocation7_spill] sm:$0xff] %v12875_v17  ;;  %v12879_v54 = vmul.f32 0.35355338, %v4535_v24  ;;  %v11311_v28 = vpop.f32.mrb[57].mxu0  ;;  %v5300_v0 = vsel %vm206_vm0, %v12875_v17, -inf }
 0x14a   :  { %v4611_v46 = vpop.f32.mrb[56].mxu1 }
 0x14b   :  { %14032 = vst [vmem:[#allocation8_spill] sm:$0xff] %v12879_v54  ;;  %v12883_v52 = vmul.f32 0.35355338, %v4611_v46  ;;  %v5303_v13 = vsel %vm206_vm0, %v12879_v54, -inf  ;;  %v11316_v38 = vpop.f32.mrb[57].mxu1 }
 0x14c   :  { %5301 = vmax.xlane.f32.xlu1 %v5300_v0  ;;  %5304 = vmax.xlane.f32.xlu0 %v5303_v13  ;;  %v4687_v3 = vpop.f32.mrb[58].mxu0 }
 0x14d   :  { %14033 = vst [vmem:[#allocation9_spill] sm:$0xff] %v12883_v52  ;;  %v12887_v61 = vmul.f32 0.35355338, %v4687_v3  ;;  %v11321_v62 = vpop.f32.mrb[59].mxu0  ;;  %v5306_v24 = vsel %vm206_vm0, %v12883_v52, -inf }
 0x14e   :  { %v4763_v34 = vpop.f32.mrb[58].mxu1 }
 0x14f   :  { %14034 = vst [vmem:[#allocation10_spill] sm:$0xff] %v12887_v61  ;;  %v12891_v28 = vmul.f32 0.35355338, %v4763_v34  ;;  %v5309_v46 = vsel %vm206_vm0, %v12887_v61, -inf  ;;  %v11326_v17 = vpop.f32.mrb[59].mxu1 }
 0x150   :  { %5307 = vmax.xlane.f32.xlu1 %v5306_v24  ;;  %5310 = vmax.xlane.f32.xlu0 %v5309_v46  ;;  %v4839_v54 = vpop.f32.mrb[60].mxu0 }
 0x151   :  { %14035 = vst [vmem:[#allocation11_spill] sm:$0xff] %v12891_v28  ;;  %v12895_v38 = vmul.f32 0.35355338, %v4839_v54  ;;  %v11331_v0 = vpop.f32.mrb[61].mxu0  ;;  %v5312_v3 = vsel %vm206_vm0, %v12891_v28, -inf }
 0x152   :  { %v4915_v13 = vpop.f32.mrb[60].mxu1 }
 0x153   :  { %14036 = vst [vmem:[#allocation12_spill] sm:$0xff] %v12895_v38  ;;  %v12899_v62 = vmul.f32 0.35355338, %v4915_v13  ;;  %v5315_v34 = vsel %vm206_vm0, %v12895_v38, -inf  ;;  %v11336_v52 = vpop.f32.mrb[61].mxu1 }
 0x154   :  { %5313 = vmax.xlane.f32.xlu1 %v5312_v3  ;;  %5316 = vmax.xlane.f32.xlu0 %v5315_v34  ;;  %v4991_v61 = vpop.f32.mrb[62].mxu0 }
 0x155   :  { %14037 = vst [vmem:[#allocation13_spill] sm:$0xff] %v12899_v62  ;;  %v12903_v17 = vmul.f32 0.35355338, %v4991_v61  ;;  %v5318_v54 = vsel %vm206_vm0, %v12899_v62, -inf  ;;  %v11341_v24 = vpop.f32.mrb[63].mxu0 }
 0x156   :  { %v5067_v46 = vpop.f32.mrb[62].mxu1 }
 0x157   :  { %14038 = vst [vmem:[#allocation14_spill] sm:$0xff] %v12903_v17  ;;  %v12907_v0 = vmul.f32 0.35355338, %v5067_v46  ;;  %v5321_v13 = vsel %vm206_vm0, %v12903_v17, -inf  ;;  %v11346_v28 = vpop.f32.mrb[63].mxu1 }
 0x158   :  { %5319 = vmax.xlane.f32.xlu1 %v5318_v54  ;;  %5322 = vmax.xlane.f32.xlu0 %v5321_v13 }
 0x159   :  { %14039 = vst [vmem:[#allocation15_spill] sm:$0xff] %v12907_v0  ;;  %v5324_v52 = vsel %vm206_vm0, %v12907_v0, -inf }
 0x15c   :  { %5325 = vmax.xlane.f32.xlu1 %v5324_v52 }
 0x169   :  { %v5137_v3 = vpop.xlane.xlu0 %5136 }
 0x16a   :  { %v5327_v61 = vsub.f32 %v12657_v4, %v5137_v3 }
 0x16c   :  { %v5391_v34 = vmul.f32 1.442695, %v5327_v61 }
 0x16d   :  { %v5140_v38 = vpop.xlane.xlu0 %5139  ;;  %v5143_v62 = vpop.xlane.xlu1 %5142 }
 0x16e   :  { %11669 = vpow2.f32 %v5391_v34  ;;  %v5328_v24 = vsub.f32 %v12659_v7, %v5140_v38  ;;  %v5329_v46 = vsub.f32 %v12663_v11, %v5143_v62 }
 0x170   :  { %v5393_v41 = vmul.f32 1.442695, %v5328_v24  ;;  %v5395_v17 = vmul.f32 1.442695, %v5329_v46 }
 0x171   :  { %v5146_v28 = vpop.xlane.xlu1 %5145  ;;  %v5149_v54 = vpop.xlane.xlu0 %5148 }
 0x172   :  { %11671 = vpow2.f32 %v5393_v41  ;;  %v5330_v13 = vsub.f32 %v12667_v15, %v5146_v28  ;;  %v5331_v52 = vsub.f32 %v12671_v19, %v5149_v54 }
 0x173   :  { %11673 = vpow2.f32 %v5395_v17 }
 0x174   :  { %v5397_v0 = vmul.f32 1.442695, %v5330_v13  ;;  %v5399_v4 = vmul.f32 1.442695, %v5331_v52 }
 0x175   :  { %v5152_v3 = vpop.xlane.xlu1 %5151  ;;  %v5155_v61 = vpop.xlane.xlu0 %5154 }
 0x176   :  { %11675 = vpow2.f32 %v5397_v0  ;;  %v5332_v34 = vsub.f32 %v12675_v23, %v5152_v3  ;;  %v5333_v7 = vsub.f32 %v12679_v27, %v5155_v61 }
 0x177   :  { %11677 = vpow2.f32 %v5399_v4 }
 0x178   :  { %v12920_v11 = vpop.eup %11669  ;;  %v5401_v38 = vmul.f32 1.442695, %v5332_v34  ;;  %v5403_v62 = vmul.f32 1.442695, %v5333_v7 }
 0x179   :  { %v5158_v41 = vpop.xlane.xlu1 %5157  ;;  %v5161_v24 = vpop.xlane.xlu0 %5160  ;;  %v5519_v15 = vsel %vm206_vm0, %v12920_v11, 0.0 }
 0x17a   :  { %11679 = vpow2.f32 %v5401_v38  ;;  %v5334_v19 = vsub.f32 %v12683_v31, %v5158_v41  ;;  %v5335_v17 = vsub.f32 %v12687_v35, %v5161_v24  ;;  %5520 = vadd.xlane.f32.xlu0 %v5519_v15 }
 0x17b   :  { %11681 = vpow2.f32 %v5403_v62 }
 0x17c   :  { %v12926_v23 = vpop.eup %11671  ;;  %v5405_v27 = vmul.f32 1.442695, %v5334_v19  ;;  %v5407_v0 = vmul.f32 1.442695, %v5335_v17 }
 0x17d   :  { %v12928_v46 = vpop.eup %11673  ;;  %v5164_v28 = vpop.xlane.xlu1 %5163  ;;  %v5522_v13 = vsel %vm206_vm0, %v12926_v23, 0.0 }
 0x17e   :  { %v5167_v54 = vpop.xlane.xlu0 %5166  ;;  %11683 = vpow2.f32 %v5405_v27  ;;  %v5336_v52 = vsub.f32 %v12691_v39, %v5164_v28  ;;  %5523 = vadd.xlane.f32.xlu1 %v5522_v13  ;;  %v5525_v35 = vsel %vm206_vm0, %v12928_v46, 0.0 }
 0x17f   :  { %v5337_v31 = vsub.f32 %v12695_v43, %v5167_v54  ;;  %11685 = vpow2.f32 %v5407_v0  ;;  %5526 = vadd.xlane.f32.xlu0 %v5525_v35 }
 0x180   :  { %v12936_v4 = vpop.eup %11675  ;;  %v5409_v3 = vmul.f32 1.442695, %v5336_v52 }
 0x181   :  { %v5411_v61 = vmul.f32 1.442695, %v5337_v31  ;;  %v12938_v34 = vpop.eup %11677  ;;  %v5170_v7 = vpop.xlane.xlu1 %5169  ;;  %v5528_v62 = vsel %vm206_vm0, %v12936_v4, 0.0 }
 0x182   :  { %v5173_v38 = vpop.xlane.xlu0 %5172  ;;  %11687 = vpow2.f32 %v5409_v3  ;;  %v5338_v39 = vsub.f32 %v12699_v47, %v5170_v7  ;;  %5529 = vadd.xlane.f32.xlu1 %v5528_v62  ;;  %v5531_v41 = vsel %vm206_vm0, %v12938_v34, 0.0 }
 0x183   :  { %v5339_v43 = vsub.f32 %v12703_v51, %v5173_v38  ;;  %11689 = vpow2.f32 %v5411_v61  ;;  %5532 = vadd.xlane.f32.xlu0 %v5531_v41 }
 0x184   :  { %v12946_v24 = vpop.eup %11679  ;;  %v5413_v15 = vmul.f32 1.442695, %v5338_v39 }
 0x185   :  { %v5415_v19 = vmul.f32 1.442695, %v5339_v43  ;;  %v12948_v17 = vpop.eup %11681  ;;  %v5176_v27 = vpop.xlane.xlu1 %5175  ;;  %v5534_v28 = vsel %vm206_vm0, %v12946_v24, 0.0 }
 0x186   :  { %v5179_v0 = vpop.xlane.xlu0 %5178  ;;  %11691 = vpow2.f32 %v5413_v15  ;;  %v5340_v47 = vsub.f32 %v12707_v55, %v5176_v27  ;;  %5535 = vadd.xlane.f32.xlu1 %v5534_v28  ;;  %v5537_v54 = vsel %vm206_vm0, %v12948_v17, 0.0 }
 0x187   :  { %v5341_v51 = vsub.f32 %v12711_v59, %v5179_v0  ;;  %11693 = vpow2.f32 %v5415_v19  ;;  %5538 = vadd.xlane.f32.xlu0 %v5537_v54 }
 0x188   :  { %v12956_v13 = vpop.eup %11683  ;;  %v5417_v52 = vmul.f32 1.442695, %v5340_v47 }
 0x189   :  { %v5419_v31 = vmul.f32 1.442695, %v5341_v51  ;;  %v12958_v35 = vpop.eup %11685  ;;  %v5182_v3 = vpop.xlane.xlu1 %5181  ;;  %v5540_v7 = vsel %vm206_vm0, %v12956_v13, 0.0 }
 0x18a   :  { %v5185_v61 = vpop.xlane.xlu0 %5184  ;;  %11695 = vpow2.f32 %v5417_v52  ;;  %v5342_v55 = vsub.f32 %v12715_v63, %v5182_v3  ;;  %5541 = vadd.xlane.f32.xlu1 %v5540_v7  ;;  %v5543_v38 = vsel %vm206_vm0, %v12958_v35, 0.0 }
 0x18b   :  { %v5343_v59 = vsub.f32 %v12719_v5, %v5185_v61  ;;  %11697 = vpow2.f32 %v5419_v31  ;;  %5544 = vadd.xlane.f32.xlu0 %v5543_v38  ;;  %v142_v38 = vld [vmem:[%s13997_s2] sm:$0xff] }
 0x18c   :  { %v12966_v62 = vpop.eup %11687  ;;  %v5421_v39 = vmul.f32 1.442695, %v5342_v55  ;;  %11348 = vmatpush3.msra.mxu0 %v142_v38 }
 0x18d   :  { %v5423_v43 = vmul.f32 1.442695, %v5343_v59  ;;  %v12968_v41 = vpop.eup %11689  ;;  %v5188_v15 = vpop.xlane.xlu1 %5187  ;;  %v5546_v27 = vsel %vm206_vm0, %v12966_v62, 0.0 }
 0x18e   :  { %v5191_v19 = vpop.xlane.xlu0 %5190  ;;  %11699 = vpow2.f32 %v5421_v39  ;;  %v5344_v63 = vsub.f32 %v12723_v10, %v5188_v15  ;;  %5547 = vadd.xlane.f32.xlu1 %v5546_v27  ;;  %v5549_v0 = vsel %vm206_vm0, %v12968_v41, 0.0 }
 0x18f   :  { %v5345_v5 = vsub.f32 %v12727_v16, %v5191_v19  ;;  %11701 = vpow2.f32 %v5423_v43  ;;  %5550 = vadd.xlane.f32.xlu0 %v5549_v0 }
 0x190   :  { %v12976_v28 = vpop.eup %11691  ;;  %v5425_v47 = vmul.f32 1.442695, %v5344_v63  ;;  %v14040_v63 = vmov 0.0  }
 0x191   :  { %v5427_v51 = vmul.f32 1.442695, %v5345_v5  ;;  %v12978_v54 = vpop.eup %11693  ;;  %v5194_v52 = vpop.xlane.xlu1 %5193  ;;  %v5552_v3 = vsel %vm206_vm0, %v12976_v28, 0.0  ;;  %11357 = vmatprep.subr.mxu0 %v14040_v63 }
 0x192   :  { %v5197_v31 = vpop.xlane.xlu0 %5196  ;;  %11703 = vpow2.f32 %v5425_v47  ;;  %v5346_v10 = vsub.f32 %v12731_v21, %v5194_v52  ;;  %5553 = vadd.xlane.f32.xlu1 %v5552_v3  ;;  %v5555_v61 = vsel %vm206_vm0, %v12978_v54, 0.0 }
 0x193   :  { %v5347_v16 = vsub.f32 %v12735_v26, %v5197_v31  ;;  %11705 = vpow2.f32 %v5427_v51  ;;  %5556 = vadd.xlane.f32.xlu0 %v5555_v61  ;;  %v143_v51 = vld [vmem:[%s13997_s2 + $0x8] sm:$0xff] }
 0x194   :  { %v12986_v7 = vpop.eup %11695  ;;  %v5429_v55 = vmul.f32 1.442695, %v5346_v10  ;;  %11353 = vmatpush3.msra.mxu1 %v143_v51 }
 0x195   :  { %v5431_v59 = vmul.f32 1.442695, %v5347_v16  ;;  %v12991_v39 = vpop.eup %11697  ;;  %v5200_v43 = vpop.xlane.xlu1 %5199  ;;  %v5558_v26 = vsel %vm206_vm0, %v12986_v7, 0.0  ;;  %11362 = vmatprep.subr.mxu1 %v14040_v63 }
 0x196   :  { %v5203_v21 = vpop.xlane.xlu0 %5202  ;;  %11707 = vpow2.f32 %v5429_v55  ;;  %v5348_v15 = vsub.f32 %v12739_v32, %v5200_v43  ;;  %5559 = vadd.xlane.f32.xlu1 %v5558_v26  ;;  %v5561_v27 = vsel %vm206_vm0, %v12991_v39, 0.0 }
 0x197   :  { %v5349_v19 = vsub.f32 %v12743_v37, %v5203_v21  ;;  %11709 = vpow2.f32 %v5431_v59  ;;  %5562 = vadd.xlane.f32.xlu0 %v5561_v27 }
 0x198   :  { %v13000_v5 = vpop.eup %11699  ;;  %v5433_v0 = vmul.f32 1.442695, %v5348_v15 }
 0x199   :  { %v5435_v47 = vmul.f32 1.442695, %v5349_v19  ;;  %v13005_v52 = vpop.eup %11701  ;;  %v5206_v32 = vpop.xlane.xlu1 %5205  ;;  %v5564_v31 = vsel %vm206_vm0, %v13000_v5, 0.0 }
 0x19a   :  { %v5209_v37 = vpop.xlane.xlu0 %5208  ;;  %11711 = vpow2.f32 %v5433_v0  ;;  %v5350_v3 = vsub.f32 %v12747_v42, %v5206_v32  ;;  %5565 = vadd.xlane.f32.xlu1 %v5564_v31  ;;  %v5567_v16 = vsel %vm206_vm0, %v13005_v52, 0.0 }
 0x19b   :  { %v5351_v10 = vsub.f32 %v12751_v48, %v5209_v37  ;;  %11713 = vpow2.f32 %v5435_v47  ;;  %5568 = vadd.xlane.f32.xlu0 %v5567_v16 }
 0x19c   :  { %v13014_v61 = vpop.eup %11703  ;;  %v5437_v55 = vmul.f32 1.442695, %v5350_v3 }
 0x19d   :  { %v5439_v59 = vmul.f32 1.442695, %v5351_v10  ;;  %v13016_v38 = vpop.eup %11705  ;;  %v5212_v43 = vpop.xlane.xlu1 %5211  ;;  %v5570_v42 = vsel %vm206_vm0, %v13014_v61, 0.0 }
 0x19e   :  { %v5215_v21 = vpop.xlane.xlu0 %5214  ;;  %11715 = vpow2.f32 %v5437_v55  ;;  %v5352_v48 = vsub.f32 %v12755_v53, %v5212_v43  ;;  %5571 = vadd.xlane.f32.xlu1 %v5570_v42  ;;  %v5573_v15 = vsel %vm206_vm0, %v13016_v38, 0.0 }
 0x19f   :  { %v5353_v26 = vsub.f32 %v12759_v58, %v5215_v21  ;;  %11717 = vpow2.f32 %v5439_v59  ;;  %5574 = vadd.xlane.f32.xlu0 %v5573_v15 }
 0x1a0   :  { %v13024_v19 = vpop.eup %11707  ;;  %v5441_v27 = vmul.f32 1.442695, %v5352_v48 }
 0x1a1   :  { %v5443_v0 = vmul.f32 1.442695, %v5353_v26  ;;  %v13026_v47 = vpop.eup %11709  ;;  %v5218_v51 = vpop.xlane.xlu1 %5217  ;;  %v5576_v37 = vsel %vm206_vm0, %v13024_v19, 0.0 }
 0x1a2   :  { %v5221_v32 = vpop.xlane.xlu0 %5220  ;;  %11719 = vpow2.f32 %v5441_v27  ;;  %v5354_v53 = vsub.f32 %v12763_v1, %v5218_v51  ;;  %5577 = vadd.xlane.f32.xlu1 %v5576_v37  ;;  %v5579_v31 = vsel %vm206_vm0, %v13026_v47, 0.0 }
 0x1a3   :  { %v5355_v58 = vsub.f32 %v12767_v8, %v5221_v32  ;;  %11721 = vpow2.f32 %v5443_v0  ;;  %5580 = vadd.xlane.f32.xlu0 %v5579_v31 }
 0x1a4   :  { %v13034_v3 = vpop.eup %11711  ;;  %v5445_v10 = vmul.f32 1.442695, %v5354_v53 }
 0x1a5   :  { %v5447_v16 = vmul.f32 1.442695, %v5355_v58  ;;  %v13036_v55 = vpop.eup %11713  ;;  %v5224_v59 = vpop.xlane.xlu1 %5223  ;;  %v5582_v21 = vsel %vm206_vm0, %v13034_v3, 0.0 }
 0x1a6   :  { %v5227_v43 = vpop.xlane.xlu0 %5226  ;;  %11723 = vpow2.f32 %v5445_v10  ;;  %v5356_v1 = vsub.f32 %v12771_v14, %v5224_v59  ;;  %5583 = vadd.xlane.f32.xlu1 %v5582_v21  ;;  %v5585_v42 = vsel %vm206_vm0, %v13036_v55, 0.0 }
 0x1a7   :  { %v5357_v8 = vsub.f32 %v12775_v22, %v5227_v43  ;;  %11725 = vpow2.f32 %v5447_v16  ;;  %5586 = vadd.xlane.f32.xlu0 %v5585_v42 }
 0x1a8   :  { %v13044_v48 = vpop.eup %11715  ;;  %v5449_v26 = vmul.f32 1.442695, %v5356_v1 }
 0x1a9   :  { %v5451_v15 = vmul.f32 1.442695, %v5357_v8  ;;  %v13046_v27 = vpop.eup %11717  ;;  %v5230_v0 = vpop.xlane.xlu1 %5229  ;;  %v5588_v32 = vsel %vm206_vm0, %v13044_v48, 0.0 }
 0x1aa   :  { %v5233_v51 = vpop.xlane.xlu0 %5232  ;;  %11727 = vpow2.f32 %v5449_v26  ;;  %v5358_v14 = vsub.f32 %v12779_v29, %v5230_v0  ;;  %5589 = vadd.xlane.f32.xlu1 %v5588_v32  ;;  %v5591_v37 = vsel %vm206_vm0, %v13046_v27, 0.0 }
 0x1ab   :  { %v5359_v22 = vsub.f32 %v12783_v36, %v5233_v51  ;;  %11729 = vpow2.f32 %v5451_v15  ;;  %5592 = vadd.xlane.f32.xlu0 %v5591_v37 }
 0x1ac   :  { %v13054_v53 = vpop.eup %11719  ;;  %v5453_v58 = vmul.f32 1.442695, %v5358_v14 }
 0x1ad   :  { %v5455_v31 = vmul.f32 1.442695, %v5359_v22  ;;  %v13056_v10 = vpop.eup %11721  ;;  %v5236_v16 = vpop.xlane.xlu1 %5235  ;;  %v5594_v43 = vsel %vm206_vm0, %v13054_v53, 0.0 }
 0x1ae   :  { %v5239_v59 = vpop.xlane.xlu0 %5238  ;;  %11731 = vpow2.f32 %v5453_v58  ;;  %v5360_v29 = vsub.f32 %v12787_v44, %v5236_v16  ;;  %5595 = vadd.xlane.f32.xlu1 %v5594_v43  ;;  %v5597_v21 = vsel %vm206_vm0, %v13056_v10, 0.0 }
 0x1af   :  { %v5361_v36 = vsub.f32 %v12791_v50, %v5239_v59  ;;  %11733 = vpow2.f32 %v5455_v31  ;;  %5598 = vadd.xlane.f32.xlu0 %v5597_v21 }
 0x1b0   :  { %v13064_v1 = vpop.eup %11723  ;;  %v5457_v8 = vmul.f32 1.442695, %v5360_v29 }
 0x1b1   :  { %v5459_v42 = vmul.f32 1.442695, %v5361_v36  ;;  %v13066_v26 = vpop.eup %11725  ;;  %v5242_v15 = vpop.xlane.xlu1 %5241  ;;  %v5600_v51 = vsel %vm206_vm0, %v13064_v1, 0.0 }
 0x1b2   :  { %v5245_v0 = vpop.xlane.xlu0 %5244  ;;  %11735 = vpow2.f32 %v5457_v8  ;;  %v5362_v44 = vsub.f32 %v12795_v57, %v5242_v15  ;;  %5601 = vadd.xlane.f32.xlu1 %v5600_v51  ;;  %v5603_v32 = vsel %vm206_vm0, %v13066_v26, 0.0 }
 0x1b3   :  { %v5363_v50 = vsub.f32 %v12799_v2, %v5245_v0  ;;  %11737 = vpow2.f32 %v5459_v42  ;;  %5604 = vadd.xlane.f32.xlu0 %v5603_v32 }
 0x1b4   :  { %v13074_v14 = vpop.eup %11727  ;;  %v5461_v22 = vmul.f32 1.442695, %v5362_v44 }
 0x1b5   :  { %v5463_v37 = vmul.f32 1.442695, %v5363_v50  ;;  %v13076_v58 = vpop.eup %11729  ;;  %v5248_v31 = vpop.xlane.xlu1 %5247  ;;  %v5606_v59 = vsel %vm206_vm0, %v13074_v14, 0.0 }
 0x1b6   :  { %v5251_v16 = vpop.xlane.xlu0 %5250  ;;  %11739 = vpow2.f32 %v5461_v22  ;;  %v5364_v57 = vsub.f32 %v12803_v12, %v5248_v31  ;;  %5607 = vadd.xlane.f32.xlu1 %v5606_v59  ;;  %v5609_v43 = vsel %vm206_vm0, %v13076_v58, 0.0 }
 0x1b7   :  { %v5365_v2 = vsub.f32 %v12807_v20, %v5251_v16  ;;  %11741 = vpow2.f32 %v5463_v37  ;;  %5610 = vadd.xlane.f32.xlu0 %v5609_v43 }
 0x1b8   :  { %v13084_v29 = vpop.eup %11731  ;;  %v5465_v36 = vmul.f32 1.442695, %v5364_v57 }
 0x1b9   :  { %v5467_v21 = vmul.f32 1.442695, %v5365_v2  ;;  %v13086_v8 = vpop.eup %11733  ;;  %v5254_v42 = vpop.xlane.xlu1 %5253  ;;  %v5612_v0 = vsel %vm206_vm0, %v13084_v29, 0.0 }
 0x1ba   :  { %v5257_v15 = vpop.xlane.xlu0 %5256  ;;  %11743 = vpow2.f32 %v5465_v36  ;;  %v5366_v12 = vsub.f32 %v12811_v30, %v5254_v42  ;;  %5613 = vadd.xlane.f32.xlu1 %v5612_v0  ;;  %v5615_v51 = vsel %vm206_vm0, %v13086_v8, 0.0 }
 0x1bb   :  { %v5367_v20 = vsub.f32 %v12815_v40, %v5257_v15  ;;  %11745 = vpow2.f32 %v5467_v21  ;;  %5616 = vadd.xlane.f32.xlu0 %v5615_v51 }
 0x1bc   :  { %v13094_v44 = vpop.eup %11735  ;;  %v5469_v50 = vmul.f32 1.442695, %v5366_v12 }
 0x1bd   :  { %v5471_v32 = vmul.f32 1.442695, %v5367_v20  ;;  %v13096_v22 = vpop.eup %11737  ;;  %v5260_v37 = vpop.xlane.xlu1 %5259  ;;  %v5618_v16 = vsel %vm206_vm0, %v13094_v44, 0.0 }
 0x1be   :  { %v5263_v31 = vpop.xlane.xlu0 %5262  ;;  %11747 = vpow2.f32 %v5469_v50  ;;  %v5368_v30 = vsub.f32 %v12819_v49, %v5260_v37  ;;  %5619 = vadd.xlane.f32.xlu1 %v5618_v16  ;;  %v5621_v59 = vsel %vm206_vm0, %v13096_v22, 0.0 }
 0x1bf   :  { %v5369_v40 = vsub.f32 %v12823_v60, %v5263_v31  ;;  %11749 = vpow2.f32 %v5471_v32  ;;  %5622 = vadd.xlane.f32.xlu0 %v5621_v59 }
 0x1c0   :  { %v13104_v57 = vpop.eup %11739  ;;  %v5473_v2 = vmul.f32 1.442695, %v5368_v30 }
 0x1c1   :  { %v5475_v43 = vmul.f32 1.442695, %v5369_v40  ;;  %v13106_v36 = vpop.eup %11741  ;;  %v5266_v21 = vpop.xlane.xlu1 %5265  ;;  %v5624_v15 = vsel %vm206_vm0, %v13104_v57, 0.0 }
 0x1c2   :  { %v5269_v42 = vpop.xlane.xlu0 %5268  ;;  %11751 = vpow2.f32 %v5473_v2  ;;  %v5370_v49 = vsub.f32 %v12827_v6, %v5266_v21  ;;  %5625 = vadd.xlane.f32.xlu1 %v5624_v15  ;;  %v5627_v0 = vsel %vm206_vm0, %v13106_v36, 0.0 }
 0x1c3   :  { %v5371_v60 = vsub.f32 %v12831_v18, %v5269_v42  ;;  %11753 = vpow2.f32 %v5475_v43  ;;  %5628 = vadd.xlane.f32.xlu0 %v5627_v0 }
 0x1c4   :  { %v13114_v12 = vpop.eup %11743  ;;  %v5477_v20 = vmul.f32 1.442695, %v5370_v49 }
 0x1c5   :  { %v5479_v51 = vmul.f32 1.442695, %v5371_v60  ;;  %v13116_v50 = vpop.eup %11745  ;;  %v5272_v32 = vpop.xlane.xlu1 %5271  ;;  %v5630_v31 = vsel %vm206_vm0, %v13114_v12, 0.0 }
 0x1c6   :  { %v5275_v37 = vpop.xlane.xlu0 %5274  ;;  %11755 = vpow2.f32 %v5477_v20  ;;  %v5372_v6 = vsub.f32 %v12835_v33, %v5272_v32  ;;  %5631 = vadd.xlane.f32.xlu1 %v5630_v31  ;;  %v5633_v16 = vsel %vm206_vm0, %v13116_v50, 0.0 }
 0x1c7   :  { %v5373_v18 = vsub.f32 %v12839_v45, %v5275_v37  ;;  %11757 = vpow2.f32 %v5479_v51  ;;  %5634 = vadd.xlane.f32.xlu0 %v5633_v16 }
 0x1c8   :  { %v13124_v30 = vpop.eup %11747  ;;  %v5481_v40 = vmul.f32 1.442695, %v5372_v6 }
 0x1c9   :  { %v5483_v59 = vmul.f32 1.442695, %v5373_v18  ;;  %v13126_v2 = vpop.eup %11749  ;;  %v5278_v43 = vpop.xlane.xlu1 %5277  ;;  %v5636_v42 = vsel %vm206_vm0, %v13124_v30, 0.0 }
 0x1ca   :  { %v5281_v21 = vpop.xlane.xlu0 %5280  ;;  %11759 = vpow2.f32 %v5481_v40  ;;  %v5374_v33 = vsub.f32 %v12843_v56, %v5278_v43  ;;  %5637 = vadd.xlane.f32.xlu1 %v5636_v42  ;;  %v5639_v15 = vsel %vm206_vm0, %v13126_v2, 0.0 }
 0x1cb   :  { %v5375_v45 = vsub.f32 %v12847_v9, %v5281_v21  ;;  %11761 = vpow2.f32 %v5483_v59  ;;  %5640 = vadd.xlane.f32.xlu0 %v5639_v15  ;;  %v14041_v9 = vld [vmem:[#allocation2_spill] sm:$0xff] }
 0x1cc   :  { %v13134_v49 = vpop.eup %11751  ;;  %v5485_v60 = vmul.f32 1.442695, %v5374_v33 }
 0x1cd   :  { %v5487_v0 = vmul.f32 1.442695, %v5375_v45  ;;  %v13136_v20 = vpop.eup %11753  ;;  %v5284_v51 = vpop.xlane.xlu1 %5283  ;;  %v5642_v37 = vsel %vm206_vm0, %v13134_v49, 0.0  ;;  %v14043_v45 = vld [vmem:[#allocation4_spill] sm:$0xff] }
 0x1ce   :  { %v5287_v32 = vpop.xlane.xlu0 %5286  ;;  %11763 = vpow2.f32 %v5485_v60  ;;  %v5376_v56 = vsub.f32 %v12851_v25, %v5284_v51  ;;  %5643 = vadd.xlane.f32.xlu1 %v5642_v37  ;;  %v5645_v6 = vsel %vm206_vm0, %v13136_v20, 0.0  ;;  %v14042_v25 = vld [vmem:[#allocation3_spill] sm:$0xff] }
 0x1cf   :  { %v5377_v31 = vsub.f32 %v14041_v9, %v5287_v32  ;;  %11765 = vpow2.f32 %v5487_v0  ;;  %5646 = vadd.xlane.f32.xlu0 %v5645_v6  ;;  %v14046_v6 = vld [vmem:[#allocation5_spill] sm:$0xff] }
 0x1d0   :  { %v13144_v18 = vpop.eup %11755  ;;  %v5489_v16 = vmul.f32 1.442695, %v5376_v56 }
 0x1d1   :  { %v5491_v40 = vmul.f32 1.442695, %v5377_v31  ;;  %v13146_v59 = vpop.eup %11757  ;;  %v5290_v43 = vpop.xlane.xlu1 %5289  ;;  %v5648_v42 = vsel %vm206_vm0, %v13144_v18, 0.0 }
 0x1d2   :  { %v5293_v21 = vpop.xlane.xlu0 %5292  ;;  %11767 = vpow2.f32 %v5489_v16  ;;  %v5378_v33 = vsub.f32 %v14042_v25, %v5290_v43  ;;  %5649 = vadd.xlane.f32.xlu1 %v5648_v42  ;;  %v5651_v60 = vsel %vm206_vm0, %v13146_v59, 0.0  ;;  %v14047_v43 = vld [vmem:[#allocation6_spill] sm:$0xff] }
 0x1d3   :  { %v5379_v15 = vsub.f32 %v14043_v45, %v5293_v21  ;;  %11769 = vpow2.f32 %v5491_v40  ;;  %5652 = vadd.xlane.f32.xlu0 %v5651_v60 }
 0x1d4   :  { %v13154_v0 = vpop.eup %11759  ;;  %v5493_v51 = vmul.f32 1.442695, %v5378_v33 }
 0x1d5   :  { %14044 = vst [vmem:[#allocation2_spill] sm:$0xff] %v13154_v0  ;;  %v5495_v32 = vmul.f32 1.442695, %v5379_v15  ;;  %v13156_v37 = vpop.eup %11761  ;;  %v5296_v56 = vpop.xlane.xlu1 %5295  ;;  %v5654_v31 = vsel %vm206_vm0, %v13154_v0, 0.0 }
 0x1d6   :  { %14045 = vst [vmem:[#allocation3_spill] sm:$0xff] %v13156_v37  ;;  %v5299_v9 = vpop.xlane.xlu0 %5298  ;;  %11771 = vpow2.f32 %v5493_v51  ;;  %v5380_v16 = vsub.f32 %v14046_v6, %v5296_v56  ;;  %5655 = vadd.xlane.f32.xlu1 %v5654_v31  ;;  %v5657_v40 = vsel %vm206_vm0, %v13156_v37, 0.0  ;;  %v14050_v56 = vld [vmem:[#allocation7_spill] sm:$0xff]  ;;  %v14051_v31 = vld [vmem:[#allocation8_spill] sm:$0xff] }
 0x1d7   :  { %v5381_v21 = vsub.f32 %v14047_v43, %v5299_v9  ;;  %11773 = vpow2.f32 %v5495_v32  ;;  %5658 = vadd.xlane.f32.xlu0 %v5657_v40 }
 0x1d8   :  { %v13164_v42 = vpop.eup %11763  ;;  %v5497_v25 = vmul.f32 1.442695, %v5380_v16 }
 0x1d9   :  { %14048 = vst [vmem:[#allocation4_spill] sm:$0xff] %v13164_v42  ;;  %v5499_v33 = vmul.f32 1.442695, %v5381_v21  ;;  %v13166_v45 = vpop.eup %11765  ;;  %v5302_v15 = vpop.xlane.xlu1 %5301  ;;  %v5660_v51 = vsel %vm206_vm0, %v13164_v42, 0.0 }
 0x1da   :  { %14049 = vst [vmem:[#allocation5_spill] sm:$0xff] %v13166_v45  ;;  %v5305_v60 = vpop.xlane.xlu0 %5304  ;;  %11775 = vpow2.f32 %v5497_v25  ;;  %v5382_v9 = vsub.f32 %v14050_v56, %v5302_v15  ;;  %5661 = vadd.xlane.f32.xlu1 %v5660_v51  ;;  %v5663_v32 = vsel %vm206_vm0, %v13166_v45, 0.0  ;;  %v14054_v15 = vld [vmem:[#allocation9_spill] sm:$0xff]  ;;  %v14055_v51 = vld [vmem:[#allocation10_spill] sm:$0xff] }
 0x1db   :  { %v5383_v6 = vsub.f32 %v14051_v31, %v5305_v60  ;;  %11777 = vpow2.f32 %v5499_v33  ;;  %5664 = vadd.xlane.f32.xlu0 %v5663_v32 }
 0x1dc   :  { %v13174_v16 = vpop.eup %11767  ;;  %v5501_v43 = vmul.f32 1.442695, %v5382_v9 }
 0x1dd   :  { %14052 = vst [vmem:[#allocation6_spill] sm:$0xff] %v13174_v16  ;;  %v5503_v21 = vmul.f32 1.442695, %v5383_v6  ;;  %v13176_v40 = vpop.eup %11769  ;;  %v5308_v37 = vpop.xlane.xlu1 %5307  ;;  %v5666_v25 = vsel %vm206_vm0, %v13174_v16, 0.0 }
 0x1de   :  { %14053 = vst [vmem:[#allocation7_spill] sm:$0xff] %v13176_v40  ;;  %v5311_v0 = vpop.xlane.xlu0 %5310  ;;  %11779 = vpow2.f32 %v5501_v43  ;;  %v5384_v60 = vsub.f32 %v14054_v15, %v5308_v37  ;;  %5667 = vadd.xlane.f32.xlu1 %v5666_v25  ;;  %v5669_v33 = vsel %vm206_vm0, %v13176_v40, 0.0  ;;  %v14057_v37 = vld [vmem:[#allocation11_spill] sm:$0xff]  ;;  %v14058_v25 = vld [vmem:[#allocation12_spill] sm:$0xff] }
 0x1df   :  { %v5385_v56 = vsub.f32 %v14055_v51, %v5311_v0  ;;  %11781 = vpow2.f32 %v5503_v21  ;;  %5670 = vadd.xlane.f32.xlu0 %v5669_v33 }
 0x1e0   :  { %v13184_v9 = vpop.eup %11771  ;;  %v5505_v31 = vmul.f32 1.442695, %v5384_v60 }
 0x1e1   :  { %v5507_v6 = vmul.f32 1.442695, %v5385_v56  ;;  %v13186_v32 = vpop.eup %11773  ;;  %v5314_v45 = vpop.xlane.xlu1 %5313  ;;  %v5672_v43 = vsel %vm206_vm0, %v13184_v9, 0.0 }
 0x1e2   :  { %14056 = vst [vmem:[#allocation8_spill] sm:$0xff] %v13186_v32  ;;  %v5317_v42 = vpop.xlane.xlu0 %5316  ;;  %11783 = vpow2.f32 %v5505_v31  ;;  %v5386_v0 = vsub.f32 %v14057_v37, %v5314_v45  ;;  %5673 = vadd.xlane.f32.xlu1 %v5672_v43  ;;  %v5675_v21 = vsel %vm206_vm0, %v13186_v32, 0.0  ;;  %v14059_v45 = vld [vmem:[#allocation13_spill] sm:$0xff]  ;;  %v14060_v43 = vld [vmem:[#allocation14_spill] sm:$0xff] }
 0x1e3   :  { %v5387_v15 = vsub.f32 %v14058_v25, %v5317_v42  ;;  %11785 = vpow2.f32 %v5507_v6  ;;  %5676 = vadd.xlane.f32.xlu0 %v5675_v21 }
 0x1e4   :  { %v13194_v60 = vpop.eup %11775  ;;  %v5509_v51 = vmul.f32 1.442695, %v5386_v0 }
 0x1e5   :  { %v5511_v56 = vmul.f32 1.442695, %v5387_v15  ;;  %v13196_v33 = vpop.eup %11777  ;;  %v5320_v40 = vpop.xlane.xlu1 %5319  ;;  %v5678_v31 = vsel %vm206_vm0, %v13194_v60, 0.0 }
 0x1e6   :  { %v5323_v16 = vpop.xlane.xlu0 %5322  ;;  %11787 = vpow2.f32 %v5509_v51  ;;  %v5388_v42 = vsub.f32 %v14059_v45, %v5320_v40  ;;  %5679 = vadd.xlane.f32.xlu1 %v5678_v31  ;;  %v5681_v6 = vsel %vm206_vm0, %v13196_v33, 0.0  ;;  %v14061_v40 = vld [vmem:[#allocation15_spill] sm:$0xff] }
 0x1e7   :  { %v5389_v37 = vsub.f32 %v14060_v43, %v5323_v16  ;;  %11789 = vpow2.f32 %v5511_v56  ;;  %5682 = vadd.xlane.f32.xlu0 %v5681_v6 }
 0x1e8   :  { %v13204_v0 = vpop.eup %11779  ;;  %v5513_v25 = vmul.f32 1.442695, %v5388_v42 }
 0x1e9   :  { %v5515_v15 = vmul.f32 1.442695, %v5389_v37  ;;  %v13206_v21 = vpop.eup %11781  ;;  %v5326_v32 = vpop.xlane.xlu1 %5325  ;;  %v5684_v51 = vsel %vm206_vm0, %v13204_v0, 0.0 }
 0x1ea   :  { %11791 = vpow2.f32 %v5513_v25  ;;  %v5390_v45 = vsub.f32 %v14061_v40, %v5326_v32  ;;  %5685 = vadd.xlane.f32.xlu1 %v5684_v51  ;;  %v5687_v16 = vsel %vm206_vm0, %v13206_v21, 0.0 }
 0x1eb   :  { %11793 = vpow2.f32 %v5515_v15  ;;  %5688 = vadd.xlane.f32.xlu0 %v5687_v16 }
 0x1ec   :  { %v13213_v56 = vpop.eup %11783  ;;  %v5517_v31 = vmul.f32 1.442695, %v5390_v45 }
 0x1ed   :  { %v13215_v42 = vpop.eup %11785  ;;  %v5690_v43 = vsel %vm206_vm0, %v13213_v56, 0.0 }
 0x1ee   :  { %11795 = vpow2.f32 %v5517_v31  ;;  %5691 = vadd.xlane.f32.xlu1 %v5690_v43  ;;  %v5693_v37 = vsel %vm206_vm0, %v13215_v42, 0.0 }
 0x1ef   :  { %5694 = vadd.xlane.f32.xlu0 %v5693_v37 }
 0x1f0   :  { %v13221_v32 = vpop.eup %11787 }
 0x1f1   :  { %14062 = vst [vmem:[#allocation9_spill] sm:$0xff] %v13221_v32  ;;  %v13223_v6 = vpop.eup %11789  ;;  %v5696_v25 = vsel %vm206_vm0, %v13221_v32, 0.0  ;;  %v144_v32 = vld [vmem:[%s13997_s2 + $0x10] sm:$0xff] }
 0x1f2   :  { %14063 = vst [vmem:[#allocation10_spill] sm:$0xff] %v13223_v6  ;;  %5697 = vadd.xlane.f32.xlu1 %v5696_v25  ;;  %v5699_v15 = vsel %vm206_vm0, %v13223_v6, 0.0 }
 0x1f3   :  { %5700 = vadd.xlane.f32.xlu0 %v5699_v15 }
 0x1f4   :  { %v13229_v51 = vpop.eup %11791 }
 0x1f5   :  { %14064 = vst [vmem:[#allocation11_spill] sm:$0xff] %v13229_v51  ;;  %v13231_v40 = vpop.eup %11793  ;;  %v5702_v45 = vsel %vm206_vm0, %v13229_v51, 0.0 }
 0x1f6   :  { %14065 = vst [vmem:[#allocation12_spill] sm:$0xff] %v13231_v40  ;;  %5703 = vadd.xlane.f32.xlu1 %v5702_v45  ;;  %v5705_v16 = vsel %vm206_vm0, %v13231_v40, 0.0 }
 0x1f7   :  { %5706 = vadd.xlane.f32.xlu0 %v5705_v16 }
 0x1f8   :  { %v13237_v31 = vpop.eup %11795 }
 0x1f9   :  { %v5708_v43 = vsel %vm206_vm0, %v13237_v31, 0.0 }
 0x1fa   :  { %5709 = vadd.xlane.f32.xlu1 %v5708_v43 }
 0x207   :  { %v5521_v37 = vpop.xlane.xlu0 %5520 }
 0x208   :  { %11797 = vrcp.f32 %v5521_v37 }
 0x20b   :  { %v5524_v25 = vpop.xlane.xlu1 %5523 }
 0x20c   :  { %11799 = vrcp.f32 %v5524_v25  ;;  %v5527_v15 = vpop.xlane.xlu0 %5526 }
 0x20d   :  { %11801 = vrcp.f32 %v5527_v15 }
 0x20f   :  { %v5530_v6 = vpop.xlane.xlu1 %5529 }
 0x210   :  { %11803 = vrcp.f32 %v5530_v6  ;;  %v5533_v51 = vpop.xlane.xlu0 %5532 }
 0x211   :  { %11805 = vrcp.f32 %v5533_v51 }
 0x212   :  { %v11798_v45 = vpop.eup %11797 }
 0x213   :  { %v5775_v40 = vmul.f32 %v11798_v45, %v12920_v11  ;;  %v5536_v16 = vpop.xlane.xlu1 %5535  ;;  %v145_v11 = vld [vmem:[%s13997_s2 + $0x18] sm:$0xff] }
 0x214   :  { %11807 = vrcp.f32 %v5536_v16  ;;  %v5539_v43 = vpop.xlane.xlu0 %5538 }
 0x215   :  { %11809 = vrcp.f32 %v5539_v43  ;;  %11350 = vmatmul.mubr.msk.f32.vlgmr.msra.gmra.mrb[64].mxu0 %vm206_vm0, %v5775_v40 }
 0x216   :  { %v11800_v37 = vpop.eup %11799  ;;  %11358 = vmatpush3.msra.mxu0 %v144_v32  ;;  %11359 = vmatprep.mubr.msk.f32.mxu0 %vm11926_vm1, %v14040_v63  ;;  %v146_v32 = vld [vmem:[%s13997_s2 + $0x20] sm:$0xff] }
 0x217   :  { %v11802_v6 = vpop.eup %11801  ;;  %v5776_v51 = vmul.f32 %v11800_v37, %v12926_v23  ;;  %v5542_v25 = vpop.xlane.xlu1 %5541  ;;  %11367 = vmatprep.subr.mxu0 %v14040_v63 }
 0x218   :  { %v5777_v15 = vmul.f32 %v11802_v6, %v12928_v46  ;;  %11811 = vrcp.f32 %v5542_v25  ;;  %v5545_v45 = vpop.xlane.xlu0 %5544  ;;  %v147_v46 = vld [vmem:[%s13997_s2 + $0x28] sm:$0xff] }
 0x219   :  { %11813 = vrcp.f32 %v5545_v45  ;;  %11355 = vmatmul.mubr.msk.f32.vlgmr.msra.gmra.mrb[64].mxu1 %vm206_vm0, %v5776_v51 }
 0x21a   :  { %v11804_v40 = vpop.eup %11803  ;;  %11360 = vmatmul.mubr.msk.f32.vlgmr.msra.gmra.mrb[66].mxu0 %vm206_vm0, %v5777_v15  ;;  %11363 = vmatpush3.msra.mxu1 %v145_v11  ;;  %v149_v15 = vld [vmem:[%s13997_s2 + $0x38] sm:$0xff] }
 0x21b   :  { %v11806_v23 = vpop.eup %11805  ;;  %v5778_v16 = vmul.f32 %v11804_v40, %v12936_v4  ;;  %v5548_v43 = vpop.xlane.xlu1 %5547  ;;  %11364 = vmatprep.mubr.msk.f32.mxu1 %vm11926_vm1, %v14040_v63  ;;  %11368 = vmatpush3.msra.mxu0 %v146_v32  ;;  %v148_v4 = vld [vmem:[%s13997_s2 + $0x30] sm:$0xff] }
 0x21c   :  { %v5779_v37 = vmul.f32 %v11806_v23, %v12938_v34  ;;  %11815 = vrcp.f32 %v5548_v43  ;;  %v5551_v6 = vpop.xlane.xlu0 %5550  ;;  %11369 = vmatprep.mubr.msk.f32.mxu0 %vm11926_vm1, %v14040_v63  ;;  %11372 = vmatprep.subr.mxu1 %v14040_v63  ;;  %v151_v43 = vld [vmem:[%s13997_s2 + $0x48] sm:$0xff] }
 0x21d   :  { %11817 = vrcp.f32 %v5551_v6  ;;  %11365 = vmatmul.mubr.msk.f32.vlgmr.msra.gmra.mrb[66].mxu1 %vm206_vm0, %v5778_v16  ;;  %11377 = vmatprep.subr.mxu0 %v14040_v63 }
 0x21e   :  { %v11808_v51 = vpop.eup %11807  ;;  %11370 = vmatmul.mubr.msk.f32.vlgmr.msra.gmra.mrb[68].mxu0 %vm206_vm0, %v5779_v37  ;;  %11373 = vmatpush3.msra.mxu1 %v147_v46 }
 0x21f   :  { %v11810_v34 = vpop.eup %11809  ;;  %v5780_v25 = vmul.f32 %v11808_v51, %v12946_v24  ;;  %v5554_v11 = vpop.xlane.xlu1 %5553  ;;  %11374 = vmatprep.mubr.msk.f32.mxu1 %vm11926_vm1, %v14040_v63  ;;  %11378 = vmatpush3.msra.mxu0 %v148_v4  ;;  %v150_v24 = vld [vmem:[%s13997_s2 + $0x40] sm:$0xff] }
 0x220   :  { %v5781_v45 = vmul.f32 %v11810_v34, %v12948_v17  ;;  %11819 = vrcp.f32 %v5554_v11  ;;  %v5557_v32 = vpop.xlane.xlu0 %5556  ;;  %11379 = vmatprep.mubr.msk.f32.mxu0 %vm11926_vm1, %v14040_v63  ;;  %11382 = vmatprep.subr.mxu1 %v14040_v63  ;;  %v153_v34 = vld [vmem:[%s13997_s2 + $0x58] sm:$0xff] }
 0x221   :  { %11821 = vrcp.f32 %v5557_v32  ;;  %11375 = vmatmul.mubr.msk.f32.vlgmr.msra.gmra.mrb[68].mxu1 %vm206_vm0, %v5780_v25  ;;  %11387 = vmatprep.subr.mxu0 %v14040_v63 }
 0x222   :  { %v11812_v40 = vpop.eup %11811  ;;  %11380 = vmatmul.mubr.msk.f32.vlgmr.msra.gmra.mrb[70].mxu0 %vm206_vm0, %v5781_v45  ;;  %11383 = vmatpush3.msra.mxu1 %v149_v15 }
 0x223   :  { %v11814_v17 = vpop.eup %11813  ;;  %v5782_v23 = vmul.f32 %v11812_v40, %v12956_v13  ;;  %v5560_v16 = vpop.xlane.xlu1 %5559  ;;  %11384 = vmatprep.mubr.msk.f32.mxu1 %vm11926_vm1, %v14040_v63  ;;  %11388 = vmatpush3.msra.mxu0 %v150_v24  ;;  %v152_v13 = vld [vmem:[%s13997_s2 + $0x50] sm:$0xff]  ;;  %v155_v24 = vld [vmem:[%s13997_s2 + $0x68] sm:$0xff] }
 0x224   :  { %v5783_v46 = vmul.f32 %v11814_v17, %v12958_v35  ;;  %11823 = vrcp.f32 %v5560_v16  ;;  %v5563_v37 = vpop.xlane.xlu0 %5562  ;;  %11389 = vmatprep.mubr.msk.f32.mxu0 %vm11926_vm1, %v14040_v63  ;;  %11392 = vmatprep.subr.mxu1 %v14040_v63 }
 0x225   :  { %11825 = vrcp.f32 %v5563_v37  ;;  %11385 = vmatmul.mubr.msk.f32.vlgmr.msra.gmra.mrb[70].mxu1 %vm206_vm0, %v5782_v23  ;;  %11397 = vmatprep.subr.mxu0 %v14040_v63 }
 0x226   :  { %v11816_v6 = vpop.eup %11815  ;;  %11390 = vmatmul.mubr.msk.f32.vlgmr.msra.gmra.mrb[72].mxu0 %vm206_vm0, %v5783_v46  ;;  %11393 = vmatpush3.msra.mxu1 %v151_v43  ;;  %v157_v46 = vld [vmem:[%s13997_s2 + $0x78] sm:$0xff] }
 0x227   :  { %v11818_v35 = vpop.eup %11817  ;;  %v5784_v4 = vmul.f32 %v11816_v6, %v12966_v62  ;;  %v5566_v51 = vpop.xlane.xlu1 %5565  ;;  %11394 = vmatprep.mubr.msk.f32.mxu1 %vm11926_vm1, %v14040_v63  ;;  %11398 = vmatpush3.msra.mxu0 %v152_v13  ;;  %v154_v62 = vld [vmem:[%s13997_s2 + $0x60] sm:$0xff] }
 0x228   :  { %v5785_v25 = vmul.f32 %v11818_v35, %v12968_v41  ;;  %11827 = vrcp.f32 %v5566_v51  ;;  %v5569_v11 = vpop.xlane.xlu0 %5568  ;;  %11399 = vmatprep.mubr.msk.f32.mxu0 %vm11926_vm1, %v14040_v63  ;;  %11402 = vmatprep.subr.mxu1 %v14040_v63  ;;  %v159_v51 = vld [vmem:[%s13997_s2 + $0x88] sm:$0xff] }
 0x229   :  { %11829 = vrcp.f32 %v5569_v11  ;;  %11395 = vmatmul.mubr.msk.f32.vlgmr.msra.gmra.mrb[72].mxu1 %vm206_vm0, %v5784_v4  ;;  %11407 = vmatprep.subr.mxu0 %v14040_v63 }
 0x22a   :  { %v11820_v15 = vpop.eup %11819  ;;  %11400 = vmatmul.mubr.msk.f32.vlgmr.msra.gmra.mrb[74].mxu0 %vm206_vm0, %v5785_v25  ;;  %11403 = vmatpush3.msra.mxu1 %v153_v34 }
 0x22b   :  { %v11822_v41 = vpop.eup %11821  ;;  %v5786_v45 = vmul.f32 %v11820_v15, %v12976_v28  ;;  %v5572_v32 = vpop.xlane.xlu1 %5571  ;;  %11404 = vmatprep.mubr.msk.f32.mxu1 %vm11926_vm1, %v14040_v63  ;;  %11408 = vmatpush3.msra.mxu0 %v154_v62  ;;  %v156_v28 = vld [vmem:[%s13997_s2 + $0x70] sm:$0xff] }
 0x22c   :  { %v5787_v40 = vmul.f32 %v11822_v41, %v12978_v54  ;;  %11831 = vrcp.f32 %v5572_v32  ;;  %v5575_v17 = vpop.xlane.xlu0 %5574  ;;  %11409 = vmatprep.mubr.msk.f32.mxu0 %vm11926_vm1, %v14040_v63  ;;  %11412 = vmatprep.subr.mxu1 %v14040_v63  ;;  %v161_v41 = vld [vmem:[%s13997_s2 + $0x98] sm:$0xff] }
 0x22d   :  { %11833 = vrcp.f32 %v5575_v17  ;;  %11405 = vmatmul.mubr.msk.f32.vlgmr.msra.gmra.mrb[74].mxu1 %vm206_vm0, %v5786_v45  ;;  %11417 = vmatprep.subr.mxu0 %v14040_v63 }
 0x22e   :  { %v11824_v23 = vpop.eup %11823  ;;  %11410 = vmatmul.mubr.msk.f32.vlgmr.msra.gmra.mrb[76].mxu0 %vm206_vm0, %v5787_v40  ;;  %11413 = vmatpush3.msra.mxu1 %v155_v24 }
 0x22f   :  { %v11826_v54 = vpop.eup %11825  ;;  %v5788_v16 = vmul.f32 %v11824_v23, %v12986_v7  ;;  %v5578_v43 = vpop.xlane.xlu1 %5577  ;;  %11414 = vmatprep.mubr.msk.f32.mxu1 %vm11926_vm1, %v14040_v63  ;;  %11418 = vmatpush3.msra.mxu0 %v156_v28  ;;  %v158_v7 = vld [vmem:[%s13997_s2 + $0x80] sm:$0xff]  ;;  %v163_v28 = vld [vmem:[%s13997_s2 + $0xa8] sm:$0xff] }
 0x230   :  { %v5789_v37 = vmul.f32 %v11826_v54, %v12991_v39  ;;  %11835 = vrcp.f32 %v5578_v43  ;;  %v5581_v13 = vpop.xlane.xlu0 %5580  ;;  %11419 = vmatprep.mubr.msk.f32.mxu0 %vm11926_vm1, %v14040_v63  ;;  %11422 = vmatprep.subr.mxu1 %v14040_v63 }
 0x231   :  { %11837 = vrcp.f32 %v5581_v13  ;;  %11415 = vmatmul.mubr.msk.f32.vlgmr.msra.gmra.mrb[76].mxu1 %vm206_vm0, %v5788_v16  ;;  %11427 = vmatprep.subr.mxu0 %v14040_v63 }
 0x232   :  { %v11828_v6 = vpop.eup %11827  ;;  %11420 = vmatmul.mubr.msk.f32.vlgmr.msra.gmra.mrb[78].mxu0 %vm206_vm0, %v5789_v37  ;;  %11423 = vmatpush3.msra.mxu1 %v157_v46  ;;  %v165_v37 = vld [vmem:[%s13997_s2 + $0xb8] sm:$0xff] }
 0x233   :  { %v11830_v39 = vpop.eup %11829  ;;  %v5790_v35 = vmul.f32 %v11828_v6, %v13000_v5  ;;  %v5584_v4 = vpop.xlane.xlu1 %5583  ;;  %11424 = vmatprep.mubr.msk.f32.mxu1 %vm11926_vm1, %v14040_v63  ;;  %11428 = vmatpush3.msra.mxu0 %v158_v7  ;;  %v160_v5 = vld [vmem:[%s13997_s2 + $0x90] sm:$0xff] }
 0x234   :  { %v5791_v34 = vmul.f32 %v11830_v39, %v13005_v52  ;;  %11839 = vrcp.f32 %v5584_v4  ;;  %v5587_v25 = vpop.xlane.xlu0 %5586  ;;  %11429 = vmatprep.mubr.msk.f32.mxu0 %vm11926_vm1, %v14040_v63  ;;  %11432 = vmatprep.subr.mxu1 %v14040_v63  ;;  %v167_v4 = vld [vmem:[%s13997_s2 + $0xc8] sm:$0xff] }
 0x235   :  { %11841 = vrcp.f32 %v5587_v25  ;;  %11425 = vmatmul.mubr.msk.f32.vlgmr.msra.gmra.mrb[78].mxu1 %vm206_vm0, %v5790_v35  ;;  %11437 = vmatprep.subr.mxu0 %v14040_v63 }
 0x236   :  { %v11832_v11 = vpop.eup %11831  ;;  %11430 = vmatmul.mubr.msk.f32.vlgmr.msra.gmra.mrb[80].mxu0 %vm206_vm0, %v5791_v34  ;;  %11433 = vmatpush3.msra.mxu1 %v159_v51 }
 0x237   :  { %v11834_v52 = vpop.eup %11833  ;;  %v5792_v62 = vmul.f32 %v11832_v11, %v13014_v61  ;;  %v5590_v15 = vpop.xlane.xlu1 %5589  ;;  %11434 = vmatprep.mubr.msk.f32.mxu1 %vm11926_vm1, %v14040_v63  ;;  %11438 = vmatpush3.msra.mxu0 %v160_v5  ;;  %v162_v61 = vld [vmem:[%s13997_s2 + $0xa0] sm:$0xff] }
 0x238   :  { %v5793_v45 = vmul.f32 %v11834_v52, %v13016_v38  ;;  %11843 = vrcp.f32 %v5590_v15  ;;  %v5593_v32 = vpop.xlane.xlu0 %5592  ;;  %11439 = vmatprep.mubr.msk.f32.mxu0 %vm11926_vm1, %v14040_v63  ;;  %11442 = vmatprep.subr.mxu1 %v14040_v63  ;;  %v169_v52 = vld [vmem:[%s13997_s2 + $0xd8] sm:$0xff] }
 0x239   :  { %11845 = vrcp.f32 %v5593_v32  ;;  %11435 = vmatmul.mubr.msk.f32.vlgmr.msra.gmra.mrb[80].mxu1 %vm206_vm0, %v5792_v62  ;;  %11447 = vmatprep.subr.mxu0 %v14040_v63 }
 0x23a   :  { %v11836_v24 = vpop.eup %11835  ;;  %11440 = vmatmul.mubr.msk.f32.vlgmr.msra.gmra.mrb[82].mxu0 %vm206_vm0, %v5793_v45  ;;  %11443 = vmatpush3.msra.mxu1 %v161_v41 }
 0x23b   :  { %v11838_v38 = vpop.eup %11837  ;;  %v5794_v40 = vmul.f32 %v11836_v24, %v13024_v19  ;;  %v5596_v17 = vpop.xlane.xlu1 %5595  ;;  %11444 = vmatprep.mubr.msk.f32.mxu1 %vm11926_vm1, %v14040_v63  ;;  %11448 = vmatpush3.msra.mxu0 %v162_v61  ;;  %v164_v19 = vld [vmem:[%s13997_s2 + $0xb0] sm:$0xff]  ;;  %v171_v61 = vld [vmem:[%s13997_s2 + $0xe8] sm:$0xff] }
 0x23c   :  { %v5795_v23 = vmul.f32 %v11838_v38, %v13026_v47  ;;  %11847 = vrcp.f32 %v5596_v17  ;;  %v5599_v54 = vpop.xlane.xlu0 %5598  ;;  %11449 = vmatprep.mubr.msk.f32.mxu0 %vm11926_vm1, %v14040_v63  ;;  %11452 = vmatprep.subr.mxu1 %v14040_v63 }
 0x23d   :  { %11849 = vrcp.f32 %v5599_v54  ;;  %11445 = vmatmul.mubr.msk.f32.vlgmr.msra.gmra.mrb[82].mxu1 %vm206_vm0, %v5794_v40  ;;  %11457 = vmatprep.subr.mxu0 %v14040_v63 }
 0x23e   :  { %v11840_v16 = vpop.eup %11839  ;;  %11450 = vmatmul.mubr.msk.f32.vlgmr.msra.gmra.mrb[84].mxu0 %vm206_vm0, %v5795_v23  ;;  %11453 = vmatpush3.msra.mxu1 %v163_v28  ;;  %v173_v23 = vld [vmem:[%s13997_s2 + $0xf8] sm:$0xff] }
 0x23f   :  { %v11842_v47 = vpop.eup %11841  ;;  %v5796_v43 = vmul.f32 %v11840_v16, %v13034_v3  ;;  %v5602_v46 = vpop.xlane.xlu1 %5601  ;;  %11454 = vmatprep.mubr.msk.f32.mxu1 %vm11926_vm1, %v14040_v63  ;;  %11458 = vmatpush3.msra.mxu0 %v164_v19  ;;  %v166_v3 = vld [vmem:[%s13997_s2 + $0xc0] sm:$0xff] }
 0x240   :  { %v5797_v13 = vmul.f32 %v11842_v47, %v13036_v55  ;;  %11851 = vrcp.f32 %v5602_v46  ;;  %v5605_v7 = vpop.xlane.xlu0 %5604  ;;  %11459 = vmatprep.mubr.msk.f32.mxu0 %vm11926_vm1, %v14040_v63  ;;  %11462 = vmatprep.subr.mxu1 %v14040_v63  ;;  %v175_v46 = vld [vmem:[%s13997_s2 + $0x108] sm:$0xff] }
 0x241   :  { %11853 = vrcp.f32 %v5605_v7  ;;  %11455 = vmatmul.mubr.msk.f32.vlgmr.msra.gmra.mrb[84].mxu1 %vm206_vm0, %v5796_v43  ;;  %11467 = vmatprep.subr.mxu0 %v14040_v63 }
 0x242   :  { %v11844_v6 = vpop.eup %11843  ;;  %11460 = vmatmul.mubr.msk.f32.vlgmr.msra.gmra.mrb[86].mxu0 %vm206_vm0, %v5797_v13  ;;  %11463 = vmatpush3.msra.mxu1 %v165_v37 }
 0x243   :  { %v11846_v55 = vpop.eup %11845  ;;  %v5798_v39 = vmul.f32 %v11844_v6, %v13044_v48  ;;  %v5608_v35 = vpop.xlane.xlu1 %5607  ;;  %11464 = vmatprep.mubr.msk.f32.mxu1 %vm11926_vm1, %v14040_v63  ;;  %11468 = vmatpush3.msra.mxu0 %v166_v3  ;;  %v168_v48 = vld [vmem:[%s13997_s2 + $0xd0] sm:$0xff] }
 0x244   :  { %v5799_v51 = vmul.f32 %v11846_v55, %v13046_v27  ;;  %11855 = vrcp.f32 %v5608_v35  ;;  %v5611_v34 = vpop.xlane.xlu0 %5610  ;;  %11469 = vmatprep.mubr.msk.f32.mxu0 %vm11926_vm1, %v14040_v63  ;;  %11472 = vmatprep.subr.mxu1 %v14040_v63  ;;  %v177_v55 = vld [vmem:[%s13997_s2 + $0x118] sm:$0xff] }
 0x245   :  { %11857 = vrcp.f32 %v5611_v34  ;;  %11465 = vmatmul.mubr.msk.f32.vlgmr.msra.gmra.mrb[86].mxu1 %vm206_vm0, %v5798_v39  ;;  %11477 = vmatprep.subr.mxu0 %v14040_v63 }
 0x246   :  { %v11848_v25 = vpop.eup %11847  ;;  %11470 = vmatmul.mubr.msk.f32.vlgmr.msra.gmra.mrb[88].mxu0 %vm206_vm0, %v5799_v51  ;;  %11473 = vmatpush3.msra.mxu1 %v167_v4 }
 0x247   :  { %v11850_v27 = vpop.eup %11849  ;;  %v5800_v5 = vmul.f32 %v11848_v25, %v13054_v53  ;;  %v5614_v11 = vpop.xlane.xlu1 %5613  ;;  %11474 = vmatprep.mubr.msk.f32.mxu1 %vm11926_vm1, %v14040_v63  ;;  %11478 = vmatpush3.msra.mxu0 %v168_v48  ;;  %v170_v53 = vld [vmem:[%s13997_s2 + $0xe0] sm:$0xff]  ;;  %v179_v48 = vld [vmem:[%s13997_s2 + $0x128] sm:$0xff] }
 0x248   :  { %v5801_v62 = vmul.f32 %v11850_v27, %v13056_v10  ;;  %11859 = vrcp.f32 %v5614_v11  ;;  %v5617_v15 = vpop.xlane.xlu0 %5616  ;;  %11479 = vmatprep.mubr.msk.f32.mxu0 %vm11926_vm1, %v14040_v63  ;;  %11482 = vmatprep.subr.mxu1 %v14040_v63 }
 0x249   :  { %11861 = vrcp.f32 %v5617_v15  ;;  %11475 = vmatmul.mubr.msk.f32.vlgmr.msra.gmra.mrb[88].mxu1 %vm206_vm0, %v5800_v5  ;;  %11487 = vmatprep.subr.mxu0 %v14040_v63 }
 0x24a   :  { %v11852_v41 = vpop.eup %11851  ;;  %11480 = vmatmul.mubr.msk.f32.vlgmr.msra.gmra.mrb[90].mxu0 %vm206_vm0, %v5801_v62  ;;  %11483 = vmatpush3.msra.mxu1 %v169_v52  ;;  %v181_v62 = vld [vmem:[%s13997_s2 + $0x138] sm:$0xff] }
 0x24b   :  { %v11854_v10 = vpop.eup %11853  ;;  %v5802_v45 = vmul.f32 %v11852_v41, %v13064_v1  ;;  %v5620_v32 = vpop.xlane.xlu1 %5619  ;;  %11484 = vmatprep.mubr.msk.f32.mxu1 %vm11926_vm1, %v14040_v63  ;;  %11488 = vmatpush3.msra.mxu0 %v170_v53  ;;  %v172_v1 = vld [vmem:[%s13997_s2 + $0xf0] sm:$0xff] }
 0x24c   :  { %v5803_v24 = vmul.f32 %v11854_v10, %v13066_v26  ;;  %11863 = vrcp.f32 %v5620_v32  ;;  %v5623_v38 = vpop.xlane.xlu0 %5622  ;;  %11489 = vmatprep.mubr.msk.f32.mxu0 %vm11926_vm1, %v14040_v63  ;;  %11492 = vmatprep.subr.mxu1 %v14040_v63  ;;  %v183_v32 = vld [vmem:[%s13997_s2 + $0x148] sm:$0xff] }
 0x24d   :  { %11865 = vrcp.f32 %v5623_v38  ;;  %11485 = vmatmul.mubr.msk.f32.vlgmr.msra.gmra.mrb[90].mxu1 %vm206_vm0, %v5802_v45  ;;  %11497 = vmatprep.subr.mxu0 %v14040_v63 }
 0x24e   :  { %v11856_v40 = vpop.eup %11855  ;;  %11490 = vmatmul.mubr.msk.f32.vlgmr.msra.gmra.mrb[92].mxu0 %vm206_vm0, %v5803_v24  ;;  %11493 = vmatpush3.msra.mxu1 %v171_v61 }
 0x24f   :  { %v11858_v26 = vpop.eup %11857  ;;  %v5804_v17 = vmul.f32 %v11856_v40, %v13074_v14  ;;  %v5626_v28 = vpop.xlane.xlu1 %5625  ;;  %11494 = vmatprep.mubr.msk.f32.mxu1 %vm11926_vm1, %v14040_v63  ;;  %11498 = vmatpush3.msra.mxu0 %v172_v1  ;;  %v174_v14 = vld [vmem:[%s13997_s2 + $0x100] sm:$0xff] }
 0x250   :  { %v5805_v54 = vmul.f32 %v11858_v26, %v13076_v58  ;;  %11867 = vrcp.f32 %v5626_v28  ;;  %v5629_v19 = vpop.xlane.xlu0 %5628  ;;  %11499 = vmatprep.mubr.msk.f32.mxu0 %vm11926_vm1, %v14040_v63  ;;  %11502 = vmatprep.subr.mxu1 %v14040_v63  ;;  %v185_v26 = vld [vmem:[%s13997_s2 + $0x158] sm:$0xff] }
 0x251   :  { %11869 = vrcp.f32 %v5629_v19  ;;  %11495 = vmatmul.mubr.msk.f32.vlgmr.msra.gmra.mrb[92].mxu1 %vm206_vm0, %v5804_v17  ;;  %11507 = vmatprep.subr.mxu0 %v14040_v63 }
 0x252   :  { %v11860_v16 = vpop.eup %11859  ;;  %11500 = vmatmul.mubr.msk.f32.vlgmr.msra.gmra.mrb[94].mxu0 %vm206_vm0, %v5805_v54  ;;  %11503 = vmatpush3.msra.mxu1 %v173_v23 }
 0x253   :  { %v11862_v58 = vpop.eup %11861  ;;  %v5806_v47 = vmul.f32 %v11860_v16, %v13084_v29  ;;  %v5632_v43 = vpop.xlane.xlu1 %5631  ;;  %11504 = vmatprep.mubr.msk.f32.mxu1 %vm11926_vm1, %v14040_v63  ;;  %11508 = vmatpush3.msra.mxu0 %v174_v14  ;;  %v176_v29 = vld [vmem:[%s13997_s2 + $0x110] sm:$0xff]  ;;  %v187_v14 = vld [vmem:[%s13997_s2 + $0x168] sm:$0xff] }
 0x254   :  { %v5807_v37 = vmul.f32 %v11862_v58, %v13086_v8  ;;  %11871 = vrcp.f32 %v5632_v43  ;;  %v5635_v13 = vpop.xlane.xlu0 %5634  ;;  %11509 = vmatprep.mubr.msk.f32.mxu0 %vm11926_vm1, %v14040_v63  ;;  %11512 = vmatprep.subr.mxu1 %v14040_v63  ;;  %v14066_v43 = vld [vmem:[#allocation2_spill] sm:$0xff] }
 0x255   :  { %11873 = vrcp.f32 %v5635_v13  ;;  %11505 = vmatmul.mubr.msk.f32.vlgmr.msra.gmra.mrb[94].mxu1 %vm206_vm0, %v5806_v47  ;;  %11517 = vmatprep.subr.mxu0 %v14040_v63  ;;  %v189_v13 = vld [vmem:[%s13997_s2 + $0x178] sm:$0xff] }
 0x256   :  { %v11864_v7 = vpop.eup %11863  ;;  %11510 = vmatmul.mubr.msk.f32.vlgmr.msra.gmra.mrb[96].mxu0 %vm206_vm0, %v5807_v37  ;;  %11513 = vmatpush3.msra.mxu1 %v175_v46 }
 0x257   :  { %v11866_v8 = vpop.eup %11865  ;;  %v5808_v3 = vmul.f32 %v11864_v7, %v13094_v44  ;;  %v5638_v6 = vpop.xlane.xlu1 %5637  ;;  %11514 = vmatprep.mubr.msk.f32.mxu1 %vm11926_vm1, %v14040_v63  ;;  %11518 = vmatpush3.msra.mxu0 %v176_v29  ;;  %v178_v44 = vld [vmem:[%s13997_s2 + $0x120] sm:$0xff]  ;;  %v14067_v29 = vld [vmem:[#allocation3_spill] sm:$0xff] }
 0x258   :  { %v5809_v39 = vmul.f32 %v11866_v8, %v13096_v22  ;;  %11875 = vrcp.f32 %v5638_v6  ;;  %v5641_v35 = vpop.xlane.xlu0 %5640  ;;  %11519 = vmatprep.mubr.msk.f32.mxu0 %vm11926_vm1, %v14040_v63  ;;  %11522 = vmatprep.subr.mxu1 %v14040_v63 }
 0x259   :  { %11877 = vrcp.f32 %v5641_v35  ;;  %11515 = vmatmul.mubr.msk.f32.vlgmr.msra.gmra.mrb[96].mxu1 %vm206_vm0, %v5808_v3  ;;  %11527 = vmatprep.subr.mxu0 %v14040_v63  ;;  %v190_v3 = vld [vmem:[%s13997_s2 + $0x180] sm:$0xff] }
 0x25a   :  { %v11868_v4 = vpop.eup %11867  ;;  %11520 = vmatmul.mubr.msk.f32.vlgmr.msra.gmra.mrb[98].mxu0 %vm206_vm0, %v5809_v39  ;;  %11523 = vmatpush3.msra.mxu1 %v177_v55  ;;  %v14068_v39 = vld [vmem:[#allocation4_spill] sm:$0xff] }
 0x25b   :  { %v11870_v22 = vpop.eup %11869  ;;  %v5810_v51 = vmul.f32 %v11868_v4, %v13104_v57  ;;  %v5644_v34 = vpop.xlane.xlu1 %5643  ;;  %11524 = vmatprep.mubr.msk.f32.mxu1 %vm11926_vm1, %v14040_v63  ;;  %11528 = vmatpush3.msra.mxu0 %v178_v44  ;;  %v180_v57 = vld [vmem:[%s13997_s2 + $0x130] sm:$0xff]  ;;  %v191_v4 = vld [vmem:[%s13997_s2 + $0x188] sm:$0xff] }
 0x25c   :  { %v5811_v25 = vmul.f32 %v11870_v22, %v13106_v36  ;;  %11879 = vrcp.f32 %v5644_v34  ;;  %v5647_v27 = vpop.xlane.xlu0 %5646  ;;  %11529 = vmatprep.mubr.msk.f32.mxu0 %vm11926_vm1, %v14040_v63  ;;  %11532 = vmatprep.subr.mxu1 %v14040_v63  ;;  %v14069_v22 = vld [vmem:[#allocation5_spill] sm:$0xff] }
 0x25d   :  { %11881 = vrcp.f32 %v5647_v27  ;;  %11525 = vmatmul.mubr.msk.f32.vlgmr.msra.gmra.mrb[98].mxu1 %vm206_vm0, %v5810_v51  ;;  %11537 = vmatprep.subr.mxu0 %v14040_v63 }
 0x25e   :  { %v11872_v5 = vpop.eup %11871  ;;  %11530 = vmatmul.mubr.msk.f32.vlgmr.msra.gmra.mrb[100].mxu0 %vm206_vm0, %v5811_v25  ;;  %11533 = vmatpush3.msra.mxu1 %v179_v48  ;;  %v192_v48 = vld [vmem:[%s13997_s2 + $0x190] sm:$0xff] }
 0x25f   :  { %v11874_v36 = vpop.eup %11873  ;;  %v5812_v11 = vmul.f32 %v11872_v5, %v13114_v12  ;;  %v5650_v52 = vpop.xlane.xlu1 %5649  ;;  %11534 = vmatprep.mubr.msk.f32.mxu1 %vm11926_vm1, %v14040_v63  ;;  %11538 = vmatpush3.msra.mxu0 %v180_v57  ;;  %v182_v12 = vld [vmem:[%s13997_s2 + $0x140] sm:$0xff] }
 0x260   :  { %v5813_v15 = vmul.f32 %v11874_v36, %v13116_v50  ;;  %11883 = vrcp.f32 %v5650_v52  ;;  %v5653_v53 = vpop.xlane.xlu0 %5652  ;;  %11539 = vmatprep.mubr.msk.f32.mxu0 %vm11926_vm1, %v14040_v63  ;;  %11542 = vmatprep.subr.mxu1 %v14040_v63  ;;  %v14070_v57 = vld [vmem:[#allocation6_spill] sm:$0xff]  ;;  %v14071_v52 = vld [vmem:[#allocation7_spill] sm:$0xff] }
 0x261   :  { %11885 = vrcp.f32 %v5653_v53  ;;  %11535 = vmatmul.mubr.msk.f32.vlgmr.msra.gmra.mrb[100].mxu1 %vm206_vm0, %v5812_v11  ;;  %11547 = vmatprep.subr.mxu0 %v14040_v63  ;;  %v193_v11 = vld [vmem:[%s13997_s2 + $0x198] sm:$0xff]  ;;  %v194_v53 = vld [vmem:[%s13997_s2 + $0x1a0] sm:$0xff] }
 0x262   :  { %v11876_v41 = vpop.eup %11875  ;;  %11540 = vmatmul.mubr.msk.f32.vlgmr.msra.gmra.mrb[102].mxu0 %vm206_vm0, %v5813_v15  ;;  %11543 = vmatpush3.msra.mxu1 %v181_v62 }
 0x263   :  { %v11878_v50 = vpop.eup %11877  ;;  %v5814_v10 = vmul.f32 %v11876_v41, %v13124_v30  ;;  %v5656_v45 = vpop.xlane.xlu1 %5655  ;;  %11544 = vmatprep.mubr.msk.f32.mxu1 %vm11926_vm1, %v14040_v63  ;;  %11548 = vmatpush3.msra.mxu0 %v182_v12  ;;  %v184_v30 = vld [vmem:[%s13997_s2 + $0x150] sm:$0xff] }
 0x264   :  { %v5815_v61 = vmul.f32 %v11878_v50, %v13126_v2  ;;  %11887 = vrcp.f32 %v5656_v45  ;;  %v5659_v24 = vpop.xlane.xlu0 %5658  ;;  %11549 = vmatprep.mubr.msk.f32.mxu0 %vm11926_vm1, %v14040_v63  ;;  %11552 = vmatprep.subr.mxu1 %v14040_v63  ;;  %v195_v45 = vld [vmem:[%s13997_s2 + $0x1a8] sm:$0xff] }
 0x265   :  { %11889 = vrcp.f32 %v5659_v24  ;;  %11545 = vmatmul.mubr.msk.f32.vlgmr.msra.gmra.mrb[102].mxu1 %vm206_vm0, %v5814_v10  ;;  %11557 = vmatprep.subr.mxu0 %v14040_v63 }
 0x266   :  { %v11880_v38 = vpop.eup %11879  ;;  %11550 = vmatmul.mubr.msk.f32.vlgmr.msra.gmra.mrb[104].mxu0 %vm206_vm0, %v5815_v61  ;;  %11553 = vmatpush3.msra.mxu1 %v183_v32  ;;  %v14072_v32 = vld [vmem:[#allocation8_spill] sm:$0xff] }
 0x267   :  { %v11882_v2 = vpop.eup %11881  ;;  %v5816_v1 = vmul.f32 %v11880_v38, %v13134_v49  ;;  %v5662_v40 = vpop.xlane.xlu1 %5661  ;;  %11554 = vmatprep.mubr.msk.f32.mxu1 %vm11926_vm1, %v14040_v63  ;;  %11558 = vmatpush3.msra.mxu0 %v184_v30  ;;  %v186_v49 = vld [vmem:[%s13997_s2 + $0x160] sm:$0xff] }
 0x268   :  { %v5817_v17 = vmul.f32 %v11882_v2, %v13136_v20  ;;  %11891 = vrcp.f32 %v5662_v40  ;;  %v5665_v28 = vpop.xlane.xlu0 %5664  ;;  %11559 = vmatprep.mubr.msk.f32.mxu0 %vm11926_vm1, %v14040_v63  ;;  %11562 = vmatprep.subr.mxu1 %v14040_v63  ;;  %v197_v40 = vld [vmem:[%s13997_s2 + $0x1b8] sm:$0xff] }
 0x269   :  { %11893 = vrcp.f32 %v5665_v28  ;;  %11555 = vmatmul.mubr.msk.f32.vlgmr.msra.gmra.mrb[104].mxu1 %vm206_vm0, %v5816_v1  ;;  %11567 = vmatprep.subr.mxu0 %v14040_v63 }
 0x26a   :  { %v11884_v23 = vpop.eup %11883  ;;  %11560 = vmatmul.mubr.msk.f32.vlgmr.msra.gmra.mrb[106].mxu0 %vm206_vm0, %v5817_v17  ;;  %11563 = vmatpush3.msra.mxu1 %v185_v26 }
 0x26b   :  { %v11886_v20 = vpop.eup %11885  ;;  %v5818_v54 = vmul.f32 %v11884_v23, %v13144_v18  ;;  %v5668_v19 = vpop.xlane.xlu1 %5667  ;;  %11564 = vmatprep.mubr.msk.f32.mxu1 %vm11926_vm1, %v14040_v63  ;;  %11568 = vmatpush3.msra.mxu0 %v186_v49  ;;  %v188_v18 = vld [vmem:[%s13997_s2 + $0x170] sm:$0xff] }
 0x26c   :  { %v5819_v16 = vmul.f32 %v11886_v20, %v13146_v59  ;;  %11895 = vrcp.f32 %v5668_v19  ;;  %v5671_v58 = vpop.xlane.xlu0 %5670  ;;  %11569 = vmatprep.mubr.msk.f32.mxu0 %vm11926_vm1, %v14040_v63  ;;  %11572 = vmatprep.subr.mxu1 %v14040_v63  ;;  %v199_v20 = vld [vmem:[%s13997_s2 + $0x1c8] sm:$0xff] }
 0x26d   :  { %11897 = vrcp.f32 %v5671_v58  ;;  %11565 = vmatmul.mubr.msk.f32.vlgmr.msra.gmra.mrb[106].mxu1 %vm206_vm0, %v5818_v54  ;;  %11577 = vmatprep.subr.mxu0 %v14040_v63 }
 0x26e   :  { %v11888_v47 = vpop.eup %11887  ;;  %11570 = vmatmul.mubr.msk.f32.vlgmr.msra.gmra.mrb[108].mxu0 %vm206_vm0, %v5819_v16  ;;  %11573 = vmatpush3.msra.mxu1 %v187_v14 }
 0x26f   :  { %v11890_v59 = vpop.eup %11889  ;;  %v5820_v46 = vmul.f32 %v11888_v47, %v14066_v43  ;;  %v5674_v37 = vpop.xlane.xlu1 %5673  ;;  %11574 = vmatprep.mubr.msk.f32.mxu1 %vm11926_vm1, %v14040_v63  ;;  %11578 = vmatpush3.msra.mxu0 %v188_v18  ;;  %v201_v18 = vld [vmem:[%s13997_s2 + $0x1d8] sm:$0xff] }
 0x270   :  { %v5821_v7 = vmul.f32 %v11890_v59, %v14067_v29  ;;  %11899 = vrcp.f32 %v5674_v37  ;;  %v5677_v8 = vpop.xlane.xlu0 %5676  ;;  %11579 = vmatprep.mubr.msk.f32.mxu0 %vm11926_vm1, %v14040_v63  ;;  %11582 = vmatprep.subr.mxu1 %v14040_v63  ;;  %v203_v37 = vld [vmem:[%s13997_s2 + $0x1e8] sm:$0xff] }
 0x271   :  { %11901 = vrcp.f32 %v5677_v8  ;;  %11575 = vmatmul.mubr.msk.f32.vlgmr.msra.gmra.mrb[108].mxu1 %vm206_vm0, %v5820_v46  ;;  %11587 = vmatprep.subr.mxu0 %v14040_v63 }
 0x272   :  { %v11892_v6 = vpop.eup %11891  ;;  %11580 = vmatmul.mubr.msk.f32.vlgmr.msra.gmra.mrb[110].mxu0 %vm206_vm0, %v5821_v7  ;;  %11583 = vmatpush3.msra.mxu1 %v189_v13  ;;  %v14074_v13 = vld [vmem:[#allocation10_spill] sm:$0xff]  ;;  %v204_v7 = vld [vmem:[%s13997_s2 + $0x1f0] sm:$0xff] }
 0x273   :  { %v11894_v55 = vpop.eup %11893  ;;  %v5822_v35 = vmul.f32 %v11892_v6, %v14068_v39  ;;  %v5680_v44 = vpop.xlane.xlu1 %5679  ;;  %11584 = vmatprep.mubr.msk.f32.mxu1 %vm11926_vm1, %v14040_v63  ;;  %11588 = vmatpush3.msra.mxu0 %v190_v3  ;;  %v14075_v6 = vld [vmem:[#allocation11_spill] sm:$0xff]  ;;  %v205_v39 = vld [vmem:[%s13997_s2 + $0x1f8] sm:$0xff] }
 0x274   :  { %v5823_v51 = vmul.f32 %v11894_v55, %v14069_v22  ;;  %11903 = vrcp.f32 %v5680_v44  ;;  %v5683_v34 = vpop.xlane.xlu0 %5682  ;;  %11589 = vmatprep.mubr.msk.f32.mxu0 %vm11926_vm1, %v14040_v63  ;;  %11592 = vmatprep.subr.mxu1 %v14040_v63 }
 0x275   :  { %11905 = vrcp.f32 %v5683_v34  ;;  %11585 = vmatmul.mubr.msk.f32.vlgmr.msra.gmra.mrb[110].mxu1 %vm206_vm0, %v5822_v35  ;;  %11597 = vmatprep.subr.mxu0 %v14040_v63  ;;  %v14076_v35 = vld [vmem:[#allocation12_spill] sm:$0xff] }
 0x276   :  { %v11896_v25 = vpop.eup %11895  ;;  %11590 = vmatmul.mubr.msk.f32.vlgmr.msra.gmra.mrb[112].mxu0 %vm206_vm0, %v5823_v51  ;;  %11593 = vmatpush3.msra.mxu1 %v191_v4 }
 0x277   :  { %v11898_v27 = vpop.eup %11897  ;;  %v5824_v5 = vmul.f32 %v11896_v25, %v14070_v57  ;;  %v5686_v36 = vpop.xlane.xlu1 %5685  ;;  %11594 = vmatprep.mubr.msk.f32.mxu1 %vm11926_vm1, %v14040_v63  ;;  %11598 = vmatpush3.msra.mxu0 %v192_v48 }
 0x278   :  { %v5825_v62 = vmul.f32 %v11898_v27, %v14071_v52  ;;  %11907 = vrcp.f32 %v5686_v36  ;;  %v5689_v15 = vpop.xlane.xlu0 %5688  ;;  %11599 = vmatprep.mubr.msk.f32.mxu0 %vm11926_vm1, %v14040_v63  ;;  %11602 = vmatprep.subr.mxu1 %v14040_v63 }
 0x279   :  { %11909 = vrcp.f32 %v5689_v15  ;;  %11595 = vmatmul.mubr.msk.f32.vlgmr.msra.gmra.mrb[112].mxu1 %vm206_vm0, %v5824_v5  ;;  %11607 = vmatprep.subr.mxu0 %v14040_v63 }
 0x27a   :  { %v11900_v12 = vpop.eup %11899  ;;  %11600 = vmatmul.mubr.msk.f32.vlgmr.msra.gmra.mrb[114].mxu0 %vm206_vm0, %v5825_v62  ;;  %11603 = vmatpush3.msra.mxu1 %v193_v11 }
 0x27b   :  { %v11902_v41 = vpop.eup %11901  ;;  %v5826_v50 = vmul.f32 %v11900_v12, %v13184_v9  ;;  %v5692_v10 = vpop.xlane.xlu1 %5691  ;;  %11604 = vmatprep.mubr.msk.f32.mxu1 %vm11926_vm1, %v14040_v63  ;;  %11608 = vmatpush3.msra.mxu0 %v194_v53  ;;  %v196_v9 = vld [vmem:[%s13997_s2 + $0x1b0] sm:$0xff] }
 0x27c   :  { %v5827_v61 = vmul.f32 %v11902_v41, %v14072_v32  ;;  %11911 = vrcp.f32 %v5692_v10  ;;  %v5695_v24 = vpop.xlane.xlu0 %5694  ;;  %11609 = vmatprep.mubr.msk.f32.mxu0 %vm11926_vm1, %v14040_v63  ;;  %11612 = vmatprep.subr.mxu1 %v14040_v63 }
 0x27d   :  { %11913 = vrcp.f32 %v5695_v24  ;;  %11605 = vmatmul.mubr.msk.f32.vlgmr.msra.gmra.mrb[114].mxu1 %vm206_vm0, %v5826_v50  ;;  %11617 = vmatprep.subr.mxu0 %v14040_v63 }
 0x27e   :  { %v11904_v30 = vpop.eup %11903  ;;  %11610 = vmatmul.mubr.msk.f32.vlgmr.msra.gmra.mrb[116].mxu0 %vm206_vm0, %v5827_v61  ;;  %11613 = vmatpush3.msra.mxu1 %v195_v45 }
 0x27f   :  { %v11906_v38 = vpop.eup %11905  ;;  %v5828_v2 = vmul.f32 %v11904_v30, %v13194_v60  ;;  %v5698_v1 = vpop.xlane.xlu1 %5697  ;;  %11614 = vmatprep.mubr.msk.f32.mxu1 %vm11926_vm1, %v14040_v63  ;;  %11618 = vmatpush3.msra.mxu0 %v196_v9  ;;  %v198_v60 = vld [vmem:[%s13997_s2 + $0x1c0] sm:$0xff] }
 0x280   :  { %v5829_v26 = vmul.f32 %v11906_v38, %v13196_v33  ;;  %11915 = vrcp.f32 %v5698_v1  ;;  %v5701_v17 = vpop.xlane.xlu0 %5700  ;;  %11619 = vmatprep.mubr.msk.f32.mxu0 %vm11926_vm1, %v14040_v63  ;;  %11622 = vmatprep.subr.mxu1 %v14040_v63 }
 0x281   :  { %11917 = vrcp.f32 %v5701_v17  ;;  %11615 = vmatmul.mubr.msk.f32.vlgmr.msra.gmra.mrb[116].mxu1 %vm206_vm0, %v5828_v2  ;;  %11627 = vmatprep.subr.mxu0 %v14040_v63 }
 0x282   :  { %v11908_v28 = vpop.eup %11907  ;;  %11620 = vmatmul.mubr.msk.f32.vlgmr.msra.gmra.mrb[118].mxu0 %vm206_vm0, %v5829_v26  ;;  %11623 = vmatpush3.msra.mxu1 %v197_v40 }
 0x283   :  { %v11910_v33 = vpop.eup %11909  ;;  %v5830_v49 = vmul.f32 %v11908_v28, %v13204_v0  ;;  %v5704_v23 = vpop.xlane.xlu1 %5703  ;;  %11624 = vmatprep.mubr.msk.f32.mxu1 %vm11926_vm1, %v14040_v63  ;;  %11628 = vmatpush3.msra.mxu0 %v198_v60  ;;  %v200_v0 = vld [vmem:[%s13997_s2 + $0x1d0] sm:$0xff] }
 0x284   :  { %v5831_v54 = vmul.f32 %v11910_v33, %v13206_v21  ;;  %11919 = vrcp.f32 %v5704_v23  ;;  %v5707_v19 = vpop.xlane.xlu0 %5706  ;;  %11629 = vmatprep.mubr.msk.f32.mxu0 %vm11926_vm1, %v14040_v63  ;;  %11632 = vmatprep.subr.mxu1 %v14040_v63 }
 0x285   :  { %11921 = vrcp.f32 %v5707_v19  ;;  %11625 = vmatmul.mubr.msk.f32.vlgmr.msra.gmra.mrb[118].mxu1 %vm206_vm0, %v5830_v49  ;;  %11637 = vmatprep.subr.mxu0 %v14040_v63 }
 0x286   :  { %v11912_v14 = vpop.eup %11911  ;;  %11630 = vmatmul.mubr.msk.f32.vlgmr.msra.gmra.mrb[120].mxu0 %vm206_vm0, %v5831_v54  ;;  %11633 = vmatpush3.msra.mxu1 %v199_v20 }
 0x287   :  { %v11914_v21 = vpop.eup %11913  ;;  %v5832_v16 = vmul.f32 %v11912_v14, %v13213_v56  ;;  %v5710_v58 = vpop.xlane.xlu1 %5709  ;;  %11634 = vmatprep.mubr.msk.f32.mxu1 %vm11926_vm1, %v14040_v63  ;;  %11638 = vmatpush3.msra.mxu0 %v200_v0  ;;  %v202_v56 = vld [vmem:[%s13997_s2 + $0x1e0] sm:$0xff] }
 0x288   :  { %v5833_v47 = vmul.f32 %v11914_v21, %v13215_v42  ;;  %11923 = vrcp.f32 %v5710_v58  ;;  %11639 = vmatprep.mubr.msk.f32.mxu0 %vm11926_vm1, %v14040_v63  ;;  %11642 = vmatprep.subr.mxu1 %v14040_v63  ;;  %v14073_v42 = vld [vmem:[#allocation9_spill] sm:$0xff] }
 0x289   :  { %11635 = vmatmul.mubr.msk.f32.vlgmr.msra.gmra.mrb[120].mxu1 %vm206_vm0, %v5832_v16  ;;  %11647 = vmatprep.subr.mxu0 %v14040_v63 }
 0x28a   :  { %v11916_v59 = vpop.eup %11915  ;;  %11640 = vmatmul.mubr.msk.f32.vlgmr.msra.gmra.mrb[122].mxu0 %vm206_vm0, %v5833_v47  ;;  %11643 = vmatpush3.msra.mxu1 %v201_v18 }
 0x28b   :  { %v11918_v43 = vpop.eup %11917  ;;  %v5834_v46 = vmul.f32 %v11916_v59, %v14073_v42  ;;  %11644 = vmatprep.mubr.msk.f32.mxu1 %vm11926_vm1, %v14040_v63  ;;  %11648 = vmatpush3.msra.mxu0 %v202_v56 }
 0x28c   :  { %v5835_v29 = vmul.f32 %v11918_v43, %v14074_v13  ;;  %11649 = vmatprep.mubr.msk.f32.mxu0 %vm11926_vm1, %v14040_v63  ;;  %11652 = vmatprep.subr.mxu1 %v14040_v63 }
 0x28d   :  { %11645 = vmatmul.mubr.msk.f32.vlgmr.msra.gmra.mrb[122].mxu1 %vm206_vm0, %v5834_v46  ;;  %11657 = vmatprep.subr.mxu0 %v14040_v63 }
 0x28e   :  { %v11920_v8 = vpop.eup %11919  ;;  %11650 = vmatmul.mubr.msk.f32.vlgmr.msra.gmra.mrb[124].mxu0 %vm206_vm0, %v5835_v29  ;;  %11653 = vmatpush3.msra.mxu1 %v203_v37 }
 0x28f   :  { %v11922_v3 = vpop.eup %11921  ;;  %v5836_v55 = vmul.f32 %v11920_v8, %v14075_v6  ;;  %11654 = vmatprep.mubr.msk.f32.mxu1 %vm11926_vm1, %v14040_v63  ;;  %11658 = vmatpush3.msra.mxu0 %v204_v7 }
 0x290   :  { %v5837_v44 = vmul.f32 %v11922_v3, %v14076_v35  ;;  %11659 = vmatprep.mubr.msk.f32.mxu0 %vm11926_vm1, %v14040_v63  ;;  %11662 = vmatprep.subr.mxu1 %v14040_v63 }
 0x291   :  { %11655 = vmatmul.mubr.msk.f32.vlgmr.msra.gmra.mrb[124].mxu1 %vm206_vm0, %v5836_v55 }
 0x292   :  { %v11924_v4 = vpop.eup %11923  ;;  %11660 = vmatmul.mubr.msk.f32.vlgmr.msra.gmra.mrb[126].mxu0 %vm206_vm0, %v5837_v44  ;;  %11663 = vmatpush3.msra.mxu1 %v205_v39 }
 0x293   :  { %v5838_v22 = vmul.f32 %v11924_v4, %v13237_v31  ;;  %11664 = vmatprep.mubr.msk.f32.mxu1 %vm11926_vm1, %v14040_v63 }
 0x295   :  { %11665 = vmatmul.mubr.msk.f32.vlgmr.msra.gmra.mrb[126].mxu1 %vm206_vm0, %v5838_v22 }
 0x2e8   :  { %v5908_v51 = vpop.f32.mrb[64].mxu0 }
 0x2e9   :  { %10511 = vst.msk [vmem:[%s13998_s3] sm:$0xff] %vm206_vm0, %v5908_v51  ;;  %v11351_v34 = vpop.f32.mrb[65].mxu0 }
 0x2ec   :  { %v5981_v48 = vpop.f32.mrb[64].mxu1 }
 0x2ed   :  { %10512 = vst.msk [vmem:[%s13998_s3 + $0x8] sm:$0xff] %vm206_vm0, %v5981_v48  ;;  %v6054_v25 = vpop.f32.mrb[66].mxu0  ;;  %v11356_v31 = vpop.f32.mrb[65].mxu1 }
 0x2ee   :  { %10513 = vst.msk [vmem:[%s13998_s3 + $0x10] sm:$0xff] %vm206_vm0, %v6054_v25  ;;  %v11361_v63 = vpop.f32.mrb[67].mxu0 }
 0x2f0   :  { %v6127_v27 = vpop.f32.mrb[66].mxu1 }
 0x2f1   :  { %10514 = vst.msk [vmem:[%s13998_s3 + $0x18] sm:$0xff] %vm206_vm0, %v6127_v27  ;;  %v6200_v57 = vpop.f32.mrb[68].mxu0  ;;  %v11366_v5 = vpop.f32.mrb[67].mxu1 }
 0x2f2   :  { %10515 = vst.msk [vmem:[%s13998_s3 + $0x20] sm:$0xff] %vm206_vm0, %v6200_v57  ;;  %v11371_v36 = vpop.f32.mrb[69].mxu0 }
 0x2f4   :  { %v6273_v11 = vpop.f32.mrb[68].mxu1 }
 0x2f5   :  { %10516 = vst.msk [vmem:[%s13998_s3 + $0x28] sm:$0xff] %vm206_vm0, %v6273_v11  ;;  %v6346_v52 = vpop.f32.mrb[70].mxu0  ;;  %v11376_v62 = vpop.f32.mrb[69].mxu1 }
 0x2f6   :  { %10517 = vst.msk [vmem:[%s13998_s3 + $0x30] sm:$0xff] %vm206_vm0, %v6346_v52  ;;  %v11381_v15 = vpop.f32.mrb[71].mxu0 }
 0x2f8   :  { %v6419_v53 = vpop.f32.mrb[70].mxu1 }
 0x2f9   :  { %10518 = vst.msk [vmem:[%s13998_s3 + $0x38] sm:$0xff] %vm206_vm0, %v6419_v53  ;;  %v6492_v12 = vpop.f32.mrb[72].mxu0  ;;  %v11386_v41 = vpop.f32.mrb[71].mxu1 }
 0x2fa   :  { %10519 = vst.msk [vmem:[%s13998_s3 + $0x40] sm:$0xff] %vm206_vm0, %v6492_v12  ;;  %v11391_v50 = vpop.f32.mrb[73].mxu0 }
 0x2fc   :  { %v6565_v10 = vpop.f32.mrb[72].mxu1 }
 0x2fd   :  { %10520 = vst.msk [vmem:[%s13998_s3 + $0x48] sm:$0xff] %vm206_vm0, %v6565_v10  ;;  %v6638_v45 = vpop.f32.mrb[74].mxu0  ;;  %v11396_v32 = vpop.f32.mrb[73].mxu1 }
 0x2fe   :  { %10521 = vst.msk [vmem:[%s13998_s3 + $0x50] sm:$0xff] %vm206_vm0, %v6638_v45  ;;  %v11401_v61 = vpop.f32.mrb[75].mxu0 }
 0x300   :  { %v6711_v24 = vpop.f32.mrb[74].mxu1 }
 0x301   :  { %10522 = vst.msk [vmem:[%s13998_s3 + $0x58] sm:$0xff] %vm206_vm0, %v6711_v24  ;;  %v6784_v9 = vpop.f32.mrb[76].mxu0  ;;  %v11406_v30 = vpop.f32.mrb[75].mxu1 }
 0x302   :  { %10523 = vst.msk [vmem:[%s13998_s3 + $0x60] sm:$0xff] %vm206_vm0, %v6784_v9  ;;  %v11411_v38 = vpop.f32.mrb[77].mxu0 }
 0x304   :  { %v6857_v2 = vpop.f32.mrb[76].mxu1 }
 0x305   :  { %10524 = vst.msk [vmem:[%s13998_s3 + $0x68] sm:$0xff] %vm206_vm0, %v6857_v2  ;;  %v6930_v1 = vpop.f32.mrb[78].mxu0  ;;  %v11416_v40 = vpop.f32.mrb[77].mxu1 }
 0x306   :  { %10525 = vst.msk [vmem:[%s13998_s3 + $0x70] sm:$0xff] %vm206_vm0, %v6930_v1  ;;  %v11421_v26 = vpop.f32.mrb[79].mxu0 }
 0x308   :  { %v7003_v17 = vpop.f32.mrb[78].mxu1 }
 0x309   :  { %10526 = vst.msk [vmem:[%s13998_s3 + $0x78] sm:$0xff] %vm206_vm0, %v7003_v17  ;;  %v7076_v60 = vpop.f32.mrb[80].mxu0  ;;  %v11426_v28 = vpop.f32.mrb[79].mxu1 }
 0x30a   :  { %10527 = vst.msk [vmem:[%s13998_s3 + $0x80] sm:$0xff] %vm206_vm0, %v7076_v60  ;;  %v11431_v33 = vpop.f32.mrb[81].mxu0 }
 0x30c   :  { %v7149_v49 = vpop.f32.mrb[80].mxu1 }
 0x30d   :  { %10528 = vst.msk [vmem:[%s13998_s3 + $0x88] sm:$0xff] %vm206_vm0, %v7149_v49  ;;  %v7222_v23 = vpop.f32.mrb[82].mxu0  ;;  %v11436_v20 = vpop.f32.mrb[81].mxu1 }
 0x30e   :  { %10529 = vst.msk [vmem:[%s13998_s3 + $0x90] sm:$0xff] %vm206_vm0, %v7222_v23  ;;  %v11441_v54 = vpop.f32.mrb[83].mxu0 }
 0x310   :  { %v7295_v19 = vpop.f32.mrb[82].mxu1 }
 0x311   :  { %10530 = vst.msk [vmem:[%s13998_s3 + $0x98] sm:$0xff] %vm206_vm0, %v7295_v19  ;;  %v7368_v0 = vpop.f32.mrb[84].mxu0  ;;  %v11446_v14 = vpop.f32.mrb[83].mxu1 }
 0x312   :  { %10531 = vst.msk [vmem:[%s13998_s3 + $0xa0] sm:$0xff] %vm206_vm0, %v7368_v0  ;;  %v11451_v21 = vpop.f32.mrb[85].mxu0 }
 0x314   :  { %v7441_v16 = vpop.f32.mrb[84].mxu1 }
 0x315   :  { %10532 = vst.msk [vmem:[%s13998_s3 + $0xa8] sm:$0xff] %vm206_vm0, %v7441_v16  ;;  %v7514_v58 = vpop.f32.mrb[86].mxu0  ;;  %v11456_v18 = vpop.f32.mrb[85].mxu1 }
 0x316   :  { %10533 = vst.msk [vmem:[%s13998_s3 + $0xb0] sm:$0xff] %vm206_vm0, %v7514_v58  ;;  %v11461_v47 = vpop.f32.mrb[87].mxu0 }
 0x318   :  { %v7587_v56 = vpop.f32.mrb[86].mxu1 }
 0x319   :  { %10534 = vst.msk [vmem:[%s13998_s3 + $0xb8] sm:$0xff] %vm206_vm0, %v7587_v56  ;;  %v7660_v59 = vpop.f32.mrb[88].mxu0  ;;  %v11466_v43 = vpop.f32.mrb[87].mxu1 }
 0x31a   :  { %10535 = vst.msk [vmem:[%s13998_s3 + $0xc0] sm:$0xff] %vm206_vm0, %v7660_v59  ;;  %v11471_v42 = vpop.f32.mrb[89].mxu0 }
 0x31c   :  { %v7733_v46 = vpop.f32.mrb[88].mxu1 }
 0x31d   :  { %10536 = vst.msk [vmem:[%s13998_s3 + $0xc8] sm:$0xff] %vm206_vm0, %v7733_v46  ;;  %v7806_v37 = vpop.f32.mrb[90].mxu0  ;;  %v11476_v13 = vpop.f32.mrb[89].mxu1 }
 0x31e   :  { %10537 = vst.msk [vmem:[%s13998_s3 + $0xd0] sm:$0xff] %vm206_vm0, %v7806_v37  ;;  %v11481_v29 = vpop.f32.mrb[91].mxu0 }
 0x320   :  { %v7879_v7 = vpop.f32.mrb[90].mxu1 }
 0x321   :  { %10538 = vst.msk [vmem:[%s13998_s3 + $0xd8] sm:$0xff] %vm206_vm0, %v7879_v7  ;;  %v7952_v8 = vpop.f32.mrb[92].mxu0  ;;  %v11486_v3 = vpop.f32.mrb[91].mxu1 }
 0x322   :  { %10539 = vst.msk [vmem:[%s13998_s3 + $0xe0] sm:$0xff] %vm206_vm0, %v7952_v8  ;;  %v11491_v6 = vpop.f32.mrb[93].mxu0 }
 0x324   :  { %v8025_v55 = vpop.f32.mrb[92].mxu1 }
 0x325   :  { %10540 = vst.msk [vmem:[%s13998_s3 + $0xe8] sm:$0xff] %vm206_vm0, %v8025_v55  ;;  %v8098_v39 = vpop.f32.mrb[94].mxu0  ;;  %v11496_v35 = vpop.f32.mrb[93].mxu1 }
 0x326   :  { %10541 = vst.msk [vmem:[%s13998_s3 + $0xf0] sm:$0xff] %vm206_vm0, %v8098_v39  ;;  %v11501_v44 = vpop.f32.mrb[95].mxu0 }
 0x328   :  { %v8171_v4 = vpop.f32.mrb[94].mxu1 }
 0x329   :  { %10542 = vst.msk [vmem:[%s13998_s3 + $0xf8] sm:$0xff] %vm206_vm0, %v8171_v4  ;;  %v8244_v22 = vpop.f32.mrb[96].mxu0  ;;  %v11506_v51 = vpop.f32.mrb[95].mxu1 }
 0x32a   :  { %10543 = vst.msk [vmem:[%s13998_s3 + $0x100] sm:$0xff] %vm206_vm0, %v8244_v22  ;;  %v11511_v34 = vpop.f32.mrb[97].mxu0 }
 0x32c   :  { %v8317_v48 = vpop.f32.mrb[96].mxu1 }
 0x32d   :  { %10544 = vst.msk [vmem:[%s13998_s3 + $0x108] sm:$0xff] %vm206_vm0, %v8317_v48  ;;  %v8390_v25 = vpop.f32.mrb[98].mxu0  ;;  %v11516_v31 = vpop.f32.mrb[97].mxu1 }
 0x32e   :  { %10545 = vst.msk [vmem:[%s13998_s3 + $0x110] sm:$0xff] %vm206_vm0, %v8390_v25  ;;  %v11521_v63 = vpop.f32.mrb[99].mxu0 }
 0x330   :  { %v8463_v27 = vpop.f32.mrb[98].mxu1 }
 0x331   :  { %10546 = vst.msk [vmem:[%s13998_s3 + $0x118] sm:$0xff] %vm206_vm0, %v8463_v27  ;;  %v8536_v57 = vpop.f32.mrb[100].mxu0  ;;  %v11526_v5 = vpop.f32.mrb[99].mxu1 }
 0x332   :  { %10547 = vst.msk [vmem:[%s13998_s3 + $0x120] sm:$0xff] %vm206_vm0, %v8536_v57  ;;  %v11531_v36 = vpop.f32.mrb[101].mxu0 }
 0x334   :  { %v8609_v11 = vpop.f32.mrb[100].mxu1 }
 0x335   :  { %10548 = vst.msk [vmem:[%s13998_s3 + $0x128] sm:$0xff] %vm206_vm0, %v8609_v11  ;;  %v8682_v52 = vpop.f32.mrb[102].mxu0  ;;  %v11536_v62 = vpop.f32.mrb[101].mxu1 }
 0x336   :  { %10549 = vst.msk [vmem:[%s13998_s3 + $0x130] sm:$0xff] %vm206_vm0, %v8682_v52  ;;  %v11541_v15 = vpop.f32.mrb[103].mxu0 }
 0x338   :  { %v8755_v53 = vpop.f32.mrb[102].mxu1 }
 0x339   :  { %10550 = vst.msk [vmem:[%s13998_s3 + $0x138] sm:$0xff] %vm206_vm0, %v8755_v53  ;;  %v8828_v12 = vpop.f32.mrb[104].mxu0  ;;  %v11546_v41 = vpop.f32.mrb[103].mxu1 }
 0x33a   :  { %10551 = vst.msk [vmem:[%s13998_s3 + $0x140] sm:$0xff] %vm206_vm0, %v8828_v12  ;;  %v11551_v50 = vpop.f32.mrb[105].mxu0 }
 0x33c   :  { %v8901_v10 = vpop.f32.mrb[104].mxu1 }
 0x33d   :  { %10552 = vst.msk [vmem:[%s13998_s3 + $0x148] sm:$0xff] %vm206_vm0, %v8901_v10  ;;  %v8974_v45 = vpop.f32.mrb[106].mxu0  ;;  %v11556_v32 = vpop.f32.mrb[105].mxu1 }
 0x33e   :  { %10553 = vst.msk [vmem:[%s13998_s3 + $0x150] sm:$0xff] %vm206_vm0, %v8974_v45  ;;  %v11561_v61 = vpop.f32.mrb[107].mxu0 }
 0x340   :  { %v9047_v24 = vpop.f32.mrb[106].mxu1 }
 0x341   :  { %10554 = vst.msk [vmem:[%s13998_s3 + $0x158] sm:$0xff] %vm206_vm0, %v9047_v24  ;;  %v9120_v9 = vpop.f32.mrb[108].mxu0  ;;  %v11566_v30 = vpop.f32.mrb[107].mxu1 }
 0x342   :  { %10555 = vst.msk [vmem:[%s13998_s3 + $0x160] sm:$0xff] %vm206_vm0, %v9120_v9  ;;  %v11571_v38 = vpop.f32.mrb[109].mxu0 }
 0x344   :  { %v9193_v2 = vpop.f32.mrb[108].mxu1 }
 0x345   :  { %10556 = vst.msk [vmem:[%s13998_s3 + $0x168] sm:$0xff] %vm206_vm0, %v9193_v2  ;;  %v9266_v1 = vpop.f32.mrb[110].mxu0  ;;  %v11576_v40 = vpop.f32.mrb[109].mxu1 }
 0x346   :  { %10557 = vst.msk [vmem:[%s13998_s3 + $0x170] sm:$0xff] %vm206_vm0, %v9266_v1  ;;  %v11581_v26 = vpop.f32.mrb[111].mxu0 }
 0x348   :  { %v9339_v17 = vpop.f32.mrb[110].mxu1 }
 0x349   :  { %10558 = vst.msk [vmem:[%s13998_s3 + $0x178] sm:$0xff] %vm206_vm0, %v9339_v17  ;;  %v9412_v60 = vpop.f32.mrb[112].mxu0  ;;  %v11586_v28 = vpop.f32.mrb[111].mxu1 }
 0x34a   :  { %10559 = vst.msk [vmem:[%s13998_s3 + $0x180] sm:$0xff] %vm206_vm0, %v9412_v60  ;;  %v11591_v33 = vpop.f32.mrb[113].mxu0 }
 0x34c   :  { %v9485_v49 = vpop.f32.mrb[112].mxu1 }
 0x34d   :  { %10560 = vst.msk [vmem:[%s13998_s3 + $0x188] sm:$0xff] %vm206_vm0, %v9485_v49  ;;  %v9558_v23 = vpop.f32.mrb[114].mxu0  ;;  %v11596_v20 = vpop.f32.mrb[113].mxu1 }
 0x34e   :  { %10561 = vst.msk [vmem:[%s13998_s3 + $0x190] sm:$0xff] %vm206_vm0, %v9558_v23  ;;  %v11601_v54 = vpop.f32.mrb[115].mxu0 }
 0x350   :  { %v9631_v19 = vpop.f32.mrb[114].mxu1 }
 0x351   :  { %10562 = vst.msk [vmem:[%s13998_s3 + $0x198] sm:$0xff] %vm206_vm0, %v9631_v19  ;;  %v9704_v0 = vpop.f32.mrb[116].mxu0  ;;  %v11606_v14 = vpop.f32.mrb[115].mxu1 }
 0x352   :  { %10563 = vst.msk [vmem:[%s13998_s3 + $0x1a0] sm:$0xff] %vm206_vm0, %v9704_v0  ;;  %v11611_v21 = vpop.f32.mrb[117].mxu0 }
 0x354   :  { %v9777_v16 = vpop.f32.mrb[116].mxu1 }
 0x355   :  { %10564 = vst.msk [vmem:[%s13998_s3 + $0x1a8] sm:$0xff] %vm206_vm0, %v9777_v16  ;;  %v9850_v58 = vpop.f32.mrb[118].mxu0  ;;  %v11616_v18 = vpop.f32.mrb[117].mxu1 }
 0x356   :  { %10565 = vst.msk [vmem:[%s13998_s3 + $0x1b0] sm:$0xff] %vm206_vm0, %v9850_v58  ;;  %v11621_v47 = vpop.f32.mrb[119].mxu0 }
 0x358   :  { %v9923_v56 = vpop.f32.mrb[118].mxu1 }
 0x359   :  { %10566 = vst.msk [vmem:[%s13998_s3 + $0x1b8] sm:$0xff] %vm206_vm0, %v9923_v56  ;;  %v9996_v59 = vpop.f32.mrb[120].mxu0  ;;  %v11626_v43 = vpop.f32.mrb[119].mxu1 }
 0x35a   :  { %10567 = vst.msk [vmem:[%s13998_s3 + $0x1c0] sm:$0xff] %vm206_vm0, %v9996_v59  ;;  %v11631_v42 = vpop.f32.mrb[121].mxu0 }
 0x35c   :  { %v10069_v46 = vpop.f32.mrb[120].mxu1 }
 0x35d   :  { %10568 = vst.msk [vmem:[%s13998_s3 + $0x1c8] sm:$0xff] %vm206_vm0, %v10069_v46  ;;  %v10142_v37 = vpop.f32.mrb[122].mxu0  ;;  %v11636_v13 = vpop.f32.mrb[121].mxu1 }
 0x35e   :  { %10569 = vst.msk [vmem:[%s13998_s3 + $0x1d0] sm:$0xff] %vm206_vm0, %v10142_v37  ;;  %v11641_v29 = vpop.f32.mrb[123].mxu0 }
 0x360   :  { %v10215_v7 = vpop.f32.mrb[122].mxu1 }
 0x361   :  { %10570 = vst.msk [vmem:[%s13998_s3 + $0x1d8] sm:$0xff] %vm206_vm0, %v10215_v7  ;;  %v10288_v8 = vpop.f32.mrb[124].mxu0  ;;  %v11646_v3 = vpop.f32.mrb[123].mxu1 }
 0x362   :  { %10571 = vst.msk [vmem:[%s13998_s3 + $0x1e0] sm:$0xff] %vm206_vm0, %v10288_v8  ;;  %v11651_v6 = vpop.f32.mrb[125].mxu0 }
 0x364   :  { %v10361_v55 = vpop.f32.mrb[124].mxu1 }
 0x365   :  { %10572 = vst.msk [vmem:[%s13998_s3 + $0x1e8] sm:$0xff] %vm206_vm0, %v10361_v55  ;;  %v10434_v39 = vpop.f32.mrb[126].mxu0  ;;  %v11656_v35 = vpop.f32.mrb[125].mxu1 }
 0x366   :  { %10573 = vst.msk [vmem:[%s13998_s3 + $0x1f0] sm:$0xff] %vm206_vm0, %v10434_v39  ;;  %v11661_v44 = vpop.f32.mrb[127].mxu0 }
 0x368   :  { %v10507_v4 = vpop.f32.mrb[126].mxu1 }
 0x369   :  { %10574 = vst.msk [vmem:[%s13998_s3 + $0x1f8] sm:$0xff] %vm206_vm0, %v10507_v4  ;;  %v11666_v22 = vpop.f32.mrb[127].mxu1 }

// kernel: run.36
= control target key start
LH: loop header
LB: loop body
LE: loop exit
PB: predicated region body
PF: predicated region fallthrough
CT: control target
= control target key end

     0   :  { %s12518_s12 = smov 0   ;;  %s14155_s0 = inlined_call_operand.vmem [shape: f32[128,4,8], index: 0, kind: input, shape index: {}]   ;;  %s14156_s1 = inlined_call_operand.vmem [shape: f32[128,4,8], index: 1, kind: input, shape index: {}]   ;;  %s14157_s2 = inlined_call_operand.vmem [shape: f32[128,4,8], index: 2, kind: input, shape index: {}]   ;;  %s14158_s3 = inlined_call_operand.vmem [shape: f32[128,4,8], index: 3, kind: output, shape index: {}]  }
   0x1 LB: > { %s11055_s13 = sadd.s32 4294967295, %s12494_s12   ;;  %p11059_p0 = scmp.ge.s32.totalorder %s12494_s12, 1  ;;  %s12494_s12 = sphi %s12518_s12, %s13_s12  }
   0x2   : > { %p160_p1 = scmp.lt.s32.totalorder %s12494_s12, 3 }
   0x4   : > { %p161_p2 = pnand %p11059_p0, %p160_p1 }
   0x6   : > { %164 = sbr.rel (%p161_p2) target bundleno = 892 (0x37c), region = 32 }
   0xd   : > { %s11060_s14 = sshll.u32 %s11055_s13, 6  ;;  %v14159_v0 = vmov 0.0   ;;  %vm12497_vm0 = vmmov 0   ;;  %vm410_vm1 = vcmask 64512   ;;  %vm5339_vm2 = vcmask 27648  }
   0xe   : > { %11582 = vmatprep.subr.mxu0 %v14159_v0  ;;  %p195_p3 = scmp.lt.s32.totalorder %s11060_s14, 127  ;;  %11584 = vmatprep.mubr.msk.f32.mxu0 %vm12497_vm0, %v14159_v0  ;;  %vm6048_vm3 = vcmask 1043456   ;;  %vm6044_vm4 = vcmask 31744   ;;  %vm10910_vm5 = vcmask 60416  }
   0xf   : > { %11587 = vmatprep.subr.mxu1 %v14159_v0  ;;  %11589 = vmatprep.mubr.msk.f32.mxu1 %vm12497_vm0, %v14159_v0 }
  0x10   : > { %s14238_s14 = smov (!%p195_p3, %s11060_s14), 127 }
  0x11   : > { %s12532_s15 = sshll.u32 %s14238_s14, 2 }
  0x12   : > { %s12538_s18 = scalar_lea.vmem %s14156_s1, %s12532_s15  ;;  %s12544_s21 = scalar_lea.vmem %s14155_s0, %s12532_s15 }
  0x13   : > { %v282_v1 = vld [vmem:[%s12538_s18] sm:$0xf]  ;;  %v283_v2 = vld [vmem:[%s12538_s18 + $0x4] sm:$0xf]  ;;  %v284_v5 = vld [vmem:[%s12538_s18 + $0x8] sm:$0xf]  ;;  %s13327_s24 = scalar_lea.vmem %s14157_s2, %s12532_s15  ;;  %s14022_s27 = scalar_lea.vmem %s14158_s3, %s12532_s15 }
  0x14   : > { %11583 = vmatpush3.xpose.msk.msra.mxu0 %vm410_vm1, %v282_v1  ;;  %v218_v3 = vld [vmem:[%s12544_s21] sm:$0xf]  ;;  %11588 = vmatpush3.xpose.msk.msra.mxu1 %vm410_vm1, %v283_v2  ;;  %v219_v4 = vld [vmem:[%s12544_s21 + $0x4] sm:$0xf]  ;;  %v285_v6 = vld [vmem:[%s12538_s18 + $0xc] sm:$0xf] }
  0x15   : > { %11592 = vmatprep.subr.mxu0 %v14159_v0  ;;  %11597 = vmatprep.subr.mxu1 %v14159_v0  ;;  %v220_v7 = vld [vmem:[%s12544_s21 + $0x8] sm:$0xf]  ;;  %v286_v8 = vld [vmem:[%s12538_s18 + $0x10] sm:$0xf]  ;;  %v221_v9 = vld [vmem:[%s12544_s21 + $0xc] sm:$0xf] }
  0x16   : > { %v287_v10 = vld [vmem:[%s12538_s18 + $0x14] sm:$0xf]  ;;  %v222_v11 = vld [vmem:[%s12544_s21 + $0x10] sm:$0xf]  ;;  %v288_v12 = vld [vmem:[%s12538_s18 + $0x18] sm:$0xf] }
  0x17   : > { %11585 = vmatmul.mubr.msk.f32.vlgmr.msra.gmra.mrb[0].mxu0 %vm410_vm1, %v218_v3  ;;  %11590 = vmatmul.mubr.msk.f32.vlgmr.msra.gmra.mrb[0].mxu1 %vm410_vm1, %v219_v4  ;;  %v223_v13 = vld [vmem:[%s12544_s21 + $0x14] sm:$0xf]  ;;  %v289_v14 = vld [vmem:[%s12538_s18 + $0x1c] sm:$0xf]  ;;  %v224_v15 = vld [vmem:[%s12544_s21 + $0x18] sm:$0xf] }
  0x18   : > { %11593 = vmatpush3.xpose.msk.msra.mxu0 %vm410_vm1, %v284_v5  ;;  %11594 = vmatprep.mubr.msk.f32.mxu0 %vm12497_vm0, %v14159_v0  ;;  %v290_v16 = vld [vmem:[%s12538_s18 + $0x20] sm:$0xf]  ;;  %v225_v17 = vld [vmem:[%s12544_s21 + $0x1c] sm:$0xf]  ;;  %v291_v18 = vld [vmem:[%s12538_s18 + $0x24] sm:$0xf] }
  0x19   : > { %11602 = vmatprep.subr.mxu0 %v14159_v0  ;;  %11598 = vmatpush3.xpose.msk.msra.mxu1 %vm410_vm1, %v285_v6  ;;  %v226_v19 = vld [vmem:[%s12544_s21 + $0x20] sm:$0xf]  ;;  %v292_v20 = vld [vmem:[%s12538_s18 + $0x28] sm:$0xf]  ;;  %v227_v21 = vld [vmem:[%s12544_s21 + $0x24] sm:$0xf] }
  0x1a   : > { %11599 = vmatprep.mubr.msk.f32.mxu1 %vm12497_vm0, %v14159_v0  ;;  %11607 = vmatprep.subr.mxu1 %v14159_v0  ;;  %v293_v22 = vld [vmem:[%s12538_s18 + $0x2c] sm:$0xf]  ;;  %v228_v23 = vld [vmem:[%s12544_s21 + $0x28] sm:$0xf]  ;;  %v294_v24 = vld [vmem:[%s12538_s18 + $0x30] sm:$0xf] }
  0x1b   : > { %11595 = vmatmul.mubr.msk.f32.vlgmr.msra.gmra.mrb[2].mxu0 %vm410_vm1, %v220_v7  ;;  %v229_v25 = vld [vmem:[%s12544_s21 + $0x2c] sm:$0xf]  ;;  %v295_v26 = vld [vmem:[%s12538_s18 + $0x34] sm:$0xf]  ;;  %v230_v27 = vld [vmem:[%s12544_s21 + $0x30] sm:$0xf] }
  0x1c   : > { %11603 = vmatpush3.xpose.msk.msra.mxu0 %vm410_vm1, %v286_v8  ;;  %11604 = vmatprep.mubr.msk.f32.mxu0 %vm12497_vm0, %v14159_v0  ;;  %v296_v28 = vld [vmem:[%s12538_s18 + $0x38] sm:$0xf]  ;;  %v231_v29 = vld [vmem:[%s12544_s21 + $0x34] sm:$0xf]  ;;  %v297_v30 = vld [vmem:[%s12538_s18 + $0x3c] sm:$0xf] }
  0x1d   : > { %11600 = vmatmul.mubr.msk.f32.vlgmr.msra.gmra.mrb[2].mxu1 %vm410_vm1, %v221_v9  ;;  %11612 = vmatprep.subr.mxu0 %v14159_v0  ;;  %v232_v31 = vld [vmem:[%s12544_s21 + $0x38] sm:$0xf]  ;;  %v298_v32 = vld [vmem:[%s12538_s18 + $0x40] sm:$0xf]  ;;  %v233_v33 = vld [vmem:[%s12544_s21 + $0x3c] sm:$0xf] }
  0x1e   : > { %11608 = vmatpush3.xpose.msk.msra.mxu1 %vm410_vm1, %v287_v10  ;;  %11609 = vmatprep.mubr.msk.f32.mxu1 %vm12497_vm0, %v14159_v0  ;;  %v299_v34 = vld [vmem:[%s12538_s18 + $0x44] sm:$0xf]  ;;  %v234_v35 = vld [vmem:[%s12544_s21 + $0x40] sm:$0xf]  ;;  %v300_v36 = vld [vmem:[%s12538_s18 + $0x48] sm:$0xf] }
  0x1f   : > { %11605 = vmatmul.mubr.msk.f32.vlgmr.msra.gmra.mrb[4].mxu0 %vm410_vm1, %v222_v11  ;;  %11617 = vmatprep.subr.mxu1 %v14159_v0  ;;  %v235_v37 = vld [vmem:[%s12544_s21 + $0x44] sm:$0xf]  ;;  %v301_v38 = vld [vmem:[%s12538_s18 + $0x4c] sm:$0xf]  ;;  %v236_v39 = vld [vmem:[%s12544_s21 + $0x48] sm:$0xf] }
  0x20   : > { %11613 = vmatpush3.xpose.msk.msra.mxu0 %vm410_vm1, %v288_v12  ;;  %11614 = vmatprep.mubr.msk.f32.mxu0 %vm12497_vm0, %v14159_v0  ;;  %v302_v40 = vld [vmem:[%s12538_s18 + $0x50] sm:$0xf]  ;;  %v237_v41 = vld [vmem:[%s12544_s21 + $0x4c] sm:$0xf]  ;;  %v303_v42 = vld [vmem:[%s12538_s18 + $0x54] sm:$0xf] }
  0x21   : > { %11610 = vmatmul.mubr.msk.f32.vlgmr.msra.gmra.mrb[4].mxu1 %vm410_vm1, %v223_v13  ;;  %11622 = vmatprep.subr.mxu0 %v14159_v0  ;;  %v238_v43 = vld [vmem:[%s12544_s21 + $0x50] sm:$0xf]  ;;  %v304_v44 = vld [vmem:[%s12538_s18 + $0x58] sm:$0xf]  ;;  %v239_v45 = vld [vmem:[%s12544_s21 + $0x54] sm:$0xf] }
  0x22   : > { %11618 = vmatpush3.xpose.msk.msra.mxu1 %vm410_vm1, %v289_v14  ;;  %11619 = vmatprep.mubr.msk.f32.mxu1 %vm12497_vm0, %v14159_v0  ;;  %v305_v46 = vld [vmem:[%s12538_s18 + $0x5c] sm:$0xf]  ;;  %v240_v47 = vld [vmem:[%s12544_s21 + $0x58] sm:$0xf]  ;;  %v306_v48 = vld [vmem:[%s12538_s18 + $0x60] sm:$0xf] }
  0x23   : > { %11615 = vmatmul.mubr.msk.f32.vlgmr.msra.gmra.mrb[6].mxu0 %vm410_vm1, %v224_v15  ;;  %11627 = vmatprep.subr.mxu1 %v14159_v0  ;;  %v241_v49 = vld [vmem:[%s12544_s21 + $0x5c] sm:$0xf]  ;;  %v307_v50 = vld [vmem:[%s12538_s18 + $0x64] sm:$0xf]  ;;  %v242_v51 = vld [vmem:[%s12544_s21 + $0x60] sm:$0xf] }
  0x24   : > { %11623 = vmatpush3.xpose.msk.msra.mxu0 %vm410_vm1, %v290_v16  ;;  %11624 = vmatprep.mubr.msk.f32.mxu0 %vm12497_vm0, %v14159_v0  ;;  %v308_v52 = vld [vmem:[%s12538_s18 + $0x68] sm:$0xf]  ;;  %v243_v53 = vld [vmem:[%s12544_s21 + $0x64] sm:$0xf]  ;;  %v309_v54 = vld [vmem:[%s12538_s18 + $0x6c] sm:$0xf] }
  0x25   : > { %11620 = vmatmul.mubr.msk.f32.vlgmr.msra.gmra.mrb[6].mxu1 %vm410_vm1, %v225_v17  ;;  %11632 = vmatprep.subr.mxu0 %v14159_v0  ;;  %v244_v55 = vld [vmem:[%s12544_s21 + $0x68] sm:$0xf]  ;;  %v310_v56 = vld [vmem:[%s12538_s18 + $0x70] sm:$0xf]  ;;  %v245_v57 = vld [vmem:[%s12544_s21 + $0x6c] sm:$0xf] }
  0x26   : > { %11628 = vmatpush3.xpose.msk.msra.mxu1 %vm410_vm1, %v291_v18  ;;  %11629 = vmatprep.mubr.msk.f32.mxu1 %vm12497_vm0, %v14159_v0  ;;  %v311_v58 = vld [vmem:[%s12538_s18 + $0x74] sm:$0xf]  ;;  %v246_v59 = vld [vmem:[%s12544_s21 + $0x70] sm:$0xf]  ;;  %v312_v60 = vld [vmem:[%s12538_s18 + $0x78] sm:$0xf] }
  0x27   : > { %11625 = vmatmul.mubr.msk.f32.vlgmr.msra.gmra.mrb[8].mxu0 %vm410_vm1, %v226_v19  ;;  %11637 = vmatprep.subr.mxu1 %v14159_v0  ;;  %v247_v61 = vld [vmem:[%s12544_s21 + $0x74] sm:$0xf]  ;;  %v313_v62 = vld [vmem:[%s12538_s18 + $0x7c] sm:$0xf]  ;;  %v248_v63 = vld [vmem:[%s12544_s21 + $0x78] sm:$0xf] }
  0x28   : > { %11633 = vmatpush3.xpose.msk.msra.mxu0 %vm410_vm1, %v292_v20  ;;  %11634 = vmatprep.mubr.msk.f32.mxu0 %vm12497_vm0, %v14159_v0  ;;  %v314_v1 = vld [vmem:[%s12538_s18 + $0x80] sm:$0xf]  ;;  %v249_v2 = vld [vmem:[%s12544_s21 + $0x7c] sm:$0xf]  ;;  %v315_v3 = vld [vmem:[%s12538_s18 + $0x84] sm:$0xf] }
  0x29   : > { %11630 = vmatmul.mubr.msk.f32.vlgmr.msra.gmra.mrb[8].mxu1 %vm410_vm1, %v227_v21  ;;  %11642 = vmatprep.subr.mxu0 %v14159_v0  ;;  %v250_v4 = vld [vmem:[%s12544_s21 + $0x80] sm:$0xf]  ;;  %v316_v5 = vld [vmem:[%s12538_s18 + $0x88] sm:$0xf]  ;;  %v251_v6 = vld [vmem:[%s12544_s21 + $0x84] sm:$0xf] }
  0x2a   : > { %11638 = vmatpush3.xpose.msk.msra.mxu1 %vm410_vm1, %v293_v22  ;;  %11639 = vmatprep.mubr.msk.f32.mxu1 %vm12497_vm0, %v14159_v0  ;;  %v317_v7 = vld [vmem:[%s12538_s18 + $0x8c] sm:$0xf]  ;;  %v252_v8 = vld [vmem:[%s12544_s21 + $0x88] sm:$0xf]  ;;  %v318_v9 = vld [vmem:[%s12538_s18 + $0x90] sm:$0xf] }
  0x2b   : > { %11635 = vmatmul.mubr.msk.f32.vlgmr.msra.gmra.mrb[10].mxu0 %vm410_vm1, %v228_v23  ;;  %11647 = vmatprep.subr.mxu1 %v14159_v0  ;;  %v253_v10 = vld [vmem:[%s12544_s21 + $0x8c] sm:$0xf]  ;;  %v319_v11 = vld [vmem:[%s12538_s18 + $0x94] sm:$0xf]  ;;  %v254_v12 = vld [vmem:[%s12544_s21 + $0x90] sm:$0xf] }
  0x2c   : > { %11643 = vmatpush3.xpose.msk.msra.mxu0 %vm410_vm1, %v294_v24  ;;  %11644 = vmatprep.mubr.msk.f32.mxu0 %vm12497_vm0, %v14159_v0  ;;  %v320_v13 = vld [vmem:[%s12538_s18 + $0x98] sm:$0xf]  ;;  %v255_v14 = vld [vmem:[%s12544_s21 + $0x94] sm:$0xf]  ;;  %v321_v15 = vld [vmem:[%s12538_s18 + $0x9c] sm:$0xf] }
  0x2d   : > { %11640 = vmatmul.mubr.msk.f32.vlgmr.msra.gmra.mrb[10].mxu1 %vm410_vm1, %v229_v25  ;;  %11652 = vmatprep.subr.mxu0 %v14159_v0  ;;  %v256_v16 = vld [vmem:[%s12544_s21 + $0x98] sm:$0xf]  ;;  %v322_v17 = vld [vmem:[%s12538_s18 + $0xa0] sm:$0xf]  ;;  %v257_v18 = vld [vmem:[%s12544_s21 + $0x9c] sm:$0xf] }
  0x2e   : > { %11648 = vmatpush3.xpose.msk.msra.mxu1 %vm410_vm1, %v295_v26  ;;  %11649 = vmatprep.mubr.msk.f32.mxu1 %vm12497_vm0, %v14159_v0  ;;  %v323_v19 = vld [vmem:[%s12538_s18 + $0xa4] sm:$0xf]  ;;  %v258_v20 = vld [vmem:[%s12544_s21 + $0xa0] sm:$0xf]  ;;  %v324_v21 = vld [vmem:[%s12538_s18 + $0xa8] sm:$0xf] }
  0x2f   : > { %11645 = vmatmul.mubr.msk.f32.vlgmr.msra.gmra.mrb[12].mxu0 %vm410_vm1, %v230_v27  ;;  %11657 = vmatprep.subr.mxu1 %v14159_v0  ;;  %v259_v22 = vld [vmem:[%s12544_s21 + $0xa4] sm:$0xf]  ;;  %v325_v23 = vld [vmem:[%s12538_s18 + $0xac] sm:$0xf]  ;;  %v260_v24 = vld [vmem:[%s12544_s21 + $0xa8] sm:$0xf] }
  0x30   : > { %11653 = vmatpush3.xpose.msk.msra.mxu0 %vm410_vm1, %v296_v28  ;;  %11654 = vmatprep.mubr.msk.f32.mxu0 %vm12497_vm0, %v14159_v0  ;;  %v326_v25 = vld [vmem:[%s12538_s18 + $0xb0] sm:$0xf]  ;;  %v261_v26 = vld [vmem:[%s12544_s21 + $0xac] sm:$0xf]  ;;  %v327_v27 = vld [vmem:[%s12538_s18 + $0xb4] sm:$0xf] }
  0x31   : > { %11650 = vmatmul.mubr.msk.f32.vlgmr.msra.gmra.mrb[12].mxu1 %vm410_vm1, %v231_v29  ;;  %11662 = vmatprep.subr.mxu0 %v14159_v0  ;;  %v262_v28 = vld [vmem:[%s12544_s21 + $0xb0] sm:$0xf]  ;;  %v328_v29 = vld [vmem:[%s12538_s18 + $0xb8] sm:$0xf] }
  0x32   : > { %11658 = vmatpush3.xpose.msk.msra.mxu1 %vm410_vm1, %v297_v30  ;;  %11659 = vmatprep.mubr.msk.f32.mxu1 %vm12497_vm0, %v14159_v0  ;;  %v263_v30 = vld [vmem:[%s12544_s21 + $0xb4] sm:$0xf] }
  0x33   : > { %11655 = vmatmul.mubr.msk.f32.vlgmr.msra.gmra.mrb[14].mxu0 %vm410_vm1, %v232_v31  ;;  %11667 = vmatprep.subr.mxu1 %v14159_v0  ;;  %v329_v31 = vld [vmem:[%s12538_s18 + $0xbc] sm:$0xf] }
  0x34   : > { %11663 = vmatpush3.xpose.msk.msra.mxu0 %vm410_vm1, %v298_v32  ;;  %11664 = vmatprep.mubr.msk.f32.mxu0 %vm12497_vm0, %v14159_v0  ;;  %v264_v32 = vld [vmem:[%s12544_s21 + $0xb8] sm:$0xf] }
  0x35   : > { %11660 = vmatmul.mubr.msk.f32.vlgmr.msra.gmra.mrb[14].mxu1 %vm410_vm1, %v233_v33  ;;  %11672 = vmatprep.subr.mxu0 %v14159_v0  ;;  %v330_v33 = vld [vmem:[%s12538_s18 + $0xc0] sm:$0xf] }
  0x36   : > { %11668 = vmatpush3.xpose.msk.msra.mxu1 %vm410_vm1, %v299_v34  ;;  %11669 = vmatprep.mubr.msk.f32.mxu1 %vm12497_vm0, %v14159_v0  ;;  %v265_v34 = vld [vmem:[%s12544_s21 + $0xbc] sm:$0xf] }
  0x37   : > { %11665 = vmatmul.mubr.msk.f32.vlgmr.msra.gmra.mrb[16].mxu0 %vm410_vm1, %v234_v35  ;;  %11677 = vmatprep.subr.mxu1 %v14159_v0  ;;  %v331_v35 = vld [vmem:[%s12538_s18 + $0xc4] sm:$0xf] }
  0x38   : > { %11673 = vmatpush3.xpose.msk.msra.mxu0 %vm410_vm1, %v300_v36  ;;  %11674 = vmatprep.mubr.msk.f32.mxu0 %vm12497_vm0, %v14159_v0  ;;  %v266_v36 = vld [vmem:[%s12544_s21 + $0xc0] sm:$0xf] }
  0x39   : > { %11670 = vmatmul.mubr.msk.f32.vlgmr.msra.gmra.mrb[16].mxu1 %vm410_vm1, %v235_v37  ;;  %11682 = vmatprep.subr.mxu0 %v14159_v0  ;;  %v332_v37 = vld [vmem:[%s12538_s18 + $0xc8] sm:$0xf] }
  0x3a   : > { %11678 = vmatpush3.xpose.msk.msra.mxu1 %vm410_vm1, %v301_v38  ;;  %11679 = vmatprep.mubr.msk.f32.mxu1 %vm12497_vm0, %v14159_v0  ;;  %v267_v38 = vld [vmem:[%s12544_s21 + $0xc4] sm:$0xf] }
  0x3b   : > { %11675 = vmatmul.mubr.msk.f32.vlgmr.msra.gmra.mrb[18].mxu0 %vm410_vm1, %v236_v39  ;;  %11687 = vmatprep.subr.mxu1 %v14159_v0  ;;  %v333_v39 = vld [vmem:[%s12538_s18 + $0xcc] sm:$0xf] }
  0x3c   : > { %11683 = vmatpush3.xpose.msk.msra.mxu0 %vm410_vm1, %v302_v40  ;;  %11684 = vmatprep.mubr.msk.f32.mxu0 %vm12497_vm0, %v14159_v0  ;;  %v268_v40 = vld [vmem:[%s12544_s21 + $0xc8] sm:$0xf] }
  0x3d   : > { %11680 = vmatmul.mubr.msk.f32.vlgmr.msra.gmra.mrb[18].mxu1 %vm410_vm1, %v237_v41  ;;  %11692 = vmatprep.subr.mxu0 %v14159_v0  ;;  %v334_v41 = vld [vmem:[%s12538_s18 + $0xd0] sm:$0xf] }
  0x3e   : > { %11688 = vmatpush3.xpose.msk.msra.mxu1 %vm410_vm1, %v303_v42  ;;  %11689 = vmatprep.mubr.msk.f32.mxu1 %vm12497_vm0, %v14159_v0  ;;  %v269_v42 = vld [vmem:[%s12544_s21 + $0xcc] sm:$0xf] }
  0x3f   : > { %11685 = vmatmul.mubr.msk.f32.vlgmr.msra.gmra.mrb[20].mxu0 %vm410_vm1, %v238_v43  ;;  %11697 = vmatprep.subr.mxu1 %v14159_v0  ;;  %v335_v43 = vld [vmem:[%s12538_s18 + $0xd4] sm:$0xf] }
  0x40   : > { %11693 = vmatpush3.xpose.msk.msra.mxu0 %vm410_vm1, %v304_v44  ;;  %11694 = vmatprep.mubr.msk.f32.mxu0 %vm12497_vm0, %v14159_v0  ;;  %v270_v44 = vld [vmem:[%s12544_s21 + $0xd0] sm:$0xf] }
  0x41   : > { %11690 = vmatmul.mubr.msk.f32.vlgmr.msra.gmra.mrb[20].mxu1 %vm410_vm1, %v239_v45  ;;  %11702 = vmatprep.subr.mxu0 %v14159_v0  ;;  %v336_v45 = vld [vmem:[%s12538_s18 + $0xd8] sm:$0xf] }
  0x42   : > { %11698 = vmatpush3.xpose.msk.msra.mxu1 %vm410_vm1, %v305_v46  ;;  %11699 = vmatprep.mubr.msk.f32.mxu1 %vm12497_vm0, %v14159_v0  ;;  %v271_v46 = vld [vmem:[%s12544_s21 + $0xd4] sm:$0xf] }
  0x43   : > { %11695 = vmatmul.mubr.msk.f32.vlgmr.msra.gmra.mrb[22].mxu0 %vm410_vm1, %v240_v47  ;;  %11707 = vmatprep.subr.mxu1 %v14159_v0  ;;  %v337_v47 = vld [vmem:[%s12538_s18 + $0xdc] sm:$0xf] }
  0x44   : > { %11703 = vmatpush3.xpose.msk.msra.mxu0 %vm410_vm1, %v306_v48  ;;  %11704 = vmatprep.mubr.msk.f32.mxu0 %vm12497_vm0, %v14159_v0  ;;  %v272_v48 = vld [vmem:[%s12544_s21 + $0xd8] sm:$0xf] }
  0x45   : > { %11700 = vmatmul.mubr.msk.f32.vlgmr.msra.gmra.mrb[22].mxu1 %vm410_vm1, %v241_v49  ;;  %11712 = vmatprep.subr.mxu0 %v14159_v0  ;;  %v338_v49 = vld [vmem:[%s12538_s18 + $0xe0] sm:$0xf] }
  0x46   : > { %11708 = vmatpush3.xpose.msk.msra.mxu1 %vm410_vm1, %v307_v50  ;;  %11709 = vmatprep.mubr.msk.f32.mxu1 %vm12497_vm0, %v14159_v0  ;;  %v273_v50 = vld [vmem:[%s12544_s21 + $0xdc] sm:$0xf] }
  0x47   : > { %11705 = vmatmul.mubr.msk.f32.vlgmr.msra.gmra.mrb[24].mxu0 %vm410_vm1, %v242_v51  ;;  %11717 = vmatprep.subr.mxu1 %v14159_v0  ;;  %v339_v51 = vld [vmem:[%s12538_s18 + $0xe4] sm:$0xf] }
  0x48   : > { %11713 = vmatpush3.xpose.msk.msra.mxu0 %vm410_vm1, %v308_v52  ;;  %11714 = vmatprep.mubr.msk.f32.mxu0 %vm12497_vm0, %v14159_v0  ;;  %v274_v52 = vld [vmem:[%s12544_s21 + $0xe0] sm:$0xf] }
  0x49   : > { %11710 = vmatmul.mubr.msk.f32.vlgmr.msra.gmra.mrb[24].mxu1 %vm410_vm1, %v243_v53  ;;  %11722 = vmatprep.subr.mxu0 %v14159_v0  ;;  %v340_v53 = vld [vmem:[%s12538_s18 + $0xe8] sm:$0xf] }
  0x4a   : > { %11718 = vmatpush3.xpose.msk.msra.mxu1 %vm410_vm1, %v309_v54  ;;  %11719 = vmatprep.mubr.msk.f32.mxu1 %vm12497_vm0, %v14159_v0  ;;  %v275_v54 = vld [vmem:[%s12544_s21 + $0xe4] sm:$0xf] }
  0x4b   : > { %11715 = vmatmul.mubr.msk.f32.vlgmr.msra.gmra.mrb[26].mxu0 %vm410_vm1, %v244_v55  ;;  %11727 = vmatprep.subr.mxu1 %v14159_v0  ;;  %v341_v55 = vld [vmem:[%s12538_s18 + $0xec] sm:$0xf] }
  0x4c   : > { %11723 = vmatpush3.xpose.msk.msra.mxu0 %vm410_vm1, %v310_v56  ;;  %11724 = vmatprep.mubr.msk.f32.mxu0 %vm12497_vm0, %v14159_v0  ;;  %v276_v56 = vld [vmem:[%s12544_s21 + $0xe8] sm:$0xf] }
  0x4d   : > { %11720 = vmatmul.mubr.msk.f32.vlgmr.msra.gmra.mrb[26].mxu1 %vm410_vm1, %v245_v57  ;;  %11732 = vmatprep.subr.mxu0 %v14159_v0  ;;  %v342_v57 = vld [vmem:[%s12538_s18 + $0xf0] sm:$0xf] }
  0x4e   : > { %11728 = vmatpush3.xpose.msk.msra.mxu1 %vm410_vm1, %v311_v58  ;;  %11729 = vmatprep.mubr.msk.f32.mxu1 %vm12497_vm0, %v14159_v0  ;;  %v277_v58 = vld [vmem:[%s12544_s21 + $0xec] sm:$0xf] }
  0x4f   : > { %11725 = vmatmul.mubr.msk.f32.vlgmr.msra.gmra.mrb[28].mxu0 %vm410_vm1, %v246_v59  ;;  %11737 = vmatprep.subr.mxu1 %v14159_v0  ;;  %v343_v59 = vld [vmem:[%s12538_s18 + $0xf4] sm:$0xf] }
  0x50   : > { %11733 = vmatpush3.xpose.msk.msra.mxu0 %vm410_vm1, %v312_v60  ;;  %11734 = vmatprep.mubr.msk.f32.mxu0 %vm12497_vm0, %v14159_v0  ;;  %v278_v60 = vld [vmem:[%s12544_s21 + $0xf0] sm:$0xf] }
  0x51   : > { %11730 = vmatmul.mubr.msk.f32.vlgmr.msra.gmra.mrb[28].mxu1 %vm410_vm1, %v247_v61  ;;  %11742 = vmatprep.subr.mxu0 %v14159_v0  ;;  %v344_v61 = vld [vmem:[%s12538_s18 + $0xf8] sm:$0xf] }
  0x52   : > { %11738 = vmatpush3.xpose.msk.msra.mxu1 %vm410_vm1, %v313_v62  ;;  %11739 = vmatprep.mubr.msk.f32.mxu1 %vm12497_vm0, %v14159_v0  ;;  %v279_v62 = vld [vmem:[%s12544_s21 + $0xf4] sm:$0xf] }
  0x53   : > { %11735 = vmatmul.mubr.msk.f32.vlgmr.msra.gmra.mrb[30].mxu0 %vm410_vm1, %v248_v63  ;;  %11747 = vmatprep.subr.mxu1 %v14159_v0  ;;  %v345_v63 = vld [vmem:[%s12538_s18 + $0xfc] sm:$0xf] }
  0x54   : > { %11743 = vmatpush3.xpose.msk.msra.mxu0 %vm410_vm1, %v314_v1  ;;  %11744 = vmatprep.mubr.msk.f32.mxu0 %vm12497_vm0, %v14159_v0  ;;  %v280_v1 = vld [vmem:[%s12544_s21 + $0xf8] sm:$0xf] }
  0x55   : > { %11740 = vmatmul.mubr.msk.f32.vlgmr.msra.gmra.mrb[30].mxu1 %vm410_vm1, %v249_v2  ;;  %11752 = vmatprep.subr.mxu0 %v14159_v0  ;;  %v281_v2 = vld [vmem:[%s12544_s21 + $0xfc] sm:$0xf] }
  0x56   : > { %11748 = vmatpush3.xpose.msk.msra.mxu1 %vm410_vm1, %v315_v3  ;;  %11749 = vmatprep.mubr.msk.f32.mxu1 %vm12497_vm0, %v14159_v0 }
  0x57   : > { %11745 = vmatmul.mubr.msk.f32.vlgmr.msra.gmra.mrb[32].mxu0 %vm410_vm1, %v250_v4  ;;  %11757 = vmatprep.subr.mxu1 %v14159_v0 }
  0x58   : > { %11753 = vmatpush3.xpose.msk.msra.mxu0 %vm410_vm1, %v316_v5  ;;  %11754 = vmatprep.mubr.msk.f32.mxu0 %vm12497_vm0, %v14159_v0 }
  0x59   : > { %11750 = vmatmul.mubr.msk.f32.vlgmr.msra.gmra.mrb[32].mxu1 %vm410_vm1, %v251_v6  ;;  %11762 = vmatprep.subr.mxu0 %v14159_v0 }
  0x5a   : > { %11758 = vmatpush3.xpose.msk.msra.mxu1 %vm410_vm1, %v317_v7  ;;  %11759 = vmatprep.mubr.msk.f32.mxu1 %vm12497_vm0, %v14159_v0 }
  0x5b   : > { %11755 = vmatmul.mubr.msk.f32.vlgmr.msra.gmra.mrb[34].mxu0 %vm410_vm1, %v252_v8  ;;  %11767 = vmatprep.subr.mxu1 %v14159_v0 }
  0x5c   : > { %11763 = vmatpush3.xpose.msk.msra.mxu0 %vm410_vm1, %v318_v9  ;;  %11764 = vmatprep.mubr.msk.f32.mxu0 %vm12497_vm0, %v14159_v0 }
  0x5d   : > { %11760 = vmatmul.mubr.msk.f32.vlgmr.msra.gmra.mrb[34].mxu1 %vm410_vm1, %v253_v10  ;;  %11772 = vmatprep.subr.mxu0 %v14159_v0 }
  0x5e   : > { %11768 = vmatpush3.xpose.msk.msra.mxu1 %vm410_vm1, %v319_v11  ;;  %11769 = vmatprep.mubr.msk.f32.mxu1 %vm12497_vm0, %v14159_v0 }
  0x5f   : > { %11765 = vmatmul.mubr.msk.f32.vlgmr.msra.gmra.mrb[36].mxu0 %vm410_vm1, %v254_v12  ;;  %11777 = vmatprep.subr.mxu1 %v14159_v0 }
  0x60   : > { %11773 = vmatpush3.xpose.msk.msra.mxu0 %vm410_vm1, %v320_v13  ;;  %11774 = vmatprep.mubr.msk.f32.mxu0 %vm12497_vm0, %v14159_v0 }
  0x61   : > { %11770 = vmatmul.mubr.msk.f32.vlgmr.msra.gmra.mrb[36].mxu1 %vm410_vm1, %v255_v14  ;;  %11782 = vmatprep.subr.mxu0 %v14159_v0 }
  0x62   : > { %11778 = vmatpush3.xpose.msk.msra.mxu1 %vm410_vm1, %v321_v15  ;;  %11779 = vmatprep.mubr.msk.f32.mxu1 %vm12497_vm0, %v14159_v0 }
  0x63   : > { %11775 = vmatmul.mubr.msk.f32.vlgmr.msra.gmra.mrb[38].mxu0 %vm410_vm1, %v256_v16  ;;  %11787 = vmatprep.subr.mxu1 %v14159_v0 }
  0x64   : > { %11783 = vmatpush3.xpose.msk.msra.mxu0 %vm410_vm1, %v322_v17  ;;  %11784 = vmatprep.mubr.msk.f32.mxu0 %vm12497_vm0, %v14159_v0 }
  0x65   : > { %11780 = vmatmul.mubr.msk.f32.vlgmr.msra.gmra.mrb[38].mxu1 %vm410_vm1, %v257_v18  ;;  %11792 = vmatprep.subr.mxu0 %v14159_v0 }
  0x66   : > { %11788 = vmatpush3.xpose.msk.msra.mxu1 %vm410_vm1, %v323_v19  ;;  %11789 = vmatprep.mubr.msk.f32.mxu1 %vm12497_vm0, %v14159_v0 }
  0x67   : > { %11785 = vmatmul.mubr.msk.f32.vlgmr.msra.gmra.mrb[40].mxu0 %vm410_vm1, %v258_v20  ;;  %11797 = vmatprep.subr.mxu1 %v14159_v0 }
  0x68   : > { %11793 = vmatpush3.xpose.msk.msra.mxu0 %vm410_vm1, %v324_v21  ;;  %11794 = vmatprep.mubr.msk.f32.mxu0 %vm12497_vm0, %v14159_v0 }
  0x69   : > { %11790 = vmatmul.mubr.msk.f32.vlgmr.msra.gmra.mrb[40].mxu1 %vm410_vm1, %v259_v22  ;;  %11802 = vmatprep.subr.mxu0 %v14159_v0 }
  0x6a   : > { %11798 = vmatpush3.xpose.msk.msra.mxu1 %vm410_vm1, %v325_v23  ;;  %11799 = vmatprep.mubr.msk.f32.mxu1 %vm12497_vm0, %v14159_v0 }
  0x6b   : > { %11795 = vmatmul.mubr.msk.f32.vlgmr.msra.gmra.mrb[42].mxu0 %vm410_vm1, %v260_v24  ;;  %11807 = vmatprep.subr.mxu1 %v14159_v0 }
  0x6c   : > { %11803 = vmatpush3.xpose.msk.msra.mxu0 %vm410_vm1, %v326_v25  ;;  %11804 = vmatprep.mubr.msk.f32.mxu0 %vm12497_vm0, %v14159_v0 }
  0x6d   : > { %11800 = vmatmul.mubr.msk.f32.vlgmr.msra.gmra.mrb[42].mxu1 %vm410_vm1, %v261_v26  ;;  %11812 = vmatprep.subr.mxu0 %v14159_v0 }
  0x6e   : > { %11808 = vmatpush3.xpose.msk.msra.mxu1 %vm410_vm1, %v327_v27  ;;  %11809 = vmatprep.mubr.msk.f32.mxu1 %vm12497_vm0, %v14159_v0 }
  0x6f   : > { %11805 = vmatmul.mubr.msk.f32.vlgmr.msra.gmra.mrb[44].mxu0 %vm410_vm1, %v262_v28  ;;  %11817 = vmatprep.subr.mxu1 %v14159_v0 }
  0x70   : > { %11813 = vmatpush3.xpose.msk.msra.mxu0 %vm410_vm1, %v328_v29  ;;  %11814 = vmatprep.mubr.msk.f32.mxu0 %vm12497_vm0, %v14159_v0 }
  0x71   : > { %11810 = vmatmul.mubr.msk.f32.vlgmr.msra.gmra.mrb[44].mxu1 %vm410_vm1, %v263_v30  ;;  %11822 = vmatprep.subr.mxu0 %v14159_v0 }
  0x72   : > { %11818 = vmatpush3.xpose.msk.msra.mxu1 %vm410_vm1, %v329_v31  ;;  %11819 = vmatprep.mubr.msk.f32.mxu1 %vm12497_vm0, %v14159_v0 }
  0x73   : > { %11815 = vmatmul.mubr.msk.f32.vlgmr.msra.gmra.mrb[46].mxu0 %vm410_vm1, %v264_v32  ;;  %11827 = vmatprep.subr.mxu1 %v14159_v0 }
  0x74   : > { %11823 = vmatpush3.xpose.msk.msra.mxu0 %vm410_vm1, %v330_v33  ;;  %11824 = vmatprep.mubr.msk.f32.mxu0 %vm12497_vm0, %v14159_v0 }
  0x75   : > { %11820 = vmatmul.mubr.msk.f32.vlgmr.msra.gmra.mrb[46].mxu1 %vm410_vm1, %v265_v34  ;;  %11832 = vmatprep.subr.mxu0 %v14159_v0 }
  0x76   : > { %11828 = vmatpush3.xpose.msk.msra.mxu1 %vm410_vm1, %v331_v35  ;;  %11829 = vmatprep.mubr.msk.f32.mxu1 %vm12497_vm0, %v14159_v0 }
  0x77   : > { %11825 = vmatmul.mubr.msk.f32.vlgmr.msra.gmra.mrb[48].mxu0 %vm410_vm1, %v266_v36  ;;  %11837 = vmatprep.subr.mxu1 %v14159_v0 }
  0x78   : > { %11833 = vmatpush3.xpose.msk.msra.mxu0 %vm410_vm1, %v332_v37  ;;  %11834 = vmatprep.mubr.msk.f32.mxu0 %vm12497_vm0, %v14159_v0 }
  0x79   : > { %11830 = vmatmul.mubr.msk.f32.vlgmr.msra.gmra.mrb[48].mxu1 %vm410_vm1, %v267_v38  ;;  %11842 = vmatprep.subr.mxu0 %v14159_v0 }
  0x7a   : > { %11838 = vmatpush3.xpose.msk.msra.mxu1 %vm410_vm1, %v333_v39  ;;  %11839 = vmatprep.mubr.msk.f32.mxu1 %vm12497_vm0, %v14159_v0 }
  0x7b   : > { %11835 = vmatmul.mubr.msk.f32.vlgmr.msra.gmra.mrb[50].mxu0 %vm410_vm1, %v268_v40  ;;  %11847 = vmatprep.subr.mxu1 %v14159_v0 }
  0x7c   : > { %11843 = vmatpush3.xpose.msk.msra.mxu0 %vm410_vm1, %v334_v41  ;;  %11844 = vmatprep.mubr.msk.f32.mxu0 %vm12497_vm0, %v14159_v0 }
  0x7d   : > { %11840 = vmatmul.mubr.msk.f32.vlgmr.msra.gmra.mrb[50].mxu1 %vm410_vm1, %v269_v42  ;;  %11852 = vmatprep.subr.mxu0 %v14159_v0 }
  0x7e   : > { %11848 = vmatpush3.xpose.msk.msra.mxu1 %vm410_vm1, %v335_v43  ;;  %11849 = vmatprep.mubr.msk.f32.mxu1 %vm12497_vm0, %v14159_v0 }
  0x7f   : > { %11845 = vmatmul.mubr.msk.f32.vlgmr.msra.gmra.mrb[52].mxu0 %vm410_vm1, %v270_v44  ;;  %11857 = vmatprep.subr.mxu1 %v14159_v0 }
  0x80   : > { %11853 = vmatpush3.xpose.msk.msra.mxu0 %vm410_vm1, %v336_v45  ;;  %11854 = vmatprep.mubr.msk.f32.mxu0 %vm12497_vm0, %v14159_v0 }
  0x81   : > { %11850 = vmatmul.mubr.msk.f32.vlgmr.msra.gmra.mrb[52].mxu1 %vm410_vm1, %v271_v46  ;;  %11862 = vmatprep.subr.mxu0 %v14159_v0 }
  0x82   : > { %11858 = vmatpush3.xpose.msk.msra.mxu1 %vm410_vm1, %v337_v47  ;;  %11859 = vmatprep.mubr.msk.f32.mxu1 %vm12497_vm0, %v14159_v0 }
  0x83   : > { %11855 = vmatmul.mubr.msk.f32.vlgmr.msra.gmra.mrb[54].mxu0 %vm410_vm1, %v272_v48  ;;  %11867 = vmatprep.subr.mxu1 %v14159_v0 }
  0x84   : > { %11863 = vmatpush3.xpose.msk.msra.mxu0 %vm410_vm1, %v338_v49  ;;  %11864 = vmatprep.mubr.msk.f32.mxu0 %vm12497_vm0, %v14159_v0 }
  0x85   : > { %11860 = vmatmul.mubr.msk.f32.vlgmr.msra.gmra.mrb[54].mxu1 %vm410_vm1, %v273_v50  ;;  %11872 = vmatprep.subr.mxu0 %v14159_v0 }
  0x86   : > { %11868 = vmatpush3.xpose.msk.msra.mxu1 %vm410_vm1, %v339_v51  ;;  %11869 = vmatprep.mubr.msk.f32.mxu1 %vm12497_vm0, %v14159_v0 }
  0x87   : > { %11865 = vmatmul.mubr.msk.f32.vlgmr.msra.gmra.mrb[56].mxu0 %vm410_vm1, %v274_v52  ;;  %11877 = vmatprep.subr.mxu1 %v14159_v0 }
  0x88   : > { %11873 = vmatpush3.xpose.msk.msra.mxu0 %vm410_vm1, %v340_v53  ;;  %11874 = vmatprep.mubr.msk.f32.mxu0 %vm12497_vm0, %v14159_v0 }
  0x89   : > { %11870 = vmatmul.mubr.msk.f32.vlgmr.msra.gmra.mrb[56].mxu1 %vm410_vm1, %v275_v54  ;;  %11882 = vmatprep.subr.mxu0 %v14159_v0 }
  0x8a   : > { %11878 = vmatpush3.xpose.msk.msra.mxu1 %vm410_vm1, %v341_v55  ;;  %11879 = vmatprep.mubr.msk.f32.mxu1 %vm12497_vm0, %v14159_v0 }
  0x8b   : > { %11875 = vmatmul.mubr.msk.f32.vlgmr.msra.gmra.mrb[58].mxu0 %vm410_vm1, %v276_v56  ;;  %11887 = vmatprep.subr.mxu1 %v14159_v0 }
  0x8c   : > { %11883 = vmatpush3.xpose.msk.msra.mxu0 %vm410_vm1, %v342_v57  ;;  %11884 = vmatprep.mubr.msk.f32.mxu0 %vm12497_vm0, %v14159_v0 }
  0x8d   : > { %11880 = vmatmul.mubr.msk.f32.vlgmr.msra.gmra.mrb[58].mxu1 %vm410_vm1, %v277_v58  ;;  %11892 = vmatprep.subr.mxu0 %v14159_v0 }
  0x8e   : > { %11888 = vmatpush3.xpose.msk.msra.mxu1 %vm410_vm1, %v343_v59  ;;  %11889 = vmatprep.mubr.msk.f32.mxu1 %vm12497_vm0, %v14159_v0 }
  0x8f   : > { %11885 = vmatmul.mubr.msk.f32.vlgmr.msra.gmra.mrb[60].mxu0 %vm410_vm1, %v278_v60  ;;  %11897 = vmatprep.subr.mxu1 %v14159_v0 }
  0x90   : > { %11893 = vmatpush3.xpose.msk.msra.mxu0 %vm410_vm1, %v344_v61  ;;  %11894 = vmatprep.mubr.msk.f32.mxu0 %vm12497_vm0, %v14159_v0 }
  0x91   : > { %11890 = vmatmul.mubr.msk.f32.vlgmr.msra.gmra.mrb[60].mxu1 %vm410_vm1, %v279_v62  ;;  %11902 = vmatprep.subr.mxu0 %v14159_v0 }
  0x92   : > { %11898 = vmatpush3.xpose.msk.msra.mxu1 %vm410_vm1, %v345_v63  ;;  %11899 = vmatprep.mubr.msk.f32.mxu1 %vm12497_vm0, %v14159_v0 }
  0x93   : > { %11895 = vmatmul.mubr.msk.f32.vlgmr.msra.gmra.mrb[62].mxu0 %vm410_vm1, %v280_v1  ;;  %11907 = vmatprep.subr.mxu1 %v14159_v0 }
  0x94   : > { %11904 = vmatprep.mubr.msk.f32.mxu0 %vm12497_vm0, %v14159_v0 }
  0x95   : > { %11900 = vmatmul.mubr.msk.f32.vlgmr.msra.gmra.mrb[62].mxu1 %vm410_vm1, %v281_v2 }
  0x96   : > { %11909 = vmatprep.mubr.msk.f32.mxu1 %vm12497_vm0, %v14159_v0 }
  0xea   : > { %v483_v3 = vpop.f32.mrb[0].mxu0  ;;  %v559_v4 = vpop.f32.mrb[0].mxu1 }
  0xeb   : > { %v12994_v5 = vmul.f32 0.35355338, %v483_v3  ;;  %v11586_v6 = vpop.f32.mrb[1].mxu0  ;;  %v12996_v7 = vmul.f32 0.35355338, %v559_v4  ;;  %v11591_v8 = vpop.f32.mrb[1].mxu1 }
  0xed   : > { %v5340_v9 = vsel %vm5339_vm2, %v12994_v5, -inf  ;;  %v5343_v13 = vsel %vm5339_vm2, %v12996_v7, -inf }
  0xee   : > { %5341 = vmax.xlane.f32.xlu0 %v5340_v9  ;;  %v635_v10 = vpop.f32.mrb[2].mxu0 }
  0xef   : > { %v13000_v11 = vmul.f32 0.35355338, %v635_v10  ;;  %v11596_v12 = vpop.f32.mrb[3].mxu0 }
  0xf0   : > { %v711_v14 = vpop.f32.mrb[2].mxu1 }
  0xf1   : > { %v13004_v15 = vmul.f32 0.35355338, %v711_v14  ;;  %v5346_v16 = vsel %vm5339_vm2, %v13000_v11, -inf  ;;  %v11601_v17 = vpop.f32.mrb[3].mxu1 }
  0xf2   : > { %5344 = vmax.xlane.f32.xlu0 %v5343_v13  ;;  %5347 = vmax.xlane.f32.xlu1 %v5346_v16  ;;  %v787_v18 = vpop.f32.mrb[4].mxu0 }
  0xf3   : > { %v13008_v19 = vmul.f32 0.35355338, %v787_v18  ;;  %v11606_v20 = vpop.f32.mrb[5].mxu0  ;;  %v5349_v21 = vsel %vm5339_vm2, %v13004_v15, -inf }
  0xf4   : > { %v863_v22 = vpop.f32.mrb[4].mxu1 }
  0xf5   : > { %v13012_v23 = vmul.f32 0.35355338, %v863_v22  ;;  %v5352_v24 = vsel %vm5339_vm2, %v13008_v19, -inf  ;;  %v11611_v25 = vpop.f32.mrb[5].mxu1 }
  0xf6   : > { %5350 = vmax.xlane.f32.xlu1 %v5349_v21  ;;  %5353 = vmax.xlane.f32.xlu0 %v5352_v24  ;;  %v939_v26 = vpop.f32.mrb[6].mxu0 }
  0xf7   : > { %v13016_v27 = vmul.f32 0.35355338, %v939_v26  ;;  %v11616_v28 = vpop.f32.mrb[7].mxu0  ;;  %v5355_v29 = vsel %vm5339_vm2, %v13012_v23, -inf }
  0xf8   : > { %v1015_v30 = vpop.f32.mrb[6].mxu1 }
  0xf9   : > { %v13020_v31 = vmul.f32 0.35355338, %v1015_v30  ;;  %v5358_v32 = vsel %vm5339_vm2, %v13016_v27, -inf  ;;  %v11621_v33 = vpop.f32.mrb[7].mxu1 }
  0xfa   : > { %5356 = vmax.xlane.f32.xlu1 %v5355_v29  ;;  %5359 = vmax.xlane.f32.xlu0 %v5358_v32  ;;  %v1091_v34 = vpop.f32.mrb[8].mxu0 }
  0xfb   : > { %v13024_v35 = vmul.f32 0.35355338, %v1091_v34  ;;  %v11626_v36 = vpop.f32.mrb[9].mxu0  ;;  %v5361_v37 = vsel %vm5339_vm2, %v13020_v31, -inf }
  0xfc   : > { %v1167_v38 = vpop.f32.mrb[8].mxu1 }
  0xfd   : > { %v13028_v39 = vmul.f32 0.35355338, %v1167_v38  ;;  %v5364_v40 = vsel %vm5339_vm2, %v13024_v35, -inf  ;;  %v11631_v41 = vpop.f32.mrb[9].mxu1 }
  0xfe   : > { %5362 = vmax.xlane.f32.xlu1 %v5361_v37  ;;  %5365 = vmax.xlane.f32.xlu0 %v5364_v40  ;;  %v1243_v42 = vpop.f32.mrb[10].mxu0 }
  0xff   : > { %v13032_v43 = vmul.f32 0.35355338, %v1243_v42  ;;  %v11636_v44 = vpop.f32.mrb[11].mxu0  ;;  %v5367_v45 = vsel %vm5339_vm2, %v13028_v39, -inf }
 0x100   : > { %v1319_v46 = vpop.f32.mrb[10].mxu1 }
 0x101   : > { %v13036_v47 = vmul.f32 0.35355338, %v1319_v46  ;;  %v5370_v48 = vsel %vm5339_vm2, %v13032_v43, -inf  ;;  %v11641_v49 = vpop.f32.mrb[11].mxu1 }
 0x102   : > { %5368 = vmax.xlane.f32.xlu1 %v5367_v45  ;;  %5371 = vmax.xlane.f32.xlu0 %v5370_v48  ;;  %v1395_v50 = vpop.f32.mrb[12].mxu0 }
 0x103   : > { %v13040_v51 = vmul.f32 0.35355338, %v1395_v50  ;;  %v11646_v52 = vpop.f32.mrb[13].mxu0  ;;  %v5373_v53 = vsel %vm5339_vm2, %v13036_v47, -inf }
 0x104   : > { %v1471_v54 = vpop.f32.mrb[12].mxu1 }
 0x105   : > { %v13044_v55 = vmul.f32 0.35355338, %v1471_v54  ;;  %v5376_v56 = vsel %vm5339_vm2, %v13040_v51, -inf  ;;  %v11651_v57 = vpop.f32.mrb[13].mxu1 }
 0x106   : > { %5374 = vmax.xlane.f32.xlu1 %v5373_v53  ;;  %5377 = vmax.xlane.f32.xlu0 %v5376_v56  ;;  %v1547_v58 = vpop.f32.mrb[14].mxu0 }
 0x107   : > { %v13048_v59 = vmul.f32 0.35355338, %v1547_v58  ;;  %v11656_v60 = vpop.f32.mrb[15].mxu0  ;;  %v5379_v61 = vsel %vm5339_vm2, %v13044_v55, -inf }
 0x108   : > { %v1623_v62 = vpop.f32.mrb[14].mxu1 }
 0x109   : > { %v13052_v63 = vmul.f32 0.35355338, %v1623_v62  ;;  %v5382_v1 = vsel %vm5339_vm2, %v13048_v59, -inf  ;;  %v11661_v2 = vpop.f32.mrb[15].mxu1 }
 0x10a   : > { %5380 = vmax.xlane.f32.xlu1 %v5379_v61  ;;  %5383 = vmax.xlane.f32.xlu0 %v5382_v1  ;;  %v1699_v3 = vpop.f32.mrb[16].mxu0 }
 0x10b   : > { %v13056_v4 = vmul.f32 0.35355338, %v1699_v3  ;;  %v11666_v6 = vpop.f32.mrb[17].mxu0  ;;  %v5385_v8 = vsel %vm5339_vm2, %v13052_v63, -inf }
 0x10c   : > { %v1775_v9 = vpop.f32.mrb[16].mxu1 }
 0x10d   : > { %v13060_v10 = vmul.f32 0.35355338, %v1775_v9  ;;  %v5388_v12 = vsel %vm5339_vm2, %v13056_v4, -inf  ;;  %v11671_v13 = vpop.f32.mrb[17].mxu1 }
 0x10e   : > { %5386 = vmax.xlane.f32.xlu1 %v5385_v8  ;;  %5389 = vmax.xlane.f32.xlu0 %v5388_v12  ;;  %v1851_v14 = vpop.f32.mrb[18].mxu0 }
 0x10f   : > { %v13064_v16 = vmul.f32 0.35355338, %v1851_v14  ;;  %v11676_v17 = vpop.f32.mrb[19].mxu0  ;;  %v5391_v18 = vsel %vm5339_vm2, %v13060_v10, -inf }
 0x110   : > { %v1927_v20 = vpop.f32.mrb[18].mxu1 }
 0x111   : > { %v13068_v21 = vmul.f32 0.35355338, %v1927_v20  ;;  %v5394_v22 = vsel %vm5339_vm2, %v13064_v16, -inf  ;;  %v11681_v24 = vpop.f32.mrb[19].mxu1 }
 0x112   : > { %5392 = vmax.xlane.f32.xlu1 %v5391_v18  ;;  %5395 = vmax.xlane.f32.xlu0 %v5394_v22  ;;  %v2003_v25 = vpop.f32.mrb[20].mxu0 }
 0x113   : > { %v13072_v26 = vmul.f32 0.35355338, %v2003_v25  ;;  %v11686_v28 = vpop.f32.mrb[21].mxu0  ;;  %v5397_v29 = vsel %vm5339_vm2, %v13068_v21, -inf }
 0x114   : > { %v2079_v30 = vpop.f32.mrb[20].mxu1 }
 0x115   : > { %v13076_v32 = vmul.f32 0.35355338, %v2079_v30  ;;  %v5400_v33 = vsel %vm5339_vm2, %v13072_v26, -inf  ;;  %v11691_v34 = vpop.f32.mrb[21].mxu1 }
 0x116   : > { %5398 = vmax.xlane.f32.xlu1 %v5397_v29  ;;  %5401 = vmax.xlane.f32.xlu0 %v5400_v33  ;;  %v2155_v36 = vpop.f32.mrb[22].mxu0 }
 0x117   : > { %v13080_v37 = vmul.f32 0.35355338, %v2155_v36  ;;  %v11696_v38 = vpop.f32.mrb[23].mxu0  ;;  %v5403_v40 = vsel %vm5339_vm2, %v13076_v32, -inf }
 0x118   : > { %v2231_v41 = vpop.f32.mrb[22].mxu1 }
 0x119   : > { %v13084_v42 = vmul.f32 0.35355338, %v2231_v41  ;;  %v5406_v44 = vsel %vm5339_vm2, %v13080_v37, -inf  ;;  %v11701_v45 = vpop.f32.mrb[23].mxu1 }
 0x11a   : > { %5404 = vmax.xlane.f32.xlu1 %v5403_v40  ;;  %5407 = vmax.xlane.f32.xlu0 %v5406_v44  ;;  %v2307_v46 = vpop.f32.mrb[24].mxu0 }
 0x11b   : > { %v13088_v48 = vmul.f32 0.35355338, %v2307_v46  ;;  %v11706_v49 = vpop.f32.mrb[25].mxu0  ;;  %v5409_v50 = vsel %vm5339_vm2, %v13084_v42, -inf }
 0x11c   : > { %v2383_v52 = vpop.f32.mrb[24].mxu1 }
 0x11d   : > { %v13092_v53 = vmul.f32 0.35355338, %v2383_v52  ;;  %v5412_v54 = vsel %vm5339_vm2, %v13088_v48, -inf  ;;  %v11711_v56 = vpop.f32.mrb[25].mxu1 }
 0x11e   : > { %5410 = vmax.xlane.f32.xlu1 %v5409_v50  ;;  %5413 = vmax.xlane.f32.xlu0 %v5412_v54  ;;  %v2459_v57 = vpop.f32.mrb[26].mxu0 }
 0x11f   : > { %v13096_v58 = vmul.f32 0.35355338, %v2459_v57  ;;  %v11716_v60 = vpop.f32.mrb[27].mxu0  ;;  %v5415_v61 = vsel %vm5339_vm2, %v13092_v53, -inf }
 0x120   : > { %v2535_v62 = vpop.f32.mrb[26].mxu1 }
 0x121   : > { %v13100_v1 = vmul.f32 0.35355338, %v2535_v62  ;;  %v5418_v2 = vsel %vm5339_vm2, %v13096_v58, -inf  ;;  %v11721_v3 = vpop.f32.mrb[27].mxu1 }
 0x122   : > { %5416 = vmax.xlane.f32.xlu1 %v5415_v61  ;;  %5419 = vmax.xlane.f32.xlu0 %v5418_v2  ;;  %v2611_v6 = vpop.f32.mrb[28].mxu0 }
 0x123   : > { %v13104_v8 = vmul.f32 0.35355338, %v2611_v6  ;;  %v11726_v9 = vpop.f32.mrb[29].mxu0  ;;  %v5421_v12 = vsel %vm5339_vm2, %v13100_v1, -inf }
 0x124   : > { %v2687_v13 = vpop.f32.mrb[28].mxu1 }
 0x125   : > { %v13108_v14 = vmul.f32 0.35355338, %v2687_v13  ;;  %v5424_v17 = vsel %vm5339_vm2, %v13104_v8, -inf  ;;  %v11731_v18 = vpop.f32.mrb[29].mxu1 }
 0x126   : > { %5422 = vmax.xlane.f32.xlu1 %v5421_v12  ;;  %5425 = vmax.xlane.f32.xlu0 %v5424_v17  ;;  %v2763_v20 = vpop.f32.mrb[30].mxu0 }
 0x127   : > { %v13112_v22 = vmul.f32 0.35355338, %v2763_v20  ;;  %v11736_v24 = vpop.f32.mrb[31].mxu0  ;;  %v5427_v25 = vsel %vm5339_vm2, %v13108_v14, -inf }
 0x128   : > { %v2839_v28 = vpop.f32.mrb[30].mxu1 }
 0x129   : > { %v13116_v29 = vmul.f32 0.35355338, %v2839_v28  ;;  %v5430_v30 = vsel %vm5339_vm2, %v13112_v22, -inf  ;;  %v11741_v33 = vpop.f32.mrb[31].mxu1 }
 0x12a   : > { %5428 = vmax.xlane.f32.xlu1 %v5427_v25  ;;  %5431 = vmax.xlane.f32.xlu0 %v5430_v30  ;;  %v2915_v34 = vpop.f32.mrb[32].mxu0 }
 0x12b   : > { %v13120_v36 = vmul.f32 0.35355338, %v2915_v34  ;;  %v11746_v38 = vpop.f32.mrb[33].mxu0  ;;  %v5433_v40 = vsel %vm5339_vm2, %v13116_v29, -inf }
 0x12c   : > { %v2991_v41 = vpop.f32.mrb[32].mxu1 }
 0x12d   : > { %v13124_v44 = vmul.f32 0.35355338, %v2991_v41  ;;  %v5436_v45 = vsel %vm5339_vm2, %v13120_v36, -inf  ;;  %v11751_v46 = vpop.f32.mrb[33].mxu1 }
 0x12e   : > { %5434 = vmax.xlane.f32.xlu1 %v5433_v40  ;;  %5437 = vmax.xlane.f32.xlu0 %v5436_v45  ;;  %v3067_v49 = vpop.f32.mrb[34].mxu0 }
 0x12f   : > { %v13128_v50 = vmul.f32 0.35355338, %v3067_v49  ;;  %v11756_v52 = vpop.f32.mrb[35].mxu0  ;;  %v5439_v54 = vsel %vm5339_vm2, %v13124_v44, -inf }
 0x130   : > { %v3143_v56 = vpop.f32.mrb[34].mxu1 }
 0x131   : > { %v13132_v57 = vmul.f32 0.35355338, %v3143_v56  ;;  %v5442_v60 = vsel %vm5339_vm2, %v13128_v50, -inf  ;;  %v11761_v61 = vpop.f32.mrb[35].mxu1 }
 0x132   : > { %5440 = vmax.xlane.f32.xlu1 %v5439_v54  ;;  %5443 = vmax.xlane.f32.xlu0 %v5442_v60  ;;  %v3219_v62 = vpop.f32.mrb[36].mxu0 }
 0x133   : > { %v13136_v2 = vmul.f32 0.35355338, %v3219_v62  ;;  %v11766_v3 = vpop.f32.mrb[37].mxu0  ;;  %v5445_v6 = vsel %vm5339_vm2, %v13132_v57, -inf }
 0x134   : > { %v3295_v9 = vpop.f32.mrb[36].mxu1 }
 0x135   : > { %v13140_v12 = vmul.f32 0.35355338, %v3295_v9  ;;  %v5448_v13 = vsel %vm5339_vm2, %v13136_v2, -inf  ;;  %v11771_v17 = vpop.f32.mrb[37].mxu1 }
 0x136   : > { %5446 = vmax.xlane.f32.xlu1 %v5445_v6  ;;  %5449 = vmax.xlane.f32.xlu0 %v5448_v13  ;;  %v3371_v18 = vpop.f32.mrb[38].mxu0 }
 0x137   : > { %v13144_v20 = vmul.f32 0.35355338, %v3371_v18  ;;  %v11776_v24 = vpop.f32.mrb[39].mxu0  ;;  %v5451_v25 = vsel %vm5339_vm2, %v13140_v12, -inf }
 0x138   : > { %v3447_v28 = vpop.f32.mrb[38].mxu1 }
 0x139   : > { %v13148_v30 = vmul.f32 0.35355338, %v3447_v28  ;;  %v5454_v33 = vsel %vm5339_vm2, %v13144_v20, -inf  ;;  %v11781_v34 = vpop.f32.mrb[39].mxu1 }
 0x13a   : > { %5452 = vmax.xlane.f32.xlu1 %v5451_v25  ;;  %5455 = vmax.xlane.f32.xlu0 %v5454_v33  ;;  %v3523_v38 = vpop.f32.mrb[40].mxu0 }
 0x13b   : > { %v13152_v40 = vmul.f32 0.35355338, %v3523_v38  ;;  %v11786_v41 = vpop.f32.mrb[41].mxu0  ;;  %v5457_v45 = vsel %vm5339_vm2, %v13148_v30, -inf }
 0x13c   : > { %v3599_v46 = vpop.f32.mrb[40].mxu1 }
 0x13d   : > { %v13156_v49 = vmul.f32 0.35355338, %v3599_v46  ;;  %v5460_v52 = vsel %vm5339_vm2, %v13152_v40, -inf  ;;  %v11791_v54 = vpop.f32.mrb[41].mxu1 }
 0x13e   : > { %5458 = vmax.xlane.f32.xlu1 %v5457_v45  ;;  %5461 = vmax.xlane.f32.xlu0 %v5460_v52  ;;  %v3675_v56 = vpop.f32.mrb[42].mxu0 }
 0x13f   : > { %v13160_v60 = vmul.f32 0.35355338, %v3675_v56  ;;  %v11796_v61 = vpop.f32.mrb[43].mxu0  ;;  %v5463_v62 = vsel %vm5339_vm2, %v13156_v49, -inf }
 0x140   : > { %v3751_v3 = vpop.f32.mrb[42].mxu1 }
 0x141   : > { %v13164_v6 = vmul.f32 0.35355338, %v3751_v3  ;;  %v5466_v9 = vsel %vm5339_vm2, %v13160_v60, -inf  ;;  %v11801_v13 = vpop.f32.mrb[43].mxu1 }
 0x142   : > { %5464 = vmax.xlane.f32.xlu1 %v5463_v62  ;;  %5467 = vmax.xlane.f32.xlu0 %v5466_v9  ;;  %v3827_v17 = vpop.f32.mrb[44].mxu0 }
 0x143   : > { %v13168_v18 = vmul.f32 0.35355338, %v3827_v17  ;;  %v11806_v24 = vpop.f32.mrb[45].mxu0  ;;  %v5469_v25 = vsel %vm5339_vm2, %v13164_v6, -inf }
 0x144   : > { %v3903_v28 = vpop.f32.mrb[44].mxu1 }
 0x145   : > { %v13172_v33 = vmul.f32 0.35355338, %v3903_v28  ;;  %v5472_v34 = vsel %vm5339_vm2, %v13168_v18, -inf  ;;  %v11811_v38 = vpop.f32.mrb[45].mxu1 }
 0x146   : > { %5470 = vmax.xlane.f32.xlu1 %v5469_v25  ;;  %5473 = vmax.xlane.f32.xlu0 %v5472_v34  ;;  %v3979_v41 = vpop.f32.mrb[46].mxu0 }
 0x147   : > { %v13176_v45 = vmul.f32 0.35355338, %v3979_v41  ;;  %v11816_v46 = vpop.f32.mrb[47].mxu0  ;;  %v5475_v52 = vsel %vm5339_vm2, %v13172_v33, -inf }
 0x148   : > { %v4055_v54 = vpop.f32.mrb[46].mxu1 }
 0x149   : > { %v13180_v56 = vmul.f32 0.35355338, %v4055_v54  ;;  %v5478_v61 = vsel %vm5339_vm2, %v13176_v45, -inf  ;;  %v11821_v62 = vpop.f32.mrb[47].mxu1 }
 0x14a   : > { %5476 = vmax.xlane.f32.xlu1 %v5475_v52  ;;  %5479 = vmax.xlane.f32.xlu0 %v5478_v61  ;;  %v4131_v3 = vpop.f32.mrb[48].mxu0 }
 0x14b   : > { %v13184_v9 = vmul.f32 0.35355338, %v4131_v3  ;;  %v11826_v13 = vpop.f32.mrb[49].mxu0  ;;  %v5481_v17 = vsel %vm5339_vm2, %v13180_v56, -inf }
 0x14c   : > { %v4207_v24 = vpop.f32.mrb[48].mxu1 }
 0x14d   : > { %v13188_v25 = vmul.f32 0.35355338, %v4207_v24  ;;  %v5484_v28 = vsel %vm5339_vm2, %v13184_v9, -inf  ;;  %v11831_v34 = vpop.f32.mrb[49].mxu1 }
 0x14e   : > { %5482 = vmax.xlane.f32.xlu1 %v5481_v17  ;;  %5485 = vmax.xlane.f32.xlu0 %v5484_v28  ;;  %v4283_v38 = vpop.f32.mrb[50].mxu0 }
 0x14f   : > { %v13192_v41 = vmul.f32 0.35355338, %v4283_v38  ;;  %v11836_v46 = vpop.f32.mrb[51].mxu0  ;;  %v5487_v52 = vsel %vm5339_vm2, %v13188_v25, -inf }
 0x150   : > { %v4359_v54 = vpop.f32.mrb[50].mxu1 }
 0x151   : > { %14186 = vst [vmem:[#allocation2_spill] sm:$0xff] %v13192_v41  ;;  %v13196_v61 = vmul.f32 0.35355338, %v4359_v54  ;;  %v5490_v62 = vsel %vm5339_vm2, %v13192_v41, -inf  ;;  %v11841_v3 = vpop.f32.mrb[51].mxu1 }
 0x152   : > { %5488 = vmax.xlane.f32.xlu1 %v5487_v52  ;;  %5491 = vmax.xlane.f32.xlu0 %v5490_v62  ;;  %v4435_v13 = vpop.f32.mrb[52].mxu0 }
 0x153   : > { %14187 = vst [vmem:[#allocation3_spill] sm:$0xff] %v13196_v61  ;;  %v13200_v24 = vmul.f32 0.35355338, %v4435_v13  ;;  %v11846_v17 = vpop.f32.mrb[53].mxu0  ;;  %v5493_v28 = vsel %vm5339_vm2, %v13196_v61, -inf }
 0x154   : > { %v4511_v34 = vpop.f32.mrb[52].mxu1 }
 0x155   : > { %14188 = vst [vmem:[#allocation4_spill] sm:$0xff] %v13200_v24  ;;  %v13204_v38 = vmul.f32 0.35355338, %v4511_v34  ;;  %v5496_v46 = vsel %vm5339_vm2, %v13200_v24, -inf  ;;  %v11851_v54 = vpop.f32.mrb[53].mxu1 }
 0x156   : > { %5494 = vmax.xlane.f32.xlu1 %v5493_v28  ;;  %5497 = vmax.xlane.f32.xlu0 %v5496_v46  ;;  %v4587_v0 = vpop.f32.mrb[54].mxu0 }
 0x157   : > { %14189 = vst [vmem:[#allocation5_spill] sm:$0xff] %v13204_v38  ;;  %v13208_v3 = vmul.f32 0.35355338, %v4587_v0  ;;  %v11856_v52 = vpop.f32.mrb[55].mxu0  ;;  %v5499_v62 = vsel %vm5339_vm2, %v13204_v38, -inf }
 0x158   : > { %v4663_v13 = vpop.f32.mrb[54].mxu1 }
 0x159   : > { %14190 = vst [vmem:[#allocation6_spill] sm:$0xff] %v13208_v3  ;;  %v13212_v17 = vmul.f32 0.35355338, %v4663_v13  ;;  %v5502_v34 = vsel %vm5339_vm2, %v13208_v3, -inf  ;;  %v11861_v61 = vpop.f32.mrb[55].mxu1 }
 0x15a   : > { %5500 = vmax.xlane.f32.xlu1 %v5499_v62  ;;  %5503 = vmax.xlane.f32.xlu0 %v5502_v34  ;;  %v4739_v24 = vpop.f32.mrb[56].mxu0 }
 0x15b   : > { %14191 = vst [vmem:[#allocation7_spill] sm:$0xff] %v13212_v17  ;;  %v13216_v54 = vmul.f32 0.35355338, %v4739_v24  ;;  %v11866_v28 = vpop.f32.mrb[57].mxu0  ;;  %v5505_v0 = vsel %vm5339_vm2, %v13212_v17, -inf }
 0x15c   : > { %v4815_v46 = vpop.f32.mrb[56].mxu1 }
 0x15d   : > { %14192 = vst [vmem:[#allocation8_spill] sm:$0xff] %v13216_v54  ;;  %v13220_v52 = vmul.f32 0.35355338, %v4815_v46  ;;  %v5508_v13 = vsel %vm5339_vm2, %v13216_v54, -inf  ;;  %v11871_v38 = vpop.f32.mrb[57].mxu1 }
 0x15e   : > { %5506 = vmax.xlane.f32.xlu1 %v5505_v0  ;;  %5509 = vmax.xlane.f32.xlu0 %v5508_v13  ;;  %v4891_v3 = vpop.f32.mrb[58].mxu0 }
 0x15f   : > { %14193 = vst [vmem:[#allocation9_spill] sm:$0xff] %v13220_v52  ;;  %v13224_v61 = vmul.f32 0.35355338, %v4891_v3  ;;  %v11876_v62 = vpop.f32.mrb[59].mxu0  ;;  %v5511_v24 = vsel %vm5339_vm2, %v13220_v52, -inf }
 0x160   : > { %v4967_v34 = vpop.f32.mrb[58].mxu1 }
 0x161   : > { %14194 = vst [vmem:[#allocation10_spill] sm:$0xff] %v13224_v61  ;;  %v13228_v28 = vmul.f32 0.35355338, %v4967_v34  ;;  %v5514_v46 = vsel %vm5339_vm2, %v13224_v61, -inf  ;;  %v11881_v17 = vpop.f32.mrb[59].mxu1 }
 0x162   : > { %5512 = vmax.xlane.f32.xlu1 %v5511_v24  ;;  %5515 = vmax.xlane.f32.xlu0 %v5514_v46  ;;  %v5043_v54 = vpop.f32.mrb[60].mxu0 }
 0x163   : > { %14195 = vst [vmem:[#allocation11_spill] sm:$0xff] %v13228_v28  ;;  %v13232_v38 = vmul.f32 0.35355338, %v5043_v54  ;;  %v11886_v0 = vpop.f32.mrb[61].mxu0  ;;  %v5517_v3 = vsel %vm5339_vm2, %v13228_v28, -inf }
 0x164   : > { %v5119_v13 = vpop.f32.mrb[60].mxu1 }
 0x165   : > { %14196 = vst [vmem:[#allocation12_spill] sm:$0xff] %v13232_v38  ;;  %v13236_v62 = vmul.f32 0.35355338, %v5119_v13  ;;  %v5520_v34 = vsel %vm5339_vm2, %v13232_v38, -inf  ;;  %v11891_v52 = vpop.f32.mrb[61].mxu1 }
 0x166   : > { %5518 = vmax.xlane.f32.xlu1 %v5517_v3  ;;  %5521 = vmax.xlane.f32.xlu0 %v5520_v34  ;;  %v5195_v61 = vpop.f32.mrb[62].mxu0 }
 0x167   : > { %14197 = vst [vmem:[#allocation13_spill] sm:$0xff] %v13236_v62  ;;  %v13240_v17 = vmul.f32 0.35355338, %v5195_v61  ;;  %v5523_v54 = vsel %vm5339_vm2, %v13236_v62, -inf  ;;  %v11896_v24 = vpop.f32.mrb[63].mxu0 }
 0x168   : > { %v5271_v46 = vpop.f32.mrb[62].mxu1 }
 0x169   : > { %14198 = vst [vmem:[#allocation14_spill] sm:$0xff] %v13240_v17  ;;  %v13244_v0 = vmul.f32 0.35355338, %v5271_v46  ;;  %v5526_v13 = vsel %vm5339_vm2, %v13240_v17, -inf  ;;  %v11901_v28 = vpop.f32.mrb[63].mxu1 }
 0x16a   : > { %5524 = vmax.xlane.f32.xlu1 %v5523_v54  ;;  %5527 = vmax.xlane.f32.xlu0 %v5526_v13 }
 0x16b   : > { %14199 = vst [vmem:[#allocation15_spill] sm:$0xff] %v13244_v0  ;;  %v5529_v52 = vsel %vm5339_vm2, %v13244_v0, -inf }
 0x16e   : > { %5530 = vmax.xlane.f32.xlu1 %v5529_v52 }
 0x17b   : > { %v5342_v3 = vpop.xlane.xlu0 %5341 }
 0x17c   : > { %v5532_v61 = vsub.f32 %v12994_v5, %v5342_v3 }
 0x17e   : > { %v5596_v34 = vmul.f32 1.442695, %v5532_v61 }
 0x17f   : > { %v5345_v38 = vpop.xlane.xlu0 %5344  ;;  %v5348_v62 = vpop.xlane.xlu1 %5347 }
 0x180   : > { %12232 = vpow2.f32 %v5596_v34  ;;  %v5533_v24 = vsub.f32 %v12996_v7, %v5345_v38  ;;  %v5534_v46 = vsub.f32 %v13000_v11, %v5348_v62 }
 0x182   : > { %v5598_v41 = vmul.f32 1.442695, %v5533_v24  ;;  %v5600_v17 = vmul.f32 1.442695, %v5534_v46 }
 0x183   : > { %v5351_v28 = vpop.xlane.xlu1 %5350  ;;  %v5354_v54 = vpop.xlane.xlu0 %5353 }
 0x184   : > { %12234 = vpow2.f32 %v5598_v41  ;;  %v5535_v13 = vsub.f32 %v13004_v15, %v5351_v28  ;;  %v5536_v52 = vsub.f32 %v13008_v19, %v5354_v54 }
 0x185   : > { %12236 = vpow2.f32 %v5600_v17 }
 0x186   : > { %v5602_v0 = vmul.f32 1.442695, %v5535_v13  ;;  %v5604_v5 = vmul.f32 1.442695, %v5536_v52 }
 0x187   : > { %v5357_v3 = vpop.xlane.xlu1 %5356  ;;  %v5360_v61 = vpop.xlane.xlu0 %5359 }
 0x188   : > { %12238 = vpow2.f32 %v5602_v0  ;;  %v5537_v34 = vsub.f32 %v13012_v23, %v5357_v3  ;;  %v5538_v7 = vsub.f32 %v13016_v27, %v5360_v61 }
 0x189   : > { %12240 = vpow2.f32 %v5604_v5 }
 0x18a   : > { %v13257_v11 = vpop.eup %12232  ;;  %v5606_v38 = vmul.f32 1.442695, %v5537_v34  ;;  %v5608_v62 = vmul.f32 1.442695, %v5538_v7 }
 0x18b   : > { %v5363_v41 = vpop.xlane.xlu1 %5362  ;;  %v5366_v24 = vpop.xlane.xlu0 %5365  ;;  %v5724_v15 = vsel %vm5339_vm2, %v13257_v11, 0.0 }
 0x18c   : > { %12242 = vpow2.f32 %v5606_v38  ;;  %v5539_v19 = vsub.f32 %v13020_v31, %v5363_v41  ;;  %v5540_v17 = vsub.f32 %v13024_v35, %v5366_v24  ;;  %5725 = vadd.xlane.f32.xlu0 %v5724_v15 }
 0x18d   : > { %12244 = vpow2.f32 %v5608_v62 }
 0x18e   : > { %v13263_v23 = vpop.eup %12234  ;;  %v5610_v27 = vmul.f32 1.442695, %v5539_v19  ;;  %v5612_v0 = vmul.f32 1.442695, %v5540_v17 }
 0x18f   : > { %v13265_v46 = vpop.eup %12236  ;;  %v5369_v28 = vpop.xlane.xlu1 %5368  ;;  %v5727_v13 = vsel %vm5339_vm2, %v13263_v23, 0.0 }
 0x190   : > { %v5372_v54 = vpop.xlane.xlu0 %5371  ;;  %12246 = vpow2.f32 %v5610_v27  ;;  %v5541_v52 = vsub.f32 %v13028_v39, %v5369_v28  ;;  %5728 = vadd.xlane.f32.xlu1 %v5727_v13  ;;  %v5730_v35 = vsel %vm5339_vm2, %v13265_v46, 0.0 }
 0x191   : > { %v5542_v31 = vsub.f32 %v13032_v43, %v5372_v54  ;;  %12248 = vpow2.f32 %v5612_v0  ;;  %5731 = vadd.xlane.f32.xlu0 %v5730_v35 }
 0x192   : > { %v13273_v5 = vpop.eup %12238  ;;  %v5614_v3 = vmul.f32 1.442695, %v5541_v52 }
 0x193   : > { %v5616_v61 = vmul.f32 1.442695, %v5542_v31  ;;  %v13275_v34 = vpop.eup %12240  ;;  %v5375_v7 = vpop.xlane.xlu1 %5374  ;;  %v5733_v62 = vsel %vm5339_vm2, %v13273_v5, 0.0 }
 0x194   : > { %v5378_v38 = vpop.xlane.xlu0 %5377  ;;  %12250 = vpow2.f32 %v5614_v3  ;;  %v5543_v39 = vsub.f32 %v13036_v47, %v5375_v7  ;;  %5734 = vadd.xlane.f32.xlu1 %v5733_v62  ;;  %v5736_v41 = vsel %vm5339_vm2, %v13275_v34, 0.0 }
 0x195   : > { %v5544_v43 = vsub.f32 %v13040_v51, %v5378_v38  ;;  %12252 = vpow2.f32 %v5616_v61  ;;  %5737 = vadd.xlane.f32.xlu0 %v5736_v41 }
 0x196   : > { %v13283_v24 = vpop.eup %12242  ;;  %v5618_v15 = vmul.f32 1.442695, %v5543_v39 }
 0x197   : > { %v5620_v19 = vmul.f32 1.442695, %v5544_v43  ;;  %v13285_v17 = vpop.eup %12244  ;;  %v5381_v27 = vpop.xlane.xlu1 %5380  ;;  %v5739_v28 = vsel %vm5339_vm2, %v13283_v24, 0.0 }
 0x198   : > { %v5384_v0 = vpop.xlane.xlu0 %5383  ;;  %12254 = vpow2.f32 %v5618_v15  ;;  %v5545_v47 = vsub.f32 %v13044_v55, %v5381_v27  ;;  %5740 = vadd.xlane.f32.xlu1 %v5739_v28  ;;  %v5742_v54 = vsel %vm5339_vm2, %v13285_v17, 0.0 }
 0x199   : > { %v5546_v51 = vsub.f32 %v13048_v59, %v5384_v0  ;;  %12256 = vpow2.f32 %v5620_v19  ;;  %5743 = vadd.xlane.f32.xlu0 %v5742_v54 }
 0x19a   : > { %v13293_v13 = vpop.eup %12246  ;;  %v5622_v52 = vmul.f32 1.442695, %v5545_v47 }
 0x19b   : > { %v5624_v31 = vmul.f32 1.442695, %v5546_v51  ;;  %v13295_v35 = vpop.eup %12248  ;;  %v5387_v3 = vpop.xlane.xlu1 %5386  ;;  %v5745_v7 = vsel %vm5339_vm2, %v13293_v13, 0.0 }
 0x19c   : > { %v5390_v61 = vpop.xlane.xlu0 %5389  ;;  %12258 = vpow2.f32 %v5622_v52  ;;  %v5547_v55 = vsub.f32 %v13052_v63, %v5387_v3  ;;  %5746 = vadd.xlane.f32.xlu1 %v5745_v7  ;;  %v5748_v38 = vsel %vm5339_vm2, %v13295_v35, 0.0 }
 0x19d   : > { %v5548_v59 = vsub.f32 %v13056_v4, %v5390_v61  ;;  %12260 = vpow2.f32 %v5624_v31  ;;  %5749 = vadd.xlane.f32.xlu0 %v5748_v38  ;;  %v346_v38 = vld [vmem:[%s13327_s24] sm:$0xf] }
 0x19e   : > { %v13303_v62 = vpop.eup %12250  ;;  %v5626_v39 = vmul.f32 1.442695, %v5547_v55  ;;  %11903 = vmatpush3.msk.msra.mxu0 %vm6048_vm3, %v346_v38 }
 0x19f   : > { %v5628_v43 = vmul.f32 1.442695, %v5548_v59  ;;  %v13305_v41 = vpop.eup %12252  ;;  %v5393_v15 = vpop.xlane.xlu1 %5392  ;;  %v5751_v27 = vsel %vm5339_vm2, %v13303_v62, 0.0 }
 0x1a0   : > { %v5396_v19 = vpop.xlane.xlu0 %5395  ;;  %12262 = vpow2.f32 %v5626_v39  ;;  %v5549_v63 = vsub.f32 %v13060_v10, %v5393_v15  ;;  %5752 = vadd.xlane.f32.xlu1 %v5751_v27  ;;  %v5754_v0 = vsel %vm5339_vm2, %v13305_v41, 0.0 }
 0x1a1   : > { %v5550_v4 = vsub.f32 %v13064_v16, %v5396_v19  ;;  %12264 = vpow2.f32 %v5628_v43  ;;  %5755 = vadd.xlane.f32.xlu0 %v5754_v0 }
 0x1a2   : > { %v13313_v28 = vpop.eup %12254  ;;  %v5630_v47 = vmul.f32 1.442695, %v5549_v63  ;;  %v14200_v63 = vmov 0.0  }
 0x1a3   : > { %v5632_v51 = vmul.f32 1.442695, %v5550_v4  ;;  %v13315_v54 = vpop.eup %12256  ;;  %v5399_v52 = vpop.xlane.xlu1 %5398  ;;  %v5757_v10 = vsel %vm5339_vm2, %v13313_v28, 0.0  ;;  %11912 = vmatprep.subr.mxu0 %v14200_v63 }
 0x1a4   : > { %v5402_v31 = vpop.xlane.xlu0 %5401  ;;  %12266 = vpow2.f32 %v5630_v47  ;;  %v5551_v16 = vsub.f32 %v13068_v21, %v5399_v52  ;;  %5758 = vadd.xlane.f32.xlu1 %v5757_v10  ;;  %v5760_v61 = vsel %vm5339_vm2, %v13315_v54, 0.0 }
 0x1a5   : > { %v5552_v3 = vsub.f32 %v13072_v26, %v5402_v31  ;;  %12268 = vpow2.f32 %v5632_v51  ;;  %5761 = vadd.xlane.f32.xlu0 %v5760_v61  ;;  %v347_v51 = vld [vmem:[%s13327_s24 + $0x4] sm:$0xf] }
 0x1a6   : > { %v13329_v7 = vpop.eup %12258  ;;  %v5634_v55 = vmul.f32 1.442695, %v5551_v16  ;;  %11908 = vmatpush3.msk.msra.mxu1 %vm6048_vm3, %v347_v51 }
 0x1a7   : > { %v5636_v59 = vmul.f32 1.442695, %v5552_v3  ;;  %v13332_v21 = vpop.eup %12260  ;;  %v5405_v26 = vpop.xlane.xlu1 %5404  ;;  %v5763_v43 = vsel %vm5339_vm2, %v13329_v7, 0.0  ;;  %11917 = vmatprep.subr.mxu1 %v14200_v63 }
 0x1a8   : > { %v5408_v39 = vpop.xlane.xlu0 %5407  ;;  %12270 = vpow2.f32 %v5634_v55  ;;  %v5553_v15 = vsub.f32 %v13076_v32, %v5405_v26  ;;  %5764 = vadd.xlane.f32.xlu1 %v5763_v43  ;;  %v5766_v27 = vsel %vm5339_vm2, %v13332_v21, 0.0 }
 0x1a9   : > { %v5554_v19 = vsub.f32 %v13080_v37, %v5408_v39  ;;  %12272 = vpow2.f32 %v5636_v59  ;;  %5767 = vadd.xlane.f32.xlu0 %v5766_v27 }
 0x1aa   : > { %v13342_v4 = vpop.eup %12262  ;;  %v5638_v0 = vmul.f32 1.442695, %v5553_v15 }
 0x1ab   : > { %v5640_v47 = vmul.f32 1.442695, %v5554_v19  ;;  %v13345_v52 = vpop.eup %12264  ;;  %v5411_v32 = vpop.xlane.xlu1 %5410  ;;  %v5769_v37 = vsel %vm5339_vm2, %v13342_v4, 0.0 }
 0x1ac   : > { %v5414_v31 = vpop.xlane.xlu0 %5413  ;;  %12274 = vpow2.f32 %v5638_v0  ;;  %v5555_v10 = vsub.f32 %v13084_v42, %v5411_v32  ;;  %5770 = vadd.xlane.f32.xlu1 %v5769_v37  ;;  %v5772_v3 = vsel %vm5339_vm2, %v13345_v52, 0.0 }
 0x1ad   : > { %v5556_v16 = vsub.f32 %v13088_v48, %v5414_v31  ;;  %12276 = vpow2.f32 %v5640_v47  ;;  %5773 = vadd.xlane.f32.xlu0 %v5772_v3 }
 0x1ae   : > { %v13355_v61 = vpop.eup %12266  ;;  %v5642_v55 = vmul.f32 1.442695, %v5555_v10 }
 0x1af   : > { %v5644_v59 = vmul.f32 1.442695, %v5556_v16  ;;  %v13357_v38 = vpop.eup %12268  ;;  %v5417_v26 = vpop.xlane.xlu1 %5416  ;;  %v5775_v42 = vsel %vm5339_vm2, %v13355_v61, 0.0 }
 0x1b0   : > { %v5420_v39 = vpop.xlane.xlu0 %5419  ;;  %12278 = vpow2.f32 %v5642_v55  ;;  %v5557_v48 = vsub.f32 %v13092_v53, %v5417_v26  ;;  %5776 = vadd.xlane.f32.xlu1 %v5775_v42  ;;  %v5778_v15 = vsel %vm5339_vm2, %v13357_v38, 0.0 }
 0x1b1   : > { %v5558_v43 = vsub.f32 %v13096_v58, %v5420_v39  ;;  %12280 = vpow2.f32 %v5644_v59  ;;  %5779 = vadd.xlane.f32.xlu0 %v5778_v15 }
 0x1b2   : > { %v13365_v19 = vpop.eup %12270  ;;  %v5646_v27 = vmul.f32 1.442695, %v5557_v48 }
 0x1b3   : > { %v5648_v0 = vmul.f32 1.442695, %v5558_v43  ;;  %v13367_v47 = vpop.eup %12272  ;;  %v5423_v51 = vpop.xlane.xlu1 %5422  ;;  %v5781_v31 = vsel %vm5339_vm2, %v13365_v19, 0.0 }
 0x1b4   : > { %v5426_v32 = vpop.xlane.xlu0 %5425  ;;  %12282 = vpow2.f32 %v5646_v27  ;;  %v5559_v53 = vsub.f32 %v13100_v1, %v5423_v51  ;;  %5782 = vadd.xlane.f32.xlu1 %v5781_v31  ;;  %v5784_v37 = vsel %vm5339_vm2, %v13367_v47, 0.0 }
 0x1b5   : > { %v5560_v58 = vsub.f32 %v13104_v8, %v5426_v32  ;;  %12284 = vpow2.f32 %v5648_v0  ;;  %5785 = vadd.xlane.f32.xlu0 %v5784_v37 }
 0x1b6   : > { %v13375_v10 = vpop.eup %12274  ;;  %v5650_v16 = vmul.f32 1.442695, %v5559_v53 }
 0x1b7   : > { %v5652_v3 = vmul.f32 1.442695, %v5560_v58  ;;  %v13377_v55 = vpop.eup %12276  ;;  %v5429_v59 = vpop.xlane.xlu1 %5428  ;;  %v5787_v39 = vsel %vm5339_vm2, %v13375_v10, 0.0 }
 0x1b8   : > { %v5432_v26 = vpop.xlane.xlu0 %5431  ;;  %12286 = vpow2.f32 %v5650_v16  ;;  %v5561_v1 = vsub.f32 %v13108_v14, %v5429_v59  ;;  %5788 = vadd.xlane.f32.xlu1 %v5787_v39  ;;  %v5790_v42 = vsel %vm5339_vm2, %v13377_v55, 0.0 }
 0x1b9   : > { %v5562_v8 = vsub.f32 %v13112_v22, %v5432_v26  ;;  %12288 = vpow2.f32 %v5652_v3  ;;  %5791 = vadd.xlane.f32.xlu0 %v5790_v42 }
 0x1ba   : > { %v13385_v48 = vpop.eup %12278  ;;  %v5654_v43 = vmul.f32 1.442695, %v5561_v1 }
 0x1bb   : > { %v5656_v15 = vmul.f32 1.442695, %v5562_v8  ;;  %v13387_v27 = vpop.eup %12280  ;;  %v5435_v0 = vpop.xlane.xlu1 %5434  ;;  %v5793_v32 = vsel %vm5339_vm2, %v13385_v48, 0.0 }
 0x1bc   : > { %v5438_v51 = vpop.xlane.xlu0 %5437  ;;  %12290 = vpow2.f32 %v5654_v43  ;;  %v5563_v14 = vsub.f32 %v13116_v29, %v5435_v0  ;;  %5794 = vadd.xlane.f32.xlu1 %v5793_v32  ;;  %v5796_v31 = vsel %vm5339_vm2, %v13387_v27, 0.0 }
 0x1bd   : > { %v5564_v22 = vsub.f32 %v13120_v36, %v5438_v51  ;;  %12292 = vpow2.f32 %v5656_v15  ;;  %5797 = vadd.xlane.f32.xlu0 %v5796_v31 }
 0x1be   : > { %v13395_v53 = vpop.eup %12282  ;;  %v5658_v58 = vmul.f32 1.442695, %v5563_v14 }
 0x1bf   : > { %v5660_v37 = vmul.f32 1.442695, %v5564_v22  ;;  %v13397_v16 = vpop.eup %12284  ;;  %v5441_v3 = vpop.xlane.xlu1 %5440  ;;  %v5799_v26 = vsel %vm5339_vm2, %v13395_v53, 0.0 }
 0x1c0   : > { %v5444_v59 = vpop.xlane.xlu0 %5443  ;;  %12294 = vpow2.f32 %v5658_v58  ;;  %v5565_v29 = vsub.f32 %v13124_v44, %v5441_v3  ;;  %5800 = vadd.xlane.f32.xlu1 %v5799_v26  ;;  %v5802_v39 = vsel %vm5339_vm2, %v13397_v16, 0.0 }
 0x1c1   : > { %v5566_v36 = vsub.f32 %v13128_v50, %v5444_v59  ;;  %12296 = vpow2.f32 %v5660_v37  ;;  %5803 = vadd.xlane.f32.xlu0 %v5802_v39 }
 0x1c2   : > { %v13405_v1 = vpop.eup %12286  ;;  %v5662_v8 = vmul.f32 1.442695, %v5565_v29 }
 0x1c3   : > { %v5664_v42 = vmul.f32 1.442695, %v5566_v36  ;;  %v13407_v43 = vpop.eup %12288  ;;  %v5447_v15 = vpop.xlane.xlu1 %5446  ;;  %v5805_v51 = vsel %vm5339_vm2, %v13405_v1, 0.0 }
 0x1c4   : > { %v5450_v0 = vpop.xlane.xlu0 %5449  ;;  %12298 = vpow2.f32 %v5662_v8  ;;  %v5567_v44 = vsub.f32 %v13132_v57, %v5447_v15  ;;  %5806 = vadd.xlane.f32.xlu1 %v5805_v51  ;;  %v5808_v32 = vsel %vm5339_vm2, %v13407_v43, 0.0 }
 0x1c5   : > { %v5568_v50 = vsub.f32 %v13136_v2, %v5450_v0  ;;  %12300 = vpow2.f32 %v5664_v42  ;;  %5809 = vadd.xlane.f32.xlu0 %v5808_v32 }
 0x1c6   : > { %v13415_v14 = vpop.eup %12290  ;;  %v5666_v22 = vmul.f32 1.442695, %v5567_v44 }
 0x1c7   : > { %v5668_v31 = vmul.f32 1.442695, %v5568_v50  ;;  %v13417_v58 = vpop.eup %12292  ;;  %v5453_v37 = vpop.xlane.xlu1 %5452  ;;  %v5811_v59 = vsel %vm5339_vm2, %v13415_v14, 0.0 }
 0x1c8   : > { %v5456_v3 = vpop.xlane.xlu0 %5455  ;;  %12302 = vpow2.f32 %v5666_v22  ;;  %v5569_v57 = vsub.f32 %v13140_v12, %v5453_v37  ;;  %5812 = vadd.xlane.f32.xlu1 %v5811_v59  ;;  %v5814_v26 = vsel %vm5339_vm2, %v13417_v58, 0.0 }
 0x1c9   : > { %v5570_v2 = vsub.f32 %v13144_v20, %v5456_v3  ;;  %12304 = vpow2.f32 %v5668_v31  ;;  %5815 = vadd.xlane.f32.xlu0 %v5814_v26 }
 0x1ca   : > { %v13425_v29 = vpop.eup %12294  ;;  %v5670_v36 = vmul.f32 1.442695, %v5569_v57 }
 0x1cb   : > { %v5672_v39 = vmul.f32 1.442695, %v5570_v2  ;;  %v13427_v8 = vpop.eup %12296  ;;  %v5459_v42 = vpop.xlane.xlu1 %5458  ;;  %v5817_v0 = vsel %vm5339_vm2, %v13425_v29, 0.0 }
 0x1cc   : > { %v5462_v15 = vpop.xlane.xlu0 %5461  ;;  %12306 = vpow2.f32 %v5670_v36  ;;  %v5571_v12 = vsub.f32 %v13148_v30, %v5459_v42  ;;  %5818 = vadd.xlane.f32.xlu1 %v5817_v0  ;;  %v5820_v51 = vsel %vm5339_vm2, %v13427_v8, 0.0 }
 0x1cd   : > { %v5572_v20 = vsub.f32 %v13152_v40, %v5462_v15  ;;  %12308 = vpow2.f32 %v5672_v39  ;;  %5821 = vadd.xlane.f32.xlu0 %v5820_v51 }
 0x1ce   : > { %v13435_v44 = vpop.eup %12298  ;;  %v5674_v50 = vmul.f32 1.442695, %v5571_v12 }
 0x1cf   : > { %v5676_v32 = vmul.f32 1.442695, %v5572_v20  ;;  %v13437_v22 = vpop.eup %12300  ;;  %v5465_v31 = vpop.xlane.xlu1 %5464  ;;  %v5823_v3 = vsel %vm5339_vm2, %v13435_v44, 0.0 }
 0x1d0   : > { %v5468_v37 = vpop.xlane.xlu0 %5467  ;;  %12310 = vpow2.f32 %v5674_v50  ;;  %v5573_v30 = vsub.f32 %v13156_v49, %v5465_v31  ;;  %5824 = vadd.xlane.f32.xlu1 %v5823_v3  ;;  %v5826_v59 = vsel %vm5339_vm2, %v13437_v22, 0.0 }
 0x1d1   : > { %v5574_v40 = vsub.f32 %v13160_v60, %v5468_v37  ;;  %12312 = vpow2.f32 %v5676_v32  ;;  %5827 = vadd.xlane.f32.xlu0 %v5826_v59 }
 0x1d2   : > { %v13445_v57 = vpop.eup %12302  ;;  %v5678_v2 = vmul.f32 1.442695, %v5573_v30 }
 0x1d3   : > { %v5680_v26 = vmul.f32 1.442695, %v5574_v40  ;;  %v13447_v36 = vpop.eup %12304  ;;  %v5471_v39 = vpop.xlane.xlu1 %5470  ;;  %v5829_v15 = vsel %vm5339_vm2, %v13445_v57, 0.0 }
 0x1d4   : > { %v5474_v42 = vpop.xlane.xlu0 %5473  ;;  %12314 = vpow2.f32 %v5678_v2  ;;  %v5575_v49 = vsub.f32 %v13164_v6, %v5471_v39  ;;  %5830 = vadd.xlane.f32.xlu1 %v5829_v15  ;;  %v5832_v0 = vsel %vm5339_vm2, %v13447_v36, 0.0 }
 0x1d5   : > { %v5576_v60 = vsub.f32 %v13168_v18, %v5474_v42  ;;  %12316 = vpow2.f32 %v5680_v26  ;;  %5833 = vadd.xlane.f32.xlu0 %v5832_v0 }
 0x1d6   : > { %v13455_v12 = vpop.eup %12306  ;;  %v5682_v20 = vmul.f32 1.442695, %v5575_v49 }
 0x1d7   : > { %v5684_v51 = vmul.f32 1.442695, %v5576_v60  ;;  %v13457_v50 = vpop.eup %12308  ;;  %v5477_v32 = vpop.xlane.xlu1 %5476  ;;  %v5835_v37 = vsel %vm5339_vm2, %v13455_v12, 0.0 }
 0x1d8   : > { %v5480_v31 = vpop.xlane.xlu0 %5479  ;;  %12318 = vpow2.f32 %v5682_v20  ;;  %v5577_v6 = vsub.f32 %v13172_v33, %v5477_v32  ;;  %5836 = vadd.xlane.f32.xlu1 %v5835_v37  ;;  %v5838_v3 = vsel %vm5339_vm2, %v13457_v50, 0.0 }
 0x1d9   : > { %v5578_v18 = vsub.f32 %v13176_v45, %v5480_v31  ;;  %12320 = vpow2.f32 %v5684_v51  ;;  %5839 = vadd.xlane.f32.xlu0 %v5838_v3 }
 0x1da   : > { %v13465_v30 = vpop.eup %12310  ;;  %v5686_v40 = vmul.f32 1.442695, %v5577_v6 }
 0x1db   : > { %v5688_v59 = vmul.f32 1.442695, %v5578_v18  ;;  %v13467_v2 = vpop.eup %12312  ;;  %v5483_v26 = vpop.xlane.xlu1 %5482  ;;  %v5841_v42 = vsel %vm5339_vm2, %v13465_v30, 0.0 }
 0x1dc   : > { %v5486_v39 = vpop.xlane.xlu0 %5485  ;;  %12322 = vpow2.f32 %v5686_v40  ;;  %v5579_v33 = vsub.f32 %v13180_v56, %v5483_v26  ;;  %5842 = vadd.xlane.f32.xlu1 %v5841_v42  ;;  %v5844_v15 = vsel %vm5339_vm2, %v13467_v2, 0.0 }
 0x1dd   : > { %v5580_v45 = vsub.f32 %v13184_v9, %v5486_v39  ;;  %12324 = vpow2.f32 %v5688_v59  ;;  %5845 = vadd.xlane.f32.xlu0 %v5844_v15  ;;  %v14201_v9 = vld [vmem:[#allocation2_spill] sm:$0xff] }
 0x1de   : > { %v13475_v49 = vpop.eup %12314  ;;  %v5690_v60 = vmul.f32 1.442695, %v5579_v33 }
 0x1df   : > { %v5692_v0 = vmul.f32 1.442695, %v5580_v45  ;;  %v13477_v20 = vpop.eup %12316  ;;  %v5489_v51 = vpop.xlane.xlu1 %5488  ;;  %v5847_v31 = vsel %vm5339_vm2, %v13475_v49, 0.0  ;;  %v14203_v45 = vld [vmem:[#allocation4_spill] sm:$0xff] }
 0x1e0   : > { %v5492_v32 = vpop.xlane.xlu0 %5491  ;;  %12326 = vpow2.f32 %v5690_v60  ;;  %v5581_v56 = vsub.f32 %v13188_v25, %v5489_v51  ;;  %5848 = vadd.xlane.f32.xlu1 %v5847_v31  ;;  %v5850_v6 = vsel %vm5339_vm2, %v13477_v20, 0.0  ;;  %v14202_v25 = vld [vmem:[#allocation3_spill] sm:$0xff] }
 0x1e1   : > { %v5582_v37 = vsub.f32 %v14201_v9, %v5492_v32  ;;  %12328 = vpow2.f32 %v5692_v0  ;;  %5851 = vadd.xlane.f32.xlu0 %v5850_v6  ;;  %v14206_v6 = vld [vmem:[#allocation5_spill] sm:$0xff] }
 0x1e2   : > { %v13485_v18 = vpop.eup %12318  ;;  %v5694_v3 = vmul.f32 1.442695, %v5581_v56 }
 0x1e3   : > { %v5696_v40 = vmul.f32 1.442695, %v5582_v37  ;;  %v13487_v59 = vpop.eup %12320  ;;  %v5495_v26 = vpop.xlane.xlu1 %5494  ;;  %v5853_v42 = vsel %vm5339_vm2, %v13485_v18, 0.0 }
 0x1e4   : > { %v5498_v39 = vpop.xlane.xlu0 %5497  ;;  %12330 = vpow2.f32 %v5694_v3  ;;  %v5583_v33 = vsub.f32 %v14202_v25, %v5495_v26  ;;  %5854 = vadd.xlane.f32.xlu1 %v5853_v42  ;;  %v5856_v60 = vsel %vm5339_vm2, %v13487_v59, 0.0  ;;  %v14207_v26 = vld [vmem:[#allocation6_spill] sm:$0xff] }
 0x1e5   : > { %v5584_v15 = vsub.f32 %v14203_v45, %v5498_v39  ;;  %12332 = vpow2.f32 %v5696_v40  ;;  %5857 = vadd.xlane.f32.xlu0 %v5856_v60 }
 0x1e6   : > { %v13495_v0 = vpop.eup %12322  ;;  %v5698_v51 = vmul.f32 1.442695, %v5583_v33 }
 0x1e7   : > { %14204 = vst [vmem:[#allocation2_spill] sm:$0xff] %v13495_v0  ;;  %v5700_v32 = vmul.f32 1.442695, %v5584_v15  ;;  %v13497_v31 = vpop.eup %12324  ;;  %v5501_v56 = vpop.xlane.xlu1 %5500  ;;  %v5859_v37 = vsel %vm5339_vm2, %v13495_v0, 0.0 }
 0x1e8   : > { %14205 = vst [vmem:[#allocation3_spill] sm:$0xff] %v13497_v31  ;;  %v5504_v9 = vpop.xlane.xlu0 %5503  ;;  %12334 = vpow2.f32 %v5698_v51  ;;  %v5585_v3 = vsub.f32 %v14206_v6, %v5501_v56  ;;  %5860 = vadd.xlane.f32.xlu1 %v5859_v37  ;;  %v5862_v40 = vsel %vm5339_vm2, %v13497_v31, 0.0  ;;  %v14210_v56 = vld [vmem:[#allocation7_spill] sm:$0xff]  ;;  %v14211_v37 = vld [vmem:[#allocation8_spill] sm:$0xff] }
 0x1e9   : > { %v5586_v39 = vsub.f32 %v14207_v26, %v5504_v9  ;;  %12336 = vpow2.f32 %v5700_v32  ;;  %5863 = vadd.xlane.f32.xlu0 %v5862_v40 }
 0x1ea   : > { %v13505_v42 = vpop.eup %12326  ;;  %v5702_v25 = vmul.f32 1.442695, %v5585_v3 }
 0x1eb   : > { %14208 = vst [vmem:[#allocation4_spill] sm:$0xff] %v13505_v42  ;;  %v5704_v33 = vmul.f32 1.442695, %v5586_v39  ;;  %v13507_v45 = vpop.eup %12328  ;;  %v5507_v15 = vpop.xlane.xlu1 %5506  ;;  %v5865_v51 = vsel %vm5339_vm2, %v13505_v42, 0.0 }
 0x1ec   : > { %14209 = vst [vmem:[#allocation5_spill] sm:$0xff] %v13507_v45  ;;  %v5510_v60 = vpop.xlane.xlu0 %5509  ;;  %12338 = vpow2.f32 %v5702_v25  ;;  %v5587_v9 = vsub.f32 %v14210_v56, %v5507_v15  ;;  %5866 = vadd.xlane.f32.xlu1 %v5865_v51  ;;  %v5868_v32 = vsel %vm5339_vm2, %v13507_v45, 0.0  ;;  %v14214_v15 = vld [vmem:[#allocation9_spill] sm:$0xff]  ;;  %v14215_v51 = vld [vmem:[#allocation10_spill] sm:$0xff] }
 0x1ed   : > { %v5588_v6 = vsub.f32 %v14211_v37, %v5510_v60  ;;  %12340 = vpow2.f32 %v5704_v33  ;;  %5869 = vadd.xlane.f32.xlu0 %v5868_v32 }
 0x1ee   : > { %v13515_v3 = vpop.eup %12330  ;;  %v5706_v26 = vmul.f32 1.442695, %v5587_v9 }
 0x1ef   : > { %14212 = vst [vmem:[#allocation6_spill] sm:$0xff] %v13515_v3  ;;  %v5708_v39 = vmul.f32 1.442695, %v5588_v6  ;;  %v13517_v40 = vpop.eup %12332  ;;  %v5513_v31 = vpop.xlane.xlu1 %5512  ;;  %v5871_v25 = vsel %vm5339_vm2, %v13515_v3, 0.0 }
 0x1f0   : > { %14213 = vst [vmem:[#allocation7_spill] sm:$0xff] %v13517_v40  ;;  %v5516_v0 = vpop.xlane.xlu0 %5515  ;;  %12342 = vpow2.f32 %v5706_v26  ;;  %v5589_v60 = vsub.f32 %v14214_v15, %v5513_v31  ;;  %5872 = vadd.xlane.f32.xlu1 %v5871_v25  ;;  %v5874_v33 = vsel %vm5339_vm2, %v13517_v40, 0.0  ;;  %v14217_v31 = vld [vmem:[#allocation11_spill] sm:$0xff]  ;;  %v14218_v25 = vld [vmem:[#allocation12_spill] sm:$0xff] }
 0x1f1   : > { %v5590_v56 = vsub.f32 %v14215_v51, %v5516_v0  ;;  %12344 = vpow2.f32 %v5708_v39  ;;  %5875 = vadd.xlane.f32.xlu0 %v5874_v33 }
 0x1f2   : > { %v13525_v9 = vpop.eup %12334  ;;  %v5710_v37 = vmul.f32 1.442695, %v5589_v60 }
 0x1f3   : > { %v5712_v6 = vmul.f32 1.442695, %v5590_v56  ;;  %v13527_v32 = vpop.eup %12336  ;;  %v5519_v45 = vpop.xlane.xlu1 %5518  ;;  %v5877_v26 = vsel %vm5339_vm2, %v13525_v9, 0.0 }
 0x1f4   : > { %14216 = vst [vmem:[#allocation8_spill] sm:$0xff] %v13527_v32  ;;  %v5522_v42 = vpop.xlane.xlu0 %5521  ;;  %12346 = vpow2.f32 %v5710_v37  ;;  %v5591_v0 = vsub.f32 %v14217_v31, %v5519_v45  ;;  %5878 = vadd.xlane.f32.xlu1 %v5877_v26  ;;  %v5880_v39 = vsel %vm5339_vm2, %v13527_v32, 0.0  ;;  %v14219_v45 = vld [vmem:[#allocation13_spill] sm:$0xff]  ;;  %v14220_v26 = vld [vmem:[#allocation14_spill] sm:$0xff] }
 0x1f5   : > { %v5592_v15 = vsub.f32 %v14218_v25, %v5522_v42  ;;  %12348 = vpow2.f32 %v5712_v6  ;;  %5881 = vadd.xlane.f32.xlu0 %v5880_v39 }
 0x1f6   : > { %v13535_v60 = vpop.eup %12338  ;;  %v5714_v51 = vmul.f32 1.442695, %v5591_v0 }
 0x1f7   : > { %v5716_v56 = vmul.f32 1.442695, %v5592_v15  ;;  %v13537_v33 = vpop.eup %12340  ;;  %v5525_v40 = vpop.xlane.xlu1 %5524  ;;  %v5883_v37 = vsel %vm5339_vm2, %v13535_v60, 0.0 }
 0x1f8   : > { %v5528_v3 = vpop.xlane.xlu0 %5527  ;;  %12350 = vpow2.f32 %v5714_v51  ;;  %v5593_v42 = vsub.f32 %v14219_v45, %v5525_v40  ;;  %5884 = vadd.xlane.f32.xlu1 %v5883_v37  ;;  %v5886_v6 = vsel %vm5339_vm2, %v13537_v33, 0.0  ;;  %v14221_v40 = vld [vmem:[#allocation15_spill] sm:$0xff] }
 0x1f9   : > { %v5594_v31 = vsub.f32 %v14220_v26, %v5528_v3  ;;  %12352 = vpow2.f32 %v5716_v56  ;;  %5887 = vadd.xlane.f32.xlu0 %v5886_v6 }
 0x1fa   : > { %v13545_v0 = vpop.eup %12342  ;;  %v5718_v25 = vmul.f32 1.442695, %v5593_v42 }
 0x1fb   : > { %v5720_v15 = vmul.f32 1.442695, %v5594_v31  ;;  %v13547_v39 = vpop.eup %12344  ;;  %v5531_v32 = vpop.xlane.xlu1 %5530  ;;  %v5889_v51 = vsel %vm5339_vm2, %v13545_v0, 0.0 }
 0x1fc   : > { %12354 = vpow2.f32 %v5718_v25  ;;  %v5595_v45 = vsub.f32 %v14221_v40, %v5531_v32  ;;  %5890 = vadd.xlane.f32.xlu1 %v5889_v51  ;;  %v5892_v3 = vsel %vm5339_vm2, %v13547_v39, 0.0 }
 0x1fd   : > { %12356 = vpow2.f32 %v5720_v15  ;;  %5893 = vadd.xlane.f32.xlu0 %v5892_v3 }
 0x1fe   : > { %v13554_v56 = vpop.eup %12346  ;;  %v5722_v37 = vmul.f32 1.442695, %v5595_v45 }
 0x1ff   : > { %v13556_v42 = vpop.eup %12348  ;;  %v5895_v26 = vsel %vm5339_vm2, %v13554_v56, 0.0 }
 0x200   : > { %12358 = vpow2.f32 %v5722_v37  ;;  %5896 = vadd.xlane.f32.xlu1 %v5895_v26  ;;  %v5898_v31 = vsel %vm5339_vm2, %v13556_v42, 0.0 }
 0x201   : > { %5899 = vadd.xlane.f32.xlu0 %v5898_v31 }
 0x202   : > { %v13562_v32 = vpop.eup %12350 }
 0x203   : > { %14222 = vst [vmem:[#allocation9_spill] sm:$0xff] %v13562_v32  ;;  %v13564_v6 = vpop.eup %12352  ;;  %v5901_v25 = vsel %vm5339_vm2, %v13562_v32, 0.0  ;;  %v348_v32 = vld [vmem:[%s13327_s24 + $0x8] sm:$0xf] }
 0x204   : > { %14223 = vst [vmem:[#allocation10_spill] sm:$0xff] %v13564_v6  ;;  %5902 = vadd.xlane.f32.xlu1 %v5901_v25  ;;  %v5904_v15 = vsel %vm5339_vm2, %v13564_v6, 0.0 }
 0x205   : > { %5905 = vadd.xlane.f32.xlu0 %v5904_v15 }
 0x206   : > { %v13570_v51 = vpop.eup %12354 }
 0x207   : > { %14224 = vst [vmem:[#allocation11_spill] sm:$0xff] %v13570_v51  ;;  %v13572_v40 = vpop.eup %12356  ;;  %v5907_v45 = vsel %vm5339_vm2, %v13570_v51, 0.0 }
 0x208   : > { %14225 = vst [vmem:[#allocation12_spill] sm:$0xff] %v13572_v40  ;;  %5908 = vadd.xlane.f32.xlu1 %v5907_v45  ;;  %v5910_v3 = vsel %vm5339_vm2, %v13572_v40, 0.0 }
 0x209   : > { %5911 = vadd.xlane.f32.xlu0 %v5910_v3 }
 0x20a   : > { %v13578_v37 = vpop.eup %12358 }
 0x20b   : > { %v5913_v26 = vsel %vm5339_vm2, %v13578_v37, 0.0 }
 0x20c   : > { %5914 = vadd.xlane.f32.xlu1 %v5913_v26 }
 0x219   : > { %v5726_v31 = vpop.xlane.xlu0 %5725 }
 0x21a   : > { %12360 = vrcp.f32 %v5726_v31 }
 0x21d   : > { %v5729_v25 = vpop.xlane.xlu1 %5728 }
 0x21e   : > { %12362 = vrcp.f32 %v5729_v25  ;;  %v5732_v15 = vpop.xlane.xlu0 %5731 }
 0x21f   : > { %12364 = vrcp.f32 %v5732_v15 }
 0x221   : > { %v5735_v6 = vpop.xlane.xlu1 %5734 }
 0x222   : > { %12366 = vrcp.f32 %v5735_v6  ;;  %v5738_v45 = vpop.xlane.xlu0 %5737 }
 0x223   : > { %12368 = vrcp.f32 %v5738_v45  ;;  %v349_v45 = vld [vmem:[%s13327_s24 + $0xc] sm:$0xf] }
 0x224   : > { %v12361_v40 = vpop.eup %12360 }
 0x225   : > { %v5980_v3 = vmul.f32 %v12361_v40, %v13257_v11  ;;  %v5741_v51 = vpop.xlane.xlu1 %5740  ;;  %v350_v40 = vld [vmem:[%s13327_s24 + $0x10] sm:$0xf] }
 0x226   : > { %12370 = vrcp.f32 %v5741_v51  ;;  %v5744_v26 = vpop.xlane.xlu0 %5743 }
 0x227   : > { %12372 = vrcp.f32 %v5744_v26  ;;  %11905 = vmatmul.mubr.msk.f32.vlgmr.msra.gmra.mrb[64].mxu0 %vm6044_vm4, %v5980_v3 }
 0x228   : > { %v12363_v31 = vpop.eup %12362  ;;  %11913 = vmatpush3.msk.msra.mxu0 %vm6048_vm3, %v348_v32  ;;  %11914 = vmatprep.mubr.msk.f32.mxu0 %vm12497_vm0, %v14200_v63 }
 0x229   : > { %v12365_v6 = vpop.eup %12364  ;;  %v5981_v25 = vmul.f32 %v12363_v31, %v13263_v23  ;;  %v5747_v15 = vpop.xlane.xlu1 %5746  ;;  %11922 = vmatprep.subr.mxu0 %v14200_v63 }
 0x22a   : > { %v5982_v11 = vmul.f32 %v12365_v6, %v13265_v46  ;;  %12374 = vrcp.f32 %v5747_v15  ;;  %v5750_v51 = vpop.xlane.xlu0 %5749  ;;  %v351_v46 = vld [vmem:[%s13327_s24 + $0x14] sm:$0xf] }
 0x22b   : > { %12376 = vrcp.f32 %v5750_v51  ;;  %11910 = vmatmul.mubr.msk.f32.vlgmr.msra.gmra.mrb[64].mxu1 %vm6044_vm4, %v5981_v25  ;;  %v352_v25 = vld [vmem:[%s13327_s24 + $0x18] sm:$0xf] }
 0x22c   : > { %v12367_v32 = vpop.eup %12366  ;;  %11915 = vmatmul.mubr.msk.f32.vlgmr.msra.gmra.mrb[66].mxu0 %vm6044_vm4, %v5982_v11  ;;  %11918 = vmatpush3.msk.msra.mxu1 %vm6048_vm3, %v349_v45  ;;  %v353_v11 = vld [vmem:[%s13327_s24 + $0x1c] sm:$0xf] }
 0x22d   : > { %v12369_v23 = vpop.eup %12368  ;;  %v5983_v3 = vmul.f32 %v12367_v32, %v13273_v5  ;;  %v5753_v26 = vpop.xlane.xlu1 %5752  ;;  %11919 = vmatprep.mubr.msk.f32.mxu1 %vm12497_vm0, %v14200_v63  ;;  %11923 = vmatpush3.msk.msra.mxu0 %vm6048_vm3, %v350_v40  ;;  %v354_v32 = vld [vmem:[%s13327_s24 + $0x20] sm:$0xf] }
 0x22e   : > { %v5984_v31 = vmul.f32 %v12369_v23, %v13275_v34  ;;  %12378 = vrcp.f32 %v5753_v26  ;;  %v5756_v6 = vpop.xlane.xlu0 %5755  ;;  %11924 = vmatprep.mubr.msk.f32.mxu0 %vm12497_vm0, %v14200_v63  ;;  %11927 = vmatprep.subr.mxu1 %v14200_v63  ;;  %v355_v26 = vld [vmem:[%s13327_s24 + $0x24] sm:$0xf] }
 0x22f   : > { %12380 = vrcp.f32 %v5756_v6  ;;  %11920 = vmatmul.mubr.msk.f32.vlgmr.msra.gmra.mrb[66].mxu1 %vm6044_vm4, %v5983_v3  ;;  %11932 = vmatprep.subr.mxu0 %v14200_v63  ;;  %v356_v6 = vld [vmem:[%s13327_s24 + $0x28] sm:$0xf] }
 0x230   : > { %v12371_v5 = vpop.eup %12370  ;;  %11925 = vmatmul.mubr.msk.f32.vlgmr.msra.gmra.mrb[68].mxu0 %vm6044_vm4, %v5984_v31  ;;  %11928 = vmatpush3.msk.msra.mxu1 %vm6048_vm3, %v351_v46 }
 0x231   : > { %v12373_v34 = vpop.eup %12372  ;;  %v5985_v15 = vmul.f32 %v12371_v5, %v13283_v24  ;;  %v5759_v45 = vpop.xlane.xlu1 %5758  ;;  %11929 = vmatprep.mubr.msk.f32.mxu1 %vm12497_vm0, %v14200_v63  ;;  %11933 = vmatpush3.msk.msra.mxu0 %vm6048_vm3, %v352_v25 }
 0x232   : > { %v5986_v51 = vmul.f32 %v12373_v34, %v13285_v17  ;;  %12382 = vrcp.f32 %v5759_v45  ;;  %v5762_v40 = vpop.xlane.xlu0 %5761  ;;  %11934 = vmatprep.mubr.msk.f32.mxu0 %vm12497_vm0, %v14200_v63  ;;  %11937 = vmatprep.subr.mxu1 %v14200_v63  ;;  %v357_v34 = vld [vmem:[%s13327_s24 + $0x2c] sm:$0xf] }
 0x233   : > { %12384 = vrcp.f32 %v5762_v40  ;;  %11930 = vmatmul.mubr.msk.f32.vlgmr.msra.gmra.mrb[68].mxu1 %vm6044_vm4, %v5985_v15  ;;  %11942 = vmatprep.subr.mxu0 %v14200_v63 }
 0x234   : > { %v12375_v24 = vpop.eup %12374  ;;  %11935 = vmatmul.mubr.msk.f32.vlgmr.msra.gmra.mrb[70].mxu0 %vm6044_vm4, %v5986_v51  ;;  %11938 = vmatpush3.msk.msra.mxu1 %vm6048_vm3, %v353_v11  ;;  %v358_v11 = vld [vmem:[%s13327_s24 + $0x30] sm:$0xf] }
 0x235   : > { %v12377_v17 = vpop.eup %12376  ;;  %v5987_v23 = vmul.f32 %v12375_v24, %v13293_v13  ;;  %v5765_v3 = vpop.xlane.xlu1 %5764  ;;  %11939 = vmatprep.mubr.msk.f32.mxu1 %vm12497_vm0, %v14200_v63  ;;  %11943 = vmatpush3.msk.msra.mxu0 %vm6048_vm3, %v354_v32  ;;  %v359_v32 = vld [vmem:[%s13327_s24 + $0x34] sm:$0xf] }
 0x236   : > { %v5988_v46 = vmul.f32 %v12377_v17, %v13295_v35  ;;  %12386 = vrcp.f32 %v5765_v3  ;;  %v5768_v31 = vpop.xlane.xlu0 %5767  ;;  %11944 = vmatprep.mubr.msk.f32.mxu0 %vm12497_vm0, %v14200_v63  ;;  %11947 = vmatprep.subr.mxu1 %v14200_v63 }
 0x237   : > { %12388 = vrcp.f32 %v5768_v31  ;;  %11940 = vmatmul.mubr.msk.f32.vlgmr.msra.gmra.mrb[70].mxu1 %vm6044_vm4, %v5987_v23  ;;  %11952 = vmatprep.subr.mxu0 %v14200_v63  ;;  %v360_v23 = vld [vmem:[%s13327_s24 + $0x38] sm:$0xf] }
 0x238   : > { %v12379_v13 = vpop.eup %12378  ;;  %11945 = vmatmul.mubr.msk.f32.vlgmr.msra.gmra.mrb[72].mxu0 %vm6044_vm4, %v5988_v46  ;;  %11948 = vmatpush3.msk.msra.mxu1 %vm6048_vm3, %v355_v26  ;;  %v361_v46 = vld [vmem:[%s13327_s24 + $0x3c] sm:$0xf] }
 0x239   : > { %v12381_v35 = vpop.eup %12380  ;;  %v5989_v25 = vmul.f32 %v12379_v13, %v13303_v62  ;;  %v5771_v5 = vpop.xlane.xlu1 %5770  ;;  %11949 = vmatprep.mubr.msk.f32.mxu1 %vm12497_vm0, %v14200_v63  ;;  %11953 = vmatpush3.msk.msra.mxu0 %vm6048_vm3, %v356_v6  ;;  %v362_v13 = vld [vmem:[%s13327_s24 + $0x40] sm:$0xf] }
 0x23a   : > { %v5990_v15 = vmul.f32 %v12381_v35, %v13305_v41  ;;  %12390 = vrcp.f32 %v5771_v5  ;;  %v5774_v45 = vpop.xlane.xlu0 %5773  ;;  %11954 = vmatprep.mubr.msk.f32.mxu0 %vm12497_vm0, %v14200_v63  ;;  %11957 = vmatprep.subr.mxu1 %v14200_v63  ;;  %v363_v5 = vld [vmem:[%s13327_s24 + $0x44] sm:$0xf] }
 0x23b   : > { %12392 = vrcp.f32 %v5774_v45  ;;  %11950 = vmatmul.mubr.msk.f32.vlgmr.msra.gmra.mrb[72].mxu1 %vm6044_vm4, %v5989_v25  ;;  %11962 = vmatprep.subr.mxu0 %v14200_v63  ;;  %v364_v45 = vld [vmem:[%s13327_s24 + $0x48] sm:$0xf] }
 0x23c   : > { %v12383_v62 = vpop.eup %12382  ;;  %11955 = vmatmul.mubr.msk.f32.vlgmr.msra.gmra.mrb[74].mxu0 %vm6044_vm4, %v5990_v15  ;;  %11958 = vmatpush3.msk.msra.mxu1 %vm6048_vm3, %v357_v34 }
 0x23d   : > { %v12385_v41 = vpop.eup %12384  ;;  %v5991_v51 = vmul.f32 %v12383_v62, %v13313_v28  ;;  %v5777_v40 = vpop.xlane.xlu1 %5776  ;;  %11959 = vmatprep.mubr.msk.f32.mxu1 %vm12497_vm0, %v14200_v63  ;;  %11963 = vmatpush3.msk.msra.mxu0 %vm6048_vm3, %v358_v11 }
 0x23e   : > { %v5992_v24 = vmul.f32 %v12385_v41, %v13315_v54  ;;  %12394 = vrcp.f32 %v5777_v40  ;;  %v5780_v17 = vpop.xlane.xlu0 %5779  ;;  %11964 = vmatprep.mubr.msk.f32.mxu0 %vm12497_vm0, %v14200_v63  ;;  %11967 = vmatprep.subr.mxu1 %v14200_v63  ;;  %v365_v41 = vld [vmem:[%s13327_s24 + $0x4c] sm:$0xf] }
 0x23f   : > { %12396 = vrcp.f32 %v5780_v17  ;;  %11960 = vmatmul.mubr.msk.f32.vlgmr.msra.gmra.mrb[74].mxu1 %vm6044_vm4, %v5991_v51  ;;  %11972 = vmatprep.subr.mxu0 %v14200_v63 }
 0x240   : > { %v12387_v28 = vpop.eup %12386  ;;  %11965 = vmatmul.mubr.msk.f32.vlgmr.msra.gmra.mrb[76].mxu0 %vm6044_vm4, %v5992_v24  ;;  %11968 = vmatpush3.msk.msra.mxu1 %vm6048_vm3, %v359_v32  ;;  %v366_v32 = vld [vmem:[%s13327_s24 + $0x50] sm:$0xf] }
 0x241   : > { %v12389_v54 = vpop.eup %12388  ;;  %v5993_v3 = vmul.f32 %v12387_v28, %v13329_v7  ;;  %v5783_v26 = vpop.xlane.xlu1 %5782  ;;  %11969 = vmatprep.mubr.msk.f32.mxu1 %vm12497_vm0, %v14200_v63  ;;  %11973 = vmatpush3.msk.msra.mxu0 %vm6048_vm3, %v360_v23  ;;  %v367_v23 = vld [vmem:[%s13327_s24 + $0x54] sm:$0xf] }
 0x242   : > { %v5994_v31 = vmul.f32 %v12389_v54, %v13332_v21  ;;  %12398 = vrcp.f32 %v5783_v26  ;;  %v5786_v6 = vpop.xlane.xlu0 %5785  ;;  %11974 = vmatprep.mubr.msk.f32.mxu0 %vm12497_vm0, %v14200_v63  ;;  %11977 = vmatprep.subr.mxu1 %v14200_v63 }
 0x243   : > { %12400 = vrcp.f32 %v5786_v6  ;;  %11970 = vmatmul.mubr.msk.f32.vlgmr.msra.gmra.mrb[76].mxu1 %vm6044_vm4, %v5993_v3  ;;  %11982 = vmatprep.subr.mxu0 %v14200_v63  ;;  %v368_v3 = vld [vmem:[%s13327_s24 + $0x58] sm:$0xf] }
 0x244   : > { %v12391_v7 = vpop.eup %12390  ;;  %11975 = vmatmul.mubr.msk.f32.vlgmr.msra.gmra.mrb[78].mxu0 %vm6044_vm4, %v5994_v31  ;;  %11978 = vmatpush3.msk.msra.mxu1 %vm6048_vm3, %v361_v46  ;;  %v369_v31 = vld [vmem:[%s13327_s24 + $0x5c] sm:$0xf] }
 0x245   : > { %v12393_v21 = vpop.eup %12392  ;;  %v5995_v35 = vmul.f32 %v12391_v7, %v13342_v4  ;;  %v5789_v25 = vpop.xlane.xlu1 %5788  ;;  %11979 = vmatprep.mubr.msk.f32.mxu1 %vm12497_vm0, %v14200_v63  ;;  %11983 = vmatpush3.msk.msra.mxu0 %vm6048_vm3, %v362_v13  ;;  %v370_v7 = vld [vmem:[%s13327_s24 + $0x60] sm:$0xf] }
 0x246   : > { %v5996_v34 = vmul.f32 %v12393_v21, %v13345_v52  ;;  %12402 = vrcp.f32 %v5789_v25  ;;  %v5792_v15 = vpop.xlane.xlu0 %5791  ;;  %11984 = vmatprep.mubr.msk.f32.mxu0 %vm12497_vm0, %v14200_v63  ;;  %11987 = vmatprep.subr.mxu1 %v14200_v63  ;;  %v371_v25 = vld [vmem:[%s13327_s24 + $0x64] sm:$0xf] }
 0x247   : > { %12404 = vrcp.f32 %v5792_v15  ;;  %11980 = vmatmul.mubr.msk.f32.vlgmr.msra.gmra.mrb[78].mxu1 %vm6044_vm4, %v5995_v35  ;;  %11992 = vmatprep.subr.mxu0 %v14200_v63  ;;  %v372_v15 = vld [vmem:[%s13327_s24 + $0x68] sm:$0xf] }
 0x248   : > { %v12395_v4 = vpop.eup %12394  ;;  %11985 = vmatmul.mubr.msk.f32.vlgmr.msra.gmra.mrb[80].mxu0 %vm6044_vm4, %v5996_v34  ;;  %11988 = vmatpush3.msk.msra.mxu1 %vm6048_vm3, %v363_v5 }
 0x249   : > { %v12397_v52 = vpop.eup %12396  ;;  %v5997_v11 = vmul.f32 %v12395_v4, %v13355_v61  ;;  %v5795_v62 = vpop.xlane.xlu1 %5794  ;;  %11989 = vmatprep.mubr.msk.f32.mxu1 %vm12497_vm0, %v14200_v63  ;;  %11993 = vmatpush3.msk.msra.mxu0 %vm6048_vm3, %v364_v45 }
 0x24a   : > { %v5998_v51 = vmul.f32 %v12397_v52, %v13357_v38  ;;  %12406 = vrcp.f32 %v5795_v62  ;;  %v5798_v40 = vpop.xlane.xlu0 %5797  ;;  %11994 = vmatprep.mubr.msk.f32.mxu0 %vm12497_vm0, %v14200_v63  ;;  %11997 = vmatprep.subr.mxu1 %v14200_v63  ;;  %v373_v52 = vld [vmem:[%s13327_s24 + $0x6c] sm:$0xf] }
 0x24b   : > { %12408 = vrcp.f32 %v5798_v40  ;;  %11990 = vmatmul.mubr.msk.f32.vlgmr.msra.gmra.mrb[80].mxu1 %vm6044_vm4, %v5997_v11  ;;  %12002 = vmatprep.subr.mxu0 %v14200_v63 }
 0x24c   : > { %v12399_v61 = vpop.eup %12398  ;;  %11995 = vmatmul.mubr.msk.f32.vlgmr.msra.gmra.mrb[82].mxu0 %vm6044_vm4, %v5998_v51  ;;  %11998 = vmatpush3.msk.msra.mxu1 %vm6048_vm3, %v365_v41  ;;  %v374_v41 = vld [vmem:[%s13327_s24 + $0x70] sm:$0xf] }
 0x24d   : > { %v12401_v38 = vpop.eup %12400  ;;  %v5999_v24 = vmul.f32 %v12399_v61, %v13365_v19  ;;  %v5801_v17 = vpop.xlane.xlu1 %5800  ;;  %11999 = vmatprep.mubr.msk.f32.mxu1 %vm12497_vm0, %v14200_v63  ;;  %12003 = vmatpush3.msk.msra.mxu0 %vm6048_vm3, %v366_v32  ;;  %v375_v32 = vld [vmem:[%s13327_s24 + $0x74] sm:$0xf] }
 0x24e   : > { %v6000_v28 = vmul.f32 %v12401_v38, %v13367_v47  ;;  %12410 = vrcp.f32 %v5801_v17  ;;  %v5804_v54 = vpop.xlane.xlu0 %5803  ;;  %12004 = vmatprep.mubr.msk.f32.mxu0 %vm12497_vm0, %v14200_v63  ;;  %12007 = vmatprep.subr.mxu1 %v14200_v63 }
 0x24f   : > { %12412 = vrcp.f32 %v5804_v54  ;;  %12000 = vmatmul.mubr.msk.f32.vlgmr.msra.gmra.mrb[82].mxu1 %vm6044_vm4, %v5999_v24  ;;  %12012 = vmatprep.subr.mxu0 %v14200_v63  ;;  %v376_v24 = vld [vmem:[%s13327_s24 + $0x78] sm:$0xf] }
 0x250   : > { %v12403_v19 = vpop.eup %12402  ;;  %12005 = vmatmul.mubr.msk.f32.vlgmr.msra.gmra.mrb[84].mxu0 %vm6044_vm4, %v6000_v28  ;;  %12008 = vmatpush3.msk.msra.mxu1 %vm6048_vm3, %v367_v23  ;;  %v377_v28 = vld [vmem:[%s13327_s24 + $0x7c] sm:$0xf] }
 0x251   : > { %v12405_v47 = vpop.eup %12404  ;;  %v6001_v26 = vmul.f32 %v12403_v19, %v13375_v10  ;;  %v5807_v46 = vpop.xlane.xlu1 %5806  ;;  %12009 = vmatprep.mubr.msk.f32.mxu1 %vm12497_vm0, %v14200_v63  ;;  %12013 = vmatpush3.msk.msra.mxu0 %vm6048_vm3, %v368_v3  ;;  %v378_v19 = vld [vmem:[%s13327_s24 + $0x80] sm:$0xf] }
 0x252   : > { %v6002_v6 = vmul.f32 %v12405_v47, %v13377_v55  ;;  %12414 = vrcp.f32 %v5807_v46  ;;  %v5810_v13 = vpop.xlane.xlu0 %5809  ;;  %12014 = vmatprep.mubr.msk.f32.mxu0 %vm12497_vm0, %v14200_v63  ;;  %12017 = vmatprep.subr.mxu1 %v14200_v63  ;;  %v379_v46 = vld [vmem:[%s13327_s24 + $0x84] sm:$0xf] }
 0x253   : > { %12416 = vrcp.f32 %v5810_v13  ;;  %12010 = vmatmul.mubr.msk.f32.vlgmr.msra.gmra.mrb[84].mxu1 %vm6044_vm4, %v6001_v26  ;;  %12022 = vmatprep.subr.mxu0 %v14200_v63  ;;  %v380_v13 = vld [vmem:[%s13327_s24 + $0x88] sm:$0xf] }
 0x254   : > { %v12407_v10 = vpop.eup %12406  ;;  %12015 = vmatmul.mubr.msk.f32.vlgmr.msra.gmra.mrb[86].mxu0 %vm6044_vm4, %v6002_v6  ;;  %12018 = vmatpush3.msk.msra.mxu1 %vm6048_vm3, %v369_v31 }
 0x255   : > { %v12409_v55 = vpop.eup %12408  ;;  %v6003_v21 = vmul.f32 %v12407_v10, %v13385_v48  ;;  %v5813_v35 = vpop.xlane.xlu1 %5812  ;;  %12019 = vmatprep.mubr.msk.f32.mxu1 %vm12497_vm0, %v14200_v63  ;;  %12023 = vmatpush3.msk.msra.mxu0 %vm6048_vm3, %v370_v7 }
 0x256   : > { %v6004_v5 = vmul.f32 %v12409_v55, %v13387_v27  ;;  %12418 = vrcp.f32 %v5813_v35  ;;  %v5816_v34 = vpop.xlane.xlu0 %5815  ;;  %12024 = vmatprep.mubr.msk.f32.mxu0 %vm12497_vm0, %v14200_v63  ;;  %12027 = vmatprep.subr.mxu1 %v14200_v63  ;;  %v381_v55 = vld [vmem:[%s13327_s24 + $0x8c] sm:$0xf] }
 0x257   : > { %12420 = vrcp.f32 %v5816_v34  ;;  %12020 = vmatmul.mubr.msk.f32.vlgmr.msra.gmra.mrb[86].mxu1 %vm6044_vm4, %v6003_v21  ;;  %12032 = vmatprep.subr.mxu0 %v14200_v63 }
 0x258   : > { %v12411_v48 = vpop.eup %12410  ;;  %12025 = vmatmul.mubr.msk.f32.vlgmr.msra.gmra.mrb[88].mxu0 %vm6044_vm4, %v6004_v5  ;;  %12028 = vmatpush3.msk.msra.mxu1 %vm6048_vm3, %v371_v25  ;;  %v382_v25 = vld [vmem:[%s13327_s24 + $0x90] sm:$0xf] }
 0x259   : > { %v12413_v27 = vpop.eup %12412  ;;  %v6005_v45 = vmul.f32 %v12411_v48, %v13395_v53  ;;  %v5819_v4 = vpop.xlane.xlu1 %5818  ;;  %12029 = vmatprep.mubr.msk.f32.mxu1 %vm12497_vm0, %v14200_v63  ;;  %12033 = vmatpush3.msk.msra.mxu0 %vm6048_vm3, %v372_v15  ;;  %v383_v15 = vld [vmem:[%s13327_s24 + $0x94] sm:$0xf] }
 0x25a   : > { %v6006_v11 = vmul.f32 %v12413_v27, %v13397_v16  ;;  %12422 = vrcp.f32 %v5819_v4  ;;  %v5822_v62 = vpop.xlane.xlu0 %5821  ;;  %12034 = vmatprep.mubr.msk.f32.mxu0 %vm12497_vm0, %v14200_v63  ;;  %12037 = vmatprep.subr.mxu1 %v14200_v63 }
 0x25b   : > { %12424 = vrcp.f32 %v5822_v62  ;;  %12030 = vmatmul.mubr.msk.f32.vlgmr.msra.gmra.mrb[88].mxu1 %vm6044_vm4, %v6005_v45  ;;  %12042 = vmatprep.subr.mxu0 %v14200_v63  ;;  %v384_v45 = vld [vmem:[%s13327_s24 + $0x98] sm:$0xf] }
 0x25c   : > { %v12415_v53 = vpop.eup %12414  ;;  %12035 = vmatmul.mubr.msk.f32.vlgmr.msra.gmra.mrb[90].mxu0 %vm6044_vm4, %v6006_v11  ;;  %12038 = vmatpush3.msk.msra.mxu1 %vm6048_vm3, %v373_v52  ;;  %v385_v11 = vld [vmem:[%s13327_s24 + $0x9c] sm:$0xf] }
 0x25d   : > { %v12417_v16 = vpop.eup %12416  ;;  %v6007_v51 = vmul.f32 %v12415_v53, %v13405_v1  ;;  %v5825_v40 = vpop.xlane.xlu1 %5824  ;;  %12039 = vmatprep.mubr.msk.f32.mxu1 %vm12497_vm0, %v14200_v63  ;;  %12043 = vmatpush3.msk.msra.mxu0 %vm6048_vm3, %v374_v41  ;;  %v386_v53 = vld [vmem:[%s13327_s24 + $0xa0] sm:$0xf] }
 0x25e   : > { %v6008_v61 = vmul.f32 %v12417_v16, %v13407_v43  ;;  %12426 = vrcp.f32 %v5825_v40  ;;  %v5828_v38 = vpop.xlane.xlu0 %5827  ;;  %12044 = vmatprep.mubr.msk.f32.mxu0 %vm12497_vm0, %v14200_v63  ;;  %12047 = vmatprep.subr.mxu1 %v14200_v63  ;;  %v387_v40 = vld [vmem:[%s13327_s24 + $0xa4] sm:$0xf] }
 0x25f   : > { %12428 = vrcp.f32 %v5828_v38  ;;  %12040 = vmatmul.mubr.msk.f32.vlgmr.msra.gmra.mrb[90].mxu1 %vm6044_vm4, %v6007_v51  ;;  %12052 = vmatprep.subr.mxu0 %v14200_v63  ;;  %v388_v38 = vld [vmem:[%s13327_s24 + $0xa8] sm:$0xf] }
 0x260   : > { %v12419_v1 = vpop.eup %12418  ;;  %12045 = vmatmul.mubr.msk.f32.vlgmr.msra.gmra.mrb[92].mxu0 %vm6044_vm4, %v6008_v61  ;;  %12048 = vmatpush3.msk.msra.mxu1 %vm6048_vm3, %v375_v32 }
 0x261   : > { %v12421_v43 = vpop.eup %12420  ;;  %v6009_v17 = vmul.f32 %v12419_v1, %v13415_v14  ;;  %v5831_v23 = vpop.xlane.xlu1 %5830  ;;  %12049 = vmatprep.mubr.msk.f32.mxu1 %vm12497_vm0, %v14200_v63  ;;  %12053 = vmatpush3.msk.msra.mxu0 %vm6048_vm3, %v376_v24 }
 0x262   : > { %v6010_v54 = vmul.f32 %v12421_v43, %v13417_v58  ;;  %12430 = vrcp.f32 %v5831_v23  ;;  %v5834_v3 = vpop.xlane.xlu0 %5833  ;;  %12054 = vmatprep.mubr.msk.f32.mxu0 %vm12497_vm0, %v14200_v63  ;;  %12057 = vmatprep.subr.mxu1 %v14200_v63  ;;  %v389_v43 = vld [vmem:[%s13327_s24 + $0xac] sm:$0xf] }
 0x263   : > { %12432 = vrcp.f32 %v5834_v3  ;;  %12050 = vmatmul.mubr.msk.f32.vlgmr.msra.gmra.mrb[92].mxu1 %vm6044_vm4, %v6009_v17  ;;  %12062 = vmatprep.subr.mxu0 %v14200_v63 }
 0x264   : > { %v12423_v14 = vpop.eup %12422  ;;  %12055 = vmatmul.mubr.msk.f32.vlgmr.msra.gmra.mrb[94].mxu0 %vm6044_vm4, %v6010_v54  ;;  %12058 = vmatpush3.msk.msra.mxu1 %vm6048_vm3, %v377_v28  ;;  %v390_v28 = vld [vmem:[%s13327_s24 + $0xb0] sm:$0xf] }
 0x265   : > { %v12425_v58 = vpop.eup %12424  ;;  %v6011_v47 = vmul.f32 %v12423_v14, %v13425_v29  ;;  %v5837_v26 = vpop.xlane.xlu1 %5836  ;;  %12059 = vmatprep.mubr.msk.f32.mxu1 %vm12497_vm0, %v14200_v63  ;;  %12063 = vmatpush3.msk.msra.mxu0 %vm6048_vm3, %v378_v19  ;;  %v391_v19 = vld [vmem:[%s13327_s24 + $0xb4] sm:$0xf] }
 0x266   : > { %v6012_v31 = vmul.f32 %v12425_v58, %v13427_v8  ;;  %12434 = vrcp.f32 %v5837_v26  ;;  %v5840_v6 = vpop.xlane.xlu0 %5839  ;;  %12064 = vmatprep.mubr.msk.f32.mxu0 %vm12497_vm0, %v14200_v63  ;;  %12067 = vmatprep.subr.mxu1 %v14200_v63  ;;  %v14226_v26 = vld [vmem:[#allocation2_spill] sm:$0xff] }
 0x267   : > { %12436 = vrcp.f32 %v5840_v6  ;;  %12060 = vmatmul.mubr.msk.f32.vlgmr.msra.gmra.mrb[94].mxu1 %vm6044_vm4, %v6011_v47  ;;  %12072 = vmatprep.subr.mxu0 %v14200_v63  ;;  %v392_v47 = vld [vmem:[%s13327_s24 + $0xb8] sm:$0xf]  ;;  %v393_v6 = vld [vmem:[%s13327_s24 + $0xbc] sm:$0xf] }
 0x268   : > { %v12427_v29 = vpop.eup %12426  ;;  %12065 = vmatmul.mubr.msk.f32.vlgmr.msra.gmra.mrb[96].mxu0 %vm6044_vm4, %v6012_v31  ;;  %12068 = vmatpush3.msk.msra.mxu1 %vm6048_vm3, %v379_v46 }
 0x269   : > { %v12429_v8 = vpop.eup %12428  ;;  %v6013_v7 = vmul.f32 %v12427_v29, %v13435_v44  ;;  %v5843_v10 = vpop.xlane.xlu1 %5842  ;;  %12069 = vmatprep.mubr.msk.f32.mxu1 %vm12497_vm0, %v14200_v63  ;;  %12073 = vmatpush3.msk.msra.mxu0 %vm6048_vm3, %v380_v13  ;;  %v14227_v13 = vld [vmem:[#allocation3_spill] sm:$0xff] }
 0x26a   : > { %v6014_v21 = vmul.f32 %v12429_v8, %v13437_v22  ;;  %12438 = vrcp.f32 %v5843_v10  ;;  %v5846_v35 = vpop.xlane.xlu0 %5845  ;;  %12074 = vmatprep.mubr.msk.f32.mxu0 %vm12497_vm0, %v14200_v63  ;;  %12077 = vmatprep.subr.mxu1 %v14200_v63 }
 0x26b   : > { %12440 = vrcp.f32 %v5846_v35  ;;  %12070 = vmatmul.mubr.msk.f32.vlgmr.msra.gmra.mrb[96].mxu1 %vm6044_vm4, %v6013_v7  ;;  %12082 = vmatprep.subr.mxu0 %v14200_v63  ;;  %v394_v7 = vld [vmem:[%s13327_s24 + $0xc0] sm:$0xf] }
 0x26c   : > { %v12431_v44 = vpop.eup %12430  ;;  %12075 = vmatmul.mubr.msk.f32.vlgmr.msra.gmra.mrb[98].mxu0 %vm6044_vm4, %v6014_v21  ;;  %12078 = vmatpush3.msk.msra.mxu1 %vm6048_vm3, %v381_v55  ;;  %v14228_v21 = vld [vmem:[#allocation4_spill] sm:$0xff] }
 0x26d   : > { %v12433_v22 = vpop.eup %12432  ;;  %v6015_v5 = vmul.f32 %v12431_v44, %v13445_v57  ;;  %v5849_v34 = vpop.xlane.xlu1 %5848  ;;  %12079 = vmatprep.mubr.msk.f32.mxu1 %vm12497_vm0, %v14200_v63  ;;  %12083 = vmatpush3.msk.msra.mxu0 %vm6048_vm3, %v382_v25  ;;  %v395_v44 = vld [vmem:[%s13327_s24 + $0xc4] sm:$0xf] }
 0x26e   : > { %v6016_v48 = vmul.f32 %v12433_v22, %v13447_v36  ;;  %12442 = vrcp.f32 %v5849_v34  ;;  %v5852_v27 = vpop.xlane.xlu0 %5851  ;;  %12084 = vmatprep.mubr.msk.f32.mxu0 %vm12497_vm0, %v14200_v63  ;;  %12087 = vmatprep.subr.mxu1 %v14200_v63  ;;  %v14229_v22 = vld [vmem:[#allocation5_spill] sm:$0xff] }
 0x26f   : > { %12444 = vrcp.f32 %v5852_v27  ;;  %12080 = vmatmul.mubr.msk.f32.vlgmr.msra.gmra.mrb[98].mxu1 %vm6044_vm4, %v6015_v5  ;;  %12092 = vmatprep.subr.mxu0 %v14200_v63 }
 0x270   : > { %v12435_v57 = vpop.eup %12434  ;;  %12085 = vmatmul.mubr.msk.f32.vlgmr.msra.gmra.mrb[100].mxu0 %vm6044_vm4, %v6016_v48  ;;  %12088 = vmatpush3.msk.msra.mxu1 %vm6048_vm3, %v383_v15  ;;  %v396_v15 = vld [vmem:[%s13327_s24 + $0xc8] sm:$0xf] }
 0x271   : > { %v12437_v36 = vpop.eup %12436  ;;  %v6017_v4 = vmul.f32 %v12435_v57, %v13455_v12  ;;  %v5855_v52 = vpop.xlane.xlu1 %5854  ;;  %12089 = vmatprep.mubr.msk.f32.mxu1 %vm12497_vm0, %v14200_v63  ;;  %12093 = vmatpush3.msk.msra.mxu0 %vm6048_vm3, %v384_v45  ;;  %v14230_v45 = vld [vmem:[#allocation6_spill] sm:$0xff] }
 0x272   : > { %v6018_v62 = vmul.f32 %v12437_v36, %v13457_v50  ;;  %12446 = vrcp.f32 %v5855_v52  ;;  %v5858_v41 = vpop.xlane.xlu0 %5857  ;;  %12094 = vmatprep.mubr.msk.f32.mxu0 %vm12497_vm0, %v14200_v63  ;;  %12097 = vmatprep.subr.mxu1 %v14200_v63  ;;  %v14231_v52 = vld [vmem:[#allocation7_spill] sm:$0xff] }
 0x273   : > { %12448 = vrcp.f32 %v5858_v41  ;;  %12090 = vmatmul.mubr.msk.f32.vlgmr.msra.gmra.mrb[100].mxu1 %vm6044_vm4, %v6017_v4  ;;  %12102 = vmatprep.subr.mxu0 %v14200_v63  ;;  %v397_v4 = vld [vmem:[%s13327_s24 + $0xcc] sm:$0xf]  ;;  %v398_v41 = vld [vmem:[%s13327_s24 + $0xd0] sm:$0xf] }
 0x274   : > { %v12439_v12 = vpop.eup %12438  ;;  %12095 = vmatmul.mubr.msk.f32.vlgmr.msra.gmra.mrb[102].mxu0 %vm6044_vm4, %v6018_v62  ;;  %12098 = vmatpush3.msk.msra.mxu1 %vm6048_vm3, %v385_v11 }
 0x275   : > { %v12441_v50 = vpop.eup %12440  ;;  %v6019_v16 = vmul.f32 %v12439_v12, %v13465_v30  ;;  %v5861_v51 = vpop.xlane.xlu1 %5860  ;;  %12099 = vmatprep.mubr.msk.f32.mxu1 %vm12497_vm0, %v14200_v63  ;;  %12103 = vmatpush3.msk.msra.mxu0 %vm6048_vm3, %v386_v53 }
 0x276   : > { %v6020_v32 = vmul.f32 %v12441_v50, %v13467_v2  ;;  %12450 = vrcp.f32 %v5861_v51  ;;  %v5864_v61 = vpop.xlane.xlu0 %5863  ;;  %12104 = vmatprep.mubr.msk.f32.mxu0 %vm12497_vm0, %v14200_v63  ;;  %12107 = vmatprep.subr.mxu1 %v14200_v63  ;;  %v399_v51 = vld [vmem:[%s13327_s24 + $0xd4] sm:$0xf] }
 0x277   : > { %12452 = vrcp.f32 %v5864_v61  ;;  %12100 = vmatmul.mubr.msk.f32.vlgmr.msra.gmra.mrb[102].mxu1 %vm6044_vm4, %v6019_v16  ;;  %12112 = vmatprep.subr.mxu0 %v14200_v63 }
 0x278   : > { %v12443_v30 = vpop.eup %12442  ;;  %12105 = vmatmul.mubr.msk.f32.vlgmr.msra.gmra.mrb[104].mxu0 %vm6044_vm4, %v6020_v32  ;;  %12108 = vmatpush3.msk.msra.mxu1 %vm6048_vm3, %v387_v40  ;;  %v14232_v40 = vld [vmem:[#allocation8_spill] sm:$0xff] }
 0x279   : > { %v12445_v2 = vpop.eup %12444  ;;  %v6021_v24 = vmul.f32 %v12443_v30, %v13475_v49  ;;  %v5867_v1 = vpop.xlane.xlu1 %5866  ;;  %12109 = vmatprep.mubr.msk.f32.mxu1 %vm12497_vm0, %v14200_v63  ;;  %12113 = vmatpush3.msk.msra.mxu0 %vm6048_vm3, %v388_v38  ;;  %v400_v38 = vld [vmem:[%s13327_s24 + $0xd8] sm:$0xf] }
 0x27a   : > { %v6022_v17 = vmul.f32 %v12445_v2, %v13477_v20  ;;  %12454 = vrcp.f32 %v5867_v1  ;;  %v5870_v23 = vpop.xlane.xlu0 %5869  ;;  %12114 = vmatprep.mubr.msk.f32.mxu0 %vm12497_vm0, %v14200_v63  ;;  %12117 = vmatprep.subr.mxu1 %v14200_v63  ;;  %v401_v1 = vld [vmem:[%s13327_s24 + $0xdc] sm:$0xf] }
 0x27b   : > { %12456 = vrcp.f32 %v5870_v23  ;;  %12110 = vmatmul.mubr.msk.f32.vlgmr.msra.gmra.mrb[104].mxu1 %vm6044_vm4, %v6021_v24  ;;  %12122 = vmatprep.subr.mxu0 %v14200_v63  ;;  %v402_v23 = vld [vmem:[%s13327_s24 + $0xe0] sm:$0xf] }
 0x27c   : > { %v12447_v49 = vpop.eup %12446  ;;  %12115 = vmatmul.mubr.msk.f32.vlgmr.msra.gmra.mrb[106].mxu0 %vm6044_vm4, %v6022_v17  ;;  %12118 = vmatpush3.msk.msra.mxu1 %vm6048_vm3, %v389_v43 }
 0x27d   : > { %v12449_v20 = vpop.eup %12448  ;;  %v6023_v54 = vmul.f32 %v12447_v49, %v13485_v18  ;;  %v5873_v3 = vpop.xlane.xlu1 %5872  ;;  %12119 = vmatprep.mubr.msk.f32.mxu1 %vm12497_vm0, %v14200_v63  ;;  %12123 = vmatpush3.msk.msra.mxu0 %vm6048_vm3, %v390_v28 }
 0x27e   : > { %v6024_v14 = vmul.f32 %v12449_v20, %v13487_v59  ;;  %12458 = vrcp.f32 %v5873_v3  ;;  %v5876_v58 = vpop.xlane.xlu0 %5875  ;;  %12124 = vmatprep.mubr.msk.f32.mxu0 %vm12497_vm0, %v14200_v63  ;;  %12127 = vmatprep.subr.mxu1 %v14200_v63  ;;  %v403_v20 = vld [vmem:[%s13327_s24 + $0xe4] sm:$0xf] }
 0x27f   : > { %12460 = vrcp.f32 %v5876_v58  ;;  %12120 = vmatmul.mubr.msk.f32.vlgmr.msra.gmra.mrb[106].mxu1 %vm6044_vm4, %v6023_v54  ;;  %12132 = vmatprep.subr.mxu0 %v14200_v63 }
 0x280   : > { %v12451_v18 = vpop.eup %12450  ;;  %12125 = vmatmul.mubr.msk.f32.vlgmr.msra.gmra.mrb[108].mxu0 %vm6044_vm4, %v6024_v14  ;;  %12128 = vmatpush3.msk.msra.mxu1 %vm6048_vm3, %v391_v19  ;;  %v404_v19 = vld [vmem:[%s13327_s24 + $0xe8] sm:$0xf] }
 0x281   : > { %v12453_v59 = vpop.eup %12452  ;;  %v6025_v46 = vmul.f32 %v12451_v18, %v14226_v26  ;;  %v5879_v31 = vpop.xlane.xlu1 %5878  ;;  %12129 = vmatprep.mubr.msk.f32.mxu1 %vm12497_vm0, %v14200_v63  ;;  %12133 = vmatpush3.msk.msra.mxu0 %vm6048_vm3, %v392_v47  ;;  %v405_v47 = vld [vmem:[%s13327_s24 + $0xec] sm:$0xf] }
 0x282   : > { %v6026_v29 = vmul.f32 %v12453_v59, %v14227_v13  ;;  %12462 = vrcp.f32 %v5879_v31  ;;  %v5882_v8 = vpop.xlane.xlu0 %5881  ;;  %12134 = vmatprep.mubr.msk.f32.mxu0 %vm12497_vm0, %v14200_v63  ;;  %12137 = vmatprep.subr.mxu1 %v14200_v63  ;;  %v406_v59 = vld [vmem:[%s13327_s24 + $0xf0] sm:$0xf]  ;;  %v407_v31 = vld [vmem:[%s13327_s24 + $0xf4] sm:$0xf] }
 0x283   : > { %12464 = vrcp.f32 %v5882_v8  ;;  %12130 = vmatmul.mubr.msk.f32.vlgmr.msra.gmra.mrb[108].mxu1 %vm6044_vm4, %v6025_v46  ;;  %12142 = vmatprep.subr.mxu0 %v14200_v63  ;;  %v14233_v46 = vld [vmem:[#allocation9_spill] sm:$0xff] }
 0x284   : > { %v12455_v10 = vpop.eup %12454  ;;  %12135 = vmatmul.mubr.msk.f32.vlgmr.msra.gmra.mrb[110].mxu0 %vm6044_vm4, %v6026_v29  ;;  %12138 = vmatpush3.msk.msra.mxu1 %vm6048_vm3, %v393_v6  ;;  %v14234_v6 = vld [vmem:[#allocation10_spill] sm:$0xff]  ;;  %v408_v29 = vld [vmem:[%s13327_s24 + $0xf8] sm:$0xf] }
 0x285   : > { %v12457_v55 = vpop.eup %12456  ;;  %v6027_v35 = vmul.f32 %v12455_v10, %v14228_v21  ;;  %v5885_v25 = vpop.xlane.xlu1 %5884  ;;  %12139 = vmatprep.mubr.msk.f32.mxu1 %vm12497_vm0, %v14200_v63  ;;  %12143 = vmatpush3.msk.msra.mxu0 %vm6048_vm3, %v394_v7  ;;  %v14235_v10 = vld [vmem:[#allocation11_spill] sm:$0xff]  ;;  %v409_v21 = vld [vmem:[%s13327_s24 + $0xfc] sm:$0xf] }
 0x286   : > { %v6028_v5 = vmul.f32 %v12457_v55, %v14229_v22  ;;  %12466 = vrcp.f32 %v5885_v25  ;;  %v5888_v34 = vpop.xlane.xlu0 %5887  ;;  %12144 = vmatprep.mubr.msk.f32.mxu0 %vm12497_vm0, %v14200_v63  ;;  %12147 = vmatprep.subr.mxu1 %v14200_v63 }
 0x287   : > { %12468 = vrcp.f32 %v5888_v34  ;;  %12140 = vmatmul.mubr.msk.f32.vlgmr.msra.gmra.mrb[110].mxu1 %vm6044_vm4, %v6027_v35  ;;  %12152 = vmatprep.subr.mxu0 %v14200_v63  ;;  %v14236_v35 = vld [vmem:[#allocation12_spill] sm:$0xff] }
 0x288   : > { %v12459_v48 = vpop.eup %12458  ;;  %12145 = vmatmul.mubr.msk.f32.vlgmr.msra.gmra.mrb[112].mxu0 %vm6044_vm4, %v6028_v5  ;;  %12148 = vmatpush3.msk.msra.mxu1 %vm6048_vm3, %v395_v44 }
 0x289   : > { %v12461_v27 = vpop.eup %12460  ;;  %v6029_v57 = vmul.f32 %v12459_v48, %v14230_v45  ;;  %v5891_v36 = vpop.xlane.xlu1 %5890  ;;  %12149 = vmatprep.mubr.msk.f32.mxu1 %vm12497_vm0, %v14200_v63  ;;  %12153 = vmatpush3.msk.msra.mxu0 %vm6048_vm3, %v396_v15 }
 0x28a   : > { %v6030_v11 = vmul.f32 %v12461_v27, %v14231_v52  ;;  %12470 = vrcp.f32 %v5891_v36  ;;  %v5894_v62 = vpop.xlane.xlu0 %5893  ;;  %12154 = vmatprep.mubr.msk.f32.mxu0 %vm12497_vm0, %v14200_v63  ;;  %12157 = vmatprep.subr.mxu1 %v14200_v63 }
 0x28b   : > { %12472 = vrcp.f32 %v5894_v62  ;;  %12150 = vmatmul.mubr.msk.f32.vlgmr.msra.gmra.mrb[112].mxu1 %vm6044_vm4, %v6029_v57  ;;  %12162 = vmatprep.subr.mxu0 %v14200_v63 }
 0x28c   : > { %v12463_v53 = vpop.eup %12462  ;;  %12155 = vmatmul.mubr.msk.f32.vlgmr.msra.gmra.mrb[114].mxu0 %vm6044_vm4, %v6030_v11  ;;  %12158 = vmatpush3.msk.msra.mxu1 %vm6048_vm3, %v397_v4 }
 0x28d   : > { %v12465_v12 = vpop.eup %12464  ;;  %v6031_v50 = vmul.f32 %v12463_v53, %v13525_v9  ;;  %v5897_v16 = vpop.xlane.xlu1 %5896  ;;  %12159 = vmatprep.mubr.msk.f32.mxu1 %vm12497_vm0, %v14200_v63  ;;  %12163 = vmatpush3.msk.msra.mxu0 %vm6048_vm3, %v398_v41 }
 0x28e   : > { %v6032_v32 = vmul.f32 %v12465_v12, %v14232_v40  ;;  %12474 = vrcp.f32 %v5897_v16  ;;  %v5900_v61 = vpop.xlane.xlu0 %5899  ;;  %12164 = vmatprep.mubr.msk.f32.mxu0 %vm12497_vm0, %v14200_v63  ;;  %12167 = vmatprep.subr.mxu1 %v14200_v63 }
 0x28f   : > { %12476 = vrcp.f32 %v5900_v61  ;;  %12160 = vmatmul.mubr.msk.f32.vlgmr.msra.gmra.mrb[114].mxu1 %vm6044_vm4, %v6031_v50  ;;  %12172 = vmatprep.subr.mxu0 %v14200_v63 }
 0x290   : > { %v12467_v9 = vpop.eup %12466  ;;  %12165 = vmatmul.mubr.msk.f32.vlgmr.msra.gmra.mrb[116].mxu0 %vm6044_vm4, %v6032_v32  ;;  %12168 = vmatpush3.msk.msra.mxu1 %vm6048_vm3, %v399_v51 }
 0x291   : > { %v12469_v30 = vpop.eup %12468  ;;  %v6033_v2 = vmul.f32 %v12467_v9, %v13535_v60  ;;  %v5903_v24 = vpop.xlane.xlu1 %5902  ;;  %12169 = vmatprep.mubr.msk.f32.mxu1 %vm12497_vm0, %v14200_v63  ;;  %12173 = vmatpush3.msk.msra.mxu0 %vm6048_vm3, %v400_v38 }
 0x292   : > { %v6034_v43 = vmul.f32 %v12469_v30, %v13537_v33  ;;  %12478 = vrcp.f32 %v5903_v24  ;;  %v5906_v17 = vpop.xlane.xlu0 %5905  ;;  %12174 = vmatprep.mubr.msk.f32.mxu0 %vm12497_vm0, %v14200_v63  ;;  %12177 = vmatprep.subr.mxu1 %v14200_v63 }
 0x293   : > { %12480 = vrcp.f32 %v5906_v17  ;;  %12170 = vmatmul.mubr.msk.f32.vlgmr.msra.gmra.mrb[116].mxu1 %vm6044_vm4, %v6033_v2  ;;  %12182 = vmatprep.subr.mxu0 %v14200_v63 }
 0x294   : > { %v12471_v60 = vpop.eup %12470  ;;  %12175 = vmatmul.mubr.msk.f32.vlgmr.msra.gmra.mrb[118].mxu0 %vm6044_vm4, %v6034_v43  ;;  %12178 = vmatpush3.msk.msra.mxu1 %vm6048_vm3, %v401_v1 }
 0x295   : > { %v12473_v33 = vpop.eup %12472  ;;  %v6035_v28 = vmul.f32 %v12471_v60, %v13545_v0  ;;  %v5909_v49 = vpop.xlane.xlu1 %5908  ;;  %12179 = vmatprep.mubr.msk.f32.mxu1 %vm12497_vm0, %v14200_v63  ;;  %12183 = vmatpush3.msk.msra.mxu0 %vm6048_vm3, %v402_v23 }
 0x296   : > { %v6036_v54 = vmul.f32 %v12473_v33, %v13547_v39  ;;  %12482 = vrcp.f32 %v5909_v49  ;;  %v5912_v3 = vpop.xlane.xlu0 %5911  ;;  %12184 = vmatprep.mubr.msk.f32.mxu0 %vm12497_vm0, %v14200_v63  ;;  %12187 = vmatprep.subr.mxu1 %v14200_v63 }
 0x297   : > { %12484 = vrcp.f32 %v5912_v3  ;;  %12180 = vmatmul.mubr.msk.f32.vlgmr.msra.gmra.mrb[118].mxu1 %vm6044_vm4, %v6035_v28  ;;  %12192 = vmatprep.subr.mxu0 %v14200_v63 }
 0x298   : > { %v12475_v0 = vpop.eup %12474  ;;  %12185 = vmatmul.mubr.msk.f32.vlgmr.msra.gmra.mrb[120].mxu0 %vm6044_vm4, %v6036_v54  ;;  %12188 = vmatpush3.msk.msra.mxu1 %vm6048_vm3, %v403_v20 }
 0x299   : > { %v12477_v39 = vpop.eup %12476  ;;  %v6037_v14 = vmul.f32 %v12475_v0, %v13554_v56  ;;  %v5915_v58 = vpop.xlane.xlu1 %5914  ;;  %12189 = vmatprep.mubr.msk.f32.mxu1 %vm12497_vm0, %v14200_v63  ;;  %12193 = vmatpush3.msk.msra.mxu0 %vm6048_vm3, %v404_v19 }
 0x29a   : > { %v6038_v18 = vmul.f32 %v12477_v39, %v13556_v42  ;;  %12486 = vrcp.f32 %v5915_v58  ;;  %12194 = vmatprep.mubr.msk.f32.mxu0 %vm12497_vm0, %v14200_v63  ;;  %12197 = vmatprep.subr.mxu1 %v14200_v63 }
 0x29b   : > { %12190 = vmatmul.mubr.msk.f32.vlgmr.msra.gmra.mrb[120].mxu1 %vm6044_vm4, %v6037_v14  ;;  %12202 = vmatprep.subr.mxu0 %v14200_v63 }
 0x29c   : > { %v12479_v56 = vpop.eup %12478  ;;  %12195 = vmatmul.mubr.msk.f32.vlgmr.msra.gmra.mrb[122].mxu0 %vm6044_vm4, %v6038_v18  ;;  %12198 = vmatpush3.msk.msra.mxu1 %vm6048_vm3, %v405_v47 }
 0x29d   : > { %v12481_v26 = vpop.eup %12480  ;;  %v6039_v42 = vmul.f32 %v12479_v56, %v14233_v46  ;;  %12199 = vmatprep.mubr.msk.f32.mxu1 %vm12497_vm0, %v14200_v63  ;;  %12203 = vmatpush3.msk.msra.mxu0 %vm6048_vm3, %v406_v59 }
 0x29e   : > { %v6040_v13 = vmul.f32 %v12481_v26, %v14234_v6  ;;  %12204 = vmatprep.mubr.msk.f32.mxu0 %vm12497_vm0, %v14200_v63  ;;  %12207 = vmatprep.subr.mxu1 %v14200_v63 }
 0x29f   : > { %12200 = vmatmul.mubr.msk.f32.vlgmr.msra.gmra.mrb[122].mxu1 %vm6044_vm4, %v6039_v42  ;;  %12212 = vmatprep.subr.mxu0 %v14200_v63 }
 0x2a0   : > { %v12483_v8 = vpop.eup %12482  ;;  %12205 = vmatmul.mubr.msk.f32.vlgmr.msra.gmra.mrb[124].mxu0 %vm6044_vm4, %v6040_v13  ;;  %12208 = vmatpush3.msk.msra.mxu1 %vm6048_vm3, %v407_v31 }
 0x2a1   : > { %v12485_v7 = vpop.eup %12484  ;;  %v6041_v55 = vmul.f32 %v12483_v8, %v14235_v10  ;;  %12209 = vmatprep.mubr.msk.f32.mxu1 %vm12497_vm0, %v14200_v63  ;;  %12213 = vmatpush3.msk.msra.mxu0 %vm6048_vm3, %v408_v29 }
 0x2a2   : > { %v6042_v25 = vmul.f32 %v12485_v7, %v14236_v35  ;;  %12214 = vmatprep.mubr.msk.f32.mxu0 %vm12497_vm0, %v14200_v63  ;;  %12217 = vmatprep.subr.mxu1 %v14200_v63 }
 0x2a3   : > { %12210 = vmatmul.mubr.msk.f32.vlgmr.msra.gmra.mrb[124].mxu1 %vm6044_vm4, %v6041_v55 }
 0x2a4   : > { %v12487_v44 = vpop.eup %12486  ;;  %12215 = vmatmul.mubr.msk.f32.vlgmr.msra.gmra.mrb[126].mxu0 %vm6044_vm4, %v6042_v25  ;;  %12218 = vmatpush3.msk.msra.mxu1 %vm6048_vm3, %v409_v21 }
 0x2a5   : > { %v6043_v22 = vmul.f32 %v12487_v44, %v13578_v37  ;;  %12219 = vmatprep.mubr.msk.f32.mxu1 %vm12497_vm0, %v14200_v63 }
 0x2a7   : > { %12220 = vmatmul.mubr.msk.f32.vlgmr.msra.gmra.mrb[126].mxu1 %vm6044_vm4, %v6043_v22 }
 0x2fa   : > { %v6118_v5 = vpop.f32.mrb[64].mxu0 }
 0x2fb   : > { %10911 = vst.msk [vmem:[%s14022_s27] sm:$0xf] %vm10910_vm5, %v6118_v5  ;;  %v11906_v37 = vpop.f32.mrb[65].mxu0 }
 0x2fe   : > { %v6194_v34 = vpop.f32.mrb[64].mxu1 }
 0x2ff   : > { %10912 = vst.msk [vmem:[%s14022_s27 + $0x4] sm:$0xf] %vm10910_vm5, %v6194_v34  ;;  %v6270_v63 = vpop.f32.mrb[66].mxu0  ;;  %v11911_v15 = vpop.f32.mrb[65].mxu1 }
 0x300   : > { %10913 = vst.msk [vmem:[%s14022_s27 + $0x8] sm:$0xf] %vm10910_vm5, %v6270_v63  ;;  %v11916_v48 = vpop.f32.mrb[67].mxu0 }
 0x302   : > { %v6346_v27 = vpop.f32.mrb[66].mxu1 }
 0x303   : > { %10914 = vst.msk [vmem:[%s14022_s27 + $0xc] sm:$0xf] %vm10910_vm5, %v6346_v27  ;;  %v6422_v45 = vpop.f32.mrb[68].mxu0  ;;  %v11921_v57 = vpop.f32.mrb[67].mxu1 }
 0x304   : > { %10915 = vst.msk [vmem:[%s14022_s27 + $0x10] sm:$0xf] %vm10910_vm5, %v6422_v45  ;;  %v11926_v36 = vpop.f32.mrb[69].mxu0 }
 0x306   : > { %v6498_v4 = vpop.f32.mrb[68].mxu1 }
 0x307   : > { %10916 = vst.msk [vmem:[%s14022_s27 + $0x14] sm:$0xf] %vm10910_vm5, %v6498_v4  ;;  %v6574_v52 = vpop.f32.mrb[70].mxu0  ;;  %v11931_v11 = vpop.f32.mrb[69].mxu1 }
 0x308   : > { %10917 = vst.msk [vmem:[%s14022_s27 + $0x18] sm:$0xf] %vm10910_vm5, %v6574_v52  ;;  %v11936_v62 = vpop.f32.mrb[71].mxu0 }
 0x30a   : > { %v6650_v41 = vpop.f32.mrb[70].mxu1 }
 0x30b   : > { %10918 = vst.msk [vmem:[%s14022_s27 + $0x1c] sm:$0xf] %vm10910_vm5, %v6650_v41  ;;  %v6726_v53 = vpop.f32.mrb[72].mxu0  ;;  %v11941_v12 = vpop.f32.mrb[71].mxu1 }
 0x30c   : > { %10919 = vst.msk [vmem:[%s14022_s27 + $0x20] sm:$0xf] %vm10910_vm5, %v6726_v53  ;;  %v11946_v50 = vpop.f32.mrb[73].mxu0 }
 0x30e   : > { %v6802_v16 = vpop.f32.mrb[72].mxu1 }
 0x30f   : > { %10920 = vst.msk [vmem:[%s14022_s27 + $0x24] sm:$0xf] %vm10910_vm5, %v6802_v16  ;;  %v6878_v51 = vpop.f32.mrb[74].mxu0  ;;  %v11951_v40 = vpop.f32.mrb[73].mxu1 }
 0x310   : > { %10921 = vst.msk [vmem:[%s14022_s27 + $0x28] sm:$0xf] %vm10910_vm5, %v6878_v51  ;;  %v11956_v32 = vpop.f32.mrb[75].mxu0 }
 0x312   : > { %v6954_v61 = vpop.f32.mrb[74].mxu1 }
 0x313   : > { %10922 = vst.msk [vmem:[%s14022_s27 + $0x2c] sm:$0xf] %vm10910_vm5, %v6954_v61  ;;  %v7030_v38 = vpop.f32.mrb[76].mxu0  ;;  %v11961_v9 = vpop.f32.mrb[75].mxu1 }
 0x314   : > { %10923 = vst.msk [vmem:[%s14022_s27 + $0x30] sm:$0xf] %vm10910_vm5, %v7030_v38  ;;  %v11966_v30 = vpop.f32.mrb[77].mxu0 }
 0x316   : > { %v7106_v2 = vpop.f32.mrb[76].mxu1 }
 0x317   : > { %10924 = vst.msk [vmem:[%s14022_s27 + $0x34] sm:$0xf] %vm10910_vm5, %v7106_v2  ;;  %v7182_v24 = vpop.f32.mrb[78].mxu0  ;;  %v11971_v1 = vpop.f32.mrb[77].mxu1 }
 0x318   : > { %10925 = vst.msk [vmem:[%s14022_s27 + $0x38] sm:$0xf] %vm10910_vm5, %v7182_v24  ;;  %v11976_v43 = vpop.f32.mrb[79].mxu0 }
 0x31a   : > { %v7258_v17 = vpop.f32.mrb[78].mxu1 }
 0x31b   : > { %10926 = vst.msk [vmem:[%s14022_s27 + $0x3c] sm:$0xf] %vm10910_vm5, %v7258_v17  ;;  %v7334_v23 = vpop.f32.mrb[80].mxu0  ;;  %v11981_v60 = vpop.f32.mrb[79].mxu1 }
 0x31c   : > { %10927 = vst.msk [vmem:[%s14022_s27 + $0x40] sm:$0xf] %vm10910_vm5, %v7334_v23  ;;  %v11986_v33 = vpop.f32.mrb[81].mxu0 }
 0x31e   : > { %v7410_v28 = vpop.f32.mrb[80].mxu1 }
 0x31f   : > { %10928 = vst.msk [vmem:[%s14022_s27 + $0x44] sm:$0xf] %vm10910_vm5, %v7410_v28  ;;  %v7486_v49 = vpop.f32.mrb[82].mxu0  ;;  %v11991_v20 = vpop.f32.mrb[81].mxu1 }
 0x320   : > { %10929 = vst.msk [vmem:[%s14022_s27 + $0x48] sm:$0xf] %vm10910_vm5, %v7486_v49  ;;  %v11996_v54 = vpop.f32.mrb[83].mxu0 }
 0x322   : > { %v7562_v3 = vpop.f32.mrb[82].mxu1 }
 0x323   : > { %10930 = vst.msk [vmem:[%s14022_s27 + $0x4c] sm:$0xf] %vm10910_vm5, %v7562_v3  ;;  %v7638_v19 = vpop.f32.mrb[84].mxu0  ;;  %v12001_v0 = vpop.f32.mrb[83].mxu1 }
 0x324   : > { %10931 = vst.msk [vmem:[%s14022_s27 + $0x50] sm:$0xf] %vm10910_vm5, %v7638_v19  ;;  %v12006_v39 = vpop.f32.mrb[85].mxu0 }
 0x326   : > { %v7714_v14 = vpop.f32.mrb[84].mxu1 }
 0x327   : > { %10932 = vst.msk [vmem:[%s14022_s27 + $0x54] sm:$0xf] %vm10910_vm5, %v7714_v14  ;;  %v7790_v58 = vpop.f32.mrb[86].mxu0  ;;  %v12011_v47 = vpop.f32.mrb[85].mxu1 }
 0x328   : > { %10933 = vst.msk [vmem:[%s14022_s27 + $0x58] sm:$0xf] %vm10910_vm5, %v7790_v58  ;;  %v12016_v18 = vpop.f32.mrb[87].mxu0 }
 0x32a   : > { %v7866_v59 = vpop.f32.mrb[86].mxu1 }
 0x32b   : > { %10934 = vst.msk [vmem:[%s14022_s27 + $0x5c] sm:$0xf] %vm10910_vm5, %v7866_v59  ;;  %v7942_v56 = vpop.f32.mrb[88].mxu0  ;;  %v12021_v26 = vpop.f32.mrb[87].mxu1 }
 0x32c   : > { %10935 = vst.msk [vmem:[%s14022_s27 + $0x60] sm:$0xf] %vm10910_vm5, %v7942_v56  ;;  %v12026_v46 = vpop.f32.mrb[89].mxu0 }
 0x32e   : > { %v8018_v42 = vpop.f32.mrb[88].mxu1 }
 0x32f   : > { %10936 = vst.msk [vmem:[%s14022_s27 + $0x64] sm:$0xf] %vm10910_vm5, %v8018_v42  ;;  %v8094_v31 = vpop.f32.mrb[90].mxu0  ;;  %v12031_v6 = vpop.f32.mrb[89].mxu1 }
 0x330   : > { %10937 = vst.msk [vmem:[%s14022_s27 + $0x68] sm:$0xf] %vm10910_vm5, %v8094_v31  ;;  %v12036_v13 = vpop.f32.mrb[91].mxu0 }
 0x332   : > { %v8170_v29 = vpop.f32.mrb[90].mxu1 }
 0x333   : > { %10938 = vst.msk [vmem:[%s14022_s27 + $0x6c] sm:$0xf] %vm10910_vm5, %v8170_v29  ;;  %v8246_v8 = vpop.f32.mrb[92].mxu0  ;;  %v12041_v7 = vpop.f32.mrb[91].mxu1 }
 0x334   : > { %10939 = vst.msk [vmem:[%s14022_s27 + $0x70] sm:$0xf] %vm10910_vm5, %v8246_v8  ;;  %v12046_v10 = vpop.f32.mrb[93].mxu0 }
 0x336   : > { %v8322_v55 = vpop.f32.mrb[92].mxu1 }
 0x337   : > { %10940 = vst.msk [vmem:[%s14022_s27 + $0x74] sm:$0xf] %vm10910_vm5, %v8322_v55  ;;  %v8398_v21 = vpop.f32.mrb[94].mxu0  ;;  %v12051_v35 = vpop.f32.mrb[93].mxu1 }
 0x338   : > { %10941 = vst.msk [vmem:[%s14022_s27 + $0x78] sm:$0xf] %vm10910_vm5, %v8398_v21  ;;  %v12056_v25 = vpop.f32.mrb[95].mxu0 }
 0x33a   : > { %v8474_v44 = vpop.f32.mrb[94].mxu1 }
 0x33b   : > { %10942 = vst.msk [vmem:[%s14022_s27 + $0x7c] sm:$0xf] %vm10910_vm5, %v8474_v44  ;;  %v8550_v22 = vpop.f32.mrb[96].mxu0  ;;  %v12061_v5 = vpop.f32.mrb[95].mxu1 }
 0x33c   : > { %10943 = vst.msk [vmem:[%s14022_s27 + $0x80] sm:$0xf] %vm10910_vm5, %v8550_v22  ;;  %v12066_v37 = vpop.f32.mrb[97].mxu0 }
 0x33e   : > { %v8626_v34 = vpop.f32.mrb[96].mxu1 }
 0x33f   : > { %10944 = vst.msk [vmem:[%s14022_s27 + $0x84] sm:$0xf] %vm10910_vm5, %v8626_v34  ;;  %v8702_v63 = vpop.f32.mrb[98].mxu0  ;;  %v12071_v15 = vpop.f32.mrb[97].mxu1 }
 0x340   : > { %10945 = vst.msk [vmem:[%s14022_s27 + $0x88] sm:$0xf] %vm10910_vm5, %v8702_v63  ;;  %v12076_v48 = vpop.f32.mrb[99].mxu0 }
 0x342   : > { %v8778_v27 = vpop.f32.mrb[98].mxu1 }
 0x343   : > { %10946 = vst.msk [vmem:[%s14022_s27 + $0x8c] sm:$0xf] %vm10910_vm5, %v8778_v27  ;;  %v8854_v45 = vpop.f32.mrb[100].mxu0  ;;  %v12081_v57 = vpop.f32.mrb[99].mxu1 }
 0x344   : > { %10947 = vst.msk [vmem:[%s14022_s27 + $0x90] sm:$0xf] %vm10910_vm5, %v8854_v45  ;;  %v12086_v36 = vpop.f32.mrb[101].mxu0 }
 0x346   : > { %v8930_v4 = vpop.f32.mrb[100].mxu1 }
 0x347   : > { %10948 = vst.msk [vmem:[%s14022_s27 + $0x94] sm:$0xf] %vm10910_vm5, %v8930_v4  ;;  %v9006_v52 = vpop.f32.mrb[102].mxu0  ;;  %v12091_v11 = vpop.f32.mrb[101].mxu1 }
 0x348   : > { %10949 = vst.msk [vmem:[%s14022_s27 + $0x98] sm:$0xf] %vm10910_vm5, %v9006_v52  ;;  %v12096_v62 = vpop.f32.mrb[103].mxu0 }
 0x34a   : > { %v9082_v41 = vpop.f32.mrb[102].mxu1 }
 0x34b   : > { %10950 = vst.msk [vmem:[%s14022_s27 + $0x9c] sm:$0xf] %vm10910_vm5, %v9082_v41  ;;  %v9158_v53 = vpop.f32.mrb[104].mxu0  ;;  %v12101_v12 = vpop.f32.mrb[103].mxu1 }
 0x34c   : > { %10951 = vst.msk [vmem:[%s14022_s27 + $0xa0] sm:$0xf] %vm10910_vm5, %v9158_v53  ;;  %v12106_v50 = vpop.f32.mrb[105].mxu0 }
 0x34e   : > { %v9234_v16 = vpop.f32.mrb[104].mxu1 }
 0x34f   : > { %10952 = vst.msk [vmem:[%s14022_s27 + $0xa4] sm:$0xf] %vm10910_vm5, %v9234_v16  ;;  %v9310_v51 = vpop.f32.mrb[106].mxu0  ;;  %v12111_v40 = vpop.f32.mrb[105].mxu1 }
 0x350   : > { %10953 = vst.msk [vmem:[%s14022_s27 + $0xa8] sm:$0xf] %vm10910_vm5, %v9310_v51  ;;  %v12116_v32 = vpop.f32.mrb[107].mxu0 }
 0x352   : > { %v9386_v61 = vpop.f32.mrb[106].mxu1 }
 0x353   : > { %10954 = vst.msk [vmem:[%s14022_s27 + $0xac] sm:$0xf] %vm10910_vm5, %v9386_v61  ;;  %v9462_v38 = vpop.f32.mrb[108].mxu0  ;;  %v12121_v9 = vpop.f32.mrb[107].mxu1 }
 0x354   : > { %10955 = vst.msk [vmem:[%s14022_s27 + $0xb0] sm:$0xf] %vm10910_vm5, %v9462_v38  ;;  %v12126_v30 = vpop.f32.mrb[109].mxu0 }
 0x356   : > { %v9538_v2 = vpop.f32.mrb[108].mxu1 }
 0x357   : > { %10956 = vst.msk [vmem:[%s14022_s27 + $0xb4] sm:$0xf] %vm10910_vm5, %v9538_v2  ;;  %v9614_v24 = vpop.f32.mrb[110].mxu0  ;;  %v12131_v1 = vpop.f32.mrb[109].mxu1 }
 0x358   : > { %10957 = vst.msk [vmem:[%s14022_s27 + $0xb8] sm:$0xf] %vm10910_vm5, %v9614_v24  ;;  %v12136_v43 = vpop.f32.mrb[111].mxu0 }
 0x35a   : > { %v9690_v17 = vpop.f32.mrb[110].mxu1 }
 0x35b   : > { %10958 = vst.msk [vmem:[%s14022_s27 + $0xbc] sm:$0xf] %vm10910_vm5, %v9690_v17  ;;  %v9766_v23 = vpop.f32.mrb[112].mxu0  ;;  %v12141_v60 = vpop.f32.mrb[111].mxu1 }
 0x35c   : > { %10959 = vst.msk [vmem:[%s14022_s27 + $0xc0] sm:$0xf] %vm10910_vm5, %v9766_v23  ;;  %v12146_v33 = vpop.f32.mrb[113].mxu0 }
 0x35e   : > { %v9842_v28 = vpop.f32.mrb[112].mxu1 }
 0x35f   : > { %10960 = vst.msk [vmem:[%s14022_s27 + $0xc4] sm:$0xf] %vm10910_vm5, %v9842_v28  ;;  %v9918_v49 = vpop.f32.mrb[114].mxu0  ;;  %v12151_v20 = vpop.f32.mrb[113].mxu1 }
 0x360   : > { %10961 = vst.msk [vmem:[%s14022_s27 + $0xc8] sm:$0xf] %vm10910_vm5, %v9918_v49  ;;  %v12156_v54 = vpop.f32.mrb[115].mxu0 }
 0x362   : > { %v9994_v3 = vpop.f32.mrb[114].mxu1 }
 0x363   : > { %10962 = vst.msk [vmem:[%s14022_s27 + $0xcc] sm:$0xf] %vm10910_vm5, %v9994_v3  ;;  %v10070_v19 = vpop.f32.mrb[116].mxu0  ;;  %v12161_v0 = vpop.f32.mrb[115].mxu1 }
 0x364   : > { %10963 = vst.msk [vmem:[%s14022_s27 + $0xd0] sm:$0xf] %vm10910_vm5, %v10070_v19  ;;  %v12166_v39 = vpop.f32.mrb[117].mxu0 }
 0x366   : > { %v10146_v14 = vpop.f32.mrb[116].mxu1 }
 0x367   : > { %10964 = vst.msk [vmem:[%s14022_s27 + $0xd4] sm:$0xf] %vm10910_vm5, %v10146_v14  ;;  %v10222_v58 = vpop.f32.mrb[118].mxu0  ;;  %v12171_v47 = vpop.f32.mrb[117].mxu1 }
 0x368   : > { %10965 = vst.msk [vmem:[%s14022_s27 + $0xd8] sm:$0xf] %vm10910_vm5, %v10222_v58  ;;  %v12176_v18 = vpop.f32.mrb[119].mxu0 }
 0x36a   : > { %v10298_v59 = vpop.f32.mrb[118].mxu1 }
 0x36b   : > { %10966 = vst.msk [vmem:[%s14022_s27 + $0xdc] sm:$0xf] %vm10910_vm5, %v10298_v59  ;;  %v10374_v56 = vpop.f32.mrb[120].mxu0  ;;  %v12181_v26 = vpop.f32.mrb[119].mxu1 }
 0x36c   : > { %10967 = vst.msk [vmem:[%s14022_s27 + $0xe0] sm:$0xf] %vm10910_vm5, %v10374_v56  ;;  %v12186_v46 = vpop.f32.mrb[121].mxu0 }
 0x36e   : > { %v10450_v42 = vpop.f32.mrb[120].mxu1 }
 0x36f   : > { %10968 = vst.msk [vmem:[%s14022_s27 + $0xe4] sm:$0xf] %vm10910_vm5, %v10450_v42  ;;  %v10526_v31 = vpop.f32.mrb[122].mxu0  ;;  %v12191_v6 = vpop.f32.mrb[121].mxu1 }
 0x370   : > { %10969 = vst.msk [vmem:[%s14022_s27 + $0xe8] sm:$0xf] %vm10910_vm5, %v10526_v31  ;;  %v12196_v13 = vpop.f32.mrb[123].mxu0 }
 0x372   : > { %v10602_v29 = vpop.f32.mrb[122].mxu1 }
 0x373   : > { %10970 = vst.msk [vmem:[%s14022_s27 + $0xec] sm:$0xf] %vm10910_vm5, %v10602_v29  ;;  %v10678_v8 = vpop.f32.mrb[124].mxu0  ;;  %v12201_v7 = vpop.f32.mrb[123].mxu1 }
 0x374   : > { %10971 = vst.msk [vmem:[%s14022_s27 + $0xf0] sm:$0xf] %vm10910_vm5, %v10678_v8  ;;  %v12206_v10 = vpop.f32.mrb[125].mxu0 }
 0x376   : > { %v10754_v55 = vpop.f32.mrb[124].mxu1 }
 0x377   : > { %10972 = vst.msk [vmem:[%s14022_s27 + $0xf4] sm:$0xf] %vm10910_vm5, %v10754_v55  ;;  %v10830_v21 = vpop.f32.mrb[126].mxu0  ;;  %v12211_v35 = vpop.f32.mrb[125].mxu1 }
 0x378   : > { %10973 = vst.msk [vmem:[%s14022_s27 + $0xf8] sm:$0xf] %vm10910_vm5, %v10830_v21  ;;  %v12216_v25 = vpop.f32.mrb[127].mxu0 }
 0x37a   : > { %v10906_v44 = vpop.f32.mrb[126].mxu1 }
 0x37b   : > { %10974 = vst.msk [vmem:[%s14022_s27 + $0xfc] sm:$0xf] %vm10910_vm5, %v10906_v44  ;;  %v12221_v22 = vpop.f32.mrb[127].mxu1 }
 0x37c PF: > { %s13_s12 = sadd.s32 1, %s12494_s12  }
 0x37d   : > { %p10_p4 = scmp.ge.s32.totalorder %s13_s12, 4  }
 0x37f   :  { %12 = sbr.rel (!%p10_p4) target bundleno = 1 (0x1), region = 68 }

</bundles_post_ra>
